<compile_context>
chip_gen: v7x
topology: tpu7x:2x2x1
jax: 0.10.0
libtpu: 0.0.40
codegen_flags: <defaults>
</compile_context>

<pallas_src>
import functools

import jax
import jax.numpy as jnp
from jax.experimental import pallas as pl
from jax.experimental.pallas import tpu as pltpu


# ---------------------------------------------------------------------------
# Pallas matmul kernels (conv / fc hot path): bf16 inputs, f32 accumulation.
# Stats variants additionally emit per-channel column sum / sum-of-squares
# (used to build training-mode BatchNorm statistics without re-reading the
# conv output from HBM).
# ---------------------------------------------------------------------------
def _round_up(x, m):
    return (x + m - 1) // m * m


def _mm_kernel(a_ref, b_ref, o_ref):
    o_ref[...] = jnp.dot(a_ref[...], b_ref[...],
                         preferred_element_type=jnp.float32).astype(o_ref.dtype)


def _mm_stats_kernel(a_ref, b_ref, o_ref, s_ref, ss_ref):
    acc = jnp.dot(a_ref[...], b_ref[...], preferred_element_type=jnp.float32)
    o_ref[...] = acc.astype(o_ref.dtype)
    s_ref[...] = jnp.sum(acc, axis=0, keepdims=True)[None]
    ss_ref[...] = jnp.sum(acc * acc, axis=0, keepdims=True)[None]


def _mm_kernel_k(a_ref, b_ref, o_ref, acc_ref):
    @pl.when(pl.program_id(2) == 0)
    def _():
        acc_ref[...] = jnp.zeros_like(acc_ref)

    acc_ref[...] += jnp.dot(a_ref[...], b_ref[...],
                            preferred_element_type=jnp.float32)

    @pl.when(pl.program_id(2) == pl.num_programs(2) - 1)
    def _():
        o_ref[...] = acc_ref[...].astype(o_ref.dtype)


def _mm_stats_kernel_k(a_ref, b_ref, o_ref, s_ref, ss_ref, acc_ref):
    @pl.when(pl.program_id(2) == 0)
    def _():
        acc_ref[...] = jnp.zeros_like(acc_ref)

    acc_ref[...] += jnp.dot(a_ref[...], b_ref[...],
                            preferred_element_type=jnp.float32)

    @pl.when(pl.program_id(2) == pl.num_programs(2) - 1)
    def _():
        acc = acc_ref[...]
        o_ref[...] = acc.astype(o_ref.dtype)
        s_ref[...] = jnp.sum(acc, axis=0, keepdims=True)[None]
        ss_ref[...] = jnp.sum(acc * acc, axis=0, keepdims=True)[None]


def _pick_tiles(M, K, N):
    """Tile selection: minimal padding (M rounded to native bf16 sublane tile
    of 16), 2-4 K steps when K is big (pipelining), single K step otherwise,
    and at least 2 blocks on a parallel axis so v7x's 2nd TensorCore works."""
    Mp = _round_up(max(M, 1), 16)
    if Mp <= 512:
        tm = Mp
    else:
        tm = 256
        Mp = _round_up(M, tm)

    Kp = _round_up(K, 128)
    if Kp <= 512:
        tk = Kp                                  # single K step (fast path)
    else:
        for cand in (512, 384, 256):
            if Kp % cand == 0:
                tk = cand
                break
        else:
            tk = Kp if Kp <= 1024 else 128

    Np = _round_up(N, 128)
    tn = 256 if (Np % 256 == 0) else 128

    # Megacore (v7x): make sure at least one parallel axis has >=2 blocks.
    if (Mp // tm) == 1 and (Np // tn) == 1:
        if Np >= 256:
            tn = 128
        elif Mp >= 32 and (Mp // 2) % 8 == 0:
            tm = Mp // 2
    return tm, tk, tn, Mp, Kp, Np


def pallas_matmul(a, b, out_dtype=jnp.float32, compute_stats=False):
    """(M, K) @ (K, N) -> (M, N).  Inputs cast to bf16 for the MXU.
    If compute_stats, also returns per-column mean and (population) variance
    of the un-padded result, accumulated in the matmul epilogue."""
    M, K = a.shape
    K2, N = b.shape
    assert K == K2
    tm, tk, tn, Mp, Kp, Np = _pick_tiles(M, K, N)

    a16 = a.astype(jnp.bfloat16)
    b16 = b.astype(jnp.bfloat16)
    if (Mp, Kp) != (M, K):
        a16 = jnp.pad(a16, ((0, Mp - M), (0, Kp - K)))
    if (Kp, Np) != (K, N):
        b16 = jnp.pad(b16, ((0, Kp - K), (0, Np - N)))

    gm, gn, gk = Mp // tm, Np // tn, Kp // tk

    if gk == 1:
        grid = (gm, gn)
        in_specs = [pl.BlockSpec((tm, tk), lambda i, j: (i, 0)),
                    pl.BlockSpec((tk, tn), lambda i, j: (0, j))]
        o_spec = pl.BlockSpec((tm, tn), lambda i, j: (i, j))
        stat_spec = pl.BlockSpec((1, 1, tn), lambda i, j: (i, 0, j))
        kernel = _mm_stats_kernel if compute_stats else _mm_kernel
        scratch = []
        dims = ("parallel", "parallel")
    else:
        grid = (gm, gn, gk)
        in_specs = [pl.BlockSpec((tm, tk), lambda i, j, k: (i, k)),
                    pl.BlockSpec((tk, tn), lambda i, j, k: (k, j))]
        o_spec = pl.BlockSpec((tm, tn), lambda i, j, k: (i, j))
        stat_spec = pl.BlockSpec((1, 1, tn), lambda i, j, k: (i, 0, j))
        kernel = _mm_stats_kernel_k if compute_stats else _mm_kernel_k
        scratch = [pltpu.VMEM((tm, tn), jnp.float32)]
        dims = ("parallel", "parallel", "arbitrary")

    if compute_stats:
        out_shape = (jax.ShapeDtypeStruct((Mp, Np), out_dtype),
                     jax.ShapeDtypeStruct((gm, 1, Np), jnp.float32),
                     jax.ShapeDtypeStruct((gm, 1, Np), jnp.float32))
        out_specs = (o_spec, stat_spec, stat_spec)
    else:
        out_shape = jax.ShapeDtypeStruct((Mp, Np), out_dtype)
        out_specs = o_spec

    outs = pl.pallas_call(
        kernel,
        out_shape=out_shape,
        grid_spec=pltpu.PrefetchScalarGridSpec(
            num_scalar_prefetch=0,
            grid=grid,
            in_specs=in_specs,
            out_specs=out_specs,
            scratch_shapes=scratch,
        ),
        compiler_params=pltpu.CompilerParams(
            dimension_semantics=dims,
            vmem_limit_bytes=32 * 1024 * 1024),
    )(a16, b16)

    if compute_stats:
        out, col_sum, col_sumsq = outs
        total = jnp.sum(col_sum, axis=(0, 1))[:N]          # padded rows are 0
        total_sq = jnp.sum(col_sumsq, axis=(0, 1))[:N]
        mean = total / M
        var = total_sq / M - mean * mean
        return out[:M, :N], mean, var
    return outs[:M, :N]


# ---------------------------------------------------------------------------
# Fused elementwise Pallas kernels (BN affine / +residual / ReLU), lane-dense
# (>=128) channel layout, bf16 outputs (next conv consumes bf16).
# ---------------------------------------------------------------------------
def _bn_relu_kernel(x_ref, s_ref, b_ref, o_ref, *, relu):
    v = x_ref[...] * s_ref[...] + b_ref[...]
    if relu:
        v = jnp.maximum(v, 0.0)
    o_ref[...] = v.astype(o_ref.dtype)


def _bn_add_relu_kernel(x_ref, s_ref, b_ref, y_ref, o_ref):
    v = (x_ref[...] * s_ref[...] + b_ref[...]
         + y_ref[...].astype(jnp.float32))
    o_ref[...] = jnp.maximum(v, 0.0).astype(o_ref.dtype)


def _bn2_add_relu_kernel(x_ref, s1_ref, b1_ref, y_ref, s2_ref, b2_ref, o_ref):
    v = (x_ref[...] * s1_ref[...] + b1_ref[...]
         + y_ref[...].astype(jnp.float32) * s2_ref[...] + b2_ref[...])
    o_ref[...] = jnp.maximum(v, 0.0).astype(o_ref.dtype)


def _lane_pack(m, c):
    """Pick (rows, lanes, rep) so the last dim is lane-dense (>=128)."""
    if c % 128 == 0:
        return m, c, 1
    if c < 128 and 128 % c == 0 and (m * c) % 128 == 0:
        rep = 128 // c
        return (m * c) // 128, 128, rep
    return m, c, 1   # fallback: full-dim block (masked stores)


def _fused_elementwise(kernel, operands, M, C, out_dtype=jnp.bfloat16):
    """operands: ordered list of (array, kind); kind 'row' -> (M, C) tensor,
    kind 'chan' -> (1, C) per-channel scale/shift."""
    R, L, rep = _lane_pack(M, C)
    Rp8 = _round_up(R, 8)
    if Rp8 <= 512:
        bm, Rp = Rp8, Rp8
    else:
        bm = 512                                  # ~85% of HBM roofline tile
        Rp = _round_up(R, bm)

    args, specs = [], []
    for arr, kind in operands:
        if kind == "row":
            a = arr.reshape(R, L)
            if Rp != R:
                a = jnp.pad(a, ((0, Rp - R), (0, 0)))
            args.append(a)
            specs.append(pl.BlockSpec((bm, L), lambda i: (i, 0)))
        else:
            a = jnp.tile(arr, (1, rep)) if rep > 1 else arr
            args.append(a.astype(jnp.float32))
            specs.append(pl.BlockSpec((1, L), lambda i: (0, 0)))

    out = pl.pallas_call(
        kernel,
        out_shape=jax.ShapeDtypeStruct((Rp, L), out_dtype),
        grid_spec=pltpu.PrefetchScalarGridSpec(
            num_scalar_prefetch=0,
            grid=(Rp // bm,),
            in_specs=specs,
            out_specs=pl.BlockSpec((bm, L), lambda i: (i, 0)),
        ),
        compiler_params=pltpu.CompilerParams(
            dimension_semantics=("parallel",),
            vmem_limit_bytes=32 * 1024 * 1024),
    )(*args)
    return out[:R].reshape(M, C)


# ---------------------------------------------------------------------------
# Conv / pooling / BN helpers (glue around the Pallas kernels)
# ---------------------------------------------------------------------------
def conv2d(x, cw, stride=1, padding=0):
    """x: NHWC; cw: pre-packed conv weight dict.  Returns (out_f32, mean, var)
    with BN batch statistics produced by the matmul epilogue.
    No bias: every conv here feeds a training-mode BN which cancels it."""
    N, H, W, C = x.shape
    kh, kw, O = cw["kh"], cw["kw"], cw["cout"]
    assert cw["cin"] == C
    x16 = x.astype(jnp.bfloat16)                 # halve im2col HBM traffic
    xp = jnp.pad(x16, ((0, 0), (padding, padding), (padding, padding), (0, 0)))
    Ho = (H + 2 * padding - kh) // stride + 1
    Wo = (W + 2 * padding - kw) // stride + 1
    if kh == 1 and kw == 1:
        patches = xp[:, 0:stride * Ho:stride, 0:stride * Wo:stride, :]
        patches = patches.reshape(N * Ho * Wo, C)
    else:
        # TODO(synk): im2col still materialized in HBM (one write/read of the
        #             kh*kw-expanded buffer); fusing the taps into the matmul
        #             K grid axis would remove it.
        cols = [xp[:, ki:ki + stride * Ho:stride, kj:kj + stride * Wo:stride, :]
                for ki in range(kh) for kj in range(kw)]
        patches = jnp.concatenate(cols, axis=-1).reshape(N * Ho * Wo,
                                                         kh * kw * C)
    out, mean, var = pallas_matmul(patches, cw["w"], compute_stats=True)
    return out.reshape(N, Ho, Wo, O), mean, var


def maxpool2d(x, k=3, stride=2, padding=1):
    # TODO(synk): shifted-slice max in JAX (fused by XLA under jit); a
    #             dedicated window kernel only pays off at larger spatial sizes.
    N, H, W, C = x.shape
    xp = jnp.pad(x, ((0, 0), (padding, padding), (padding, padding), (0, 0)),
                 constant_values=-jnp.inf)
    Ho = (H + 2 * padding - k) // stride + 1
    Wo = (W + 2 * padding - k) // stride + 1
    out = None
    for ki in range(k):
        for kj in range(k):
            sl = xp[:, ki:ki + stride * Ho:stride,
                    kj:kj + stride * Wo:stride, :]
            out = sl if out is None else jnp.maximum(out, sl)
    return out


def _bn_affine(mean, var, gamma, beta, eps=1e-5):
    """Training-mode (batch statistics) BN as per-channel scale/shift."""
    scale = gamma * jax.lax.rsqrt(var + eps)
    shift = beta - mean * scale
    return scale.reshape(1, -1), shift.reshape(1, -1)


def bn_relu(x_nhwc, mean, var, gamma, beta, relu=True):
    N, H, W, C = x_nhwc.shape
    s, b = _bn_affine(mean, var, gamma, beta)
    kernel = functools.partial(_bn_relu_kernel, relu=relu)
    out = _fused_elementwise(
        kernel,
        [(x_nhwc.reshape(-1, C), "row"), (s, "chan"), (b, "chan")],
        N * H * W, C)
    return out.reshape(N, H, W, C)


def bn_add_relu_identity(x_nhwc, mean, var, gamma, beta, y_nhwc):
    """relu( BN(x) + y ) — identity-shortcut merge (y may be bf16)."""
    N, H, W, C = x_nhwc.shape
    s, b = _bn_affine(mean, var, gamma, beta)
    out = _fused_elementwise(
        _bn_add_relu_kernel,
        [(x_nhwc.reshape(-1, C), "row"), (s, "chan"), (b, "chan"),
         (y_nhwc.reshape(-1, C), "row")],
        N * H * W, C)
    return out.reshape(N, H, W, C)


def bn2_add_relu(x_nhwc, m1, v1, g1, b1, y_nhwc, m2, v2, g2, b2):
    """relu( BN(x) + BN(y) ) — projection-shortcut merge."""
    N, H, W, C = x_nhwc.shape
    s1, sh1 = _bn_affine(m1, v1, g1, b1)
    s2, sh2 = _bn_affine(m2, v2, g2, b2)
    out = _fused_elementwise(
        _bn2_add_relu_kernel,
        [(x_nhwc.reshape(-1, C), "row"), (s1, "chan"), (sh1, "chan"),
         (y_nhwc.reshape(-1, C), "row"), (s2, "chan"), (sh2, "chan")],
        N * H * W, C)
    return out.reshape(N, H, W, C)


# ---------------------------------------------------------------------------
# ResNet-18 (ResidualBlock path) forward
# ---------------------------------------------------------------------------
def residual_block(x, p):
    h, m1, v1 = conv2d(x, p["conv1"], stride=p["stride"], padding=1)
    h = bn_relu(h, m1, v1, p["bn1_g"], p["bn1_b"], relu=True)
    h2, m2, v2 = conv2d(h, p["conv2"], stride=1, padding=1)
    if p["use_conv1x1"]:
        sc, ms, vs = conv2d(x, p["sc"], stride=p["stride"], padding=0)
        return bn2_add_relu(h2, m2, v2, p["bn2_g"], p["bn2_b"],
                            sc, ms, vs, p["sc_bn_g"], p["sc_bn_b"])
    return bn_add_relu_identity(h2, m2, v2, p["bn2_g"], p["bn2_b"], x)


def resnet_forward(x_nchw, p):
    x = jnp.transpose(x_nchw, (0, 2, 3, 1)).astype(jnp.float32)  # NCHW -> NHWC
    h, m, v = conv2d(x, p["conv1"], stride=2, padding=3)
    h = bn_relu(h, m, v, p["bn1_g"], p["bn1_b"], relu=True)      # bf16 out
    h = maxpool2d(h, k=3, stride=2, padding=1)
    for bp in p["blocks"]:
        h = residual_block(h, bp)
    pooled = jnp.mean(h.astype(jnp.float32), axis=(1, 2))  # AdaptiveAvgPool2d
    return pallas_matmul(pooled, p["fc_w"]) + p["fc_b"]            # (N, 1000)


# ---------------------------------------------------------------------------
# Deterministic synthetic parameters (ResNet-18 shapes, in_channels=3).
# Conv weights are pre-packed once: (O,C,kh,kw) -> (kh*kw*C, O) bf16.
# ---------------------------------------------------------------------------
def _pack_conv(w):
    O, C, kh, kw = w.shape
    w2 = jnp.transpose(w, (2, 3, 1, 0)).reshape(kh * kw * C, O)
    return {"w": w2.astype(jnp.bfloat16), "kh": kh, "kw": kw,
            "cin": C, "cout": O}


def init_resnet18_params(key, in_channels=3):
    keys = iter(jax.random.split(key, 256))

    def conv_init(k, o, c, kh, kw):
        # No bias: it is exactly cancelled by the following training-mode BN.
        return _pack_conv(0.05 * jax.random.normal(k, (o, c, kh, kw),
                                                   jnp.float32))

    def bn_init(k, c):
        k1, k2 = jax.random.split(k)
        g = 1.0 + 0.1 * jax.random.normal(k1, (c,), jnp.float32)
        b = 0.1 * jax.random.normal(k2, (c,), jnp.float32)
        return g, b

    p = {}
    p["conv1"] = conv_init(next(keys), 64, in_channels, 7, 7)
    p["bn1_g"], p["bn1_b"] = bn_init(next(keys), 64)

    arch = [2, 2, 2, 2]  # ResNet-18
    blocks = []
    in_ch = 64
    for i, num_blocks in enumerate(arch):
        stride = 1 if i == 0 else 2
        out_ch = 64 * 2 ** i
        for j in range(num_blocks):
            bp = {}
            bp["stride"] = stride if j == 0 else 1
            # NOTE: mirrors the reference exactly — `stride` here is the *layer*
            # stride, so non-first blocks of strided layers still get a 1x1
            # (stride-1) projection shortcut.
            bp["use_conv1x1"] = (in_ch != out_ch) or (stride != 1)
            bp["conv1"] = conv_init(next(keys), out_ch, in_ch, 3, 3)
            bp["bn1_g"], bp["bn1_b"] = bn_init(next(keys), out_ch)
            bp["conv2"] = conv_init(next(keys), out_ch, out_ch, 3, 3)
            bp["bn2_g"], bp["bn2_b"] = bn_init(next(keys), out_ch)
            if bp["use_conv1x1"]:
                bp["sc"] = conv_init(next(keys), out_ch, in_ch, 1, 1)
                bp["sc_bn_g"], bp["sc_bn_b"] = bn_init(next(keys), out_ch)
            blocks.append(bp)
            in_ch = out_ch
    p["blocks"] = blocks

    k1, k2 = jax.random.split(next(keys))
    p["fc_w"] = (0.02 * jax.random.normal(k1, (512, 1000), jnp.float32)
                 ).astype(jnp.bfloat16)
    p["fc_b"] = 0.01 * jax.random.normal(k2, (1000,), jnp.float32)
    return p


# ---------------------------------------------------------------------------
if __name__ == "__main__":
    key = jax.random.PRNGKey(0)
    k_params, k_input = jax.random.split(key)
    params = init_resnet18_params(k_params, in_channels=3)

    # Small input consistent with the module: NCHW, batch=2, 3 channels, 32x32.
    x = jax.random.normal(k_input, (2, 3, 32, 32), jnp.float32)

    # Whole forward under jit: all glue (im2col pads/concats, reshapes, BN
    # scale/shift math, pooling) compiles into one program around the kernels.
    forward = jax.jit(lambda inp: resnet_forward(inp, params))

    logits = forward(x)
    jax.block_until_ready(logits)
    assert logits.shape == (2, 1000)
    assert bool(jnp.all(jnp.isfinite(logits)))
    print("KERNEL_OK")
</pallas_src>

<mosaic_0001>
module attributes {stable_mosaic.version = 11 : i64} {
  func.func @_mm_stats_kernel(%arg0: i32, %arg1: i32, %arg2: memref<256x256xbf16, #tpu.memory_space<vmem>>, %arg3: memref<256x128xbf16, #tpu.memory_space<vmem>>, %arg4: memref<256x128xf32, #tpu.memory_space<vmem>>, %arg5: memref<1x1x128xf32, #tpu.memory_space<vmem>>, %arg6: memref<1x1x128xf32, #tpu.memory_space<vmem>>) attributes {dimension_semantics = [#tpu.dimension_semantics<parallel>, #tpu.dimension_semantics<parallel>], iteration_bounds = array<i64: 2, 1>, scalar_prefetch = 0 : i64, scratch_operands = 0 : i64, tpu.core_type = #tpu.core_type<tc>, window_params = [{transform_indices = @transform_0, window_bounds = array<i64: 256, 256>}, {transform_indices = @transform_1, window_bounds = array<i64: 256, 128>}, {transform_indices = @transform_2, window_bounds = array<i64: 256, 128>}, {transform_indices = @transform_3, window_bounds = array<i64: 1, 1, 128>}, {transform_indices = @transform_4, window_bounds = array<i64: 1, 1, 128>}]} {
    %c0 = arith.constant 0 : index
    %c0_0 = arith.constant 0 : index
    %0 = vector.load %arg2[%c0, %c0_0] : memref<256x256xbf16, #tpu.memory_space<vmem>>, vector<256x256xbf16>
    %c0_1 = arith.constant 0 : index
    %c0_2 = arith.constant 0 : index
    %1 = vector.load %arg3[%c0_1, %c0_2] : memref<256x128xbf16, #tpu.memory_space<vmem>>, vector<256x128xbf16>
    %cst = arith.constant dense<0.000000e+00> : vector<256x128xf32>
    %2 = tpu.matmul %0, %1, %cst {dimension_numbers = #tpu.dot_dimension_numbers<[1], [0], [0], [1], [0, 0, 1, 1], [], []>} : vector<256x256xbf16>, vector<256x128xbf16>, vector<256x128xf32> -> vector<256x128xf32>
    %c0_3 = arith.constant 0 : index
    %c0_4 = arith.constant 0 : index
    %3 = vector.load %arg4[%c0_3, %c0_4] : memref<256x128xf32, #tpu.memory_space<vmem>>, vector<256x128xf32>
    tpu.vector_store %arg4[%c0_3, %c0_4], %2 {strides = array<i32>} : memref<256x128xf32, #tpu.memory_space<vmem>>, vector<256x128xf32>,
    %cst_5 = arith.constant dense<0.000000e+00> : vector<128xf32>
    %4 = vector.multi_reduction <add>, %2, %cst_5 [0] : vector<256x128xf32> to vector<128xf32>
    %5 = vector.shape_cast %4 : vector<128xf32> to vector<1x128xf32>
    %6 = vector.shape_cast %5 : vector<1x128xf32> to vector<1x1x128xf32>
    %c0_6 = arith.constant 0 : index
    %c0_7 = arith.constant 0 : index
    %c0_8 = arith.constant 0 : index
    %7 = vector.load %arg5[%c0_6, %c0_7, %c0_8] : memref<1x1x128xf32, #tpu.memory_space<vmem>>, vector<1x1x128xf32>
    tpu.vector_store %arg5[%c0_6, %c0_7, %c0_8], %6 {strides = array<i32>} : memref<1x1x128xf32, #tpu.memory_space<vmem>>, vector<1x1x128xf32>,
    %8 = arith.mulf %2, %2 : vector<256x128xf32>
    %cst_9 = arith.constant dense<0.000000e+00> : vector<128xf32>
    %9 = vector.multi_reduction <add>, %8, %cst_9 [0] : vector<256x128xf32> to vector<128xf32>
    %10 = vector.shape_cast %9 : vector<128xf32> to vector<1x128xf32>
    %11 = vector.shape_cast %10 : vector<1x128xf32> to vector<1x1x128xf32>
    %c0_10 = arith.constant 0 : index
    %c0_11 = arith.constant 0 : index
    %c0_12 = arith.constant 0 : index
    %12 = vector.load %arg6[%c0_10, %c0_11, %c0_12] : memref<1x1x128xf32, #tpu.memory_space<vmem>>, vector<1x1x128xf32>
    tpu.vector_store %arg6[%c0_10, %c0_11, %c0_12], %11 {strides = array<i32>} : memref<1x1x128xf32, #tpu.memory_space<vmem>>, vector<1x1x128xf32>,
    return
  }
  func.func @transform_0(%arg0: i32, %arg1: i32) -> (i32, i32) {
    %c0_i32 = arith.constant 0 : i32
    %c0_i32_0 = arith.constant 0 : i32
    return %arg0, %c0_i32 : i32, i32
  }
  func.func @transform_1(%arg0: i32, %arg1: i32) -> (i32, i32) {
    %c0_i32 = arith.constant 0 : i32
    %c0_i32_0 = arith.constant 0 : i32
    return %c0_i32, %arg1 : i32, i32
  }
  func.func @transform_2(%arg0: i32, %arg1: i32) -> (i32, i32) {
    %c0_i32 = arith.constant 0 : i32
    return %arg0, %arg1 : i32, i32
  }
  func.func @transform_3(%arg0: i32, %arg1: i32) -> (i32, i32, i32) {
    %c0_i32 = arith.constant 0 : i32
    %c0_i32_0 = arith.constant 0 : i32
    return %arg0, %c0_i32, %arg1 : i32, i32, i32
  }
  func.func @transform_4(%arg0: i32, %arg1: i32) -> (i32, i32, i32) {
    %c0_i32 = arith.constant 0 : i32
    %c0_i32_0 = arith.constant 0 : i32
    return %arg0, %c0_i32, %arg1 : i32, i32, i32
  }
}

module attributes {stable_mosaic.version = 11 : i64} {
  func.func @_bn_relu_kernel(%arg0: i32, %arg1: memref<256x128xf32, #tpu.memory_space<vmem>>, %arg2: memref<1x128xf32, #tpu.memory_space<vmem>>, %arg3: memref<1x128xf32, #tpu.memory_space<vmem>>, %arg4: memref<256x128xbf16, #tpu.memory_space<vmem>>) attributes {dimension_semantics = [#tpu.dimension_semantics<parallel>], iteration_bounds = array<i64: 1>, scalar_prefetch = 0 : i64, scratch_operands = 0 : i64, tpu.core_type = #tpu.core_type<tc>, window_params = [{transform_indices = @transform_0, window_bounds = array<i64: 256, 128>}, {pipeline_mode = #tpu.pipeline_mode<synchronous>, transform_indices = @transform_1, window_bounds = array<i64: 1, 128>}, {pipeline_mode = #tpu.pipeline_mode<synchronous>, transform_indices = @transform_2, window_bounds = array<i64: 1, 128>}, {transform_indices = @transform_3, window_bounds = array<i64: 256, 128>}]} {
    %c0 = arith.constant 0 : index
    %c0_0 = arith.constant 0 : index
    %0 = vector.load %arg1[%c0, %c0_0] : memref<256x128xf32, #tpu.memory_space<vmem>>, vector<256x128xf32>
    %c0_1 = arith.constant 0 : index
    %c0_2 = arith.constant 0 : index
    %1 = vector.load %arg2[%c0_1, %c0_2] : memref<1x128xf32, #tpu.memory_space<vmem>>, vector<1x128xf32>
    %2 = vector.broadcast %1 : vector<1x128xf32> to vector<256x128xf32>
    %3 = arith.mulf %0, %2 : vector<256x128xf32>
    %c0_3 = arith.constant 0 : index
    %c0_4 = arith.constant 0 : index
    %4 = vector.load %arg3[%c0_3, %c0_4] : memref<1x128xf32, #tpu.memory_space<vmem>>, vector<1x128xf32>
    %5 = vector.broadcast %4 : vector<1x128xf32> to vector<256x128xf32>
    %6 = arith.addf %3, %5 : vector<256x128xf32>
    %cst = arith.constant 0.000000e+00 : f32
    %7 = vector.broadcast %cst : f32 to vector<256x128xf32>
    %8 = arith.maximumf %6, %7 : vector<256x128xf32>
    %9 = arith.truncf %8 : vector<256x128xf32> to vector<256x128xbf16>
    %c0_5 = arith.constant 0 : index
    %c0_6 = arith.constant 0 : index
    %10 = vector.load %arg4[%c0_5, %c0_6] : memref<256x128xbf16, #tpu.memory_space<vmem>>, vector<256x128xbf16>
    tpu.vector_store %arg4[%c0_5, %c0_6], %9 {strides = array<i32>} : memref<256x128xbf16, #tpu.memory_space<vmem>>, vector<256x128xbf16>,
    return
  }
  func.func @transform_0(%arg0: i32) -> (i32, i32) {
    %c0_i32 = arith.constant 0 : i32
    %c0_i32_0 = arith.constant 0 : i32
    return %arg0, %c0_i32 : i32, i32
  }
  func.func @transform_1(%arg0: i32) -> (i32, i32) {
    %c0_i32 = arith.constant 0 : i32
    %c0_i32_0 = arith.constant 0 : i32
    %c0_i32_1 = arith.constant 0 : i32
    return %c0_i32, %c0_i32_0 : i32, i32
  }
  func.func @transform_2(%arg0: i32) -> (i32, i32) {
    %c0_i32 = arith.constant 0 : i32
    %c0_i32_0 = arith.constant 0 : i32
    %c0_i32_1 = arith.constant 0 : i32
    return %c0_i32, %c0_i32_0 : i32, i32
  }
  func.func @transform_3(%arg0: i32) -> (i32, i32) {
    %c0_i32 = arith.constant 0 : i32
    %c0_i32_0 = arith.constant 0 : i32
    return %arg0, %c0_i32 : i32, i32
  }
}

module attributes {stable_mosaic.version = 11 : i64} {
  func.func @_mm_stats_kernel(%arg0: i32, %arg1: i32, %arg2: memref<64x640xbf16, #tpu.memory_space<vmem>>, %arg3: memref<640x128xbf16, #tpu.memory_space<vmem>>, %arg4: memref<64x128xf32, #tpu.memory_space<vmem>>, %arg5: memref<1x1x128xf32, #tpu.memory_space<vmem>>, %arg6: memref<1x1x128xf32, #tpu.memory_space<vmem>>) attributes {dimension_semantics = [#tpu.dimension_semantics<parallel>, #tpu.dimension_semantics<parallel>], iteration_bounds = array<i64: 2, 1>, scalar_prefetch = 0 : i64, scratch_operands = 0 : i64, tpu.core_type = #tpu.core_type<tc>, window_params = [{transform_indices = @transform_0, window_bounds = array<i64: 64, 640>}, {transform_indices = @transform_1, window_bounds = array<i64: 640, 128>}, {transform_indices = @transform_2, window_bounds = array<i64: 64, 128>}, {transform_indices = @transform_3, window_bounds = array<i64: 1, 1, 128>}, {transform_indices = @transform_4, window_bounds = array<i64: 1, 1, 128>}]} {
    %c0 = arith.constant 0 : index
    %c0_0 = arith.constant 0 : index
    %0 = vector.load %arg2[%c0, %c0_0] : memref<64x640xbf16, #tpu.memory_space<vmem>>, vector<64x640xbf16>
    %c0_1 = arith.constant 0 : index
    %c0_2 = arith.constant 0 : index
    %1 = vector.load %arg3[%c0_1, %c0_2] : memref<640x128xbf16, #tpu.memory_space<vmem>>, vector<640x128xbf16>
    %cst = arith.constant dense<0.000000e+00> : vector<64x128xf32>
    %2 = tpu.matmul %0, %1, %cst {dimension_numbers = #tpu.dot_dimension_numbers<[1], [0], [0], [1], [0, 0, 1, 1], [], []>} : vector<64x640xbf16>, vector<640x128xbf16>, vector<64x128xf32> -> vector<64x128xf32>
    %c0_3 = arith.constant 0 : index
    %c0_4 = arith.constant 0 : index
    %3 = vector.load %arg4[%c0_3, %c0_4] : memref<64x128xf32, #tpu.memory_space<vmem>>, vector<64x128xf32>
    tpu.vector_store %arg4[%c0_3, %c0_4], %2 {strides = array<i32>} : memref<64x128xf32, #tpu.memory_space<vmem>>, vector<64x128xf32>,
    %cst_5 = arith.constant dense<0.000000e+00> : vector<128xf32>
    %4 = vector.multi_reduction <add>, %2, %cst_5 [0] : vector<64x128xf32> to vector<128xf32>
    %5 = vector.shape_cast %4 : vector<128xf32> to vector<1x128xf32>
    %6 = vector.shape_cast %5 : vector<1x128xf32> to vector<1x1x128xf32>
    %c0_6 = arith.constant 0 : index
    %c0_7 = arith.constant 0 : index
    %c0_8 = arith.constant 0 : index
    %7 = vector.load %arg5[%c0_6, %c0_7, %c0_8] : memref<1x1x128xf32, #tpu.memory_space<vmem>>, vector<1x1x128xf32>
    tpu.vector_store %arg5[%c0_6, %c0_7, %c0_8], %6 {strides = array<i32>} : memref<1x1x128xf32, #tpu.memory_space<vmem>>, vector<1x1x128xf32>,
    %8 = arith.mulf %2, %2 : vector<64x128xf32>
    %cst_9 = arith.constant dense<0.000000e+00> : vector<128xf32>
    %9 = vector.multi_reduction <add>, %8, %cst_9 [0] : vector<64x128xf32> to vector<128xf32>
    %10 = vector.shape_cast %9 : vector<128xf32> to vector<1x128xf32>
    %11 = vector.shape_cast %10 : vector<1x128xf32> to vector<1x1x128xf32>
    %c0_10 = arith.constant 0 : index
    %c0_11 = arith.constant 0 : index
    %c0_12 = arith.constant 0 : index
    %12 = vector.load %arg6[%c0_10, %c0_11, %c0_12] : memref<1x1x128xf32, #tpu.memory_space<vmem>>, vector<1x1x128xf32>
    tpu.vector_store %arg6[%c0_10, %c0_11, %c0_12], %11 {strides = array<i32>} : memref<1x1x128xf32, #tpu.memory_space<vmem>>, vector<1x1x128xf32>,
    return
  }
  func.func @transform_0(%arg0: i32, %arg1: i32) -> (i32, i32) {
    %c0_i32 = arith.constant 0 : i32
    %c0_i32_0 = arith.constant 0 : i32
    return %arg0, %c0_i32 : i32, i32
  }
  func.func @transform_1(%arg0: i32, %arg1: i32) -> (i32, i32) {
    %c0_i32 = arith.constant 0 : i32
    %c0_i32_0 = arith.constant 0 : i32
    return %c0_i32, %arg1 : i32, i32
  }
  func.func @transform_2(%arg0: i32, %arg1: i32) -> (i32, i32) {
    %c0_i32 = arith.constant 0 : i32
    return %arg0, %arg1 : i32, i32
  }
  func.func @transform_3(%arg0: i32, %arg1: i32) -> (i32, i32, i32) {
    %c0_i32 = arith.constant 0 : i32
    %c0_i32_0 = arith.constant 0 : i32
    return %arg0, %c0_i32, %arg1 : i32, i32, i32
  }
  func.func @transform_4(%arg0: i32, %arg1: i32) -> (i32, i32, i32) {
    %c0_i32 = arith.constant 0 : i32
    %c0_i32_0 = arith.constant 0 : i32
    return %arg0, %c0_i32, %arg1 : i32, i32, i32
  }
}

module attributes {stable_mosaic.version = 11 : i64} {
  func.func @_bn_relu_kernel(%arg0: i32, %arg1: memref<64x128xf32, #tpu.memory_space<vmem>>, %arg2: memref<1x128xf32, #tpu.memory_space<vmem>>, %arg3: memref<1x128xf32, #tpu.memory_space<vmem>>, %arg4: memref<64x128xbf16, #tpu.memory_space<vmem>>) attributes {dimension_semantics = [#tpu.dimension_semantics<parallel>], iteration_bounds = array<i64: 1>, scalar_prefetch = 0 : i64, scratch_operands = 0 : i64, tpu.core_type = #tpu.core_type<tc>, window_params = [{transform_indices = @transform_0, window_bounds = array<i64: 64, 128>}, {pipeline_mode = #tpu.pipeline_mode<synchronous>, transform_indices = @transform_1, window_bounds = array<i64: 1, 128>}, {pipeline_mode = #tpu.pipeline_mode<synchronous>, transform_indices = @transform_2, window_bounds = array<i64: 1, 128>}, {transform_indices = @transform_3, window_bounds = array<i64: 64, 128>}]} {
    %c0 = arith.constant 0 : index
    %c0_0 = arith.constant 0 : index
    %0 = vector.load %arg1[%c0, %c0_0] : memref<64x128xf32, #tpu.memory_space<vmem>>, vector<64x128xf32>
    %c0_1 = arith.constant 0 : index
    %c0_2 = arith.constant 0 : index
    %1 = vector.load %arg2[%c0_1, %c0_2] : memref<1x128xf32, #tpu.memory_space<vmem>>, vector<1x128xf32>
    %2 = vector.broadcast %1 : vector<1x128xf32> to vector<64x128xf32>
    %3 = arith.mulf %0, %2 : vector<64x128xf32>
    %c0_3 = arith.constant 0 : index
    %c0_4 = arith.constant 0 : index
    %4 = vector.load %arg3[%c0_3, %c0_4] : memref<1x128xf32, #tpu.memory_space<vmem>>, vector<1x128xf32>
    %5 = vector.broadcast %4 : vector<1x128xf32> to vector<64x128xf32>
    %6 = arith.addf %3, %5 : vector<64x128xf32>
    %cst = arith.constant 0.000000e+00 : f32
    %7 = vector.broadcast %cst : f32 to vector<64x128xf32>
    %8 = arith.maximumf %6, %7 : vector<64x128xf32>
    %9 = arith.truncf %8 : vector<64x128xf32> to vector<64x128xbf16>
    %c0_5 = arith.constant 0 : index
    %c0_6 = arith.constant 0 : index
    %10 = vector.load %arg4[%c0_5, %c0_6] : memref<64x128xbf16, #tpu.memory_space<vmem>>, vector<64x128xbf16>
    tpu.vector_store %arg4[%c0_5, %c0_6], %9 {strides = array<i32>} : memref<64x128xbf16, #tpu.memory_space<vmem>>, vector<64x128xbf16>,
    return
  }
  func.func @transform_0(%arg0: i32) -> (i32, i32) {
    %c0_i32 = arith.constant 0 : i32
    %c0_i32_0 = arith.constant 0 : i32
    return %arg0, %c0_i32 : i32, i32
  }
  func.func @transform_1(%arg0: i32) -> (i32, i32) {
    %c0_i32 = arith.constant 0 : i32
    %c0_i32_0 = arith.constant 0 : i32
    %c0_i32_1 = arith.constant 0 : i32
    return %c0_i32, %c0_i32_0 : i32, i32
  }
  func.func @transform_2(%arg0: i32) -> (i32, i32) {
    %c0_i32 = arith.constant 0 : i32
    %c0_i32_0 = arith.constant 0 : i32
    %c0_i32_1 = arith.constant 0 : i32
    return %c0_i32, %c0_i32_0 : i32, i32
  }
  func.func @transform_3(%arg0: i32) -> (i32, i32) {
    %c0_i32 = arith.constant 0 : i32
    %c0_i32_0 = arith.constant 0 : i32
    return %arg0, %c0_i32 : i32, i32
  }
}

module attributes {stable_mosaic.version = 11 : i64} {
  func.func @_bn_add_relu_kernel(%arg0: i32, %arg1: memref<64x128xf32, #tpu.memory_space<vmem>>, %arg2: memref<1x128xf32, #tpu.memory_space<vmem>>, %arg3: memref<1x128xf32, #tpu.memory_space<vmem>>, %arg4: memref<64x128xbf16, #tpu.memory_space<vmem>>, %arg5: memref<64x128xbf16, #tpu.memory_space<vmem>>) attributes {dimension_semantics = [#tpu.dimension_semantics<parallel>], iteration_bounds = array<i64: 1>, scalar_prefetch = 0 : i64, scratch_operands = 0 : i64, tpu.core_type = #tpu.core_type<tc>, window_params = [{transform_indices = @transform_0, window_bounds = array<i64: 64, 128>}, {pipeline_mode = #tpu.pipeline_mode<synchronous>, transform_indices = @transform_1, window_bounds = array<i64: 1, 128>}, {pipeline_mode = #tpu.pipeline_mode<synchronous>, transform_indices = @transform_2, window_bounds = array<i64: 1, 128>}, {transform_indices = @transform_3, window_bounds = array<i64: 64, 128>}, {transform_indices = @transform_4, window_bounds = array<i64: 64, 128>}]} {
    %c0 = arith.constant 0 : index
    %c0_0 = arith.constant 0 : index
    %0 = vector.load %arg1[%c0, %c0_0] : memref<64x128xf32, #tpu.memory_space<vmem>>, vector<64x128xf32>
    %c0_1 = arith.constant 0 : index
    %c0_2 = arith.constant 0 : index
    %1 = vector.load %arg2[%c0_1, %c0_2] : memref<1x128xf32, #tpu.memory_space<vmem>>, vector<1x128xf32>
    %2 = vector.broadcast %1 : vector<1x128xf32> to vector<64x128xf32>
    %3 = arith.mulf %0, %2 : vector<64x128xf32>
    %c0_3 = arith.constant 0 : index
    %c0_4 = arith.constant 0 : index
    %4 = vector.load %arg3[%c0_3, %c0_4] : memref<1x128xf32, #tpu.memory_space<vmem>>, vector<1x128xf32>
    %5 = vector.broadcast %4 : vector<1x128xf32> to vector<64x128xf32>
    %6 = arith.addf %3, %5 : vector<64x128xf32>
    %c0_5 = arith.constant 0 : index
    %c0_6 = arith.constant 0 : index
    %7 = vector.load %arg4[%c0_5, %c0_6] : memref<64x128xbf16, #tpu.memory_space<vmem>>, vector<64x128xbf16>
    %8 = arith.extf %7 : vector<64x128xbf16> to vector<64x128xf32>
    %9 = arith.addf %6, %8 : vector<64x128xf32>
    %cst = arith.constant 0.000000e+00 : f32
    %10 = vector.broadcast %cst : f32 to vector<64x128xf32>
    %11 = arith.maximumf %9, %10 : vector<64x128xf32>
    %12 = arith.truncf %11 : vector<64x128xf32> to vector<64x128xbf16>
    %c0_7 = arith.constant 0 : index
    %c0_8 = arith.constant 0 : index
    %13 = vector.load %arg5[%c0_7, %c0_8] : memref<64x128xbf16, #tpu.memory_space<vmem>>, vector<64x128xbf16>
    tpu.vector_store %arg5[%c0_7, %c0_8], %12 {strides = array<i32>} : memref<64x128xbf16, #tpu.memory_space<vmem>>, vector<64x128xbf16>,
    return
  }
  func.func @transform_0(%arg0: i32) -> (i32, i32) {
    %c0_i32 = arith.constant 0 : i32
    %c0_i32_0 = arith.constant 0 : i32
    return %arg0, %c0_i32 : i32, i32
  }
  func.func @transform_1(%arg0: i32) -> (i32, i32) {
    %c0_i32 = arith.constant 0 : i32
    %c0_i32_0 = arith.constant 0 : i32
    %c0_i32_1 = arith.constant 0 : i32
    return %c0_i32, %c0_i32_0 : i32, i32
  }
  func.func @transform_2(%arg0: i32) -> (i32, i32) {
    %c0_i32 = arith.constant 0 : i32
    %c0_i32_0 = arith.constant 0 : i32
    %c0_i32_1 = arith.constant 0 : i32
    return %c0_i32, %c0_i32_0 : i32, i32
  }
  func.func @transform_3(%arg0: i32) -> (i32, i32) {
    %c0_i32 = arith.constant 0 : i32
    %c0_i32_0 = arith.constant 0 : i32
    return %arg0, %c0_i32 : i32, i32
  }
  func.func @transform_4(%arg0: i32) -> (i32, i32) {
    %c0_i32 = arith.constant 0 : i32
    %c0_i32_0 = arith.constant 0 : i32
    return %arg0, %c0_i32 : i32, i32
  }
}

module attributes {stable_mosaic.version = 11 : i64} {
  func.func @_bn_relu_kernel(%arg0: i32, %arg1: memref<32x128xf32, #tpu.memory_space<vmem>>, %arg2: memref<1x128xf32, #tpu.memory_space<vmem>>, %arg3: memref<1x128xf32, #tpu.memory_space<vmem>>, %arg4: memref<32x128xbf16, #tpu.memory_space<vmem>>) attributes {dimension_semantics = [#tpu.dimension_semantics<parallel>], iteration_bounds = array<i64: 1>, scalar_prefetch = 0 : i64, scratch_operands = 0 : i64, tpu.core_type = #tpu.core_type<tc>, window_params = [{transform_indices = @transform_0, window_bounds = array<i64: 32, 128>}, {pipeline_mode = #tpu.pipeline_mode<synchronous>, transform_indices = @transform_1, window_bounds = array<i64: 1, 128>}, {pipeline_mode = #tpu.pipeline_mode<synchronous>, transform_indices = @transform_2, window_bounds = array<i64: 1, 128>}, {transform_indices = @transform_3, window_bounds = array<i64: 32, 128>}]} {
    %c0 = arith.constant 0 : index
    %c0_0 = arith.constant 0 : index
    %0 = vector.load %arg1[%c0, %c0_0] : memref<32x128xf32, #tpu.memory_space<vmem>>, vector<32x128xf32>
    %c0_1 = arith.constant 0 : index
    %c0_2 = arith.constant 0 : index
    %1 = vector.load %arg2[%c0_1, %c0_2] : memref<1x128xf32, #tpu.memory_space<vmem>>, vector<1x128xf32>
    %2 = vector.broadcast %1 : vector<1x128xf32> to vector<32x128xf32>
    %3 = arith.mulf %0, %2 : vector<32x128xf32>
    %c0_3 = arith.constant 0 : index
    %c0_4 = arith.constant 0 : index
    %4 = vector.load %arg3[%c0_3, %c0_4] : memref<1x128xf32, #tpu.memory_space<vmem>>, vector<1x128xf32>
    %5 = vector.broadcast %4 : vector<1x128xf32> to vector<32x128xf32>
    %6 = arith.addf %3, %5 : vector<32x128xf32>
    %cst = arith.constant 0.000000e+00 : f32
    %7 = vector.broadcast %cst : f32 to vector<32x128xf32>
    %8 = arith.maximumf %6, %7 : vector<32x128xf32>
    %9 = arith.truncf %8 : vector<32x128xf32> to vector<32x128xbf16>
    %c0_5 = arith.constant 0 : index
    %c0_6 = arith.constant 0 : index
    %10 = vector.load %arg4[%c0_5, %c0_6] : memref<32x128xbf16, #tpu.memory_space<vmem>>, vector<32x128xbf16>
    tpu.vector_store %arg4[%c0_5, %c0_6], %9 {strides = array<i32>} : memref<32x128xbf16, #tpu.memory_space<vmem>>, vector<32x128xbf16>,
    return
  }
  func.func @transform_0(%arg0: i32) -> (i32, i32) {
    %c0_i32 = arith.constant 0 : i32
    %c0_i32_0 = arith.constant 0 : i32
    return %arg0, %c0_i32 : i32, i32
  }
  func.func @transform_1(%arg0: i32) -> (i32, i32) {
    %c0_i32 = arith.constant 0 : i32
    %c0_i32_0 = arith.constant 0 : i32
    %c0_i32_1 = arith.constant 0 : i32
    return %c0_i32, %c0_i32_0 : i32, i32
  }
  func.func @transform_2(%arg0: i32) -> (i32, i32) {
    %c0_i32 = arith.constant 0 : i32
    %c0_i32_0 = arith.constant 0 : i32
    %c0_i32_1 = arith.constant 0 : i32
    return %c0_i32, %c0_i32_0 : i32, i32
  }
  func.func @transform_3(%arg0: i32) -> (i32, i32) {
    %c0_i32 = arith.constant 0 : i32
    %c0_i32_0 = arith.constant 0 : i32
    return %arg0, %c0_i32 : i32, i32
  }
}

module attributes {stable_mosaic.version = 11 : i64} {
  func.func @_mm_stats_kernel(%arg0: i32, %arg1: i32, %arg2: memref<16x640xbf16, #tpu.memory_space<vmem>>, %arg3: memref<640x128xbf16, #tpu.memory_space<vmem>>, %arg4: memref<16x128xf32, #tpu.memory_space<vmem>>, %arg5: memref<1x1x128xf32, #tpu.memory_space<vmem>>, %arg6: memref<1x1x128xf32, #tpu.memory_space<vmem>>) attributes {dimension_semantics = [#tpu.dimension_semantics<parallel>, #tpu.dimension_semantics<parallel>], iteration_bounds = array<i64: 2, 1>, scalar_prefetch = 0 : i64, scratch_operands = 0 : i64, tpu.core_type = #tpu.core_type<tc>, window_params = [{transform_indices = @transform_0, window_bounds = array<i64: 16, 640>}, {transform_indices = @transform_1, window_bounds = array<i64: 640, 128>}, {transform_indices = @transform_2, window_bounds = array<i64: 16, 128>}, {transform_indices = @transform_3, window_bounds = array<i64: 1, 1, 128>}, {transform_indices = @transform_4, window_bounds = array<i64: 1, 1, 128>}]} {
    %c0 = arith.constant 0 : index
    %c0_0 = arith.constant 0 : index
    %0 = vector.load %arg2[%c0, %c0_0] : memref<16x640xbf16, #tpu.memory_space<vmem>>, vector<16x640xbf16>
    %c0_1 = arith.constant 0 : index
    %c0_2 = arith.constant 0 : index
    %1 = vector.load %arg3[%c0_1, %c0_2] : memref<640x128xbf16, #tpu.memory_space<vmem>>, vector<640x128xbf16>
    %cst = arith.constant dense<0.000000e+00> : vector<16x128xf32>
    %2 = tpu.matmul %0, %1, %cst {dimension_numbers = #tpu.dot_dimension_numbers<[1], [0], [0], [1], [0, 0, 1, 1], [], []>} : vector<16x640xbf16>, vector<640x128xbf16>, vector<16x128xf32> -> vector<16x128xf32>
    %c0_3 = arith.constant 0 : index
    %c0_4 = arith.constant 0 : index
    %3 = vector.load %arg4[%c0_3, %c0_4] : memref<16x128xf32, #tpu.memory_space<vmem>>, vector<16x128xf32>
    tpu.vector_store %arg4[%c0_3, %c0_4], %2 {strides = array<i32>} : memref<16x128xf32, #tpu.memory_space<vmem>>, vector<16x128xf32>,
    %cst_5 = arith.constant dense<0.000000e+00> : vector<128xf32>
    %4 = vector.multi_reduction <add>, %2, %cst_5 [0] : vector<16x128xf32> to vector<128xf32>
    %5 = vector.shape_cast %4 : vector<128xf32> to vector<1x128xf32>
    %6 = vector.shape_cast %5 : vector<1x128xf32> to vector<1x1x128xf32>
    %c0_6 = arith.constant 0 : index
    %c0_7 = arith.constant 0 : index
    %c0_8 = arith.constant 0 : index
    %7 = vector.load %arg5[%c0_6, %c0_7, %c0_8] : memref<1x1x128xf32, #tpu.memory_space<vmem>>, vector<1x1x128xf32>
    tpu.vector_store %arg5[%c0_6, %c0_7, %c0_8], %6 {strides = array<i32>} : memref<1x1x128xf32, #tpu.memory_space<vmem>>, vector<1x1x128xf32>,
    %8 = arith.mulf %2, %2 : vector<16x128xf32>
    %cst_9 = arith.constant dense<0.000000e+00> : vector<128xf32>
    %9 = vector.multi_reduction <add>, %8, %cst_9 [0] : vector<16x128xf32> to vector<128xf32>
    %10 = vector.shape_cast %9 : vector<128xf32> to vector<1x128xf32>
    %11 = vector.shape_cast %10 : vector<1x128xf32> to vector<1x1x128xf32>
    %c0_10 = arith.constant 0 : index
    %c0_11 = arith.constant 0 : index
    %c0_12 = arith.constant 0 : index
    %12 = vector.load %arg6[%c0_10, %c0_11, %c0_12] : memref<1x1x128xf32, #tpu.memory_space<vmem>>, vector<1x1x128xf32>
    tpu.vector_store %arg6[%c0_10, %c0_11, %c0_12], %11 {strides = array<i32>} : memref<1x1x128xf32, #tpu.memory_space<vmem>>, vector<1x1x128xf32>,
    return
  }
  func.func @transform_0(%arg0: i32, %arg1: i32) -> (i32, i32) {
    %c0_i32 = arith.constant 0 : i32
    %c0_i32_0 = arith.constant 0 : i32
    return %arg0, %c0_i32 : i32, i32
  }
  func.func @transform_1(%arg0: i32, %arg1: i32) -> (i32, i32) {
    %c0_i32 = arith.constant 0 : i32
    %c0_i32_0 = arith.constant 0 : i32
    return %c0_i32, %arg1 : i32, i32
  }
  func.func @transform_2(%arg0: i32, %arg1: i32) -> (i32, i32) {
    %c0_i32 = arith.constant 0 : i32
    return %arg0, %arg1 : i32, i32
  }
  func.func @transform_3(%arg0: i32, %arg1: i32) -> (i32, i32, i32) {
    %c0_i32 = arith.constant 0 : i32
    %c0_i32_0 = arith.constant 0 : i32
    return %arg0, %c0_i32, %arg1 : i32, i32, i32
  }
  func.func @transform_4(%arg0: i32, %arg1: i32) -> (i32, i32, i32) {
    %c0_i32 = arith.constant 0 : i32
    %c0_i32_0 = arith.constant 0 : i32
    return %arg0, %c0_i32, %arg1 : i32, i32, i32
  }
}

module attributes {stable_mosaic.version = 11 : i64} {
  func.func @_mm_stats_kernel_k(%arg0: i32, %arg1: i32, %arg2: i32, %arg3: memref<16x384xbf16, #tpu.memory_space<vmem>>, %arg4: memref<384x128xbf16, #tpu.memory_space<vmem>>, %arg5: memref<16x128xf32, #tpu.memory_space<vmem>>, %arg6: memref<1x1x128xf32, #tpu.memory_space<vmem>>, %arg7: memref<1x1x128xf32, #tpu.memory_space<vmem>>, %arg8: memref<16x128xf32, #tpu.memory_space<vmem>>) attributes {dimension_semantics = [#tpu.dimension_semantics<parallel>, #tpu.dimension_semantics<parallel>, #tpu.dimension_semantics<arbitrary>], iteration_bounds = array<i64: 2, 1, 3>, scalar_prefetch = 0 : i64, scratch_operands = 1 : i64, tpu.core_type = #tpu.core_type<tc>, window_params = [{transform_indices = @transform_0, window_bounds = array<i64: 16, 384>}, {transform_indices = @transform_1, window_bounds = array<i64: 384, 128>}, {transform_indices = @transform_2, window_bounds = array<i64: 16, 128>}, {transform_indices = @transform_3, window_bounds = array<i64: 1, 1, 128>}, {transform_indices = @transform_4, window_bounds = array<i64: 1, 1, 128>}]} {
    %c0_i32 = arith.constant 0 : i32
    %0 = arith.cmpi eq, %arg2, %c0_i32 : i32
    %1 = arith.extui %0 : i1 to i32
    %c0_i32_0 = arith.constant 0 : i32
    %2 = arith.cmpi ne, %1, %c0_i32_0 : i32
    scf.if %2 {
      %cst_9 = arith.constant 0.000000e+00 : f32
      %12 = vector.broadcast %cst_9 : f32 to vector<16x128xf32>
      %c0_10 = arith.constant 0 : index
      %c0_11 = arith.constant 0 : index
      %13 = vector.load %arg8[%c0_10, %c0_11] : memref<16x128xf32, #tpu.memory_space<vmem>>, vector<16x128xf32>
      tpu.vector_store %arg8[%c0_10, %c0_11], %12 {strides = array<i32>} : memref<16x128xf32, #tpu.memory_space<vmem>>, vector<16x128xf32>,
    } else {
    }
    %c0 = arith.constant 0 : index
    %c0_1 = arith.constant 0 : index
    %3 = vector.load %arg8[%c0, %c0_1] : memref<16x128xf32, #tpu.memory_space<vmem>>, vector<16x128xf32>
    %c0_2 = arith.constant 0 : index
    %c0_3 = arith.constant 0 : index
    %4 = vector.load %arg3[%c0_2, %c0_3] : memref<16x384xbf16, #tpu.memory_space<vmem>>, vector<16x384xbf16>
    %c0_4 = arith.constant 0 : index
    %c0_5 = arith.constant 0 : index
    %5 = vector.load %arg4[%c0_4, %c0_5] : memref<384x128xbf16, #tpu.memory_space<vmem>>, vector<384x128xbf16>
    %cst = arith.constant dense<0.000000e+00> : vector<16x128xf32>
    %6 = tpu.matmul %4, %5, %cst {dimension_numbers = #tpu.dot_dimension_numbers<[1], [0], [0], [1], [0, 0, 1, 1], [], []>} : vector<16x384xbf16>, vector<384x128xbf16>, vector<16x128xf32> -> vector<16x128xf32>
    %7 = arith.addf %3, %6 : vector<16x128xf32>
    %c0_6 = arith.constant 0 : index
    %c0_7 = arith.constant 0 : index
    %8 = vector.load %arg8[%c0_6, %c0_7] : memref<16x128xf32, #tpu.memory_space<vmem>>, vector<16x128xf32>
    tpu.vector_store %arg8[%c0_6, %c0_7], %7 {strides = array<i32>} : memref<16x128xf32, #tpu.memory_space<vmem>>, vector<16x128xf32>,
    %c2_i32 = arith.constant 2 : i32
    %9 = arith.cmpi eq, %arg2, %c2_i32 : i32
    %10 = arith.extui %9 : i1 to i32
    %c0_i32_8 = arith.constant 0 : i32
    %11 = arith.cmpi ne, %10, %c0_i32_8 : i32
    scf.if %11 {
      %c0_9 = arith.constant 0 : index
      %c0_10 = arith.constant 0 : index
      %12 = vector.load %arg8[%c0_9, %c0_10] : memref<16x128xf32, #tpu.memory_space<vmem>>, vector<16x128xf32>
      %c0_11 = arith.constant 0 : index
      %c0_12 = arith.constant 0 : index
      %13 = vector.load %arg5[%c0_11, %c0_12] : memref<16x128xf32, #tpu.memory_space<vmem>>, vector<16x128xf32>
      tpu.vector_store %arg5[%c0_11, %c0_12], %12 {strides = array<i32>} : memref<16x128xf32, #tpu.memory_space<vmem>>, vector<16x128xf32>,
      %cst_13 = arith.constant dense<0.000000e+00> : vector<128xf32>
      %14 = vector.multi_reduction <add>, %12, %cst_13 [0] : vector<16x128xf32> to vector<128xf32>
      %15 = vector.shape_cast %14 : vector<128xf32> to vector<1x128xf32>
      %16 = vector.shape_cast %15 : vector<1x128xf32> to vector<1x1x128xf32>
      %c0_14 = arith.constant 0 : index
      %c0_15 = arith.constant 0 : index
      %c0_16 = arith.constant 0 : index
      %17 = vector.load %arg6[%c0_14, %c0_15, %c0_16] : memref<1x1x128xf32, #tpu.memory_space<vmem>>, vector<1x1x128xf32>
      tpu.vector_store %arg6[%c0_14, %c0_15, %c0_16], %16 {strides = array<i32>} : memref<1x1x128xf32, #tpu.memory_space<vmem>>, vector<1x1x128xf32>,
      %18 = arith.mulf %12, %12 : vector<16x128xf32>
      %cst_17 = arith.constant dense<0.000000e+00> : vector<128xf32>
      %19 = vector.multi_reduction <add>, %18, %cst_17 [0] : vector<16x128xf32> to vector<128xf32>
      %20 = vector.shape_cast %19 : vector<128xf32> to vector<1x128xf32>
      %21 = vector.shape_cast %20 : vector<1x128xf32> to vector<1x1x128xf32>
      %c0_18 = arith.constant 0 : index
      %c0_19 = arith.constant 0 : index
      %c0_20 = arith.constant 0 : index
      %22 = vector.load %arg7[%c0_18, %c0_19, %c0_20] : memref<1x1x128xf32, #tpu.memory_space<vmem>>, vector<1x1x128xf32>
      tpu.vector_store %arg7[%c0_18, %c0_19, %c0_20], %21 {strides = array<i32>} : memref<1x1x128xf32, #tpu.memory_space<vmem>>, vector<1x1x128xf32>,
    } else {
    }
    return
  }
  func.func @transform_0(%arg0: i32, %arg1: i32, %arg2: i32) -> (i32, i32) {
    %c0_i32 = arith.constant 0 : i32
    return %arg0, %arg2 : i32, i32
  }
  func.func @transform_1(%arg0: i32, %arg1: i32, %arg2: i32) -> (i32, i32) {
    %c0_i32 = arith.constant 0 : i32
    return %arg2, %arg1 : i32, i32
  }
  func.func @transform_2(%arg0: i32, %arg1: i32, %arg2: i32) -> (i32, i32) {
    %c0_i32 = arith.constant 0 : i32
    return %arg0, %arg1 : i32, i32
  }
  func.func @transform_3(%arg0: i32, %arg1: i32, %arg2: i32) -> (i32, i32, i32) {
    %c0_i32 = arith.constant 0 : i32
    %c0_i32_0 = arith.constant 0 : i32
    return %arg0, %c0_i32, %arg1 : i32, i32, i32
  }
  func.func @transform_4(%arg0: i32, %arg1: i32, %arg2: i32) -> (i32, i32, i32) {
    %c0_i32 = arith.constant 0 : i32
    %c0_i32_0 = arith.constant 0 : i32
    return %arg0, %c0_i32, %arg1 : i32, i32, i32
  }
}

module attributes {stable_mosaic.version = 11 : i64} {
  func.func @_mm_stats_kernel(%arg0: i32, %arg1: i32, %arg2: memref<16x128xbf16, #tpu.memory_space<vmem>>, %arg3: memref<128x128xbf16, #tpu.memory_space<vmem>>, %arg4: memref<16x128xf32, #tpu.memory_space<vmem>>, %arg5: memref<1x1x128xf32, #tpu.memory_space<vmem>>, %arg6: memref<1x1x128xf32, #tpu.memory_space<vmem>>) attributes {dimension_semantics = [#tpu.dimension_semantics<parallel>, #tpu.dimension_semantics<parallel>], iteration_bounds = array<i64: 2, 1>, scalar_prefetch = 0 : i64, scratch_operands = 0 : i64, tpu.core_type = #tpu.core_type<tc>, window_params = [{transform_indices = @transform_0, window_bounds = array<i64: 16, 128>}, {transform_indices = @transform_1, window_bounds = array<i64: 128, 128>}, {transform_indices = @transform_2, window_bounds = array<i64: 16, 128>}, {transform_indices = @transform_3, window_bounds = array<i64: 1, 1, 128>}, {transform_indices = @transform_4, window_bounds = array<i64: 1, 1, 128>}]} {
    %c0 = arith.constant 0 : index
    %c0_0 = arith.constant 0 : index
    %0 = vector.load %arg2[%c0, %c0_0] : memref<16x128xbf16, #tpu.memory_space<vmem>>, vector<16x128xbf16>
    %c0_1 = arith.constant 0 : index
    %c0_2 = arith.constant 0 : index
    %1 = vector.load %arg3[%c0_1, %c0_2] : memref<128x128xbf16, #tpu.memory_space<vmem>>, vector<128x128xbf16>
    %cst = arith.constant dense<0.000000e+00> : vector<16x128xf32>
    %2 = tpu.matmul %0, %1, %cst {dimension_numbers = #tpu.dot_dimension_numbers<[1], [0], [0], [1], [0, 0, 1, 1], [], []>} : vector<16x128xbf16>, vector<128x128xbf16>, vector<16x128xf32> -> vector<16x128xf32>
    %c0_3 = arith.constant 0 : index
    %c0_4 = arith.constant 0 : index
    %3 = vector.load %arg4[%c0_3, %c0_4] : memref<16x128xf32, #tpu.memory_space<vmem>>, vector<16x128xf32>
    tpu.vector_store %arg4[%c0_3, %c0_4], %2 {strides = array<i32>} : memref<16x128xf32, #tpu.memory_space<vmem>>, vector<16x128xf32>,
    %cst_5 = arith.constant dense<0.000000e+00> : vector<128xf32>
    %4 = vector.multi_reduction <add>, %2, %cst_5 [0] : vector<16x128xf32> to vector<128xf32>
    %5 = vector.shape_cast %4 : vector<128xf32> to vector<1x128xf32>
    %6 = vector.shape_cast %5 : vector<1x128xf32> to vector<1x1x128xf32>
    %c0_6 = arith.constant 0 : index
    %c0_7 = arith.constant 0 : index
    %c0_8 = arith.constant 0 : index
    %7 = vector.load %arg5[%c0_6, %c0_7, %c0_8] : memref<1x1x128xf32, #tpu.memory_space<vmem>>, vector<1x1x128xf32>
    tpu.vector_store %arg5[%c0_6, %c0_7, %c0_8], %6 {strides = array<i32>} : memref<1x1x128xf32, #tpu.memory_space<vmem>>, vector<1x1x128xf32>,
    %8 = arith.mulf %2, %2 : vector<16x128xf32>
    %cst_9 = arith.constant dense<0.000000e+00> : vector<128xf32>
    %9 = vector.multi_reduction <add>, %8, %cst_9 [0] : vector<16x128xf32> to vector<128xf32>
    %10 = vector.shape_cast %9 : vector<128xf32> to vector<1x128xf32>
    %11 = vector.shape_cast %10 : vector<1x128xf32> to vector<1x1x128xf32>
    %c0_10 = arith.constant 0 : index
    %c0_11 = arith.constant 0 : index
    %c0_12 = arith.constant 0 : index
    %12 = vector.load %arg6[%c0_10, %c0_11, %c0_12] : memref<1x1x128xf32, #tpu.memory_space<vmem>>, vector<1x1x128xf32>
    tpu.vector_store %arg6[%c0_10, %c0_11, %c0_12], %11 {strides = array<i32>} : memref<1x1x128xf32, #tpu.memory_space<vmem>>, vector<1x1x128xf32>,
    return
  }
  func.func @transform_0(%arg0: i32, %arg1: i32) -> (i32, i32) {
    %c0_i32 = arith.constant 0 : i32
    %c0_i32_0 = arith.constant 0 : i32
    return %arg0, %c0_i32 : i32, i32
  }
  func.func @transform_1(%arg0: i32, %arg1: i32) -> (i32, i32) {
    %c0_i32 = arith.constant 0 : i32
    %c0_i32_0 = arith.constant 0 : i32
    return %c0_i32, %arg1 : i32, i32
  }
  func.func @transform_2(%arg0: i32, %arg1: i32) -> (i32, i32) {
    %c0_i32 = arith.constant 0 : i32
    return %arg0, %arg1 : i32, i32
  }
  func.func @transform_3(%arg0: i32, %arg1: i32) -> (i32, i32, i32) {
    %c0_i32 = arith.constant 0 : i32
    %c0_i32_0 = arith.constant 0 : i32
    return %arg0, %c0_i32, %arg1 : i32, i32, i32
  }
  func.func @transform_4(%arg0: i32, %arg1: i32) -> (i32, i32, i32) {
    %c0_i32 = arith.constant 0 : i32
    %c0_i32_0 = arith.constant 0 : i32
    return %arg0, %c0_i32, %arg1 : i32, i32, i32
  }
}

module attributes {stable_mosaic.version = 11 : i64} {
  func.func @_bn2_add_relu_kernel(%arg0: i32, %arg1: memref<32x128xf32, #tpu.memory_space<vmem>>, %arg2: memref<1x128xf32, #tpu.memory_space<vmem>>, %arg3: memref<1x128xf32, #tpu.memory_space<vmem>>, %arg4: memref<32x128xf32, #tpu.memory_space<vmem>>, %arg5: memref<1x128xf32, #tpu.memory_space<vmem>>, %arg6: memref<1x128xf32, #tpu.memory_space<vmem>>, %arg7: memref<32x128xbf16, #tpu.memory_space<vmem>>) attributes {dimension_semantics = [#tpu.dimension_semantics<parallel>], iteration_bounds = array<i64: 1>, scalar_prefetch = 0 : i64, scratch_operands = 0 : i64, tpu.core_type = #tpu.core_type<tc>, window_params = [{transform_indices = @transform_0, window_bounds = array<i64: 32, 128>}, {pipeline_mode = #tpu.pipeline_mode<synchronous>, transform_indices = @transform_1, window_bounds = array<i64: 1, 128>}, {pipeline_mode = #tpu.pipeline_mode<synchronous>, transform_indices = @transform_2, window_bounds = array<i64: 1, 128>}, {transform_indices = @transform_3, window_bounds = array<i64: 32, 128>}, {pipeline_mode = #tpu.pipeline_mode<synchronous>, transform_indices = @transform_4, window_bounds = array<i64: 1, 128>}, {pipeline_mode = #tpu.pipeline_mode<synchronous>, transform_indices = @transform_5, window_bounds = array<i64: 1, 128>}, {transform_indices = @transform_6, window_bounds = array<i64: 32, 128>}]} {
    %c0 = arith.constant 0 : index
    %c0_0 = arith.constant 0 : index
    %0 = vector.load %arg1[%c0, %c0_0] : memref<32x128xf32, #tpu.memory_space<vmem>>, vector<32x128xf32>
    %c0_1 = arith.constant 0 : index
    %c0_2 = arith.constant 0 : index
    %1 = vector.load %arg2[%c0_1, %c0_2] : memref<1x128xf32, #tpu.memory_space<vmem>>, vector<1x128xf32>
    %2 = vector.broadcast %1 : vector<1x128xf32> to vector<32x128xf32>
    %3 = arith.mulf %0, %2 : vector<32x128xf32>
    %c0_3 = arith.constant 0 : index
    %c0_4 = arith.constant 0 : index
    %4 = vector.load %arg3[%c0_3, %c0_4] : memref<1x128xf32, #tpu.memory_space<vmem>>, vector<1x128xf32>
    %5 = vector.broadcast %4 : vector<1x128xf32> to vector<32x128xf32>
    %6 = arith.addf %3, %5 : vector<32x128xf32>
    %c0_5 = arith.constant 0 : index
    %c0_6 = arith.constant 0 : index
    %7 = vector.load %arg4[%c0_5, %c0_6] : memref<32x128xf32, #tpu.memory_space<vmem>>, vector<32x128xf32>
    %c0_7 = arith.constant 0 : index
    %c0_8 = arith.constant 0 : index
    %8 = vector.load %arg5[%c0_7, %c0_8] : memref<1x128xf32, #tpu.memory_space<vmem>>, vector<1x128xf32>
    %9 = vector.broadcast %8 : vector<1x128xf32> to vector<32x128xf32>
    %10 = arith.mulf %7, %9 : vector<32x128xf32>
    %11 = arith.addf %6, %10 : vector<32x128xf32>
    %c0_9 = arith.constant 0 : index
    %c0_10 = arith.constant 0 : index
    %12 = vector.load %arg6[%c0_9, %c0_10] : memref<1x128xf32, #tpu.memory_space<vmem>>, vector<1x128xf32>
    %13 = vector.broadcast %12 : vector<1x128xf32> to vector<32x128xf32>
    %14 = arith.addf %11, %13 : vector<32x128xf32>
    %cst = arith.constant 0.000000e+00 : f32
    %15 = vector.broadcast %cst : f32 to vector<32x128xf32>
    %16 = arith.maximumf %14, %15 : vector<32x128xf32>
    %17 = arith.truncf %16 : vector<32x128xf32> to vector<32x128xbf16>
    %c0_11 = arith.constant 0 : index
    %c0_12 = arith.constant 0 : index
    %18 = vector.load %arg7[%c0_11, %c0_12] : memref<32x128xbf16, #tpu.memory_space<vmem>>, vector<32x128xbf16>
    tpu.vector_store %arg7[%c0_11, %c0_12], %17 {strides = array<i32>} : memref<32x128xbf16, #tpu.memory_space<vmem>>, vector<32x128xbf16>,
    return
  }
  func.func @transform_0(%arg0: i32) -> (i32, i32) {
    %c0_i32 = arith.constant 0 : i32
    %c0_i32_0 = arith.constant 0 : i32
    return %arg0, %c0_i32 : i32, i32
  }
  func.func @transform_1(%arg0: i32) -> (i32, i32) {
    %c0_i32 = arith.constant 0 : i32
    %c0_i32_0 = arith.constant 0 : i32
    %c0_i32_1 = arith.constant 0 : i32
    return %c0_i32, %c0_i32_0 : i32, i32
  }
  func.func @transform_2(%arg0: i32) -> (i32, i32) {
    %c0_i32 = arith.constant 0 : i32
    %c0_i32_0 = arith.constant 0 : i32
    %c0_i32_1 = arith.constant 0 : i32
    return %c0_i32, %c0_i32_0 : i32, i32
  }
  func.func @transform_3(%arg0: i32) -> (i32, i32) {
    %c0_i32 = arith.constant 0 : i32
    %c0_i32_0 = arith.constant 0 : i32
    return %arg0, %c0_i32 : i32, i32
  }
  func.func @transform_4(%arg0: i32) -> (i32, i32) {
    %c0_i32 = arith.constant 0 : i32
    %c0_i32_0 = arith.constant 0 : i32
    %c0_i32_1 = arith.constant 0 : i32
    return %c0_i32, %c0_i32_0 : i32, i32
  }
  func.func @transform_5(%arg0: i32) -> (i32, i32) {
    %c0_i32 = arith.constant 0 : i32
    %c0_i32_0 = arith.constant 0 : i32
    %c0_i32_1 = arith.constant 0 : i32
    return %c0_i32, %c0_i32_0 : i32, i32
  }
  func.func @transform_6(%arg0: i32) -> (i32, i32) {
    %c0_i32 = arith.constant 0 : i32
    %c0_i32_0 = arith.constant 0 : i32
    return %arg0, %c0_i32 : i32, i32
  }
}

module attributes {stable_mosaic.version = 11 : i64} {
  func.func @_mm_stats_kernel(%arg0: i32, %arg1: i32, %arg2: memref<16x128xbf16, #tpu.memory_space<vmem>>, %arg3: memref<128x128xbf16, #tpu.memory_space<vmem>>, %arg4: memref<16x128xf32, #tpu.memory_space<vmem>>, %arg5: memref<1x1x128xf32, #tpu.memory_space<vmem>>, %arg6: memref<1x1x128xf32, #tpu.memory_space<vmem>>) attributes {dimension_semantics = [#tpu.dimension_semantics<parallel>, #tpu.dimension_semantics<parallel>], iteration_bounds = array<i64: 1, 2>, scalar_prefetch = 0 : i64, scratch_operands = 0 : i64, tpu.core_type = #tpu.core_type<tc>, window_params = [{transform_indices = @transform_0, window_bounds = array<i64: 16, 128>}, {transform_indices = @transform_1, window_bounds = array<i64: 128, 128>}, {transform_indices = @transform_2, window_bounds = array<i64: 16, 128>}, {transform_indices = @transform_3, window_bounds = array<i64: 1, 1, 128>}, {transform_indices = @transform_4, window_bounds = array<i64: 1, 1, 128>}]} {
    %c0 = arith.constant 0 : index
    %c0_0 = arith.constant 0 : index
    %0 = vector.load %arg2[%c0, %c0_0] : memref<16x128xbf16, #tpu.memory_space<vmem>>, vector<16x128xbf16>
    %c0_1 = arith.constant 0 : index
    %c0_2 = arith.constant 0 : index
    %1 = vector.load %arg3[%c0_1, %c0_2] : memref<128x128xbf16, #tpu.memory_space<vmem>>, vector<128x128xbf16>
    %cst = arith.constant dense<0.000000e+00> : vector<16x128xf32>
    %2 = tpu.matmul %0, %1, %cst {dimension_numbers = #tpu.dot_dimension_numbers<[1], [0], [0], [1], [0, 0, 1, 1], [], []>} : vector<16x128xbf16>, vector<128x128xbf16>, vector<16x128xf32> -> vector<16x128xf32>
    %c0_3 = arith.constant 0 : index
    %c0_4 = arith.constant 0 : index
    %3 = vector.load %arg4[%c0_3, %c0_4] : memref<16x128xf32, #tpu.memory_space<vmem>>, vector<16x128xf32>
    tpu.vector_store %arg4[%c0_3, %c0_4], %2 {strides = array<i32>} : memref<16x128xf32, #tpu.memory_space<vmem>>, vector<16x128xf32>,
    %cst_5 = arith.constant dense<0.000000e+00> : vector<128xf32>
    %4 = vector.multi_reduction <add>, %2, %cst_5 [0] : vector<16x128xf32> to vector<128xf32>
    %5 = vector.shape_cast %4 : vector<128xf32> to vector<1x128xf32>
    %6 = vector.shape_cast %5 : vector<1x128xf32> to vector<1x1x128xf32>
    %c0_6 = arith.constant 0 : index
    %c0_7 = arith.constant 0 : index
    %c0_8 = arith.constant 0 : index
    %7 = vector.load %arg5[%c0_6, %c0_7, %c0_8] : memref<1x1x128xf32, #tpu.memory_space<vmem>>, vector<1x1x128xf32>
    tpu.vector_store %arg5[%c0_6, %c0_7, %c0_8], %6 {strides = array<i32>} : memref<1x1x128xf32, #tpu.memory_space<vmem>>, vector<1x1x128xf32>,
    %8 = arith.mulf %2, %2 : vector<16x128xf32>
    %cst_9 = arith.constant dense<0.000000e+00> : vector<128xf32>
    %9 = vector.multi_reduction <add>, %8, %cst_9 [0] : vector<16x128xf32> to vector<128xf32>
    %10 = vector.shape_cast %9 : vector<128xf32> to vector<1x128xf32>
    %11 = vector.shape_cast %10 : vector<1x128xf32> to vector<1x1x128xf32>
    %c0_10 = arith.constant 0 : index
    %c0_11 = arith.constant 0 : index
    %c0_12 = arith.constant 0 : index
    %12 = vector.load %arg6[%c0_10, %c0_11, %c0_12] : memref<1x1x128xf32, #tpu.memory_space<vmem>>, vector<1x1x128xf32>
    tpu.vector_store %arg6[%c0_10, %c0_11, %c0_12], %11 {strides = array<i32>} : memref<1x1x128xf32, #tpu.memory_space<vmem>>, vector<1x1x128xf32>,
    return
  }
  func.func @transform_0(%arg0: i32, %arg1: i32) -> (i32, i32) {
    %c0_i32 = arith.constant 0 : i32
    %c0_i32_0 = arith.constant 0 : i32
    return %arg0, %c0_i32 : i32, i32
  }
  func.func @transform_1(%arg0: i32, %arg1: i32) -> (i32, i32) {
    %c0_i32 = arith.constant 0 : i32
    %c0_i32_0 = arith.constant 0 : i32
    return %c0_i32, %arg1 : i32, i32
  }
  func.func @transform_2(%arg0: i32, %arg1: i32) -> (i32, i32) {
    %c0_i32 = arith.constant 0 : i32
    return %arg0, %arg1 : i32, i32
  }
  func.func @transform_3(%arg0: i32, %arg1: i32) -> (i32, i32, i32) {
    %c0_i32 = arith.constant 0 : i32
    %c0_i32_0 = arith.constant 0 : i32
    return %arg0, %c0_i32, %arg1 : i32, i32, i32
  }
  func.func @transform_4(%arg0: i32, %arg1: i32) -> (i32, i32, i32) {
    %c0_i32 = arith.constant 0 : i32
    %c0_i32_0 = arith.constant 0 : i32
    return %arg0, %c0_i32, %arg1 : i32, i32, i32
  }
}

module attributes {stable_mosaic.version = 11 : i64} {
  func.func @_mm_stats_kernel_k(%arg0: i32, %arg1: i32, %arg2: i32, %arg3: memref<16x384xbf16, #tpu.memory_space<vmem>>, %arg4: memref<384x128xbf16, #tpu.memory_space<vmem>>, %arg5: memref<16x128xf32, #tpu.memory_space<vmem>>, %arg6: memref<1x1x128xf32, #tpu.memory_space<vmem>>, %arg7: memref<1x1x128xf32, #tpu.memory_space<vmem>>, %arg8: memref<16x128xf32, #tpu.memory_space<vmem>>) attributes {dimension_semantics = [#tpu.dimension_semantics<parallel>, #tpu.dimension_semantics<parallel>, #tpu.dimension_semantics<arbitrary>], iteration_bounds = array<i64: 1, 2, 3>, scalar_prefetch = 0 : i64, scratch_operands = 1 : i64, tpu.core_type = #tpu.core_type<tc>, window_params = [{transform_indices = @transform_0, window_bounds = array<i64: 16, 384>}, {transform_indices = @transform_1, window_bounds = array<i64: 384, 128>}, {transform_indices = @transform_2, window_bounds = array<i64: 16, 128>}, {transform_indices = @transform_3, window_bounds = array<i64: 1, 1, 128>}, {transform_indices = @transform_4, window_bounds = array<i64: 1, 1, 128>}]} {
    %c0_i32 = arith.constant 0 : i32
    %0 = arith.cmpi eq, %arg2, %c0_i32 : i32
    %1 = arith.extui %0 : i1 to i32
    %c0_i32_0 = arith.constant 0 : i32
    %2 = arith.cmpi ne, %1, %c0_i32_0 : i32
    scf.if %2 {
      %cst_9 = arith.constant 0.000000e+00 : f32
      %12 = vector.broadcast %cst_9 : f32 to vector<16x128xf32>
      %c0_10 = arith.constant 0 : index
      %c0_11 = arith.constant 0 : index
      %13 = vector.load %arg8[%c0_10, %c0_11] : memref<16x128xf32, #tpu.memory_space<vmem>>, vector<16x128xf32>
      tpu.vector_store %arg8[%c0_10, %c0_11], %12 {strides = array<i32>} : memref<16x128xf32, #tpu.memory_space<vmem>>, vector<16x128xf32>,
    } else {
    }
    %c0 = arith.constant 0 : index
    %c0_1 = arith.constant 0 : index
    %3 = vector.load %arg8[%c0, %c0_1] : memref<16x128xf32, #tpu.memory_space<vmem>>, vector<16x128xf32>
    %c0_2 = arith.constant 0 : index
    %c0_3 = arith.constant 0 : index
    %4 = vector.load %arg3[%c0_2, %c0_3] : memref<16x384xbf16, #tpu.memory_space<vmem>>, vector<16x384xbf16>
    %c0_4 = arith.constant 0 : index
    %c0_5 = arith.constant 0 : index
    %5 = vector.load %arg4[%c0_4, %c0_5] : memref<384x128xbf16, #tpu.memory_space<vmem>>, vector<384x128xbf16>
    %cst = arith.constant dense<0.000000e+00> : vector<16x128xf32>
    %6 = tpu.matmul %4, %5, %cst {dimension_numbers = #tpu.dot_dimension_numbers<[1], [0], [0], [1], [0, 0, 1, 1], [], []>} : vector<16x384xbf16>, vector<384x128xbf16>, vector<16x128xf32> -> vector<16x128xf32>
    %7 = arith.addf %3, %6 : vector<16x128xf32>
    %c0_6 = arith.constant 0 : index
    %c0_7 = arith.constant 0 : index
    %8 = vector.load %arg8[%c0_6, %c0_7] : memref<16x128xf32, #tpu.memory_space<vmem>>, vector<16x128xf32>
    tpu.vector_store %arg8[%c0_6, %c0_7], %7 {strides = array<i32>} : memref<16x128xf32, #tpu.memory_space<vmem>>, vector<16x128xf32>,
    %c2_i32 = arith.constant 2 : i32
    %9 = arith.cmpi eq, %arg2, %c2_i32 : i32
    %10 = arith.extui %9 : i1 to i32
    %c0_i32_8 = arith.constant 0 : i32
    %11 = arith.cmpi ne, %10, %c0_i32_8 : i32
    scf.if %11 {
      %c0_9 = arith.constant 0 : index
      %c0_10 = arith.constant 0 : index
      %12 = vector.load %arg8[%c0_9, %c0_10] : memref<16x128xf32, #tpu.memory_space<vmem>>, vector<16x128xf32>
      %c0_11 = arith.constant 0 : index
      %c0_12 = arith.constant 0 : index
      %13 = vector.load %arg5[%c0_11, %c0_12] : memref<16x128xf32, #tpu.memory_space<vmem>>, vector<16x128xf32>
      tpu.vector_store %arg5[%c0_11, %c0_12], %12 {strides = array<i32>} : memref<16x128xf32, #tpu.memory_space<vmem>>, vector<16x128xf32>,
      %cst_13 = arith.constant dense<0.000000e+00> : vector<128xf32>
      %14 = vector.multi_reduction <add>, %12, %cst_13 [0] : vector<16x128xf32> to vector<128xf32>
      %15 = vector.shape_cast %14 : vector<128xf32> to vector<1x128xf32>
      %16 = vector.shape_cast %15 : vector<1x128xf32> to vector<1x1x128xf32>
      %c0_14 = arith.constant 0 : index
      %c0_15 = arith.constant 0 : index
      %c0_16 = arith.constant 0 : index
      %17 = vector.load %arg6[%c0_14, %c0_15, %c0_16] : memref<1x1x128xf32, #tpu.memory_space<vmem>>, vector<1x1x128xf32>
      tpu.vector_store %arg6[%c0_14, %c0_15, %c0_16], %16 {strides = array<i32>} : memref<1x1x128xf32, #tpu.memory_space<vmem>>, vector<1x1x128xf32>,
      %18 = arith.mulf %12, %12 : vector<16x128xf32>
      %cst_17 = arith.constant dense<0.000000e+00> : vector<128xf32>
      %19 = vector.multi_reduction <add>, %18, %cst_17 [0] : vector<16x128xf32> to vector<128xf32>
      %20 = vector.shape_cast %19 : vector<128xf32> to vector<1x128xf32>
      %21 = vector.shape_cast %20 : vector<1x128xf32> to vector<1x1x128xf32>
      %c0_18 = arith.constant 0 : index
      %c0_19 = arith.constant 0 : index
      %c0_20 = arith.constant 0 : index
      %22 = vector.load %arg7[%c0_18, %c0_19, %c0_20] : memref<1x1x128xf32, #tpu.memory_space<vmem>>, vector<1x1x128xf32>
      tpu.vector_store %arg7[%c0_18, %c0_19, %c0_20], %21 {strides = array<i32>} : memref<1x1x128xf32, #tpu.memory_space<vmem>>, vector<1x1x128xf32>,
    } else {
    }
    return
  }
  func.func @transform_0(%arg0: i32, %arg1: i32, %arg2: i32) -> (i32, i32) {
    %c0_i32 = arith.constant 0 : i32
    return %arg0, %arg2 : i32, i32
  }
  func.func @transform_1(%arg0: i32, %arg1: i32, %arg2: i32) -> (i32, i32) {
    %c0_i32 = arith.constant 0 : i32
    return %arg2, %arg1 : i32, i32
  }
  func.func @transform_2(%arg0: i32, %arg1: i32, %arg2: i32) -> (i32, i32) {
    %c0_i32 = arith.constant 0 : i32
    return %arg0, %arg1 : i32, i32
  }
  func.func @transform_3(%arg0: i32, %arg1: i32, %arg2: i32) -> (i32, i32, i32) {
    %c0_i32 = arith.constant 0 : i32
    %c0_i32_0 = arith.constant 0 : i32
    return %arg0, %c0_i32, %arg1 : i32, i32, i32
  }
  func.func @transform_4(%arg0: i32, %arg1: i32, %arg2: i32) -> (i32, i32, i32) {
    %c0_i32 = arith.constant 0 : i32
    %c0_i32_0 = arith.constant 0 : i32
    return %arg0, %c0_i32, %arg1 : i32, i32, i32
  }
}

module attributes {stable_mosaic.version = 11 : i64} {
  func.func @_bn_relu_kernel(%arg0: i32, %arg1: memref<8x256xf32, #tpu.memory_space<vmem>>, %arg2: memref<1x256xf32, #tpu.memory_space<vmem>>, %arg3: memref<1x256xf32, #tpu.memory_space<vmem>>, %arg4: memref<8x256xbf16, #tpu.memory_space<vmem>>) attributes {dimension_semantics = [#tpu.dimension_semantics<parallel>], iteration_bounds = array<i64: 1>, scalar_prefetch = 0 : i64, scratch_operands = 0 : i64, tpu.core_type = #tpu.core_type<tc>, window_params = [{transform_indices = @transform_0, window_bounds = array<i64: 8, 256>}, {pipeline_mode = #tpu.pipeline_mode<synchronous>, transform_indices = @transform_1, window_bounds = array<i64: 1, 256>}, {pipeline_mode = #tpu.pipeline_mode<synchronous>, transform_indices = @transform_2, window_bounds = array<i64: 1, 256>}, {transform_indices = @transform_3, window_bounds = array<i64: 8, 256>}]} {
    %c0 = arith.constant 0 : index
    %c0_0 = arith.constant 0 : index
    %0 = vector.load %arg1[%c0, %c0_0] : memref<8x256xf32, #tpu.memory_space<vmem>>, vector<8x256xf32>
    %c0_1 = arith.constant 0 : index
    %c0_2 = arith.constant 0 : index
    %1 = vector.load %arg2[%c0_1, %c0_2] : memref<1x256xf32, #tpu.memory_space<vmem>>, vector<1x256xf32>
    %2 = vector.broadcast %1 : vector<1x256xf32> to vector<8x256xf32>
    %3 = arith.mulf %0, %2 : vector<8x256xf32>
    %c0_3 = arith.constant 0 : index
    %c0_4 = arith.constant 0 : index
    %4 = vector.load %arg3[%c0_3, %c0_4] : memref<1x256xf32, #tpu.memory_space<vmem>>, vector<1x256xf32>
    %5 = vector.broadcast %4 : vector<1x256xf32> to vector<8x256xf32>
    %6 = arith.addf %3, %5 : vector<8x256xf32>
    %cst = arith.constant 0.000000e+00 : f32
    %7 = vector.broadcast %cst : f32 to vector<8x256xf32>
    %8 = arith.maximumf %6, %7 : vector<8x256xf32>
    %9 = arith.truncf %8 : vector<8x256xf32> to vector<8x256xbf16>
    %c0_5 = arith.constant 0 : index
    %c0_6 = arith.constant 0 : index
    %10 = vector.load %arg4[%c0_5, %c0_6] : memref<8x256xbf16, #tpu.memory_space<vmem>>, vector<8x256xbf16>
    tpu.vector_store %arg4[%c0_5, %c0_6], %9 {strides = array<i32>} : memref<8x256xbf16, #tpu.memory_space<vmem>>, vector<8x256xbf16>,
    return
  }
  func.func @transform_0(%arg0: i32) -> (i32, i32) {
    %c0_i32 = arith.constant 0 : i32
    %c0_i32_0 = arith.constant 0 : i32
    return %arg0, %c0_i32 : i32, i32
  }
  func.func @transform_1(%arg0: i32) -> (i32, i32) {
    %c0_i32 = arith.constant 0 : i32
    %c0_i32_0 = arith.constant 0 : i32
    %c0_i32_1 = arith.constant 0 : i32
    return %c0_i32, %c0_i32_0 : i32, i32
  }
  func.func @transform_2(%arg0: i32) -> (i32, i32) {
    %c0_i32 = arith.constant 0 : i32
    %c0_i32_0 = arith.constant 0 : i32
    %c0_i32_1 = arith.constant 0 : i32
    return %c0_i32, %c0_i32_0 : i32, i32
  }
  func.func @transform_3(%arg0: i32) -> (i32, i32) {
    %c0_i32 = arith.constant 0 : i32
    %c0_i32_0 = arith.constant 0 : i32
    return %arg0, %c0_i32 : i32, i32
  }
}

module attributes {stable_mosaic.version = 11 : i64} {
  func.func @_mm_stats_kernel_k(%arg0: i32, %arg1: i32, %arg2: i32, %arg3: memref<16x384xbf16, #tpu.memory_space<vmem>>, %arg4: memref<384x128xbf16, #tpu.memory_space<vmem>>, %arg5: memref<16x128xf32, #tpu.memory_space<vmem>>, %arg6: memref<1x1x128xf32, #tpu.memory_space<vmem>>, %arg7: memref<1x1x128xf32, #tpu.memory_space<vmem>>, %arg8: memref<16x128xf32, #tpu.memory_space<vmem>>) attributes {dimension_semantics = [#tpu.dimension_semantics<parallel>, #tpu.dimension_semantics<parallel>, #tpu.dimension_semantics<arbitrary>], iteration_bounds = array<i64: 1, 2, 6>, scalar_prefetch = 0 : i64, scratch_operands = 1 : i64, tpu.core_type = #tpu.core_type<tc>, window_params = [{transform_indices = @transform_0, window_bounds = array<i64: 16, 384>}, {transform_indices = @transform_1, window_bounds = array<i64: 384, 128>}, {transform_indices = @transform_2, window_bounds = array<i64: 16, 128>}, {transform_indices = @transform_3, window_bounds = array<i64: 1, 1, 128>}, {transform_indices = @transform_4, window_bounds = array<i64: 1, 1, 128>}]} {
    %c0_i32 = arith.constant 0 : i32
    %0 = arith.cmpi eq, %arg2, %c0_i32 : i32
    %1 = arith.extui %0 : i1 to i32
    %c0_i32_0 = arith.constant 0 : i32
    %2 = arith.cmpi ne, %1, %c0_i32_0 : i32
    scf.if %2 {
      %cst_9 = arith.constant 0.000000e+00 : f32
      %12 = vector.broadcast %cst_9 : f32 to vector<16x128xf32>
      %c0_10 = arith.constant 0 : index
      %c0_11 = arith.constant 0 : index
      %13 = vector.load %arg8[%c0_10, %c0_11] : memref<16x128xf32, #tpu.memory_space<vmem>>, vector<16x128xf32>
      tpu.vector_store %arg8[%c0_10, %c0_11], %12 {strides = array<i32>} : memref<16x128xf32, #tpu.memory_space<vmem>>, vector<16x128xf32>,
    } else {
    }
    %c0 = arith.constant 0 : index
    %c0_1 = arith.constant 0 : index
    %3 = vector.load %arg8[%c0, %c0_1] : memref<16x128xf32, #tpu.memory_space<vmem>>, vector<16x128xf32>
    %c0_2 = arith.constant 0 : index
    %c0_3 = arith.constant 0 : index
    %4 = vector.load %arg3[%c0_2, %c0_3] : memref<16x384xbf16, #tpu.memory_space<vmem>>, vector<16x384xbf16>
    %c0_4 = arith.constant 0 : index
    %c0_5 = arith.constant 0 : index
    %5 = vector.load %arg4[%c0_4, %c0_5] : memref<384x128xbf16, #tpu.memory_space<vmem>>, vector<384x128xbf16>
    %cst = arith.constant dense<0.000000e+00> : vector<16x128xf32>
    %6 = tpu.matmul %4, %5, %cst {dimension_numbers = #tpu.dot_dimension_numbers<[1], [0], [0], [1], [0, 0, 1, 1], [], []>} : vector<16x384xbf16>, vector<384x128xbf16>, vector<16x128xf32> -> vector<16x128xf32>
    %7 = arith.addf %3, %6 : vector<16x128xf32>
    %c0_6 = arith.constant 0 : index
    %c0_7 = arith.constant 0 : index
    %8 = vector.load %arg8[%c0_6, %c0_7] : memref<16x128xf32, #tpu.memory_space<vmem>>, vector<16x128xf32>
    tpu.vector_store %arg8[%c0_6, %c0_7], %7 {strides = array<i32>} : memref<16x128xf32, #tpu.memory_space<vmem>>, vector<16x128xf32>,
    %c5_i32 = arith.constant 5 : i32
    %9 = arith.cmpi eq, %arg2, %c5_i32 : i32
    %10 = arith.extui %9 : i1 to i32
    %c0_i32_8 = arith.constant 0 : i32
    %11 = arith.cmpi ne, %10, %c0_i32_8 : i32
    scf.if %11 {
      %c0_9 = arith.constant 0 : index
      %c0_10 = arith.constant 0 : index
      %12 = vector.load %arg8[%c0_9, %c0_10] : memref<16x128xf32, #tpu.memory_space<vmem>>, vector<16x128xf32>
      %c0_11 = arith.constant 0 : index
      %c0_12 = arith.constant 0 : index
      %13 = vector.load %arg5[%c0_11, %c0_12] : memref<16x128xf32, #tpu.memory_space<vmem>>, vector<16x128xf32>
      tpu.vector_store %arg5[%c0_11, %c0_12], %12 {strides = array<i32>} : memref<16x128xf32, #tpu.memory_space<vmem>>, vector<16x128xf32>,
      %cst_13 = arith.constant dense<0.000000e+00> : vector<128xf32>
      %14 = vector.multi_reduction <add>, %12, %cst_13 [0] : vector<16x128xf32> to vector<128xf32>
      %15 = vector.shape_cast %14 : vector<128xf32> to vector<1x128xf32>
      %16 = vector.shape_cast %15 : vector<1x128xf32> to vector<1x1x128xf32>
      %c0_14 = arith.constant 0 : index
      %c0_15 = arith.constant 0 : index
      %c0_16 = arith.constant 0 : index
      %17 = vector.load %arg6[%c0_14, %c0_15, %c0_16] : memref<1x1x128xf32, #tpu.memory_space<vmem>>, vector<1x1x128xf32>
      tpu.vector_store %arg6[%c0_14, %c0_15, %c0_16], %16 {strides = array<i32>} : memref<1x1x128xf32, #tpu.memory_space<vmem>>, vector<1x1x128xf32>,
      %18 = arith.mulf %12, %12 : vector<16x128xf32>
      %cst_17 = arith.constant dense<0.000000e+00> : vector<128xf32>
      %19 = vector.multi_reduction <add>, %18, %cst_17 [0] : vector<16x128xf32> to vector<128xf32>
      %20 = vector.shape_cast %19 : vector<128xf32> to vector<1x128xf32>
      %21 = vector.shape_cast %20 : vector<1x128xf32> to vector<1x1x128xf32>
      %c0_18 = arith.constant 0 : index
      %c0_19 = arith.constant 0 : index
      %c0_20 = arith.constant 0 : index
      %22 = vector.load %arg7[%c0_18, %c0_19, %c0_20] : memref<1x1x128xf32, #tpu.memory_space<vmem>>, vector<1x1x128xf32>
      tpu.vector_store %arg7[%c0_18, %c0_19, %c0_20], %21 {strides = array<i32>} : memref<1x1x128xf32, #tpu.memory_space<vmem>>, vector<1x1x128xf32>,
    } else {
    }
    return
  }
  func.func @transform_0(%arg0: i32, %arg1: i32, %arg2: i32) -> (i32, i32) {
    %c0_i32 = arith.constant 0 : i32
    return %arg0, %arg2 : i32, i32
  }
  func.func @transform_1(%arg0: i32, %arg1: i32, %arg2: i32) -> (i32, i32) {
    %c0_i32 = arith.constant 0 : i32
    return %arg2, %arg1 : i32, i32
  }
  func.func @transform_2(%arg0: i32, %arg1: i32, %arg2: i32) -> (i32, i32) {
    %c0_i32 = arith.constant 0 : i32
    return %arg0, %arg1 : i32, i32
  }
  func.func @transform_3(%arg0: i32, %arg1: i32, %arg2: i32) -> (i32, i32, i32) {
    %c0_i32 = arith.constant 0 : i32
    %c0_i32_0 = arith.constant 0 : i32
    return %arg0, %c0_i32, %arg1 : i32, i32, i32
  }
  func.func @transform_4(%arg0: i32, %arg1: i32, %arg2: i32) -> (i32, i32, i32) {
    %c0_i32 = arith.constant 0 : i32
    %c0_i32_0 = arith.constant 0 : i32
    return %arg0, %c0_i32, %arg1 : i32, i32, i32
  }
}

module attributes {stable_mosaic.version = 11 : i64} {
  func.func @_bn2_add_relu_kernel(%arg0: i32, %arg1: memref<8x256xf32, #tpu.memory_space<vmem>>, %arg2: memref<1x256xf32, #tpu.memory_space<vmem>>, %arg3: memref<1x256xf32, #tpu.memory_space<vmem>>, %arg4: memref<8x256xf32, #tpu.memory_space<vmem>>, %arg5: memref<1x256xf32, #tpu.memory_space<vmem>>, %arg6: memref<1x256xf32, #tpu.memory_space<vmem>>, %arg7: memref<8x256xbf16, #tpu.memory_space<vmem>>) attributes {dimension_semantics = [#tpu.dimension_semantics<parallel>], iteration_bounds = array<i64: 1>, scalar_prefetch = 0 : i64, scratch_operands = 0 : i64, tpu.core_type = #tpu.core_type<tc>, window_params = [{transform_indices = @transform_0, window_bounds = array<i64: 8, 256>}, {pipeline_mode = #tpu.pipeline_mode<synchronous>, transform_indices = @transform_1, window_bounds = array<i64: 1, 256>}, {pipeline_mode = #tpu.pipeline_mode<synchronous>, transform_indices = @transform_2, window_bounds = array<i64: 1, 256>}, {transform_indices = @transform_3, window_bounds = array<i64: 8, 256>}, {pipeline_mode = #tpu.pipeline_mode<synchronous>, transform_indices = @transform_4, window_bounds = array<i64: 1, 256>}, {pipeline_mode = #tpu.pipeline_mode<synchronous>, transform_indices = @transform_5, window_bounds = array<i64: 1, 256>}, {transform_indices = @transform_6, window_bounds = array<i64: 8, 256>}]} {
    %c0 = arith.constant 0 : index
    %c0_0 = arith.constant 0 : index
    %0 = vector.load %arg1[%c0, %c0_0] : memref<8x256xf32, #tpu.memory_space<vmem>>, vector<8x256xf32>
    %c0_1 = arith.constant 0 : index
    %c0_2 = arith.constant 0 : index
    %1 = vector.load %arg2[%c0_1, %c0_2] : memref<1x256xf32, #tpu.memory_space<vmem>>, vector<1x256xf32>
    %2 = vector.broadcast %1 : vector<1x256xf32> to vector<8x256xf32>
    %3 = arith.mulf %0, %2 : vector<8x256xf32>
    %c0_3 = arith.constant 0 : index
    %c0_4 = arith.constant 0 : index
    %4 = vector.load %arg3[%c0_3, %c0_4] : memref<1x256xf32, #tpu.memory_space<vmem>>, vector<1x256xf32>
    %5 = vector.broadcast %4 : vector<1x256xf32> to vector<8x256xf32>
    %6 = arith.addf %3, %5 : vector<8x256xf32>
    %c0_5 = arith.constant 0 : index
    %c0_6 = arith.constant 0 : index
    %7 = vector.load %arg4[%c0_5, %c0_6] : memref<8x256xf32, #tpu.memory_space<vmem>>, vector<8x256xf32>
    %c0_7 = arith.constant 0 : index
    %c0_8 = arith.constant 0 : index
    %8 = vector.load %arg5[%c0_7, %c0_8] : memref<1x256xf32, #tpu.memory_space<vmem>>, vector<1x256xf32>
    %9 = vector.broadcast %8 : vector<1x256xf32> to vector<8x256xf32>
    %10 = arith.mulf %7, %9 : vector<8x256xf32>
    %11 = arith.addf %6, %10 : vector<8x256xf32>
    %c0_9 = arith.constant 0 : index
    %c0_10 = arith.constant 0 : index
    %12 = vector.load %arg6[%c0_9, %c0_10] : memref<1x256xf32, #tpu.memory_space<vmem>>, vector<1x256xf32>
    %13 = vector.broadcast %12 : vector<1x256xf32> to vector<8x256xf32>
    %14 = arith.addf %11, %13 : vector<8x256xf32>
    %cst = arith.constant 0.000000e+00 : f32
    %15 = vector.broadcast %cst : f32 to vector<8x256xf32>
    %16 = arith.maximumf %14, %15 : vector<8x256xf32>
    %17 = arith.truncf %16 : vector<8x256xf32> to vector<8x256xbf16>
    %c0_11 = arith.constant 0 : index
    %c0_12 = arith.constant 0 : index
    %18 = vector.load %arg7[%c0_11, %c0_12] : memref<8x256xbf16, #tpu.memory_space<vmem>>, vector<8x256xbf16>
    tpu.vector_store %arg7[%c0_11, %c0_12], %17 {strides = array<i32>} : memref<8x256xbf16, #tpu.memory_space<vmem>>, vector<8x256xbf16>,
    return
  }
  func.func @transform_0(%arg0: i32) -> (i32, i32) {
    %c0_i32 = arith.constant 0 : i32
    %c0_i32_0 = arith.constant 0 : i32
    return %arg0, %c0_i32 : i32, i32
  }
  func.func @transform_1(%arg0: i32) -> (i32, i32) {
    %c0_i32 = arith.constant 0 : i32
    %c0_i32_0 = arith.constant 0 : i32
    %c0_i32_1 = arith.constant 0 : i32
    return %c0_i32, %c0_i32_0 : i32, i32
  }
  func.func @transform_2(%arg0: i32) -> (i32, i32) {
    %c0_i32 = arith.constant 0 : i32
    %c0_i32_0 = arith.constant 0 : i32
    %c0_i32_1 = arith.constant 0 : i32
    return %c0_i32, %c0_i32_0 : i32, i32
  }
  func.func @transform_3(%arg0: i32) -> (i32, i32) {
    %c0_i32 = arith.constant 0 : i32
    %c0_i32_0 = arith.constant 0 : i32
    return %arg0, %c0_i32 : i32, i32
  }
  func.func @transform_4(%arg0: i32) -> (i32, i32) {
    %c0_i32 = arith.constant 0 : i32
    %c0_i32_0 = arith.constant 0 : i32
    %c0_i32_1 = arith.constant 0 : i32
    return %c0_i32, %c0_i32_0 : i32, i32
  }
  func.func @transform_5(%arg0: i32) -> (i32, i32) {
    %c0_i32 = arith.constant 0 : i32
    %c0_i32_0 = arith.constant 0 : i32
    %c0_i32_1 = arith.constant 0 : i32
    return %c0_i32, %c0_i32_0 : i32, i32
  }
  func.func @transform_6(%arg0: i32) -> (i32, i32) {
    %c0_i32 = arith.constant 0 : i32
    %c0_i32_0 = arith.constant 0 : i32
    return %arg0, %c0_i32 : i32, i32
  }
}

module attributes {stable_mosaic.version = 11 : i64} {
  func.func @_mm_stats_kernel(%arg0: i32, %arg1: i32, %arg2: memref<16x256xbf16, #tpu.memory_space<vmem>>, %arg3: memref<256x128xbf16, #tpu.memory_space<vmem>>, %arg4: memref<16x128xf32, #tpu.memory_space<vmem>>, %arg5: memref<1x1x128xf32, #tpu.memory_space<vmem>>, %arg6: memref<1x1x128xf32, #tpu.memory_space<vmem>>) attributes {dimension_semantics = [#tpu.dimension_semantics<parallel>, #tpu.dimension_semantics<parallel>], iteration_bounds = array<i64: 1, 2>, scalar_prefetch = 0 : i64, scratch_operands = 0 : i64, tpu.core_type = #tpu.core_type<tc>, window_params = [{transform_indices = @transform_0, window_bounds = array<i64: 16, 256>}, {transform_indices = @transform_1, window_bounds = array<i64: 256, 128>}, {transform_indices = @transform_2, window_bounds = array<i64: 16, 128>}, {transform_indices = @transform_3, window_bounds = array<i64: 1, 1, 128>}, {transform_indices = @transform_4, window_bounds = array<i64: 1, 1, 128>}]} {
    %c0 = arith.constant 0 : index
    %c0_0 = arith.constant 0 : index
    %0 = vector.load %arg2[%c0, %c0_0] : memref<16x256xbf16, #tpu.memory_space<vmem>>, vector<16x256xbf16>
    %c0_1 = arith.constant 0 : index
    %c0_2 = arith.constant 0 : index
    %1 = vector.load %arg3[%c0_1, %c0_2] : memref<256x128xbf16, #tpu.memory_space<vmem>>, vector<256x128xbf16>
    %cst = arith.constant dense<0.000000e+00> : vector<16x128xf32>
    %2 = tpu.matmul %0, %1, %cst {dimension_numbers = #tpu.dot_dimension_numbers<[1], [0], [0], [1], [0, 0, 1, 1], [], []>} : vector<16x256xbf16>, vector<256x128xbf16>, vector<16x128xf32> -> vector<16x128xf32>
    %c0_3 = arith.constant 0 : index
    %c0_4 = arith.constant 0 : index
    %3 = vector.load %arg4[%c0_3, %c0_4] : memref<16x128xf32, #tpu.memory_space<vmem>>, vector<16x128xf32>
    tpu.vector_store %arg4[%c0_3, %c0_4], %2 {strides = array<i32>} : memref<16x128xf32, #tpu.memory_space<vmem>>, vector<16x128xf32>,
    %cst_5 = arith.constant dense<0.000000e+00> : vector<128xf32>
    %4 = vector.multi_reduction <add>, %2, %cst_5 [0] : vector<16x128xf32> to vector<128xf32>
    %5 = vector.shape_cast %4 : vector<128xf32> to vector<1x128xf32>
    %6 = vector.shape_cast %5 : vector<1x128xf32> to vector<1x1x128xf32>
    %c0_6 = arith.constant 0 : index
    %c0_7 = arith.constant 0 : index
    %c0_8 = arith.constant 0 : index
    %7 = vector.load %arg5[%c0_6, %c0_7, %c0_8] : memref<1x1x128xf32, #tpu.memory_space<vmem>>, vector<1x1x128xf32>
    tpu.vector_store %arg5[%c0_6, %c0_7, %c0_8], %6 {strides = array<i32>} : memref<1x1x128xf32, #tpu.memory_space<vmem>>, vector<1x1x128xf32>,
    %8 = arith.mulf %2, %2 : vector<16x128xf32>
    %cst_9 = arith.constant dense<0.000000e+00> : vector<128xf32>
    %9 = vector.multi_reduction <add>, %8, %cst_9 [0] : vector<16x128xf32> to vector<128xf32>
    %10 = vector.shape_cast %9 : vector<128xf32> to vector<1x128xf32>
    %11 = vector.shape_cast %10 : vector<1x128xf32> to vector<1x1x128xf32>
    %c0_10 = arith.constant 0 : index
    %c0_11 = arith.constant 0 : index
    %c0_12 = arith.constant 0 : index
    %12 = vector.load %arg6[%c0_10, %c0_11, %c0_12] : memref<1x1x128xf32, #tpu.memory_space<vmem>>, vector<1x1x128xf32>
    tpu.vector_store %arg6[%c0_10, %c0_11, %c0_12], %11 {strides = array<i32>} : memref<1x1x128xf32, #tpu.memory_space<vmem>>, vector<1x1x128xf32>,
    return
  }
  func.func @transform_0(%arg0: i32, %arg1: i32) -> (i32, i32) {
    %c0_i32 = arith.constant 0 : i32
    %c0_i32_0 = arith.constant 0 : i32
    return %arg0, %c0_i32 : i32, i32
  }
  func.func @transform_1(%arg0: i32, %arg1: i32) -> (i32, i32) {
    %c0_i32 = arith.constant 0 : i32
    %c0_i32_0 = arith.constant 0 : i32
    return %c0_i32, %arg1 : i32, i32
  }
  func.func @transform_2(%arg0: i32, %arg1: i32) -> (i32, i32) {
    %c0_i32 = arith.constant 0 : i32
    return %arg0, %arg1 : i32, i32
  }
  func.func @transform_3(%arg0: i32, %arg1: i32) -> (i32, i32, i32) {
    %c0_i32 = arith.constant 0 : i32
    %c0_i32_0 = arith.constant 0 : i32
    return %arg0, %c0_i32, %arg1 : i32, i32, i32
  }
  func.func @transform_4(%arg0: i32, %arg1: i32) -> (i32, i32, i32) {
    %c0_i32 = arith.constant 0 : i32
    %c0_i32_0 = arith.constant 0 : i32
    return %arg0, %c0_i32, %arg1 : i32, i32, i32
  }
}

module attributes {stable_mosaic.version = 11 : i64} {
  func.func @_mm_stats_kernel(%arg0: i32, %arg1: i32, %arg2: memref<16x256xbf16, #tpu.memory_space<vmem>>, %arg3: memref<256x256xbf16, #tpu.memory_space<vmem>>, %arg4: memref<16x256xf32, #tpu.memory_space<vmem>>, %arg5: memref<1x1x256xf32, #tpu.memory_space<vmem>>, %arg6: memref<1x1x256xf32, #tpu.memory_space<vmem>>) attributes {dimension_semantics = [#tpu.dimension_semantics<parallel>, #tpu.dimension_semantics<parallel>], iteration_bounds = array<i64: 1, 2>, scalar_prefetch = 0 : i64, scratch_operands = 0 : i64, tpu.core_type = #tpu.core_type<tc>, window_params = [{transform_indices = @transform_0, window_bounds = array<i64: 16, 256>}, {transform_indices = @transform_1, window_bounds = array<i64: 256, 256>}, {transform_indices = @transform_2, window_bounds = array<i64: 16, 256>}, {transform_indices = @transform_3, window_bounds = array<i64: 1, 1, 256>}, {transform_indices = @transform_4, window_bounds = array<i64: 1, 1, 256>}]} {
    %c0 = arith.constant 0 : index
    %c0_0 = arith.constant 0 : index
    %0 = vector.load %arg2[%c0, %c0_0] : memref<16x256xbf16, #tpu.memory_space<vmem>>, vector<16x256xbf16>
    %c0_1 = arith.constant 0 : index
    %c0_2 = arith.constant 0 : index
    %1 = vector.load %arg3[%c0_1, %c0_2] : memref<256x256xbf16, #tpu.memory_space<vmem>>, vector<256x256xbf16>
    %cst = arith.constant dense<0.000000e+00> : vector<16x256xf32>
    %2 = tpu.matmul %0, %1, %cst {dimension_numbers = #tpu.dot_dimension_numbers<[1], [0], [0], [1], [0, 0, 1, 1], [], []>} : vector<16x256xbf16>, vector<256x256xbf16>, vector<16x256xf32> -> vector<16x256xf32>
    %c0_3 = arith.constant 0 : index
    %c0_4 = arith.constant 0 : index
    %3 = vector.load %arg4[%c0_3, %c0_4] : memref<16x256xf32, #tpu.memory_space<vmem>>, vector<16x256xf32>
    tpu.vector_store %arg4[%c0_3, %c0_4], %2 {strides = array<i32>} : memref<16x256xf32, #tpu.memory_space<vmem>>, vector<16x256xf32>,
    %cst_5 = arith.constant dense<0.000000e+00> : vector<256xf32>
    %4 = vector.multi_reduction <add>, %2, %cst_5 [0] : vector<16x256xf32> to vector<256xf32>
    %5 = vector.shape_cast %4 : vector<256xf32> to vector<1x256xf32>
    %6 = vector.shape_cast %5 : vector<1x256xf32> to vector<1x1x256xf32>
    %c0_6 = arith.constant 0 : index
    %c0_7 = arith.constant 0 : index
    %c0_8 = arith.constant 0 : index
    %7 = vector.load %arg5[%c0_6, %c0_7, %c0_8] : memref<1x1x256xf32, #tpu.memory_space<vmem>>, vector<1x1x256xf32>
    tpu.vector_store %arg5[%c0_6, %c0_7, %c0_8], %6 {strides = array<i32>} : memref<1x1x256xf32, #tpu.memory_space<vmem>>, vector<1x1x256xf32>,
    %8 = arith.mulf %2, %2 : vector<16x256xf32>
    %cst_9 = arith.constant dense<0.000000e+00> : vector<256xf32>
    %9 = vector.multi_reduction <add>, %8, %cst_9 [0] : vector<16x256xf32> to vector<256xf32>
    %10 = vector.shape_cast %9 : vector<256xf32> to vector<1x256xf32>
    %11 = vector.shape_cast %10 : vector<1x256xf32> to vector<1x1x256xf32>
    %c0_10 = arith.constant 0 : index
    %c0_11 = arith.constant 0 : index
    %c0_12 = arith.constant 0 : index
    %12 = vector.load %arg6[%c0_10, %c0_11, %c0_12] : memref<1x1x256xf32, #tpu.memory_space<vmem>>, vector<1x1x256xf32>
    tpu.vector_store %arg6[%c0_10, %c0_11, %c0_12], %11 {strides = array<i32>} : memref<1x1x256xf32, #tpu.memory_space<vmem>>, vector<1x1x256xf32>,
    return
  }
  func.func @transform_0(%arg0: i32, %arg1: i32) -> (i32, i32) {
    %c0_i32 = arith.constant 0 : i32
    %c0_i32_0 = arith.constant 0 : i32
    return %arg0, %c0_i32 : i32, i32
  }
  func.func @transform_1(%arg0: i32, %arg1: i32) -> (i32, i32) {
    %c0_i32 = arith.constant 0 : i32
    %c0_i32_0 = arith.constant 0 : i32
    return %c0_i32, %arg1 : i32, i32
  }
  func.func @transform_2(%arg0: i32, %arg1: i32) -> (i32, i32) {
    %c0_i32 = arith.constant 0 : i32
    return %arg0, %arg1 : i32, i32
  }
  func.func @transform_3(%arg0: i32, %arg1: i32) -> (i32, i32, i32) {
    %c0_i32 = arith.constant 0 : i32
    %c0_i32_0 = arith.constant 0 : i32
    return %arg0, %c0_i32, %arg1 : i32, i32, i32
  }
  func.func @transform_4(%arg0: i32, %arg1: i32) -> (i32, i32, i32) {
    %c0_i32 = arith.constant 0 : i32
    %c0_i32_0 = arith.constant 0 : i32
    return %arg0, %c0_i32, %arg1 : i32, i32, i32
  }
}

module attributes {stable_mosaic.version = 11 : i64} {
  func.func @_mm_stats_kernel_k(%arg0: i32, %arg1: i32, %arg2: i32, %arg3: memref<16x384xbf16, #tpu.memory_space<vmem>>, %arg4: memref<384x256xbf16, #tpu.memory_space<vmem>>, %arg5: memref<16x256xf32, #tpu.memory_space<vmem>>, %arg6: memref<1x1x256xf32, #tpu.memory_space<vmem>>, %arg7: memref<1x1x256xf32, #tpu.memory_space<vmem>>, %arg8: memref<16x256xf32, #tpu.memory_space<vmem>>) attributes {dimension_semantics = [#tpu.dimension_semantics<parallel>, #tpu.dimension_semantics<parallel>, #tpu.dimension_semantics<arbitrary>], iteration_bounds = array<i64: 1, 2, 6>, scalar_prefetch = 0 : i64, scratch_operands = 1 : i64, tpu.core_type = #tpu.core_type<tc>, window_params = [{transform_indices = @transform_0, window_bounds = array<i64: 16, 384>}, {transform_indices = @transform_1, window_bounds = array<i64: 384, 256>}, {transform_indices = @transform_2, window_bounds = array<i64: 16, 256>}, {transform_indices = @transform_3, window_bounds = array<i64: 1, 1, 256>}, {transform_indices = @transform_4, window_bounds = array<i64: 1, 1, 256>}]} {
    %c0_i32 = arith.constant 0 : i32
    %0 = arith.cmpi eq, %arg2, %c0_i32 : i32
    %1 = arith.extui %0 : i1 to i32
    %c0_i32_0 = arith.constant 0 : i32
    %2 = arith.cmpi ne, %1, %c0_i32_0 : i32
    scf.if %2 {
      %cst_9 = arith.constant 0.000000e+00 : f32
      %12 = vector.broadcast %cst_9 : f32 to vector<16x256xf32>
      %c0_10 = arith.constant 0 : index
      %c0_11 = arith.constant 0 : index
      %13 = vector.load %arg8[%c0_10, %c0_11] : memref<16x256xf32, #tpu.memory_space<vmem>>, vector<16x256xf32>
      tpu.vector_store %arg8[%c0_10, %c0_11], %12 {strides = array<i32>} : memref<16x256xf32, #tpu.memory_space<vmem>>, vector<16x256xf32>,
    } else {
    }
    %c0 = arith.constant 0 : index
    %c0_1 = arith.constant 0 : index
    %3 = vector.load %arg8[%c0, %c0_1] : memref<16x256xf32, #tpu.memory_space<vmem>>, vector<16x256xf32>
    %c0_2 = arith.constant 0 : index
    %c0_3 = arith.constant 0 : index
    %4 = vector.load %arg3[%c0_2, %c0_3] : memref<16x384xbf16, #tpu.memory_space<vmem>>, vector<16x384xbf16>
    %c0_4 = arith.constant 0 : index
    %c0_5 = arith.constant 0 : index
    %5 = vector.load %arg4[%c0_4, %c0_5] : memref<384x256xbf16, #tpu.memory_space<vmem>>, vector<384x256xbf16>
    %cst = arith.constant dense<0.000000e+00> : vector<16x256xf32>
    %6 = tpu.matmul %4, %5, %cst {dimension_numbers = #tpu.dot_dimension_numbers<[1], [0], [0], [1], [0, 0, 1, 1], [], []>} : vector<16x384xbf16>, vector<384x256xbf16>, vector<16x256xf32> -> vector<16x256xf32>
    %7 = arith.addf %3, %6 : vector<16x256xf32>
    %c0_6 = arith.constant 0 : index
    %c0_7 = arith.constant 0 : index
    %8 = vector.load %arg8[%c0_6, %c0_7] : memref<16x256xf32, #tpu.memory_space<vmem>>, vector<16x256xf32>
    tpu.vector_store %arg8[%c0_6, %c0_7], %7 {strides = array<i32>} : memref<16x256xf32, #tpu.memory_space<vmem>>, vector<16x256xf32>,
    %c5_i32 = arith.constant 5 : i32
    %9 = arith.cmpi eq, %arg2, %c5_i32 : i32
    %10 = arith.extui %9 : i1 to i32
    %c0_i32_8 = arith.constant 0 : i32
    %11 = arith.cmpi ne, %10, %c0_i32_8 : i32
    scf.if %11 {
      %c0_9 = arith.constant 0 : index
      %c0_10 = arith.constant 0 : index
      %12 = vector.load %arg8[%c0_9, %c0_10] : memref<16x256xf32, #tpu.memory_space<vmem>>, vector<16x256xf32>
      %c0_11 = arith.constant 0 : index
      %c0_12 = arith.constant 0 : index
      %13 = vector.load %arg5[%c0_11, %c0_12] : memref<16x256xf32, #tpu.memory_space<vmem>>, vector<16x256xf32>
      tpu.vector_store %arg5[%c0_11, %c0_12], %12 {strides = array<i32>} : memref<16x256xf32, #tpu.memory_space<vmem>>, vector<16x256xf32>,
      %cst_13 = arith.constant dense<0.000000e+00> : vector<256xf32>
      %14 = vector.multi_reduction <add>, %12, %cst_13 [0] : vector<16x256xf32> to vector<256xf32>
      %15 = vector.shape_cast %14 : vector<256xf32> to vector<1x256xf32>
      %16 = vector.shape_cast %15 : vector<1x256xf32> to vector<1x1x256xf32>
      %c0_14 = arith.constant 0 : index
      %c0_15 = arith.constant 0 : index
      %c0_16 = arith.constant 0 : index
      %17 = vector.load %arg6[%c0_14, %c0_15, %c0_16] : memref<1x1x256xf32, #tpu.memory_space<vmem>>, vector<1x1x256xf32>
      tpu.vector_store %arg6[%c0_14, %c0_15, %c0_16], %16 {strides = array<i32>} : memref<1x1x256xf32, #tpu.memory_space<vmem>>, vector<1x1x256xf32>,
      %18 = arith.mulf %12, %12 : vector<16x256xf32>
      %cst_17 = arith.constant dense<0.000000e+00> : vector<256xf32>
      %19 = vector.multi_reduction <add>, %18, %cst_17 [0] : vector<16x256xf32> to vector<256xf32>
      %20 = vector.shape_cast %19 : vector<256xf32> to vector<1x256xf32>
      %21 = vector.shape_cast %20 : vector<1x256xf32> to vector<1x1x256xf32>
      %c0_18 = arith.constant 0 : index
      %c0_19 = arith.constant 0 : index
      %c0_20 = arith.constant 0 : index
      %22 = vector.load %arg7[%c0_18, %c0_19, %c0_20] : memref<1x1x256xf32, #tpu.memory_space<vmem>>, vector<1x1x256xf32>
      tpu.vector_store %arg7[%c0_18, %c0_19, %c0_20], %21 {strides = array<i32>} : memref<1x1x256xf32, #tpu.memory_space<vmem>>, vector<1x1x256xf32>,
    } else {
    }
    return
  }
  func.func @transform_0(%arg0: i32, %arg1: i32, %arg2: i32) -> (i32, i32) {
    %c0_i32 = arith.constant 0 : i32
    return %arg0, %arg2 : i32, i32
  }
  func.func @transform_1(%arg0: i32, %arg1: i32, %arg2: i32) -> (i32, i32) {
    %c0_i32 = arith.constant 0 : i32
    return %arg2, %arg1 : i32, i32
  }
  func.func @transform_2(%arg0: i32, %arg1: i32, %arg2: i32) -> (i32, i32) {
    %c0_i32 = arith.constant 0 : i32
    return %arg0, %arg1 : i32, i32
  }
  func.func @transform_3(%arg0: i32, %arg1: i32, %arg2: i32) -> (i32, i32, i32) {
    %c0_i32 = arith.constant 0 : i32
    %c0_i32_0 = arith.constant 0 : i32
    return %arg0, %c0_i32, %arg1 : i32, i32, i32
  }
  func.func @transform_4(%arg0: i32, %arg1: i32, %arg2: i32) -> (i32, i32, i32) {
    %c0_i32 = arith.constant 0 : i32
    %c0_i32_0 = arith.constant 0 : i32
    return %arg0, %c0_i32, %arg1 : i32, i32, i32
  }
}

module attributes {stable_mosaic.version = 11 : i64} {
  func.func @_bn_relu_kernel(%arg0: i32, %arg1: memref<8x512xf32, #tpu.memory_space<vmem>>, %arg2: memref<1x512xf32, #tpu.memory_space<vmem>>, %arg3: memref<1x512xf32, #tpu.memory_space<vmem>>, %arg4: memref<8x512xbf16, #tpu.memory_space<vmem>>) attributes {dimension_semantics = [#tpu.dimension_semantics<parallel>], iteration_bounds = array<i64: 1>, scalar_prefetch = 0 : i64, scratch_operands = 0 : i64, tpu.core_type = #tpu.core_type<tc>, window_params = [{transform_indices = @transform_0, window_bounds = array<i64: 8, 512>}, {pipeline_mode = #tpu.pipeline_mode<synchronous>, transform_indices = @transform_1, window_bounds = array<i64: 1, 512>}, {pipeline_mode = #tpu.pipeline_mode<synchronous>, transform_indices = @transform_2, window_bounds = array<i64: 1, 512>}, {transform_indices = @transform_3, window_bounds = array<i64: 8, 512>}]} {
    %c0 = arith.constant 0 : index
    %c0_0 = arith.constant 0 : index
    %0 = vector.load %arg1[%c0, %c0_0] : memref<8x512xf32, #tpu.memory_space<vmem>>, vector<8x512xf32>
    %c0_1 = arith.constant 0 : index
    %c0_2 = arith.constant 0 : index
    %1 = vector.load %arg2[%c0_1, %c0_2] : memref<1x512xf32, #tpu.memory_space<vmem>>, vector<1x512xf32>
    %2 = vector.broadcast %1 : vector<1x512xf32> to vector<8x512xf32>
    %3 = arith.mulf %0, %2 : vector<8x512xf32>
    %c0_3 = arith.constant 0 : index
    %c0_4 = arith.constant 0 : index
    %4 = vector.load %arg3[%c0_3, %c0_4] : memref<1x512xf32, #tpu.memory_space<vmem>>, vector<1x512xf32>
    %5 = vector.broadcast %4 : vector<1x512xf32> to vector<8x512xf32>
    %6 = arith.addf %3, %5 : vector<8x512xf32>
    %cst = arith.constant 0.000000e+00 : f32
    %7 = vector.broadcast %cst : f32 to vector<8x512xf32>
    %8 = arith.maximumf %6, %7 : vector<8x512xf32>
    %9 = arith.truncf %8 : vector<8x512xf32> to vector<8x512xbf16>
    %c0_5 = arith.constant 0 : index
    %c0_6 = arith.constant 0 : index
    %10 = vector.load %arg4[%c0_5, %c0_6] : memref<8x512xbf16, #tpu.memory_space<vmem>>, vector<8x512xbf16>
    tpu.vector_store %arg4[%c0_5, %c0_6], %9 {strides = array<i32>} : memref<8x512xbf16, #tpu.memory_space<vmem>>, vector<8x512xbf16>,
    return
  }
  func.func @transform_0(%arg0: i32) -> (i32, i32) {
    %c0_i32 = arith.constant 0 : i32
    %c0_i32_0 = arith.constant 0 : i32
    return %arg0, %c0_i32 : i32, i32
  }
  func.func @transform_1(%arg0: i32) -> (i32, i32) {
    %c0_i32 = arith.constant 0 : i32
    %c0_i32_0 = arith.constant 0 : i32
    %c0_i32_1 = arith.constant 0 : i32
    return %c0_i32, %c0_i32_0 : i32, i32
  }
  func.func @transform_2(%arg0: i32) -> (i32, i32) {
    %c0_i32 = arith.constant 0 : i32
    %c0_i32_0 = arith.constant 0 : i32
    %c0_i32_1 = arith.constant 0 : i32
    return %c0_i32, %c0_i32_0 : i32, i32
  }
  func.func @transform_3(%arg0: i32) -> (i32, i32) {
    %c0_i32 = arith.constant 0 : i32
    %c0_i32_0 = arith.constant 0 : i32
    return %arg0, %c0_i32 : i32, i32
  }
}

module attributes {stable_mosaic.version = 11 : i64} {
  func.func @_mm_stats_kernel_k(%arg0: i32, %arg1: i32, %arg2: i32, %arg3: memref<16x512xbf16, #tpu.memory_space<vmem>>, %arg4: memref<512x256xbf16, #tpu.memory_space<vmem>>, %arg5: memref<16x256xf32, #tpu.memory_space<vmem>>, %arg6: memref<1x1x256xf32, #tpu.memory_space<vmem>>, %arg7: memref<1x1x256xf32, #tpu.memory_space<vmem>>, %arg8: memref<16x256xf32, #tpu.memory_space<vmem>>) attributes {dimension_semantics = [#tpu.dimension_semantics<parallel>, #tpu.dimension_semantics<parallel>, #tpu.dimension_semantics<arbitrary>], iteration_bounds = array<i64: 1, 2, 9>, scalar_prefetch = 0 : i64, scratch_operands = 1 : i64, tpu.core_type = #tpu.core_type<tc>, window_params = [{transform_indices = @transform_0, window_bounds = array<i64: 16, 512>}, {transform_indices = @transform_1, window_bounds = array<i64: 512, 256>}, {transform_indices = @transform_2, window_bounds = array<i64: 16, 256>}, {transform_indices = @transform_3, window_bounds = array<i64: 1, 1, 256>}, {transform_indices = @transform_4, window_bounds = array<i64: 1, 1, 256>}]} {
    %c0_i32 = arith.constant 0 : i32
    %0 = arith.cmpi eq, %arg2, %c0_i32 : i32
    %1 = arith.extui %0 : i1 to i32
    %c0_i32_0 = arith.constant 0 : i32
    %2 = arith.cmpi ne, %1, %c0_i32_0 : i32
    scf.if %2 {
      %cst_9 = arith.constant 0.000000e+00 : f32
      %12 = vector.broadcast %cst_9 : f32 to vector<16x256xf32>
      %c0_10 = arith.constant 0 : index
      %c0_11 = arith.constant 0 : index
      %13 = vector.load %arg8[%c0_10, %c0_11] : memref<16x256xf32, #tpu.memory_space<vmem>>, vector<16x256xf32>
      tpu.vector_store %arg8[%c0_10, %c0_11], %12 {strides = array<i32>} : memref<16x256xf32, #tpu.memory_space<vmem>>, vector<16x256xf32>,
    } else {
    }
    %c0 = arith.constant 0 : index
    %c0_1 = arith.constant 0 : index
    %3 = vector.load %arg8[%c0, %c0_1] : memref<16x256xf32, #tpu.memory_space<vmem>>, vector<16x256xf32>
    %c0_2 = arith.constant 0 : index
    %c0_3 = arith.constant 0 : index
    %4 = vector.load %arg3[%c0_2, %c0_3] : memref<16x512xbf16, #tpu.memory_space<vmem>>, vector<16x512xbf16>
    %c0_4 = arith.constant 0 : index
    %c0_5 = arith.constant 0 : index
    %5 = vector.load %arg4[%c0_4, %c0_5] : memref<512x256xbf16, #tpu.memory_space<vmem>>, vector<512x256xbf16>
    %cst = arith.constant dense<0.000000e+00> : vector<16x256xf32>
    %6 = tpu.matmul %4, %5, %cst {dimension_numbers = #tpu.dot_dimension_numbers<[1], [0], [0], [1], [0, 0, 1, 1], [], []>} : vector<16x512xbf16>, vector<512x256xbf16>, vector<16x256xf32> -> vector<16x256xf32>
    %7 = arith.addf %3, %6 : vector<16x256xf32>
    %c0_6 = arith.constant 0 : index
    %c0_7 = arith.constant 0 : index
    %8 = vector.load %arg8[%c0_6, %c0_7] : memref<16x256xf32, #tpu.memory_space<vmem>>, vector<16x256xf32>
    tpu.vector_store %arg8[%c0_6, %c0_7], %7 {strides = array<i32>} : memref<16x256xf32, #tpu.memory_space<vmem>>, vector<16x256xf32>,
    %c8_i32 = arith.constant 8 : i32
    %9 = arith.cmpi eq, %arg2, %c8_i32 : i32
    %10 = arith.extui %9 : i1 to i32
    %c0_i32_8 = arith.constant 0 : i32
    %11 = arith.cmpi ne, %10, %c0_i32_8 : i32
    scf.if %11 {
      %c0_9 = arith.constant 0 : index
      %c0_10 = arith.constant 0 : index
      %12 = vector.load %arg8[%c0_9, %c0_10] : memref<16x256xf32, #tpu.memory_space<vmem>>, vector<16x256xf32>
      %c0_11 = arith.constant 0 : index
      %c0_12 = arith.constant 0 : index
      %13 = vector.load %arg5[%c0_11, %c0_12] : memref<16x256xf32, #tpu.memory_space<vmem>>, vector<16x256xf32>
      tpu.vector_store %arg5[%c0_11, %c0_12], %12 {strides = array<i32>} : memref<16x256xf32, #tpu.memory_space<vmem>>, vector<16x256xf32>,
      %cst_13 = arith.constant dense<0.000000e+00> : vector<256xf32>
      %14 = vector.multi_reduction <add>, %12, %cst_13 [0] : vector<16x256xf32> to vector<256xf32>
      %15 = vector.shape_cast %14 : vector<256xf32> to vector<1x256xf32>
      %16 = vector.shape_cast %15 : vector<1x256xf32> to vector<1x1x256xf32>
      %c0_14 = arith.constant 0 : index
      %c0_15 = arith.constant 0 : index
      %c0_16 = arith.constant 0 : index
      %17 = vector.load %arg6[%c0_14, %c0_15, %c0_16] : memref<1x1x256xf32, #tpu.memory_space<vmem>>, vector<1x1x256xf32>
      tpu.vector_store %arg6[%c0_14, %c0_15, %c0_16], %16 {strides = array<i32>} : memref<1x1x256xf32, #tpu.memory_space<vmem>>, vector<1x1x256xf32>,
      %18 = arith.mulf %12, %12 : vector<16x256xf32>
      %cst_17 = arith.constant dense<0.000000e+00> : vector<256xf32>
      %19 = vector.multi_reduction <add>, %18, %cst_17 [0] : vector<16x256xf32> to vector<256xf32>
      %20 = vector.shape_cast %19 : vector<256xf32> to vector<1x256xf32>
      %21 = vector.shape_cast %20 : vector<1x256xf32> to vector<1x1x256xf32>
      %c0_18 = arith.constant 0 : index
      %c0_19 = arith.constant 0 : index
      %c0_20 = arith.constant 0 : index
      %22 = vector.load %arg7[%c0_18, %c0_19, %c0_20] : memref<1x1x256xf32, #tpu.memory_space<vmem>>, vector<1x1x256xf32>
      tpu.vector_store %arg7[%c0_18, %c0_19, %c0_20], %21 {strides = array<i32>} : memref<1x1x256xf32, #tpu.memory_space<vmem>>, vector<1x1x256xf32>,
    } else {
    }
    return
  }
  func.func @transform_0(%arg0: i32, %arg1: i32, %arg2: i32) -> (i32, i32) {
    %c0_i32 = arith.constant 0 : i32
    return %arg0, %arg2 : i32, i32
  }
  func.func @transform_1(%arg0: i32, %arg1: i32, %arg2: i32) -> (i32, i32) {
    %c0_i32 = arith.constant 0 : i32
    return %arg2, %arg1 : i32, i32
  }
  func.func @transform_2(%arg0: i32, %arg1: i32, %arg2: i32) -> (i32, i32) {
    %c0_i32 = arith.constant 0 : i32
    return %arg0, %arg1 : i32, i32
  }
  func.func @transform_3(%arg0: i32, %arg1: i32, %arg2: i32) -> (i32, i32, i32) {
    %c0_i32 = arith.constant 0 : i32
    %c0_i32_0 = arith.constant 0 : i32
    return %arg0, %c0_i32, %arg1 : i32, i32, i32
  }
  func.func @transform_4(%arg0: i32, %arg1: i32, %arg2: i32) -> (i32, i32, i32) {
    %c0_i32 = arith.constant 0 : i32
    %c0_i32_0 = arith.constant 0 : i32
    return %arg0, %c0_i32, %arg1 : i32, i32, i32
  }
}

module attributes {stable_mosaic.version = 11 : i64} {
  func.func @_bn2_add_relu_kernel(%arg0: i32, %arg1: memref<8x512xf32, #tpu.memory_space<vmem>>, %arg2: memref<1x512xf32, #tpu.memory_space<vmem>>, %arg3: memref<1x512xf32, #tpu.memory_space<vmem>>, %arg4: memref<8x512xf32, #tpu.memory_space<vmem>>, %arg5: memref<1x512xf32, #tpu.memory_space<vmem>>, %arg6: memref<1x512xf32, #tpu.memory_space<vmem>>, %arg7: memref<8x512xbf16, #tpu.memory_space<vmem>>) attributes {dimension_semantics = [#tpu.dimension_semantics<parallel>], iteration_bounds = array<i64: 1>, scalar_prefetch = 0 : i64, scratch_operands = 0 : i64, tpu.core_type = #tpu.core_type<tc>, window_params = [{transform_indices = @transform_0, window_bounds = array<i64: 8, 512>}, {pipeline_mode = #tpu.pipeline_mode<synchronous>, transform_indices = @transform_1, window_bounds = array<i64: 1, 512>}, {pipeline_mode = #tpu.pipeline_mode<synchronous>, transform_indices = @transform_2, window_bounds = array<i64: 1, 512>}, {transform_indices = @transform_3, window_bounds = array<i64: 8, 512>}, {pipeline_mode = #tpu.pipeline_mode<synchronous>, transform_indices = @transform_4, window_bounds = array<i64: 1, 512>}, {pipeline_mode = #tpu.pipeline_mode<synchronous>, transform_indices = @transform_5, window_bounds = array<i64: 1, 512>}, {transform_indices = @transform_6, window_bounds = array<i64: 8, 512>}]} {
    %c0 = arith.constant 0 : index
    %c0_0 = arith.constant 0 : index
    %0 = vector.load %arg1[%c0, %c0_0] : memref<8x512xf32, #tpu.memory_space<vmem>>, vector<8x512xf32>
    %c0_1 = arith.constant 0 : index
    %c0_2 = arith.constant 0 : index
    %1 = vector.load %arg2[%c0_1, %c0_2] : memref<1x512xf32, #tpu.memory_space<vmem>>, vector<1x512xf32>
    %2 = vector.broadcast %1 : vector<1x512xf32> to vector<8x512xf32>
    %3 = arith.mulf %0, %2 : vector<8x512xf32>
    %c0_3 = arith.constant 0 : index
    %c0_4 = arith.constant 0 : index
    %4 = vector.load %arg3[%c0_3, %c0_4] : memref<1x512xf32, #tpu.memory_space<vmem>>, vector<1x512xf32>
    %5 = vector.broadcast %4 : vector<1x512xf32> to vector<8x512xf32>
    %6 = arith.addf %3, %5 : vector<8x512xf32>
    %c0_5 = arith.constant 0 : index
    %c0_6 = arith.constant 0 : index
    %7 = vector.load %arg4[%c0_5, %c0_6] : memref<8x512xf32, #tpu.memory_space<vmem>>, vector<8x512xf32>
    %c0_7 = arith.constant 0 : index
    %c0_8 = arith.constant 0 : index
    %8 = vector.load %arg5[%c0_7, %c0_8] : memref<1x512xf32, #tpu.memory_space<vmem>>, vector<1x512xf32>
    %9 = vector.broadcast %8 : vector<1x512xf32> to vector<8x512xf32>
    %10 = arith.mulf %7, %9 : vector<8x512xf32>
    %11 = arith.addf %6, %10 : vector<8x512xf32>
    %c0_9 = arith.constant 0 : index
    %c0_10 = arith.constant 0 : index
    %12 = vector.load %arg6[%c0_9, %c0_10] : memref<1x512xf32, #tpu.memory_space<vmem>>, vector<1x512xf32>
    %13 = vector.broadcast %12 : vector<1x512xf32> to vector<8x512xf32>
    %14 = arith.addf %11, %13 : vector<8x512xf32>
    %cst = arith.constant 0.000000e+00 : f32
    %15 = vector.broadcast %cst : f32 to vector<8x512xf32>
    %16 = arith.maximumf %14, %15 : vector<8x512xf32>
    %17 = arith.truncf %16 : vector<8x512xf32> to vector<8x512xbf16>
    %c0_11 = arith.constant 0 : index
    %c0_12 = arith.constant 0 : index
    %18 = vector.load %arg7[%c0_11, %c0_12] : memref<8x512xbf16, #tpu.memory_space<vmem>>, vector<8x512xbf16>
    tpu.vector_store %arg7[%c0_11, %c0_12], %17 {strides = array<i32>} : memref<8x512xbf16, #tpu.memory_space<vmem>>, vector<8x512xbf16>,
    return
  }
  func.func @transform_0(%arg0: i32) -> (i32, i32) {
    %c0_i32 = arith.constant 0 : i32
    %c0_i32_0 = arith.constant 0 : i32
    return %arg0, %c0_i32 : i32, i32
  }
  func.func @transform_1(%arg0: i32) -> (i32, i32) {
    %c0_i32 = arith.constant 0 : i32
    %c0_i32_0 = arith.constant 0 : i32
    %c0_i32_1 = arith.constant 0 : i32
    return %c0_i32, %c0_i32_0 : i32, i32
  }
  func.func @transform_2(%arg0: i32) -> (i32, i32) {
    %c0_i32 = arith.constant 0 : i32
    %c0_i32_0 = arith.constant 0 : i32
    %c0_i32_1 = arith.constant 0 : i32
    return %c0_i32, %c0_i32_0 : i32, i32
  }
  func.func @transform_3(%arg0: i32) -> (i32, i32) {
    %c0_i32 = arith.constant 0 : i32
    %c0_i32_0 = arith.constant 0 : i32
    return %arg0, %c0_i32 : i32, i32
  }
  func.func @transform_4(%arg0: i32) -> (i32, i32) {
    %c0_i32 = arith.constant 0 : i32
    %c0_i32_0 = arith.constant 0 : i32
    %c0_i32_1 = arith.constant 0 : i32
    return %c0_i32, %c0_i32_0 : i32, i32
  }
  func.func @transform_5(%arg0: i32) -> (i32, i32) {
    %c0_i32 = arith.constant 0 : i32
    %c0_i32_0 = arith.constant 0 : i32
    %c0_i32_1 = arith.constant 0 : i32
    return %c0_i32, %c0_i32_0 : i32, i32
  }
  func.func @transform_6(%arg0: i32) -> (i32, i32) {
    %c0_i32 = arith.constant 0 : i32
    %c0_i32_0 = arith.constant 0 : i32
    return %arg0, %c0_i32 : i32, i32
  }
}

module attributes {stable_mosaic.version = 11 : i64} {
  func.func @_mm_stats_kernel(%arg0: i32, %arg1: i32, %arg2: memref<16x512xbf16, #tpu.memory_space<vmem>>, %arg3: memref<512x256xbf16, #tpu.memory_space<vmem>>, %arg4: memref<16x256xf32, #tpu.memory_space<vmem>>, %arg5: memref<1x1x256xf32, #tpu.memory_space<vmem>>, %arg6: memref<1x1x256xf32, #tpu.memory_space<vmem>>) attributes {dimension_semantics = [#tpu.dimension_semantics<parallel>, #tpu.dimension_semantics<parallel>], iteration_bounds = array<i64: 1, 2>, scalar_prefetch = 0 : i64, scratch_operands = 0 : i64, tpu.core_type = #tpu.core_type<tc>, window_params = [{transform_indices = @transform_0, window_bounds = array<i64: 16, 512>}, {transform_indices = @transform_1, window_bounds = array<i64: 512, 256>}, {transform_indices = @transform_2, window_bounds = array<i64: 16, 256>}, {transform_indices = @transform_3, window_bounds = array<i64: 1, 1, 256>}, {transform_indices = @transform_4, window_bounds = array<i64: 1, 1, 256>}]} {
    %c0 = arith.constant 0 : index
    %c0_0 = arith.constant 0 : index
    %0 = vector.load %arg2[%c0, %c0_0] : memref<16x512xbf16, #tpu.memory_space<vmem>>, vector<16x512xbf16>
    %c0_1 = arith.constant 0 : index
    %c0_2 = arith.constant 0 : index
    %1 = vector.load %arg3[%c0_1, %c0_2] : memref<512x256xbf16, #tpu.memory_space<vmem>>, vector<512x256xbf16>
    %cst = arith.constant dense<0.000000e+00> : vector<16x256xf32>
    %2 = tpu.matmul %0, %1, %cst {dimension_numbers = #tpu.dot_dimension_numbers<[1], [0], [0], [1], [0, 0, 1, 1], [], []>} : vector<16x512xbf16>, vector<512x256xbf16>, vector<16x256xf32> -> vector<16x256xf32>
    %c0_3 = arith.constant 0 : index
    %c0_4 = arith.constant 0 : index
    %3 = vector.load %arg4[%c0_3, %c0_4] : memref<16x256xf32, #tpu.memory_space<vmem>>, vector<16x256xf32>
    tpu.vector_store %arg4[%c0_3, %c0_4], %2 {strides = array<i32>} : memref<16x256xf32, #tpu.memory_space<vmem>>, vector<16x256xf32>,
    %cst_5 = arith.constant dense<0.000000e+00> : vector<256xf32>
    %4 = vector.multi_reduction <add>, %2, %cst_5 [0] : vector<16x256xf32> to vector<256xf32>
    %5 = vector.shape_cast %4 : vector<256xf32> to vector<1x256xf32>
    %6 = vector.shape_cast %5 : vector<1x256xf32> to vector<1x1x256xf32>
    %c0_6 = arith.constant 0 : index
    %c0_7 = arith.constant 0 : index
    %c0_8 = arith.constant 0 : index
    %7 = vector.load %arg5[%c0_6, %c0_7, %c0_8] : memref<1x1x256xf32, #tpu.memory_space<vmem>>, vector<1x1x256xf32>
    tpu.vector_store %arg5[%c0_6, %c0_7, %c0_8], %6 {strides = array<i32>} : memref<1x1x256xf32, #tpu.memory_space<vmem>>, vector<1x1x256xf32>,
    %8 = arith.mulf %2, %2 : vector<16x256xf32>
    %cst_9 = arith.constant dense<0.000000e+00> : vector<256xf32>
    %9 = vector.multi_reduction <add>, %8, %cst_9 [0] : vector<16x256xf32> to vector<256xf32>
    %10 = vector.shape_cast %9 : vector<256xf32> to vector<1x256xf32>
    %11 = vector.shape_cast %10 : vector<1x256xf32> to vector<1x1x256xf32>
    %c0_10 = arith.constant 0 : index
    %c0_11 = arith.constant 0 : index
    %c0_12 = arith.constant 0 : index
    %12 = vector.load %arg6[%c0_10, %c0_11, %c0_12] : memref<1x1x256xf32, #tpu.memory_space<vmem>>, vector<1x1x256xf32>
    tpu.vector_store %arg6[%c0_10, %c0_11, %c0_12], %11 {strides = array<i32>} : memref<1x1x256xf32, #tpu.memory_space<vmem>>, vector<1x1x256xf32>,
    return
  }
  func.func @transform_0(%arg0: i32, %arg1: i32) -> (i32, i32) {
    %c0_i32 = arith.constant 0 : i32
    %c0_i32_0 = arith.constant 0 : i32
    return %arg0, %c0_i32 : i32, i32
  }
  func.func @transform_1(%arg0: i32, %arg1: i32) -> (i32, i32) {
    %c0_i32 = arith.constant 0 : i32
    %c0_i32_0 = arith.constant 0 : i32
    return %c0_i32, %arg1 : i32, i32
  }
  func.func @transform_2(%arg0: i32, %arg1: i32) -> (i32, i32) {
    %c0_i32 = arith.constant 0 : i32
    return %arg0, %arg1 : i32, i32
  }
  func.func @transform_3(%arg0: i32, %arg1: i32) -> (i32, i32, i32) {
    %c0_i32 = arith.constant 0 : i32
    %c0_i32_0 = arith.constant 0 : i32
    return %arg0, %c0_i32, %arg1 : i32, i32, i32
  }
  func.func @transform_4(%arg0: i32, %arg1: i32) -> (i32, i32, i32) {
    %c0_i32 = arith.constant 0 : i32
    %c0_i32_0 = arith.constant 0 : i32
    return %arg0, %c0_i32, %arg1 : i32, i32, i32
  }
}

module attributes {stable_mosaic.version = 11 : i64} {
  func.func @_mm_kernel(%arg0: i32, %arg1: i32, %arg2: memref<16x512xbf16, #tpu.memory_space<vmem>>, %arg3: memref<512x256xbf16, #tpu.memory_space<vmem>>, %arg4: memref<16x256xf32, #tpu.memory_space<vmem>>) attributes {dimension_semantics = [#tpu.dimension_semantics<parallel>, #tpu.dimension_semantics<parallel>], iteration_bounds = array<i64: 1, 4>, scalar_prefetch = 0 : i64, scratch_operands = 0 : i64, tpu.core_type = #tpu.core_type<tc>, window_params = [{transform_indices = @transform_0, window_bounds = array<i64: 16, 512>}, {transform_indices = @transform_1, window_bounds = array<i64: 512, 256>}, {transform_indices = @transform_2, window_bounds = array<i64: 16, 256>}]} {
    %c0 = arith.constant 0 : index
    %c0_0 = arith.constant 0 : index
    %0 = vector.load %arg2[%c0, %c0_0] : memref<16x512xbf16, #tpu.memory_space<vmem>>, vector<16x512xbf16>
    %c0_1 = arith.constant 0 : index
    %c0_2 = arith.constant 0 : index
    %1 = vector.load %arg3[%c0_1, %c0_2] : memref<512x256xbf16, #tpu.memory_space<vmem>>, vector<512x256xbf16>
    %cst = arith.constant dense<0.000000e+00> : vector<16x256xf32>
    %2 = tpu.matmul %0, %1, %cst {dimension_numbers = #tpu.dot_dimension_numbers<[1], [0], [0], [1], [0, 0, 1, 1], [], []>} : vector<16x512xbf16>, vector<512x256xbf16>, vector<16x256xf32> -> vector<16x256xf32>
    %c0_3 = arith.constant 0 : index
    %c0_4 = arith.constant 0 : index
    %3 = vector.load %arg4[%c0_3, %c0_4] : memref<16x256xf32, #tpu.memory_space<vmem>>, vector<16x256xf32>
    tpu.vector_store %arg4[%c0_3, %c0_4], %2 {strides = array<i32>} : memref<16x256xf32, #tpu.memory_space<vmem>>, vector<16x256xf32>,
    return
  }
  func.func @transform_0(%arg0: i32, %arg1: i32) -> (i32, i32) {
    %c0_i32 = arith.constant 0 : i32
    %c0_i32_0 = arith.constant 0 : i32
    return %arg0, %c0_i32 : i32, i32
  }
  func.func @transform_1(%arg0: i32, %arg1: i32) -> (i32, i32) {
    %c0_i32 = arith.constant 0 : i32
    %c0_i32_0 = arith.constant 0 : i32
    return %c0_i32, %arg1 : i32, i32
  }
  func.func @transform_2(%arg0: i32, %arg1: i32) -> (i32, i32) {
    %c0_i32 = arith.constant 0 : i32
    return %arg0, %arg1 : i32, i32
  }
}

</mosaic_0001>

<bundles_post_ra>
// kernel: _lambda_.42
= control target key start
LH: loop header
LB: loop body
LE: loop exit
PB: predicated region body
PF: predicated region fallthrough
CT: control target
= control target key end

     0   :  { %s719_s0 = inlined_call_operand.vmem [shape: f32[256,128], index: 0, kind: input, shape index: {}]   ;;  %s720_s1 = inlined_call_operand.vmem [shape: f32[1,128], index: 1, kind: input, shape index: {}]   ;;  %s721_s2 = inlined_call_operand.vmem [shape: f32[1,128], index: 2, kind: input, shape index: {}]   ;;  %s722_s3 = inlined_call_operand.vmem [shape: bf16[256,128], index: 3, kind: output, shape index: {}]  }
   0x1   :  { %v14_v0 = vld [vmem:[%s719_s0] sm:$0xff]  ;;  %v15_v1 = vld [vmem:[%s719_s0 + $0x8] sm:$0xff]  ;;  %v16_v6 = vld [vmem:[%s719_s0 + $0x10] sm:$0xff] }
   0x2   :  { %v510_v2 = vld [vmem:[%s720_s1] ss:$0 sm:$0xff]  ;;  %v17_v7 = vld [vmem:[%s719_s0 + $0x18] sm:$0xff]  ;;  %v19_v11 = vld [vmem:[%s719_s0 + $0x28] sm:$0xff] }
   0x3   :  { %v53_v3 = vmul.f32 %v510_v2, %v14_v0  ;;  %v54_v4 = vmul.f32 %v510_v2, %v15_v1  ;;  %v517_v5 = vld [vmem:[%s721_s2] ss:$0 sm:$0xff]  ;;  %v55_v8 = vmul.f32 %v510_v2, %v16_v6  ;;  %v56_v9 = vmul.f32 %v510_v2, %v17_v7  ;;  %v20_v12 = vld [vmem:[%s719_s0 + $0x30] sm:$0xff]  ;;  %v21_v17 = vld [vmem:[%s719_s0 + $0x38] sm:$0xff] }
   0x4   :  { %v18_v10 = vld [vmem:[%s719_s0 + $0x20] sm:$0xff]  ;;  %v58_v16 = vmul.f32 %v510_v2, %v19_v11  ;;  %v59_v20 = vmul.f32 %v510_v2, %v20_v12  ;;  %v60_v21 = vmul.f32 %v510_v2, %v21_v17  ;;  %v23_v27 = vld [vmem:[%s719_s0 + $0x48] sm:$0xff]  ;;  %v24_v32 = vld [vmem:[%s719_s0 + $0x50] sm:$0xff] }
   0x5   :  { %v92_v13 = vadd.f32 %v517_v5, %v53_v3  ;;  %v93_v14 = vadd.f32 %v517_v5, %v54_v4  ;;  %v57_v15 = vmul.f32 %v510_v2, %v18_v10  ;;  %v94_v18 = vadd.f32 %v517_v5, %v55_v8  ;;  %v22_v22 = vld [vmem:[%s719_s0 + $0x40] sm:$0xff]  ;;  %v25_v33 = vld [vmem:[%s719_s0 + $0x58] sm:$0xff]  ;;  %v27_v39 = vld [vmem:[%s719_s0 + $0x68] sm:$0xff] }
   0x6   :  { %v95_v19 = vadd.f32 %v517_v5, %v56_v9  ;;  %v97_v26 = vadd.f32 %v517_v5, %v58_v16  ;;  %v98_v30 = vadd.f32 %v517_v5, %v59_v20  ;;  %v99_v31 = vadd.f32 %v517_v5, %v60_v21  ;;  %v26_v38 = vld [vmem:[%s719_s0 + $0x60] sm:$0xff]  ;;  %v28_v44 = vld [vmem:[%s719_s0 + $0x70] sm:$0xff]  ;;  %v29_v49 = vld [vmem:[%s719_s0 + $0x78] sm:$0xff] }
   0x7   :  { %v124_v23 = vmax.f32 %v92_v13, 0.0  ;;  %v125_v24 = vmax.f32 %v93_v14, 0.0  ;;  %v96_v25 = vadd.f32 %v517_v5, %v57_v15  ;;  %v126_v28 = vmax.f32 %v94_v18, 0.0  ;;  %v30_v54 = vld [vmem:[%s719_s0 + $0x80] sm:$0xff]  ;;  %v31_v63 = vld [vmem:[%s719_s0 + $0x88] sm:$0xff]  ;;  %v32_v6 = vld [vmem:[%s719_s0 + $0x90] sm:$0xff] }
   0x8   :  { %v127_v29 = vmax.f32 %v95_v19, 0.0  ;;  %v129_v36 = vmax.f32 %v97_v26, 0.0  ;;  %v61_v37 = vmul.f32 %v510_v2, %v22_v22  ;;  %v130_v41 = vmax.f32 %v98_v30, 0.0  ;;  %v33_v7 = vld [vmem:[%s719_s0 + $0x98] sm:$0xff]  ;;  %v34_v12 = vld [vmem:[%s719_s0 + $0xa0] sm:$0xff]  ;;  %v35_v13 = vld [vmem:[%s719_s0 + $0xa8] sm:$0xff] }
   0x9   :  { %v389_v34 = vpack.c.bf16 %v125_v24, %v124_v23  ;;  %v128_v35 = vmax.f32 %v96_v25, 0.0  ;;  %v131_v42 = vmax.f32 %v99_v31, 0.0  ;;  %v62_v43 = vmul.f32 %v510_v2, %v23_v27  ;;  %v36_v18 = vld [vmem:[%s719_s0 + $0xb0] sm:$0xff]  ;;  %v37_v23 = vld [vmem:[%s719_s0 + $0xb8] sm:$0xff] }
   0xa   :  { %v394_v40 = vpack.c.bf16 %v127_v29, %v126_v28  ;;  %v100_v46 = vadd.f32 %v517_v5, %v61_v37  ;;  %v63_v47 = vmul.f32 %v510_v2, %v24_v32  ;;  %v64_v48 = vmul.f32 %v510_v2, %v25_v33  ;;  %v38_v28 = vld [vmem:[%s719_s0 + $0xc0] sm:$0xff]  ;;  %v39_v37 = vld [vmem:[%s719_s0 + $0xc8] sm:$0xff] }
   0xb   :  { %390 = vst [vmem:[%s722_s3] sm:$0xff] %v389_v34   ;;  %v399_v45 = vpack.c.bf16 %v129_v36, %v128_v35  ;;  %v404_v50 = vpack.c.bf16 %v131_v42, %v130_v41  ;;  %v101_v51 = vadd.f32 %v517_v5, %v62_v43  ;;  %v65_v52 = vmul.f32 %v510_v2, %v26_v38  ;;  %v40_v42 = vld [vmem:[%s719_s0 + $0xd0] sm:$0xff]  ;;  %v41_v43 = vld [vmem:[%s719_s0 + $0xd8] sm:$0xff] }
   0xc   :  { %466 = vst [vmem:[%s722_s3 + $0x8] sm:$0xff] %v394_v40   ;;  %v66_v53 = vmul.f32 %v510_v2, %v27_v39  ;;  %v132_v55 = vmax.f32 %v100_v46, 0.0  ;;  %v102_v56 = vadd.f32 %v517_v5, %v63_v47  ;;  %v103_v57 = vadd.f32 %v517_v5, %v64_v48  ;;  %v42_v48 = vld [vmem:[%s719_s0 + $0xe0] sm:$0xff] }
   0xd   :  { %467 = vst [vmem:[%s722_s3 + $0x10] sm:$0xff] %v399_v45   ;;  %v67_v58 = vmul.f32 %v510_v2, %v28_v44  ;;  %468 = vst [vmem:[%s722_s3 + $0x18] sm:$0xff] %v404_v50   ;;  %v133_v59 = vmax.f32 %v101_v51, 0.0  ;;  %v104_v60 = vadd.f32 %v517_v5, %v65_v52  ;;  %v68_v62 = vmul.f32 %v510_v2, %v29_v49  ;;  %v43_v49 = vld [vmem:[%s719_s0 + $0xe8] sm:$0xff] }
   0xe   :  { %v105_v61 = vadd.f32 %v517_v5, %v66_v53  ;;  %v134_v0 = vmax.f32 %v102_v56, 0.0  ;;  %v135_v1 = vmax.f32 %v103_v57, 0.0  ;;  %v69_v4 = vmul.f32 %v510_v2, %v30_v54  ;;  %v44_v54 = vld [vmem:[%s719_s0 + $0xf0] sm:$0xff] }
   0xf   :  { %v106_v3 = vadd.f32 %v517_v5, %v67_v58  ;;  %v409_v8 = vpack.c.bf16 %v133_v59, %v132_v55  ;;  %v136_v9 = vmax.f32 %v104_v60, 0.0  ;;  %v107_v11 = vadd.f32 %v517_v5, %v68_v62  ;;  %v45_v59 = vld [vmem:[%s719_s0 + $0xf8] sm:$0xff] }
  0x10   :  { %v137_v10 = vmax.f32 %v105_v61, 0.0  ;;  %v414_v14 = vpack.c.bf16 %v135_v1, %v134_v0  ;;  %v70_v16 = vmul.f32 %v510_v2, %v31_v63  ;;  %v108_v17 = vadd.f32 %v517_v5, %v69_v4 }
  0x11   :  { %v138_v15 = vmax.f32 %v106_v3, 0.0  ;;  %469 = vst [vmem:[%s722_s3 + $0x20] sm:$0xff] %v409_v8   ;;  %v139_v20 = vmax.f32 %v107_v11, 0.0  ;;  %v71_v21 = vmul.f32 %v510_v2, %v32_v6  ;;  %v72_v22 = vmul.f32 %v510_v2, %v33_v7 }
  0x12   :  { %v419_v19 = vpack.c.bf16 %v137_v10, %v136_v9  ;;  %470 = vst [vmem:[%s722_s3 + $0x28] sm:$0xff] %v414_v14   ;;  %v109_v24 = vadd.f32 %v517_v5, %v70_v16  ;;  %v140_v25 = vmax.f32 %v108_v17, 0.0  ;;  %v73_v26 = vmul.f32 %v510_v2, %v34_v12 }
  0x13   :  { %v74_v27 = vmul.f32 %v510_v2, %v35_v13  ;;  %v424_v29 = vpack.c.bf16 %v139_v20, %v138_v15  ;;  %v110_v30 = vadd.f32 %v517_v5, %v71_v21  ;;  %v111_v31 = vadd.f32 %v517_v5, %v72_v22 }
  0x14   :  { %471 = vst [vmem:[%s722_s3 + $0x30] sm:$0xff] %v419_v19   ;;  %v75_v32 = vmul.f32 %v510_v2, %v36_v18  ;;  %v141_v33 = vmax.f32 %v109_v24, 0.0  ;;  %v112_v34 = vadd.f32 %v517_v5, %v73_v26  ;;  %v76_v36 = vmul.f32 %v510_v2, %v37_v23 }
  0x15   :  { %v113_v35 = vadd.f32 %v517_v5, %v74_v27  ;;  %472 = vst [vmem:[%s722_s3 + $0x38] sm:$0xff] %v424_v29   ;;  %v142_v38 = vmax.f32 %v110_v30, 0.0  ;;  %v143_v39 = vmax.f32 %v111_v31, 0.0  ;;  %v77_v41 = vmul.f32 %v510_v2, %v38_v28 }
  0x16   :  { %v114_v40 = vadd.f32 %v517_v5, %v75_v32  ;;  %v429_v44 = vpack.c.bf16 %v141_v33, %v140_v25  ;;  %v144_v45 = vmax.f32 %v112_v34, 0.0  ;;  %v115_v47 = vadd.f32 %v517_v5, %v76_v36 }
  0x17   :  { %v145_v46 = vmax.f32 %v113_v35, 0.0  ;;  %v434_v50 = vpack.c.bf16 %v143_v39, %v142_v38  ;;  %v78_v52 = vmul.f32 %v510_v2, %v39_v37  ;;  %v116_v53 = vadd.f32 %v517_v5, %v77_v41 }
  0x18   :  { %v146_v51 = vmax.f32 %v114_v40, 0.0  ;;  %473 = vst [vmem:[%s722_s3 + $0x40] sm:$0xff] %v429_v44   ;;  %v147_v56 = vmax.f32 %v115_v47, 0.0  ;;  %v79_v57 = vmul.f32 %v510_v2, %v40_v42  ;;  %v80_v58 = vmul.f32 %v510_v2, %v41_v43 }
  0x19   :  { %v439_v55 = vpack.c.bf16 %v145_v46, %v144_v45  ;;  %474 = vst [vmem:[%s722_s3 + $0x48] sm:$0xff] %v434_v50   ;;  %v117_v60 = vadd.f32 %v517_v5, %v78_v52  ;;  %v148_v61 = vmax.f32 %v116_v53, 0.0  ;;  %v81_v62 = vmul.f32 %v510_v2, %v42_v48 }
  0x1a   :  { %v82_v63 = vmul.f32 %v510_v2, %v43_v49  ;;  %v444_v0 = vpack.c.bf16 %v147_v56, %v146_v51  ;;  %v118_v1 = vadd.f32 %v517_v5, %v79_v57  ;;  %v119_v3 = vadd.f32 %v517_v5, %v80_v58 }
  0x1b   :  { %475 = vst [vmem:[%s722_s3 + $0x50] sm:$0xff] %v439_v55   ;;  %v83_v4 = vmul.f32 %v510_v2, %v44_v54  ;;  %v149_v6 = vmax.f32 %v117_v60, 0.0  ;;  %v120_v7 = vadd.f32 %v517_v5, %v81_v62  ;;  %v84_v9 = vmul.f32 %v510_v2, %v45_v59 }
  0x1c   :  { %v121_v8 = vadd.f32 %v517_v5, %v82_v63  ;;  %476 = vst [vmem:[%s722_s3 + $0x58] sm:$0xff] %v444_v0   ;;  %v150_v10 = vmax.f32 %v118_v1, 0.0  ;;  %v151_v11 = vmax.f32 %v119_v3, 0.0 }
  0x1d   :  { %v122_v12 = vadd.f32 %v517_v5, %v83_v4  ;;  %v449_v13 = vpack.c.bf16 %v149_v6, %v148_v61  ;;  %v152_v14 = vmax.f32 %v120_v7, 0.0  ;;  %v123_v16 = vadd.f32 %v517_v5, %v84_v9 }
  0x1e   :  { %v153_v15 = vmax.f32 %v121_v8, 0.0  ;;  %v454_v17 = vpack.c.bf16 %v151_v11, %v150_v10 }
  0x1f   :  { %v154_v18 = vmax.f32 %v122_v12, 0.0  ;;  %477 = vst [vmem:[%s722_s3 + $0x60] sm:$0xff] %v449_v13   ;;  %v155_v19 = vmax.f32 %v123_v16, 0.0 }
  0x20   :  { %v459_v2 = vpack.c.bf16 %v153_v15, %v152_v14  ;;  %478 = vst [vmem:[%s722_s3 + $0x68] sm:$0xff] %v454_v17  }
  0x21   :  { %v464_v20 = vpack.c.bf16 %v155_v19, %v154_v18 }
  0x22   :  { %479 = vst [vmem:[%s722_s3 + $0x70] sm:$0xff] %v459_v2  }
  0x23   :  { %480 = vst [vmem:[%s722_s3 + $0x78] sm:$0xff] %v464_v20  }

// kernel: _lambda_.41
= control target key start
LH: loop header
LB: loop body
LE: loop exit
PB: predicated region body
PF: predicated region fallthrough
CT: control target
= control target key end

     0   :  { %s1383_s15 = smov 0   ;;  %s1385_s16 = smov 0   ;;  %s1634_s0 = inlined_call_operand.vmem [shape: bf16[512,256], index: 0, kind: input, shape index: {}]   ;;  %s1635_s1 = inlined_call_operand.vmem [shape: bf16[256,128], index: 1, kind: input, shape index: {}]   ;;  %s1636_s2 = inlined_call_operand.vmem [shape: f32[512,128], index: 2, kind: output, shape index: {0}]   ;;  %s1637_s3 = inlined_call_operand.vmem [shape: f32[2,1,128], index: 3, kind: output, shape index: {1}]   ;;  %s1638_s4 = inlined_call_operand.vmem [shape: f32[2,1,128], index: 4, kind: output, shape index: {2}]  }
   0x1   :  { %s1387_s17 = smov 0  }
   0x2 LB: > { %s27_s18 = sadd.s32 1, %s1352_s16  ;;  %p1061_p0 = scmp.ge.s32.totalorder %s1356_s17, 1  ;;  %s1356_s17 = sphi %s1387_s17, %s15_s17   ;;  %s1352_s16 = sphi %s1385_s16, %s1640_s16   ;;  %s1348_s15 = sphi %s1383_s15, %s1639_s15  }
   0x3   : > { %p29_p1 = scmp.ge.s32.totalorder %s27_s18, 2  ;;  %p196_p2 = scmp.lt.s32.totalorder %s1356_s17, 3 }
   0x5   : > { %s1642_s18 = smov (%p29_p1, %s27_s18), 0  ;;  %p197_p3 = pnand %p1061_p0, %p196_p2 }
   0x6   : > { %v1270_v0 = vld [vmem:[%s1635_s1 + $0x40] sm:$0xff] (!%p197_p3)   ;;  %s1062_s21 = sshll.u32 (!%p197_p3), %s1348_s15, 5  ;;  %v1272_v2 = vld [vmem:[%s1635_s1 + $0x48] sm:$0xff] (!%p197_p3)   ;;  %v1274_v4 = vld [vmem:[%s1635_s1 + $0x50] sm:$0xff] (!%p197_p3)   ;;  %p262_p5 = scmp.lt.s32.totalorder (!%p197_p3), %s1348_s15, 1 }
   0x7   : > { %200 = sbr.rel (%p197_p3) target bundleno = 361 (0x169), region = 28  ;;  %v1271_v1 = vld [vmem:[%s1635_s1] sm:$0xff] (!%p197_p3)   ;;  %1118 = vmatprep.subr.bf16.mxu0 (!%p197_p3), %v1270_v0  ;;  %1230 = vmatprep.subr.bf16.mxu1 (!%p197_p3), %v1270_v0  ;;  %v1273_v3 = vld [vmem:[%s1635_s1 + $0x8] sm:$0xff] (!%p197_p3)   ;;  %p243_p4 = scmp.lt.s32.totalorder (!%p197_p3), %s1062_s21, 63  ;;  %v1275_v5 = vld [vmem:[%s1635_s1 + $0x10] sm:$0xff] (!%p197_p3)  }
   0x8   : > { %1119 = vmatpush3.bf16.msra.mxu0 (!%p197_p3), %v1271_v1  ;;  %1238 = vmatpush3.bf16.msra.mxu1 (!%p197_p3), %v1271_v1  ;;  %v1276_v6 = vld [vmem:[%s1635_s1 + $0x58] sm:$0xff] (!%p197_p3)   ;;  %v1278_v8 = vld [vmem:[%s1635_s1 + $0x60] sm:$0xff] (!%p197_p3)   ;;  %v1280_v10 = vld [vmem:[%s1635_s1 + $0x68] sm:$0xff] (!%p197_p3)  }
   0x9   : > { %1120 = vmatprep.subr.bf16.mxu0 (!%p197_p3), %v1272_v2  ;;  %1231 = vmatprep.subr.bf16.mxu1 (!%p197_p3), %v1272_v2  ;;  %v1277_v7 = vld [vmem:[%s1635_s1 + $0x18] sm:$0xff] (!%p197_p3)   ;;  %v1279_v9 = vld [vmem:[%s1635_s1 + $0x20] sm:$0xff] (!%p197_p3)   ;;  %v1281_v12 = vld [vmem:[%s1635_s1 + $0x28] sm:$0xff] (!%p197_p3)  }
   0xa   : > { %v1282_v13 = vld [vmem:[%s1635_s1 + $0x70] sm:$0xff] (!%p197_p3)   ;;  %v1284_v16 = vld [vmem:[%s1635_s1 + $0x78] sm:$0xff] (!%p197_p3)  }
   0xb   : > { %v1283_v15 = vld [vmem:[%s1635_s1 + $0x30] sm:$0xff] (!%p197_p3)   ;;  %v1285_v17 = vld [vmem:[%s1635_s1 + $0x38] sm:$0xff] (!%p197_p3)  }
   0xc   : > { %1121 = vmatpush3.bf16.msra.mxu0 (!%p197_p3), %v1273_v3  ;;  %1239 = vmatpush3.bf16.msra.mxu1 (!%p197_p3), %v1273_v3 }
   0xd   : > { %1122 = vmatprep.subr.bf16.mxu0 (!%p197_p3), %v1274_v4  ;;  %1232 = vmatprep.subr.bf16.mxu1 (!%p197_p3), %v1274_v4 }
   0xe   : > { %s1644_s21 = smov (!%p243_p4, %s1062_s21), 63  ;;  %s1646_s15 = smov (!%p262_p5, %s1348_s15), 1 }
   0xf   : > { %s1117_s10 = sshll.u32 %s1644_s21, 3  ;;  %s267_s13 = scalar_lea.vmem %s1637_s3, %s1646_s15 }
  0x10   : > { %1123 = vmatpush3.bf16.msra.mxu0 %v1275_v5  ;;  %1240 = vmatpush3.bf16.msra.mxu1 %v1275_v5  ;;  %s1439_s19 = scalar_lea.vmem %s1634_s0, %s1117_s10  ;;  %s1499_s12 = scalar_lea.vmem %s1636_s2, %s1117_s10 }
  0x11   : > { %1124 = vmatprep.subr.bf16.mxu0 %v1276_v6  ;;  %1233 = vmatprep.subr.bf16.mxu1 %v1276_v6  ;;  %v1288_v11 = vld [vmem:[%s1439_s19 + $0x4] ss:$8 sps:$4 sm:$0xff]   ;;  %v1286_v18 = vld [vmem:[%s1439_s19] ss:$8 sps:$4 sm:$0xff]   ;;  %v1289_v19 = vld [vmem:[%s1439_s19 + $0x14] ss:$8 sps:$4 sm:$0xff]   ;;  %s273_s20 = scalar_lea.vmem %s1638_s4, %s1646_s15 }
  0x12   : > { %627 = vmatprep.mubr.bf16.mxu0 %v1288_v11  ;;  %v1300_v14 = vld [vmem:[%s1439_s19 + $0x84] ss:$8 sps:$4 sm:$0xff]   ;;  %v1298_v20 = vld [vmem:[%s1439_s19 + $0x80] ss:$8 sps:$4 sm:$0xff]   ;;  %v1304_v21 = vld [vmem:[%s1439_s19 + $0x94] ss:$8 sps:$4 sm:$0xff]  }
  0x13   : > { %691 = vmatprep.mubr.bf16.mxu1 %v1300_v14  ;;  %v1291_v22 = vld [vmem:[%s1439_s19 + $0x10] ss:$8 sps:$4 sm:$0xff]   ;;  %v1292_v23 = vld [vmem:[%s1439_s19 + $0x24] ss:$8 sps:$4 sm:$0xff]   ;;  %v1294_v26 = vld [vmem:[%s1439_s19 + $0x20] ss:$8 sps:$4 sm:$0xff]  }
  0x14   : > { %1125 = vmatpush3.bf16.msra.mxu0 %v1277_v7  ;;  %1241 = vmatpush3.bf16.msra.mxu1 %v1277_v7  ;;  %v1306_v24 = vld [vmem:[%s1439_s19 + $0x90] ss:$8 sps:$4 sm:$0xff]   ;;  %v1310_v25 = vld [vmem:[%s1439_s19 + $0xa4] ss:$8 sps:$4 sm:$0xff]   ;;  %v1295_v27 = vld [vmem:[%s1439_s19 + $0x34] ss:$8 sps:$4 sm:$0xff]  }
  0x15   : > { %1126 = vmatprep.subr.bf16.mxu0 %v1278_v8  ;;  %1234 = vmatprep.subr.bf16.mxu1 %v1278_v8  ;;  %v1312_v28 = vld [vmem:[%s1439_s19 + $0xa0] ss:$8 sps:$4 sm:$0xff]   ;;  %v1316_v29 = vld [vmem:[%s1439_s19 + $0xb4] ss:$8 sps:$4 sm:$0xff]   ;;  %v1297_v30 = vld [vmem:[%s1439_s19 + $0x30] ss:$8 sps:$4 sm:$0xff]  }
  0x16   : > { %v1301_v31 = vld [vmem:[%s1439_s19 + $0x44] ss:$8 sps:$4 sm:$0xff]   ;;  %v1318_v32 = vld [vmem:[%s1439_s19 + $0xb0] ss:$8 sps:$4 sm:$0xff]   ;;  %v1303_v34 = vld [vmem:[%s1439_s19 + $0x40] ss:$8 sps:$4 sm:$0xff]  }
  0x17   : > { %v1322_v33 = vld [vmem:[%s1439_s19 + $0xc4] ss:$8 sps:$4 sm:$0xff]   ;;  %v1307_v35 = vld [vmem:[%s1439_s19 + $0x54] ss:$8 sps:$4 sm:$0xff]   ;;  %v1324_v36 = vld [vmem:[%s1439_s19 + $0xc0] ss:$8 sps:$4 sm:$0xff]  }
  0x18   : > { %1127 = vmatpush3.bf16.msra.mxu0 %v1279_v9  ;;  %1242 = vmatpush3.bf16.msra.mxu1 %v1279_v9  ;;  %v1325_v37 = vld [vmem:[%s1439_s19 + $0xd4] ss:$8 sps:$4 sm:$0xff]   ;;  %v1309_v38 = vld [vmem:[%s1439_s19 + $0x50] ss:$8 sps:$4 sm:$0xff]   ;;  %v1313_v39 = vld [vmem:[%s1439_s19 + $0x64] ss:$8 sps:$4 sm:$0xff]  }
  0x19   : > { %1128 = vmatprep.subr.bf16.mxu0 %v1280_v10  ;;  %1235 = vmatprep.subr.bf16.mxu1 %v1280_v10  ;;  %v1327_v40 = vld [vmem:[%s1439_s19 + $0xd0] ss:$8 sps:$4 sm:$0xff]   ;;  %v1328_v41 = vld [vmem:[%s1439_s19 + $0xe4] ss:$8 sps:$4 sm:$0xff]   ;;  %v1315_v42 = vld [vmem:[%s1439_s19 + $0x60] ss:$8 sps:$4 sm:$0xff]  }
  0x1a   : > { %v1319_v43 = vld [vmem:[%s1439_s19 + $0x74] ss:$8 sps:$4 sm:$0xff]   ;;  %v1330_v44 = vld [vmem:[%s1439_s19 + $0xe0] ss:$8 sps:$4 sm:$0xff]   ;;  %v1321_v46 = vld [vmem:[%s1439_s19 + $0x70] ss:$8 sps:$4 sm:$0xff]  }
  0x1b   : > { %v1331_v45 = vld [vmem:[%s1439_s19 + $0xf4] ss:$8 sps:$4 sm:$0xff]   ;;  %v1333_v47 = vld [vmem:[%s1439_s19 + $0xf0] ss:$8 sps:$4 sm:$0xff]  }
  0x1c   : > { %1129 = vmatpush3.bf16.msra.mxu0 %v1281_v12  ;;  %1243 = vmatpush3.bf16.msra.mxu1 %v1281_v12 }
  0x1d   : > { %1130 = vmatprep.subr.bf16.mxu0 %v1282_v13  ;;  %1236 = vmatprep.subr.bf16.mxu1 %v1282_v13 }
  0x20   : > { %1131 = vmatpush3.bf16.msra.mxu0 %v1283_v15  ;;  %1244 = vmatpush3.bf16.msra.mxu1 %v1283_v15 }
  0x21   : > { %1132 = vmatprep.subr.bf16.mxu0 %v1284_v16  ;;  %1237 = vmatprep.subr.bf16.mxu1 %v1284_v16 }
  0x24   : > { %1133 = vmatpush3.bf16.msra.mxu0 %v1285_v17  ;;  %1245 = vmatpush3.bf16.msra.mxu1 %v1285_v17 }
  0x27   : > { %628 = vmatmul.mubr.bf16.vlgmr.msra.gmra.mrb[0].mxu0 %v1286_v18  ;;  %692 = vmatmul.mubr.bf16.vlgmr.msra.gmra.mrb[0].mxu1 %v1298_v20 }
  0x28   : > { %635 = vmatprep.mubr.bf16.mxu0 %v1289_v19  ;;  %699 = vmatprep.mubr.bf16.mxu1 %v1304_v21 }
  0x2f   : > { %636 = vmatmul.mubr.bf16.gmra.mrb[4].mxu0 %v1291_v22  ;;  %700 = vmatmul.mubr.bf16.gmra.mrb[4].mxu1 %v1306_v24 }
  0x30   : > { %643 = vmatprep.mubr.bf16.mxu0 %v1292_v23  ;;  %707 = vmatprep.mubr.bf16.mxu1 %v1310_v25 }
  0x37   : > { %644 = vmatmul.mubr.bf16.gmra.mrb[8].mxu0 %v1294_v26  ;;  %708 = vmatmul.mubr.bf16.gmra.mrb[8].mxu1 %v1312_v28 }
  0x38   : > { %651 = vmatprep.mubr.bf16.mxu0 %v1295_v27  ;;  %715 = vmatprep.mubr.bf16.mxu1 %v1316_v29 }
  0x3f   : > { %652 = vmatmul.mubr.bf16.gmra.mrb[12].mxu0 %v1297_v30  ;;  %716 = vmatmul.mubr.bf16.gmra.mrb[12].mxu1 %v1318_v32 }
  0x40   : > { %659 = vmatprep.mubr.bf16.mxu0 %v1301_v31  ;;  %723 = vmatprep.mubr.bf16.mxu1 %v1322_v33 }
  0x47   : > { %660 = vmatmul.mubr.bf16.gmra.mrb[16].mxu0 %v1303_v34  ;;  %724 = vmatmul.mubr.bf16.gmra.mrb[16].mxu1 %v1324_v36 }
  0x48   : > { %667 = vmatprep.mubr.bf16.mxu0 %v1307_v35  ;;  %731 = vmatprep.mubr.bf16.mxu1 %v1325_v37 }
  0x4f   : > { %668 = vmatmul.mubr.bf16.gmra.mrb[20].mxu0 %v1309_v38  ;;  %732 = vmatmul.mubr.bf16.gmra.mrb[20].mxu1 %v1327_v40 }
  0x50   : > { %675 = vmatprep.mubr.bf16.mxu0 %v1313_v39  ;;  %739 = vmatprep.mubr.bf16.mxu1 %v1328_v41 }
  0x57   : > { %676 = vmatmul.mubr.bf16.gmra.mrb[24].mxu0 %v1315_v42  ;;  %740 = vmatmul.mubr.bf16.gmra.mrb[24].mxu1 %v1330_v44 }
  0x58   : > { %683 = vmatprep.mubr.bf16.mxu0 %v1319_v43  ;;  %747 = vmatprep.mubr.bf16.mxu1 %v1331_v45 }
  0x5f   : > { %684 = vmatmul.mubr.bf16.gmra.mrb[28].mxu0 %v1321_v46  ;;  %748 = vmatmul.mubr.bf16.gmra.mrb[28].mxu1 %v1333_v47 }
  0xfa   : > { %v1134_v48 = vpop.f32.mrb[0].mxu0  ;;  %v1182_v50 = vpop.f32.mrb[0].mxu1 }
  0xfb   : > { %v1135_v49 = vpop.f32.mrb[1].mxu0  ;;  %v1183_v53 = vpop.f32.mrb[1].mxu1 }
  0xfc   : > { %v1136_v51 = vadd.f32 %v1135_v49, %v1134_v48  ;;  %v1137_v52 = vpop.f32.mrb[2].mxu0  ;;  %v1501_v55 = vadd.f32 %v1183_v53, %v1182_v50  ;;  %v1185_v56 = vpop.f32.mrb[2].mxu1 }
  0xfd   : > { %v1138_v54 = vpop.f32.mrb[3].mxu0  ;;  %v1186_v58 = vpop.f32.mrb[3].mxu1 }
  0xfe   : > { %756 = vst [vmem:[%s1499_s12] sm:$0xff] %v1136_v51  ;;  %v1139_v57 = vadd.f32 %v1138_v54, %v1137_v52  ;;  %772 = vst [vmem:[%s1499_s12 + $0x80] sm:$0xff] %v1501_v55  ;;  %v1506_v59 = vadd.f32 %v1186_v58, %v1185_v56  ;;  %v826_v60 = vmul.f32 %v1136_v51, %v1136_v51 }
 0x100   : > { %757 = vst [vmem:[%s1499_s12 + $0x8] sm:$0xff] %v1139_v57  ;;  %v788_v61 = vadd.f32 %v1139_v57, %v1136_v51  ;;  %v827_v62 = vmul.f32 %v1139_v57, %v1139_v57  ;;  %773 = vst [vmem:[%s1499_s12 + $0x88] sm:$0xff] %v1506_v59 }
 0x102   : > { %v858_v63 = vadd.f32 %v827_v62, %v826_v60  ;;  %v1140_v0 = vpop.f32.mrb[4].mxu0  ;;  %v1188_v2 = vpop.f32.mrb[4].mxu1 }
 0x103   : > { %v1141_v1 = vpop.f32.mrb[5].mxu0  ;;  %v1189_v5 = vpop.f32.mrb[5].mxu1 }
 0x104   : > { %v1142_v3 = vadd.f32 %v1141_v1, %v1140_v0  ;;  %v1143_v4 = vpop.f32.mrb[6].mxu0  ;;  %v1511_v7 = vadd.f32 %v1189_v5, %v1188_v2  ;;  %v1191_v8 = vpop.f32.mrb[6].mxu1 }
 0x105   : > { %v1144_v6 = vpop.f32.mrb[7].mxu0  ;;  %v1192_v12 = vpop.f32.mrb[7].mxu1 }
 0x106   : > { %758 = vst [vmem:[%s1499_s12 + $0x10] sm:$0xff] %v1142_v3  ;;  %v789_v9 = vadd.f32 %v1142_v3, %v788_v61  ;;  %v828_v10 = vmul.f32 %v1142_v3, %v1142_v3  ;;  %v1145_v11 = vadd.f32 %v1144_v6, %v1143_v4  ;;  %774 = vst [vmem:[%s1499_s12 + $0x90] sm:$0xff] %v1511_v7 }
 0x107   : > { %v1516_v13 = vadd.f32 %v1192_v12, %v1191_v8 }
 0x108   : > { %v859_v14 = vadd.f32 %v858_v63, %v828_v10  ;;  %759 = vst [vmem:[%s1499_s12 + $0x18] sm:$0xff] %v1145_v11  ;;  %v790_v15 = vadd.f32 %v1145_v11, %v789_v9  ;;  %v829_v16 = vmul.f32 %v1145_v11, %v1145_v11 }
 0x109   : > { %775 = vst [vmem:[%s1499_s12 + $0x98] sm:$0xff] %v1516_v13 }
 0x10a   : > { %v860_v17 = vadd.f32 %v859_v14, %v829_v16  ;;  %v1146_v18 = vpop.f32.mrb[8].mxu0  ;;  %v1194_v20 = vpop.f32.mrb[8].mxu1 }
 0x10b   : > { %v1147_v19 = vpop.f32.mrb[9].mxu0  ;;  %v1195_v23 = vpop.f32.mrb[9].mxu1 }
 0x10c   : > { %v1148_v21 = vadd.f32 %v1147_v19, %v1146_v18  ;;  %v1149_v22 = vpop.f32.mrb[10].mxu0  ;;  %v1521_v25 = vadd.f32 %v1195_v23, %v1194_v20  ;;  %v1197_v26 = vpop.f32.mrb[10].mxu1 }
 0x10d   : > { %v1150_v24 = vpop.f32.mrb[11].mxu0  ;;  %v1198_v30 = vpop.f32.mrb[11].mxu1 }
 0x10e   : > { %760 = vst [vmem:[%s1499_s12 + $0x20] sm:$0xff] %v1148_v21  ;;  %v791_v27 = vadd.f32 %v1148_v21, %v790_v15  ;;  %v830_v28 = vmul.f32 %v1148_v21, %v1148_v21  ;;  %v1151_v29 = vadd.f32 %v1150_v24, %v1149_v22  ;;  %776 = vst [vmem:[%s1499_s12 + $0xa0] sm:$0xff] %v1521_v25 }
 0x10f   : > { %v1526_v31 = vadd.f32 %v1198_v30, %v1197_v26 }
 0x110   : > { %v861_v32 = vadd.f32 %v860_v17, %v830_v28  ;;  %761 = vst [vmem:[%s1499_s12 + $0x28] sm:$0xff] %v1151_v29  ;;  %v792_v33 = vadd.f32 %v1151_v29, %v791_v27  ;;  %v831_v34 = vmul.f32 %v1151_v29, %v1151_v29 }
 0x111   : > { %777 = vst [vmem:[%s1499_s12 + $0xa8] sm:$0xff] %v1526_v31 }
 0x112   : > { %v862_v35 = vadd.f32 %v861_v32, %v831_v34  ;;  %v1152_v36 = vpop.f32.mrb[12].mxu0  ;;  %v1200_v38 = vpop.f32.mrb[12].mxu1 }
 0x113   : > { %v1153_v37 = vpop.f32.mrb[13].mxu0  ;;  %v1201_v41 = vpop.f32.mrb[13].mxu1 }
 0x114   : > { %v1154_v39 = vadd.f32 %v1153_v37, %v1152_v36  ;;  %v1155_v40 = vpop.f32.mrb[14].mxu0  ;;  %v1531_v43 = vadd.f32 %v1201_v41, %v1200_v38  ;;  %v1203_v44 = vpop.f32.mrb[14].mxu1 }
 0x115   : > { %v1156_v42 = vpop.f32.mrb[15].mxu0  ;;  %v1204_v48 = vpop.f32.mrb[15].mxu1 }
 0x116   : > { %762 = vst [vmem:[%s1499_s12 + $0x30] sm:$0xff] %v1154_v39  ;;  %v793_v45 = vadd.f32 %v1154_v39, %v792_v33  ;;  %v832_v46 = vmul.f32 %v1154_v39, %v1154_v39  ;;  %v1157_v47 = vadd.f32 %v1156_v42, %v1155_v40  ;;  %778 = vst [vmem:[%s1499_s12 + $0xb0] sm:$0xff] %v1531_v43 }
 0x117   : > { %v1536_v49 = vadd.f32 %v1204_v48, %v1203_v44 }
 0x118   : > { %v863_v50 = vadd.f32 %v862_v35, %v832_v46  ;;  %763 = vst [vmem:[%s1499_s12 + $0x38] sm:$0xff] %v1157_v47  ;;  %v794_v51 = vadd.f32 %v1157_v47, %v793_v45  ;;  %v833_v52 = vmul.f32 %v1157_v47, %v1157_v47 }
 0x119   : > { %779 = vst [vmem:[%s1499_s12 + $0xb8] sm:$0xff] %v1536_v49 }
 0x11a   : > { %v864_v53 = vadd.f32 %v863_v50, %v833_v52  ;;  %v1158_v54 = vpop.f32.mrb[16].mxu0  ;;  %v1206_v57 = vpop.f32.mrb[16].mxu1 }
 0x11b   : > { %v1159_v56 = vpop.f32.mrb[17].mxu0  ;;  %v1207_v61 = vpop.f32.mrb[17].mxu1 }
 0x11c   : > { %v1160_v58 = vadd.f32 %v1159_v56, %v1158_v54  ;;  %v1161_v60 = vpop.f32.mrb[18].mxu0  ;;  %v1541_v63 = vadd.f32 %v1207_v61, %v1206_v57  ;;  %v1209_v0 = vpop.f32.mrb[18].mxu1 }
 0x11d   : > { %v1162_v62 = vpop.f32.mrb[19].mxu0  ;;  %v1210_v4 = vpop.f32.mrb[19].mxu1 }
 0x11e   : > { %764 = vst [vmem:[%s1499_s12 + $0x40] sm:$0xff] %v1160_v58  ;;  %v795_v1 = vadd.f32 %v1160_v58, %v794_v51  ;;  %v834_v2 = vmul.f32 %v1160_v58, %v1160_v58  ;;  %v1163_v3 = vadd.f32 %v1162_v62, %v1161_v60  ;;  %780 = vst [vmem:[%s1499_s12 + $0xc0] sm:$0xff] %v1541_v63 }
 0x11f   : > { %v1546_v5 = vadd.f32 %v1210_v4, %v1209_v0 }
 0x120   : > { %v865_v6 = vadd.f32 %v864_v53, %v834_v2  ;;  %765 = vst [vmem:[%s1499_s12 + $0x48] sm:$0xff] %v1163_v3  ;;  %v796_v8 = vadd.f32 %v1163_v3, %v795_v1  ;;  %v835_v9 = vmul.f32 %v1163_v3, %v1163_v3 }
 0x121   : > { %781 = vst [vmem:[%s1499_s12 + $0xc8] sm:$0xff] %v1546_v5 }
 0x122   : > { %v866_v10 = vadd.f32 %v865_v6, %v835_v9  ;;  %v1164_v11 = vpop.f32.mrb[20].mxu0  ;;  %v1212_v14 = vpop.f32.mrb[20].mxu1 }
 0x123   : > { %v1165_v12 = vpop.f32.mrb[21].mxu0  ;;  %v1213_v17 = vpop.f32.mrb[21].mxu1 }
 0x124   : > { %v1166_v15 = vadd.f32 %v1165_v12, %v1164_v11  ;;  %v1167_v16 = vpop.f32.mrb[22].mxu0  ;;  %v1551_v19 = vadd.f32 %v1213_v17, %v1212_v14  ;;  %v1215_v20 = vpop.f32.mrb[22].mxu1  ;;  %v843_v14 = vmul.f32 %v1506_v59, %v1506_v59  ;;  %v844_v17 = vmul.f32 %v1511_v7, %v1511_v7 }
 0x125   : > { %v1168_v18 = vpop.f32.mrb[23].mxu0  ;;  %v1216_v24 = vpop.f32.mrb[23].mxu1 }
 0x126   : > { %766 = vst [vmem:[%s1499_s12 + $0x50] sm:$0xff] %v1166_v15  ;;  %v797_v21 = vadd.f32 %v1166_v15, %v796_v8  ;;  %v836_v22 = vmul.f32 %v1166_v15, %v1166_v15  ;;  %v1169_v23 = vadd.f32 %v1168_v18, %v1167_v16  ;;  %782 = vst [vmem:[%s1499_s12 + $0xd0] sm:$0xff] %v1551_v19 }
 0x127   : > { %v1556_v26 = vadd.f32 %v1216_v24, %v1215_v20 }
 0x128   : > { %v867_v27 = vadd.f32 %v866_v10, %v836_v22  ;;  %767 = vst [vmem:[%s1499_s12 + $0x58] sm:$0xff] %v1169_v23  ;;  %v798_v28 = vadd.f32 %v1169_v23, %v797_v21  ;;  %v837_v29 = vmul.f32 %v1169_v23, %v1169_v23  ;;  %v842_v10 = vmul.f32 %v1501_v55, %v1501_v55 }
 0x129   : > { %783 = vst [vmem:[%s1499_s12 + $0xd8] sm:$0xff] %v1556_v26  ;;  %v845_v21 = vmul.f32 %v1516_v13, %v1516_v13 }
 0x12a   : > { %v868_v30 = vadd.f32 %v867_v27, %v837_v29  ;;  %v1170_v32 = vpop.f32.mrb[24].mxu0  ;;  %v1218_v34 = vpop.f32.mrb[24].mxu1 }
 0x12b   : > { %v1171_v33 = vpop.f32.mrb[25].mxu0  ;;  %v1219_v37 = vpop.f32.mrb[25].mxu1 }
 0x12c   : > { %v1172_v35 = vadd.f32 %v1171_v33, %v1170_v32  ;;  %v1173_v36 = vpop.f32.mrb[26].mxu0  ;;  %v1561_v39 = vadd.f32 %v1219_v37, %v1218_v34  ;;  %v1221_v40 = vpop.f32.mrb[26].mxu1 }
 0x12d   : > { %v1174_v38 = vpop.f32.mrb[27].mxu0  ;;  %v1222_v45 = vpop.f32.mrb[27].mxu1 }
 0x12e   : > { %768 = vst [vmem:[%s1499_s12 + $0x60] sm:$0xff] %v1172_v35  ;;  %v799_v41 = vadd.f32 %v1172_v35, %v798_v28  ;;  %v838_v42 = vmul.f32 %v1172_v35, %v1172_v35  ;;  %v1175_v44 = vadd.f32 %v1174_v38, %v1173_v36  ;;  %784 = vst [vmem:[%s1499_s12 + $0xe0] sm:$0xff] %v1561_v39 }
 0x12f   : > { %v1566_v46 = vadd.f32 %v1222_v45, %v1221_v40  ;;  %v850_v35 = vmul.f32 %v1541_v63, %v1541_v63  ;;  %v851_v38 = vmul.f32 %v1546_v5, %v1546_v5 }
 0x130   : > { %v869_v47 = vadd.f32 %v868_v30, %v838_v42  ;;  %769 = vst [vmem:[%s1499_s12 + $0x68] sm:$0xff] %v1175_v44  ;;  %v800_v48 = vadd.f32 %v1175_v44, %v799_v41  ;;  %v839_v50 = vmul.f32 %v1175_v44, %v1175_v44  ;;  %v852_v41 = vmul.f32 %v1551_v19, %v1551_v19 }
 0x131   : > { %785 = vst [vmem:[%s1499_s12 + $0xe8] sm:$0xff] %v1566_v46 }
 0x132   : > { %v870_v51 = vadd.f32 %v869_v47, %v839_v50  ;;  %v1176_v52 = vpop.f32.mrb[28].mxu0  ;;  %v1224_v54 = vpop.f32.mrb[28].mxu1  ;;  %v854_v47 = vmul.f32 %v1561_v39, %v1561_v39 }
 0x133   : > { %v1177_v53 = vpop.f32.mrb[29].mxu0  ;;  %v1225_v58 = vpop.f32.mrb[29].mxu1 }
 0x134   : > { %v1178_v56 = vadd.f32 %v1177_v53, %v1176_v52  ;;  %v1179_v57 = vpop.f32.mrb[30].mxu0  ;;  %v1226_v61 = vadd.f32 %v1225_v58, %v1224_v54  ;;  %v1227_v62 = vpop.f32.mrb[30].mxu1 }
 0x135   : > { %v1180_v60 = vpop.f32.mrb[31].mxu0  ;;  %v1228_v3 = vpop.f32.mrb[31].mxu1 }
 0x136   : > { %770 = vst [vmem:[%s1499_s12 + $0x70] sm:$0xff] %v1178_v56  ;;  %v801_v0 = vadd.f32 %v1178_v56, %v800_v48  ;;  %v840_v1 = vmul.f32 %v1178_v56, %v1178_v56  ;;  %v1181_v2 = vadd.f32 %v1180_v60, %v1179_v57  ;;  %786 = vst [vmem:[%s1499_s12 + $0xf0] sm:$0xff] %v1226_v61 }
 0x137   : > { %v1229_v4 = vadd.f32 %v1228_v3, %v1227_v62  ;;  %v856_v50 = vmul.f32 %v1226_v61, %v1226_v61 }
 0x138   : > { %v871_v6 = vadd.f32 %v870_v51, %v840_v1  ;;  %771 = vst [vmem:[%s1499_s12 + $0x78] sm:$0xff] %v1181_v2  ;;  %v802_v8 = vadd.f32 %v1181_v2, %v801_v0  ;;  %v841_v9 = vmul.f32 %v1181_v2, %v1181_v2 }
 0x139   : > { %787 = vst [vmem:[%s1499_s12 + $0xf8] sm:$0xff] %v1229_v4  ;;  %v857_v56 = vmul.f32 %v1229_v4, %v1229_v4 }
 0x13a   : > { %v803_v11 = vadd.f32 %v1501_v55, %v802_v8  ;;  %v872_v12 = vadd.f32 %v871_v6, %v841_v9  ;;  %v846_v55 = vmul.f32 %v1521_v25, %v1521_v25 }
 0x13c   : > { %v804_v15 = vadd.f32 %v1506_v59, %v803_v11  ;;  %v873_v16 = vadd.f32 %v872_v12, %v842_v10  ;;  %v847_v59 = vmul.f32 %v1526_v31, %v1526_v31 }
 0x13e   : > { %v805_v18 = vadd.f32 %v1511_v7, %v804_v15  ;;  %v874_v20 = vadd.f32 %v873_v16, %v843_v14  ;;  %v848_v7 = vmul.f32 %v1531_v43, %v1531_v43 }
 0x140   : > { %v806_v22 = vadd.f32 %v1516_v13, %v805_v18  ;;  %v875_v23 = vadd.f32 %v874_v20, %v844_v17  ;;  %v849_v13 = vmul.f32 %v1536_v49, %v1536_v49 }
 0x142   : > { %v876_v24 = vadd.f32 %v875_v23, %v845_v21  ;;  %v807_v27 = vadd.f32 %v1521_v25, %v806_v22 }
 0x144   : > { %v808_v28 = vadd.f32 %v1526_v31, %v807_v27  ;;  %v877_v29 = vadd.f32 %v876_v24, %v846_v55 }
 0x146   : > { %v809_v30 = vadd.f32 %v1531_v43, %v808_v28  ;;  %v878_v32 = vadd.f32 %v877_v29, %v847_v59 }
 0x148   : > { %v810_v33 = vadd.f32 %v1536_v49, %v809_v30  ;;  %v879_v34 = vadd.f32 %v878_v32, %v848_v7 }
 0x14a   : > { %v811_v25 = vadd.f32 %v1541_v63, %v810_v33  ;;  %v880_v36 = vadd.f32 %v879_v34, %v849_v13  ;;  %v853_v63 = vmul.f32 %v1556_v26, %v1556_v26 }
 0x14c   : > { %v881_v31 = vadd.f32 %v880_v36, %v850_v35  ;;  %v812_v37 = vadd.f32 %v1546_v5, %v811_v25 }
 0x14e   : > { %v882_v43 = vadd.f32 %v881_v31, %v851_v38  ;;  %v813_v40 = vadd.f32 %v1551_v19, %v812_v37  ;;  %v855_v19 = vmul.f32 %v1566_v46, %v1566_v46 }
 0x150   : > { %v883_v49 = vadd.f32 %v882_v43, %v852_v41  ;;  %v814_v42 = vadd.f32 %v1556_v26, %v813_v40 }
 0x152   : > { %v884_v44 = vadd.f32 %v883_v49, %v853_v63  ;;  %v815_v45 = vadd.f32 %v1561_v39, %v814_v42 }
 0x154   : > { %v885_v5 = vadd.f32 %v884_v44, %v854_v47  ;;  %v816_v48 = vadd.f32 %v1566_v46, %v815_v45 }
 0x156   : > { %v886_v51 = vadd.f32 %v885_v5, %v855_v19  ;;  %v817_v52 = vadd.f32 %v1226_v61, %v816_v48 }
 0x158   : > { %v887_v53 = vadd.f32 %v886_v51, %v856_v50  ;;  %v818_v54 = vadd.f32 %v1229_v4, %v817_v52 }
 0x15a   : > { %v819_v26 = vrot.slane %v818_v54, 4  ;;  %v888_v57 = vadd.f32 %v887_v53, %v857_v56 }
 0x15c   : > { %v820_v58 = vadd.f32 %v819_v26, %v818_v54  ;;  %v889_v60 = vrot.slane %v888_v57, 4 }
 0x15e   : > { %v821_v62 = vrot.slane %v820_v58, 2  ;;  %v890_v39 = vadd.f32 %v889_v60, %v888_v57 }
 0x160   : > { %v822_v0 = vadd.f32 %v821_v62, %v820_v58  ;;  %v891_v1 = vrot.slane %v890_v39, 2 }
 0x162   : > { %v823_v2 = vrot.slane %v822_v0, 1  ;;  %v892_v3 = vadd.f32 %v891_v1, %v890_v39 }
 0x164   : > { %v824_v46 = vadd.f32 %v823_v2, %v822_v0  ;;  %v893_v61 = vrot.slane %v892_v3, 1 }
 0x166   : > { %825 = vst [vmem:[%s267_s13] sm:$0x1] %v824_v46  ;;  %v894_v4 = vadd.f32 %v893_v61, %v892_v3 }
 0x168   : > { %895 = vst [vmem:[%s273_s20] sm:$0x1] %v894_v4 }
 0x169 PF: > { %s15_s17 = sadd.s32 1, %s1356_s17   ;;  %s1639_s15 = smov %s1352_s16 }
 0x16a   : > { %p12_p6 = scmp.ge.s32.totalorder %s15_s17, 4   ;;  %s1640_s16 = smov %s1642_s18 }
 0x16c   :  { %14 = sbr.rel (!%p12_p6) target bundleno = 2 (0x2), region = 85 }

// kernel: _lambda_.44
= control target key start
LH: loop header
LB: loop body
LE: loop exit
PB: predicated region body
PF: predicated region fallthrough
CT: control target
= control target key end

     0   :  { %s207_s0 = inlined_call_operand.vmem [shape: f32[64,128], index: 0, kind: input, shape index: {}]   ;;  %s208_s1 = inlined_call_operand.vmem [shape: f32[1,128], index: 1, kind: input, shape index: {}]   ;;  %s209_s2 = inlined_call_operand.vmem [shape: f32[1,128], index: 2, kind: input, shape index: {}]   ;;  %s210_s3 = inlined_call_operand.vmem [shape: bf16[64,128], index: 3, kind: output, shape index: {}]  }
   0x1   :  { %v14_v0 = vld [vmem:[%s207_s0] sm:$0xff]  ;;  %v15_v1 = vld [vmem:[%s207_s0 + $0x8] sm:$0xff]  ;;  %v16_v6 = vld [vmem:[%s207_s0 + $0x10] sm:$0xff] }
   0x2   :  { %v104_v2 = vld [vmem:[%s208_s1] ss:$0 sm:$0xff]  ;;  %v17_v7 = vld [vmem:[%s207_s0 + $0x18] sm:$0xff]  ;;  %v19_v11 = vld [vmem:[%s207_s0 + $0x28] sm:$0xff] }
   0x3   :  { %v29_v3 = vmul.f32 %v104_v2, %v14_v0  ;;  %v30_v4 = vmul.f32 %v104_v2, %v15_v1  ;;  %v105_v5 = vld [vmem:[%s209_s2] ss:$0 sm:$0xff]  ;;  %v31_v8 = vmul.f32 %v104_v2, %v16_v6  ;;  %v32_v9 = vmul.f32 %v104_v2, %v17_v7  ;;  %v20_v12 = vld [vmem:[%s207_s0 + $0x30] sm:$0xff]  ;;  %v21_v17 = vld [vmem:[%s207_s0 + $0x38] sm:$0xff] }
   0x4   :  { %v18_v10 = vld [vmem:[%s207_s0 + $0x20] sm:$0xff]  ;;  %v34_v16 = vmul.f32 %v104_v2, %v19_v11  ;;  %v35_v20 = vmul.f32 %v104_v2, %v20_v12  ;;  %v36_v21 = vmul.f32 %v104_v2, %v21_v17 }
   0x5   :  { %v44_v13 = vadd.f32 %v105_v5, %v29_v3  ;;  %v45_v14 = vadd.f32 %v105_v5, %v30_v4  ;;  %v33_v15 = vmul.f32 %v104_v2, %v18_v10  ;;  %v46_v18 = vadd.f32 %v105_v5, %v31_v8 }
   0x6   :  { %v47_v19 = vadd.f32 %v105_v5, %v32_v9  ;;  %v49_v25 = vadd.f32 %v105_v5, %v34_v16  ;;  %v50_v28 = vadd.f32 %v105_v5, %v35_v20  ;;  %v51_v29 = vadd.f32 %v105_v5, %v36_v21 }
   0x7   :  { %v52_v22 = vmax.f32 %v44_v13, 0.0  ;;  %v53_v23 = vmax.f32 %v45_v14, 0.0  ;;  %v48_v24 = vadd.f32 %v105_v5, %v33_v15  ;;  %v54_v26 = vmax.f32 %v46_v18, 0.0 }
   0x8   :  { %v55_v27 = vmax.f32 %v47_v19, 0.0  ;;  %v57_v32 = vmax.f32 %v49_v25, 0.0  ;;  %v58_v34 = vmax.f32 %v50_v28, 0.0  ;;  %v59_v35 = vmax.f32 %v51_v29, 0.0 }
   0x9   :  { %v125_v30 = vpack.c.bf16 %v53_v23, %v52_v22  ;;  %v56_v31 = vmax.f32 %v48_v24, 0.0 }
   0xa   :  { %v130_v33 = vpack.c.bf16 %v55_v27, %v54_v26  ;;  %v140_v37 = vpack.c.bf16 %v59_v35, %v58_v34 }
   0xb   :  { %126 = vst [vmem:[%s210_s3] sm:$0xff] %v125_v30   ;;  %v135_v36 = vpack.c.bf16 %v57_v32, %v56_v31 }
   0xc   :  { %142 = vst [vmem:[%s210_s3 + $0x8] sm:$0xff] %v130_v33   ;;  %144 = vst [vmem:[%s210_s3 + $0x18] sm:$0xff] %v140_v37  }
   0xd   :  { %143 = vst [vmem:[%s210_s3 + $0x10] sm:$0xff] %v135_v36  }

// kernel: _lambda_.43
= control target key start
LH: loop header
LB: loop body
LE: loop exit
PB: predicated region body
PF: predicated region fallthrough
CT: control target
= control target key end

     0   :  { %s1468_s15 = smov 0   ;;  %s1470_s16 = smov 0   ;;  %s1658_s0 = inlined_call_operand.vmem [shape: bf16[128,640], index: 0, kind: input, shape index: {}]   ;;  %s1659_s1 = inlined_call_operand.vmem [shape: bf16[640,128], index: 1, kind: input, shape index: {}]   ;;  %s1660_s2 = inlined_call_operand.vmem [shape: f32[128,128], index: 2, kind: output, shape index: {0}]   ;;  %s1661_s3 = inlined_call_operand.vmem [shape: f32[2,1,128], index: 3, kind: output, shape index: {1}]   ;;  %s1662_s4 = inlined_call_operand.vmem [shape: f32[2,1,128], index: 4, kind: output, shape index: {2}]  }
   0x1   :  { %s1472_s17 = smov 0  }
   0x2 LB: > { %s27_s18 = sadd.s32 1, %s1437_s16  ;;  %p1127_p0 = scmp.ge.s32.totalorder %s1441_s17, 1  ;;  %s1441_s17 = sphi %s1472_s17, %s15_s17   ;;  %s1437_s16 = sphi %s1470_s16, %s1664_s16   ;;  %s1433_s15 = sphi %s1468_s15, %s1663_s15  }
   0x3   : > { %p29_p1 = scmp.ge.s32.totalorder %s27_s18, 2  ;;  %p196_p2 = scmp.lt.s32.totalorder %s1441_s17, 3 }
   0x5   : > { %s1666_s18 = smov (%p29_p1, %s27_s18), 0  ;;  %p197_p3 = pnand %p1127_p0, %p196_p2 }
   0x6   : > { %v1351_v0 = vld [vmem:[%s1659_s1 + $0x40] sm:$0xff] (!%p197_p3)   ;;  %v1355_v4 = vld [vmem:[%s1659_s1 + $0x48] sm:$0xff] (!%p197_p3)   ;;  %v1359_v8 = vld [vmem:[%s1659_s1 + $0x50] sm:$0xff] (!%p197_p3)   ;;  %s1128_s27 = sshll.u32 (!%p197_p3), %s1433_s15, 3  ;;  %p262_p5 = scmp.lt.s32.totalorder (!%p197_p3), %s1433_s15, 1 }
   0x7   : > { %200 = sbr.rel (%p197_p3) target bundleno = 319 (0x13f), region = 28  ;;  %v1352_v1 = vld [vmem:[%s1659_s1 + $0xc0] sm:$0xff] (!%p197_p3)   ;;  %1194 = vmatprep.subr.bf16.mxu0 (!%p197_p3), %v1351_v0  ;;  %v1356_v5 = vld [vmem:[%s1659_s1 + $0xc8] sm:$0xff] (!%p197_p3)   ;;  %v1360_v9 = vld [vmem:[%s1659_s1 + $0xd0] sm:$0xff] (!%p197_p3)   ;;  %p243_p4 = scmp.lt.s32.totalorder (!%p197_p3), %s1128_s27, 15 }
   0x8   : > { %v1353_v2 = vld [vmem:[%s1659_s1] sm:$0xff] (!%p197_p3)   ;;  %1234 = vmatprep.subr.bf16.mxu1 (!%p197_p3), %v1352_v1  ;;  %v1357_v6 = vld [vmem:[%s1659_s1 + $0x8] sm:$0xff] (!%p197_p3)   ;;  %v1361_v10 = vld [vmem:[%s1659_s1 + $0x10] sm:$0xff] (!%p197_p3)  }
   0x9   : > { %v1354_v3 = vld [vmem:[%s1659_s1 + $0x80] sm:$0xff] (!%p197_p3)   ;;  %1195 = vmatpush3.bf16.msra.mxu0 (!%p197_p3), %v1353_v2  ;;  %v1358_v7 = vld [vmem:[%s1659_s1 + $0x88] sm:$0xff] (!%p197_p3)   ;;  %v1362_v11 = vld [vmem:[%s1659_s1 + $0x90] sm:$0xff] (!%p197_p3)  }
   0xa   : > { %1235 = vmatpush3.bf16.msra.mxu1 (!%p197_p3), %v1354_v3  ;;  %1196 = vmatprep.subr.bf16.mxu0 (!%p197_p3), %v1355_v4  ;;  %v1363_v12 = vld [vmem:[%s1659_s1 + $0x58] sm:$0xff] (!%p197_p3)   ;;  %v1367_v16 = vld [vmem:[%s1659_s1 + $0x60] sm:$0xff] (!%p197_p3)   ;;  %v1371_v20 = vld [vmem:[%s1659_s1 + $0x68] sm:$0xff] (!%p197_p3)  }
   0xb   : > { %1236 = vmatprep.subr.bf16.mxu1 (!%p197_p3), %v1356_v5  ;;  %v1364_v13 = vld [vmem:[%s1659_s1 + $0xd8] sm:$0xff] (!%p197_p3)   ;;  %v1368_v17 = vld [vmem:[%s1659_s1 + $0xe0] sm:$0xff] (!%p197_p3)   ;;  %v1372_v21 = vld [vmem:[%s1659_s1 + $0xe8] sm:$0xff] (!%p197_p3)  }
   0xc   : > { %v1365_v14 = vld [vmem:[%s1659_s1 + $0x18] sm:$0xff] (!%p197_p3)   ;;  %v1369_v18 = vld [vmem:[%s1659_s1 + $0x20] sm:$0xff] (!%p197_p3)   ;;  %v1373_v22 = vld [vmem:[%s1659_s1 + $0x28] sm:$0xff] (!%p197_p3)  }
   0xd   : > { %1197 = vmatpush3.bf16.msra.mxu0 (!%p197_p3), %v1357_v6  ;;  %v1366_v15 = vld [vmem:[%s1659_s1 + $0x98] sm:$0xff] (!%p197_p3)   ;;  %v1370_v19 = vld [vmem:[%s1659_s1 + $0xa0] sm:$0xff] (!%p197_p3)   ;;  %v1374_v23 = vld [vmem:[%s1659_s1 + $0xa8] sm:$0xff] (!%p197_p3)  }
   0xe   : > { %1237 = vmatpush3.bf16.msra.mxu1 %v1358_v7  ;;  %1198 = vmatprep.subr.bf16.mxu0 %v1359_v8  ;;  %s1668_s27 = smov (!%p243_p4, %s1128_s27), 15  ;;  %v1375_v24 = vld [vmem:[%s1659_s1 + $0x70] sm:$0xff]   ;;  %v1379_v28 = vld [vmem:[%s1659_s1 + $0x78] sm:$0xff]   ;;  %v1389_v36 = vld [vmem:[%s1659_s1 + $0x100] sm:$0xff]   ;;  %s1670_s15 = smov (!%p262_p5, %s1433_s15), 1 }
   0xf   : > { %1238 = vmatprep.subr.bf16.mxu1 %v1360_v9  ;;  %v1376_v25 = vld [vmem:[%s1659_s1 + $0xf0] sm:$0xff]   ;;  %s1326_s29 = smul.u32 20, %s1668_s27  ;;  %v1380_v29 = vld [vmem:[%s1659_s1 + $0xf8] sm:$0xff]   ;;  %v1390_v37 = vld [vmem:[%s1659_s1 + $0x108] sm:$0xff]   ;;  %s267_s23 = scalar_lea.vmem %s1661_s3, %s1670_s15 }
  0x10   : > { %v1377_v26 = vld [vmem:[%s1659_s1 + $0x30] sm:$0xff]   ;;  %v1381_v30 = vld [vmem:[%s1659_s1 + $0x38] sm:$0xff]   ;;  %v1405_v46 = vld [vmem:[%s1659_s1 + $0x120] sm:$0xff]   ;;  %s273_s26 = scalar_lea.vmem %s1662_s4, %s1670_s15 }
  0x11   : > { %1199 = vmatpush3.bf16.msra.mxu0 %v1361_v10  ;;  %v1378_v27 = vld [vmem:[%s1659_s1 + $0xb0] sm:$0xff]   ;;  %s1585_s14 = scalar_lea.vmem %s1658_s0, %s1326_s29  ;;  %v1382_v31 = vld [vmem:[%s1659_s1 + $0xb8] sm:$0xff]   ;;  %v1406_v51 = vld [vmem:[%s1659_s1 + $0x128] sm:$0xff]  }
  0x12   : > { %1239 = vmatpush3.bf16.msra.mxu1 %v1362_v11  ;;  %1200 = vmatprep.subr.bf16.mxu0 %v1363_v12  ;;  %v1383_v32 = vld [vmem:[%s1585_s14] ss:$20 sps:$4 sm:$0xff]   ;;  %v1385_v33 = vld [vmem:[%s1585_s14 + $0x4] ss:$20 sps:$4 sm:$0xff]   ;;  %v1386_v34 = vld [vmem:[%s1585_s14 + $0x8] ss:$20 sps:$4 sm:$0xff]  }
  0x13   : > { %1240 = vmatprep.subr.bf16.mxu1 %v1364_v13  ;;  %v1388_v35 = vld [vmem:[%s1585_s14 + $0xc] ss:$20 sps:$4 sm:$0xff]   ;;  %755 = vmatprep.mubr.bf16.mxu0 %v1385_v33  ;;  %v1393_v39 = vld [vmem:[%s1585_s14 + $0x34] ss:$20 sps:$4 sm:$0xff]   ;;  %v1396_v42 = vld [vmem:[%s1585_s14 + $0x30] ss:$20 sps:$4 sm:$0xff]  }
  0x14   : > { %820 = vmatprep.mubr.bf16.mxu1 %v1388_v35  ;;  %v1391_v38 = vld [vmem:[%s1585_s14 + $0x2c] ss:$20 sps:$4 sm:$0xff]   ;;  %v1395_v40 = vld [vmem:[%s1585_s14 + $0x28] ss:$20 sps:$4 sm:$0xff]   ;;  %v1397_v41 = vld [vmem:[%s1659_s1 + $0x110] sm:$0xff]  }
  0x15   : > { %1201 = vmatpush3.bf16.msra.mxu0 %v1365_v14  ;;  %v1399_v43 = vld [vmem:[%s1585_s14 + $0x54] ss:$20 sps:$4 sm:$0xff]   ;;  %v1398_v44 = vld [vmem:[%s1659_s1 + $0x118] sm:$0xff]   ;;  %v1403_v47 = vld [vmem:[%s1585_s14 + $0x50] ss:$20 sps:$4 sm:$0xff]  }
  0x16   : > { %1241 = vmatpush3.bf16.msra.mxu1 %v1366_v15  ;;  %1202 = vmatprep.subr.bf16.mxu0 %v1367_v16  ;;  %v1401_v45 = vld [vmem:[%s1585_s14 + $0x5c] ss:$20 sps:$4 sm:$0xff]   ;;  %v1404_v48 = vld [vmem:[%s1585_s14 + $0x58] ss:$20 sps:$4 sm:$0xff]   ;;  %v1412_v54 = vld [vmem:[%s1585_s14 + $0x80] ss:$20 sps:$4 sm:$0xff]  }
  0x17   : > { %1242 = vmatprep.subr.bf16.mxu1 %v1368_v17  ;;  %v1407_v49 = vld [vmem:[%s1585_s14 + $0x7c] ss:$20 sps:$4 sm:$0xff]   ;;  %v1409_v50 = vld [vmem:[%s1585_s14 + $0x84] ss:$20 sps:$4 sm:$0xff]   ;;  %v1416_v56 = vld [vmem:[%s1585_s14 + $0x60] ss:$20 sps:$4 sm:$0xff]  }
  0x18   : > { %v1413_v52 = vld [vmem:[%s1659_s1 + $0x130] sm:$0xff]   ;;  %v1411_v53 = vld [vmem:[%s1585_s14 + $0x78] ss:$20 sps:$4 sm:$0xff]   ;;  %v1418_v59 = vld [vmem:[%s1585_s14 + $0x88] ss:$20 sps:$4 sm:$0xff]  }
  0x19   : > { %1203 = vmatpush3.bf16.msra.mxu0 %v1369_v18  ;;  %v1415_v55 = vld [vmem:[%s1585_s14 + $0x10] ss:$20 sps:$4 sm:$0xff]   ;;  %v1414_v57 = vld [vmem:[%s1659_s1 + $0x138] sm:$0xff]  }
  0x1a   : > { %1243 = vmatpush3.bf16.msra.mxu1 %v1370_v19  ;;  %1204 = vmatprep.subr.bf16.mxu0 %v1371_v20  ;;  %v1417_v58 = vld [vmem:[%s1585_s14 + $0x38] ss:$20 sps:$4 sm:$0xff]   ;;  %s1131_s14 = sshll.u32 %s1668_s27, 3 }
  0x1b   : > { %1244 = vmatprep.subr.bf16.mxu1 %v1372_v21  ;;  %s260_s21 = scalar_lea.vmem %s1660_s2, %s1131_s14 }
  0x1d   : > { %1205 = vmatpush3.bf16.msra.mxu0 %v1373_v22 }
  0x1e   : > { %1245 = vmatpush3.bf16.msra.mxu1 %v1374_v23  ;;  %1206 = vmatprep.subr.bf16.mxu0 %v1375_v24 }
  0x1f   : > { %1246 = vmatprep.subr.bf16.mxu1 %v1376_v25 }
  0x21   : > { %1207 = vmatpush3.bf16.msra.mxu0 %v1377_v26 }
  0x22   : > { %1247 = vmatpush3.bf16.msra.mxu1 %v1378_v27  ;;  %1208 = vmatprep.subr.bf16.mxu0 %v1379_v28 }
  0x23   : > { %1248 = vmatprep.subr.bf16.mxu1 %v1380_v29 }
  0x25   : > { %1209 = vmatpush3.bf16.msra.mxu0 %v1381_v30 }
  0x26   : > { %1249 = vmatpush3.bf16.msra.mxu1 %v1382_v31  ;;  %1286 = vmatprep.subr.bf16.mxu0 %v1389_v36 }
  0x27   : > { %1310 = vmatprep.subr.bf16.mxu1 %v1389_v36 }
  0x28   : > { %756 = vmatmul.mubr.bf16.vlgmr.msra.gmra.mrb[0].mxu0 %v1383_v32 }
  0x29   : > { %821 = vmatmul.mubr.bf16.vlgmr.msra.gmra.mrb[0].mxu1 %v1386_v34  ;;  %1287 = vmatpush3.bf16.msra.mxu0 %v1389_v36 }
  0x2a   : > { %1318 = vmatpush3.bf16.msra.mxu1 %v1389_v36  ;;  %1288 = vmatprep.subr.bf16.mxu0 %v1390_v37 }
  0x2b   : > { %1311 = vmatprep.subr.bf16.mxu1 %v1390_v37  ;;  %763 = vmatprep.mubr.bf16.mxu0 %v1391_v38 }
  0x2c   : > { %828 = vmatprep.mubr.bf16.mxu1 %v1393_v39 }
  0x2d   : > { %1289 = vmatpush3.bf16.msra.mxu0 %v1390_v37 }
  0x2e   : > { %1319 = vmatpush3.bf16.msra.mxu1 %v1390_v37  ;;  %1290 = vmatprep.subr.bf16.mxu0 %v1397_v41 }
  0x2f   : > { %1312 = vmatprep.subr.bf16.mxu1 %v1397_v41 }
  0x30   : > { %764 = vmatmul.mubr.bf16.gmra.mrb[4].mxu0 %v1395_v40 }
  0x31   : > { %829 = vmatmul.mubr.bf16.gmra.mrb[4].mxu1 %v1396_v42  ;;  %771 = vmatprep.mubr.bf16.mxu0 %v1399_v43 }
  0x32   : > { %1291 = vmatpush3.bf16.msra.mxu0 %v1397_v41  ;;  %836 = vmatprep.mubr.bf16.mxu1 %v1401_v45 }
  0x33   : > { %1320 = vmatpush3.bf16.msra.mxu1 %v1397_v41  ;;  %1292 = vmatprep.subr.bf16.mxu0 %v1398_v44 }
  0x34   : > { %1313 = vmatprep.subr.bf16.mxu1 %v1398_v44 }
  0x36   : > { %1293 = vmatpush3.bf16.msra.mxu0 %v1398_v44 }
  0x37   : > { %1321 = vmatpush3.bf16.msra.mxu1 %v1398_v44  ;;  %1294 = vmatprep.subr.bf16.mxu0 %v1405_v46 }
  0x38   : > { %772 = vmatmul.mubr.bf16.gmra.mrb[8].mxu0 %v1403_v47  ;;  %1314 = vmatprep.subr.bf16.mxu1 %v1405_v46 }
  0x39   : > { %837 = vmatmul.mubr.bf16.gmra.mrb[8].mxu1 %v1404_v48  ;;  %779 = vmatprep.mubr.bf16.mxu0 %v1407_v49 }
  0x3a   : > { %1295 = vmatpush3.bf16.msra.mxu0 %v1405_v46  ;;  %844 = vmatprep.mubr.bf16.mxu1 %v1409_v50 }
  0x3b   : > { %1322 = vmatpush3.bf16.msra.mxu1 %v1405_v46  ;;  %1296 = vmatprep.subr.bf16.mxu0 %v1406_v51 }
  0x3c   : > { %1315 = vmatprep.subr.bf16.mxu1 %v1406_v51 }
  0x3e   : > { %1297 = vmatpush3.bf16.msra.mxu0 %v1406_v51 }
  0x3f   : > { %1323 = vmatpush3.bf16.msra.mxu1 %v1406_v51  ;;  %1298 = vmatprep.subr.bf16.mxu0 %v1413_v52 }
  0x40   : > { %780 = vmatmul.mubr.bf16.gmra.mrb[12].mxu0 %v1411_v53  ;;  %1316 = vmatprep.subr.bf16.mxu1 %v1413_v52 }
  0x41   : > { %845 = vmatmul.mubr.bf16.gmra.mrb[12].mxu1 %v1412_v54  ;;  %1302 = vmatprep.mubr.bf16.mxu0 %v1415_v55 }
  0x42   : > { %1299 = vmatpush3.bf16.msra.mxu0 %v1413_v52  ;;  %1306 = vmatprep.mubr.bf16.mxu1 %v1416_v56 }
  0x43   : > { %1324 = vmatpush3.bf16.msra.mxu1 %v1413_v52  ;;  %1300 = vmatprep.subr.bf16.mxu0 %v1414_v57 }
  0x44   : > { %1317 = vmatprep.subr.bf16.mxu1 %v1414_v57 }
  0x46   : > { %1301 = vmatpush3.bf16.msra.mxu0 %v1414_v57 }
  0x47   : > { %1325 = vmatpush3.bf16.msra.mxu1 %v1414_v57 }
  0x49   : > { %1303 = vmatmul.mubr.bf16.vlgmr.msra.gmra.mrb[16].mxu0 %v1417_v58 }
  0x4a   : > { %1307 = vmatmul.mubr.bf16.vlgmr.msra.gmra.mrb[16].mxu1 %v1418_v59 }
  0xfb   : > { %v1210_v60 = vpop.f32.mrb[0].mxu0 }
  0xfc   : > { %v1250_v61 = vpop.f32.mrb[0].mxu1  ;;  %v1211_v62 = vpop.f32.mrb[1].mxu0 }
  0xfd   : > { %v1212_v63 = vadd.f32 %v1211_v62, %v1210_v60  ;;  %v1251_v0 = vpop.f32.mrb[1].mxu1  ;;  %v1213_v1 = vpop.f32.mrb[2].mxu0 }
  0xfe   : > { %v1252_v2 = vadd.f32 %v1251_v0, %v1250_v61  ;;  %v1253_v3 = vpop.f32.mrb[2].mxu1  ;;  %v1214_v4 = vpop.f32.mrb[3].mxu0 }
  0xff   : > { %v1215_v5 = vadd.f32 %v1214_v4, %v1213_v1  ;;  %v1254_v6 = vpop.f32.mrb[3].mxu1 }
 0x100   : > { %v1255_v7 = vadd.f32 %v1254_v6, %v1253_v3  ;;  %v823_v8 = vadd.f32 %v1252_v2, %v1212_v63 }
 0x102   : > { %v826_v9 = vadd.f32 %v1255_v7, %v1215_v5 }
 0x103   : > { %v1216_v10 = vpop.f32.mrb[4].mxu0 }
 0x104   : > { %v1256_v11 = vpop.f32.mrb[4].mxu1  ;;  %v1217_v12 = vpop.f32.mrb[5].mxu0 }
 0x105   : > { %v1218_v13 = vadd.f32 %v1217_v12, %v1216_v10  ;;  %v1257_v14 = vpop.f32.mrb[5].mxu1  ;;  %v1219_v15 = vpop.f32.mrb[6].mxu0 }
 0x106   : > { %v1258_v16 = vadd.f32 %v1257_v14, %v1256_v11  ;;  %v1259_v17 = vpop.f32.mrb[6].mxu1  ;;  %v1220_v18 = vpop.f32.mrb[7].mxu0 }
 0x107   : > { %v1221_v19 = vadd.f32 %v1220_v18, %v1219_v15  ;;  %v1260_v20 = vpop.f32.mrb[7].mxu1 }
 0x108   : > { %v1261_v21 = vadd.f32 %v1260_v20, %v1259_v17  ;;  %v831_v22 = vadd.f32 %v1258_v16, %v1218_v13 }
 0x10a   : > { %v834_v23 = vadd.f32 %v1261_v21, %v1221_v19 }
 0x10b   : > { %v1222_v24 = vpop.f32.mrb[8].mxu0 }
 0x10c   : > { %v1262_v25 = vpop.f32.mrb[8].mxu1  ;;  %v1223_v26 = vpop.f32.mrb[9].mxu0 }
 0x10d   : > { %v1224_v27 = vadd.f32 %v1223_v26, %v1222_v24  ;;  %v1263_v28 = vpop.f32.mrb[9].mxu1  ;;  %v1225_v29 = vpop.f32.mrb[10].mxu0 }
 0x10e   : > { %v1264_v30 = vadd.f32 %v1263_v28, %v1262_v25  ;;  %v1265_v31 = vpop.f32.mrb[10].mxu1  ;;  %v1226_v32 = vpop.f32.mrb[11].mxu0 }
 0x10f   : > { %v1227_v33 = vadd.f32 %v1226_v32, %v1225_v29  ;;  %v1266_v34 = vpop.f32.mrb[11].mxu1 }
 0x110   : > { %v1267_v35 = vadd.f32 %v1266_v34, %v1265_v31  ;;  %v839_v36 = vadd.f32 %v1264_v30, %v1224_v27 }
 0x112   : > { %v842_v37 = vadd.f32 %v1267_v35, %v1227_v33 }
 0x113   : > { %v1228_v38 = vpop.f32.mrb[12].mxu0 }
 0x114   : > { %v1268_v39 = vpop.f32.mrb[12].mxu1  ;;  %v1229_v40 = vpop.f32.mrb[13].mxu0 }
 0x115   : > { %v1230_v41 = vadd.f32 %v1229_v40, %v1228_v38  ;;  %v1269_v42 = vpop.f32.mrb[13].mxu1  ;;  %v1231_v43 = vpop.f32.mrb[14].mxu0 }
 0x116   : > { %v1270_v44 = vadd.f32 %v1269_v42, %v1268_v39  ;;  %v1271_v45 = vpop.f32.mrb[14].mxu1  ;;  %v1232_v46 = vpop.f32.mrb[15].mxu0 }
 0x117   : > { %v1233_v47 = vadd.f32 %v1232_v46, %v1231_v43  ;;  %v1272_v48 = vpop.f32.mrb[15].mxu1 }
 0x118   : > { %v1273_v49 = vadd.f32 %v1272_v48, %v1271_v45  ;;  %v847_v50 = vadd.f32 %v1270_v44, %v1230_v41 }
 0x11a   : > { %v850_v51 = vadd.f32 %v1273_v49, %v1233_v47 }
 0x11c   : > { %v1304_v52 = vpop.f32.mrb[16].mxu0 }
 0x11d   : > { %v896_v53 = vadd.f32 %v1304_v52, %v831_v22  ;;  %v1308_v54 = vpop.f32.mrb[16].mxu1  ;;  %v887_v55 = vpop.f32.mrb[17].mxu0 }
 0x11e   : > { %v912_v56 = vadd.f32 %v1308_v54, %v847_v50  ;;  %v888_v57 = vadd.f32 %v887_v55, %v823_v8  ;;  %v903_v58 = vpop.f32.mrb[17].mxu1  ;;  %v1305_v59 = vpop.f32.mrb[18].mxu0 }
 0x11f   : > { %920 = vst [vmem:[%s260_s21 + $0x10] sm:$0xff] %v896_v53  ;;  %v904_v60 = vadd.f32 %v903_v58, %v839_v36  ;;  %v899_v61 = vadd.f32 %v1305_v59, %v834_v23  ;;  %v1309_v62 = vpop.f32.mrb[18].mxu1  ;;  %v890_v63 = vpop.f32.mrb[19].mxu0  ;;  %v942_v7 = vmul.f32 %v896_v53, %v896_v53 }
 0x120   : > { %924 = vst [vmem:[%s260_s21 + $0x30] sm:$0xff] %v912_v56  ;;  %918 = vst [vmem:[%s260_s21] sm:$0xff] %v888_v57  ;;  %v915_v0 = vadd.f32 %v1309_v62, %v850_v51  ;;  %v891_v1 = vadd.f32 %v890_v63, %v826_v9  ;;  %v906_v2 = vpop.f32.mrb[19].mxu1  ;;  %v940_v4 = vmul.f32 %v888_v57, %v888_v57 }
 0x121   : > { %922 = vst [vmem:[%s260_s21 + $0x20] sm:$0xff] %v904_v60  ;;  %921 = vst [vmem:[%s260_s21 + $0x18] sm:$0xff] %v899_v61  ;;  %v907_v3 = vadd.f32 %v906_v2, %v842_v37  ;;  %v943_v11 = vmul.f32 %v899_v61, %v899_v61  ;;  %v944_v14 = vmul.f32 %v904_v60, %v904_v60 }
 0x122   : > { %925 = vst [vmem:[%s260_s21 + $0x38] sm:$0xff] %v915_v0  ;;  %919 = vst [vmem:[%s260_s21 + $0x8] sm:$0xff] %v891_v1  ;;  %v926_v5 = vadd.f32 %v891_v1, %v888_v57  ;;  %v941_v6 = vmul.f32 %v891_v1, %v891_v1  ;;  %v946_v19 = vmul.f32 %v912_v56, %v912_v56 }
 0x123   : > { %923 = vst [vmem:[%s260_s21 + $0x28] sm:$0xff] %v907_v3  ;;  %v945_v17 = vmul.f32 %v907_v3, %v907_v3  ;;  %v947_v22 = vmul.f32 %v915_v0, %v915_v0 }
 0x124   : > { %v927_v8 = vadd.f32 %v926_v5, %v896_v53  ;;  %v948_v10 = vadd.f32 %v941_v6, %v940_v4 }
 0x126   : > { %v949_v12 = vadd.f32 %v948_v10, %v942_v7  ;;  %v928_v13 = vadd.f32 %v927_v8, %v899_v61 }
 0x128   : > { %v929_v15 = vadd.f32 %v928_v13, %v904_v60  ;;  %v950_v9 = vadd.f32 %v949_v12, %v943_v11 }
 0x12a   : > { %v930_v16 = vadd.f32 %v929_v15, %v907_v3  ;;  %v951_v18 = vadd.f32 %v950_v9, %v944_v14 }
 0x12c   : > { %v931_v20 = vadd.f32 %v930_v16, %v912_v56  ;;  %v952_v21 = vadd.f32 %v951_v18, %v945_v17 }
 0x12e   : > { %v932_v23 = vadd.f32 %v931_v20, %v915_v0  ;;  %v953_v24 = vadd.f32 %v952_v21, %v946_v19 }
 0x130   : > { %v933_v25 = vrot.slane %v932_v23, 4  ;;  %v954_v26 = vadd.f32 %v953_v24, %v947_v22 }
 0x132   : > { %v934_v27 = vadd.f32 %v933_v25, %v932_v23  ;;  %v955_v28 = vrot.slane %v954_v26, 4 }
 0x134   : > { %v935_v29 = vrot.slane %v934_v27, 2  ;;  %v956_v30 = vadd.f32 %v955_v28, %v954_v26 }
 0x136   : > { %v936_v31 = vadd.f32 %v935_v29, %v934_v27  ;;  %v957_v32 = vrot.slane %v956_v30, 2 }
 0x138   : > { %v937_v33 = vrot.slane %v936_v31, 1  ;;  %v958_v34 = vadd.f32 %v957_v32, %v956_v30 }
 0x13a   : > { %v938_v35 = vadd.f32 %v937_v33, %v936_v31  ;;  %v959_v36 = vrot.slane %v958_v34, 1 }
 0x13c   : > { %939 = vst [vmem:[%s267_s23] sm:$0x1] %v938_v35  ;;  %v960_v37 = vadd.f32 %v959_v36, %v958_v34 }
 0x13e   : > { %961 = vst [vmem:[%s273_s26] sm:$0x1] %v960_v37 }
 0x13f PF: > { %s15_s17 = sadd.s32 1, %s1441_s17   ;;  %s1663_s15 = smov %s1437_s16 }
 0x140   : > { %p12_p6 = scmp.ge.s32.totalorder %s15_s17, 4   ;;  %s1664_s16 = smov %s1666_s18 }
 0x142   :  { %14 = sbr.rel (!%p12_p6) target bundleno = 2 (0x2), region = 85 }

// kernel: _lambda_.46
= control target key start
LH: loop header
LB: loop body
LE: loop exit
PB: predicated region body
PF: predicated region fallthrough
CT: control target
= control target key end

     0   :  { %s270_s0 = inlined_call_operand.vmem [shape: f32[64,128], index: 0, kind: input, shape index: {}]   ;;  %s271_s1 = inlined_call_operand.vmem [shape: f32[1,128], index: 1, kind: input, shape index: {}]   ;;  %s272_s2 = inlined_call_operand.vmem [shape: f32[1,128], index: 2, kind: input, shape index: {}]   ;;  %s273_s3 = inlined_call_operand.vmem [shape: bf16[64,128], index: 3, kind: input, shape index: {}]   ;;  %s274_s4 = inlined_call_operand.vmem [shape: bf16[64,128], index: 4, kind: output, shape index: {}]  }
   0x1   :  { %v17_v0 = vld [vmem:[%s270_s0] sm:$0xff]  ;;  %v18_v1 = vld [vmem:[%s270_s0 + $0x8] sm:$0xff]  ;;  %v19_v7 = vld [vmem:[%s270_s0 + $0x10] sm:$0xff] }
   0x2   :  { %v131_v2 = vld [vmem:[%s271_s1] ss:$0 sm:$0xff]  ;;  %v20_v10 = vld [vmem:[%s270_s0 + $0x18] sm:$0xff]  ;;  %v185_v12 = vld [vmem:[%s273_s3 + $0x8] sm:$0xff]  }
   0x3   :  { %v32_v3 = vmul.f32 %v131_v2, %v17_v0  ;;  %v33_v4 = vmul.f32 %v131_v2, %v18_v1  ;;  %v132_v5 = vld [vmem:[%s272_s2] ss:$0 sm:$0xff]  ;;  %v34_v11 = vmul.f32 %v131_v2, %v19_v7  ;;  %v35_v16 = vmul.f32 %v131_v2, %v20_v10  ;;  %v22_v18 = vld [vmem:[%s270_s0 + $0x28] sm:$0xff]  ;;  %v186_v19 = vld [vmem:[%s273_s3 + $0x10] sm:$0xff]  }
   0x4   :  { %v150_v6 = vld [vmem:[%s273_s3] sm:$0xff]   ;;  %v155_v17 = vunpack.c.l.bf16 %v185_v12  ;;  %v156_v21 = vunpack.c.h.bf16 %v185_v12  ;;  %v37_v23 = vmul.f32 %v131_v2, %v22_v18  ;;  %v23_v24 = vld [vmem:[%s270_s0 + $0x30] sm:$0xff]  ;;  %v159_v28 = vunpack.c.l.bf16 %v186_v19  ;;  %v24_v29 = vld [vmem:[%s270_s0 + $0x38] sm:$0xff] }
   0x5   :  { %v151_v8 = vunpack.c.l.bf16 %v150_v6  ;;  %v152_v9 = vunpack.c.h.bf16 %v150_v6  ;;  %v21_v13 = vld [vmem:[%s270_s0 + $0x20] sm:$0xff]  ;;  %v47_v14 = vadd.f32 %v132_v5, %v32_v3  ;;  %v48_v15 = vadd.f32 %v132_v5, %v33_v4  ;;  %v187_v34 = vld [vmem:[%s273_s3 + $0x18] sm:$0xff]  }
   0x6   :  { %v49_v20 = vadd.f32 %v132_v5, %v34_v11  ;;  %v36_v22 = vmul.f32 %v131_v2, %v21_v13  ;;  %v50_v27 = vadd.f32 %v132_v5, %v35_v16  ;;  %v52_v32 = vadd.f32 %v132_v5, %v37_v23 }
   0x7   :  { %v71_v25 = vadd.f32 %v151_v8, %v47_v14  ;;  %v72_v26 = vadd.f32 %v152_v9, %v48_v15  ;;  %v160_v33 = vunpack.c.h.bf16 %v186_v19  ;;  %v38_v38 = vmul.f32 %v131_v2, %v23_v24 }
   0x8   :  { %v73_v30 = vadd.f32 %v155_v17, %v49_v20  ;;  %v51_v31 = vadd.f32 %v132_v5, %v36_v22  ;;  %v74_v37 = vadd.f32 %v156_v21, %v50_v27  ;;  %v39_v42 = vmul.f32 %v131_v2, %v24_v29 }
   0x9   :  { %v79_v35 = vmax.f32 %v71_v25, 0.0  ;;  %v80_v36 = vmax.f32 %v72_v26, 0.0  ;;  %v76_v41 = vadd.f32 %v160_v33, %v52_v32  ;;  %v53_v45 = vadd.f32 %v132_v5, %v38_v38 }
   0xa   :  { %v81_v39 = vmax.f32 %v73_v30, 0.0  ;;  %v75_v40 = vadd.f32 %v159_v28, %v51_v31  ;;  %v82_v44 = vmax.f32 %v74_v37, 0.0  ;;  %v163_v46 = vunpack.c.l.bf16 %v187_v34 }
   0xb   :  { %v168_v43 = vpack.c.bf16 %v80_v36, %v79_v35  ;;  %v84_v48 = vmax.f32 %v76_v41, 0.0  ;;  %v54_v49 = vadd.f32 %v132_v5, %v39_v42  ;;  %v164_v50 = vunpack.c.h.bf16 %v187_v34 }
   0xc   :  { %v83_v47 = vmax.f32 %v75_v40, 0.0  ;;  %v173_v51 = vpack.c.bf16 %v82_v44, %v81_v39  ;;  %v77_v52 = vadd.f32 %v163_v46, %v53_v45 }
   0xd   :  { %169 = vst [vmem:[%s274_s4] sm:$0xff] %v168_v43   ;;  %v78_v54 = vadd.f32 %v164_v50, %v54_v49 }
   0xe   :  { %v178_v53 = vpack.c.bf16 %v84_v48, %v83_v47  ;;  %188 = vst [vmem:[%s274_s4 + $0x8] sm:$0xff] %v173_v51   ;;  %v85_v55 = vmax.f32 %v77_v52, 0.0 }
   0xf   :  { %v86_v56 = vmax.f32 %v78_v54, 0.0 }
  0x10   :  { %189 = vst [vmem:[%s274_s4 + $0x10] sm:$0xff] %v178_v53  }
  0x11   :  { %v183_v57 = vpack.c.bf16 %v86_v56, %v85_v55 }
  0x13   :  { %190 = vst [vmem:[%s274_s4 + $0x18] sm:$0xff] %v183_v57  }

// kernel: _lambda_.52
= control target key start
LH: loop header
LB: loop body
LE: loop exit
PB: predicated region body
PF: predicated region fallthrough
CT: control target
= control target key end

     0   :  { %s133_s0 = inlined_call_operand.vmem [shape: f32[32,128], index: 0, kind: input, shape index: {}]   ;;  %s134_s1 = inlined_call_operand.vmem [shape: f32[1,128], index: 1, kind: input, shape index: {}]   ;;  %s135_s2 = inlined_call_operand.vmem [shape: f32[1,128], index: 2, kind: input, shape index: {}]   ;;  %s136_s3 = inlined_call_operand.vmem [shape: bf16[32,128], index: 3, kind: output, shape index: {}]  }
   0x1   :  { %v14_v0 = vld [vmem:[%s133_s0] sm:$0xff]  ;;  %v15_v1 = vld [vmem:[%s133_s0 + $0x8] sm:$0xff]  ;;  %v16_v6 = vld [vmem:[%s133_s0 + $0x10] sm:$0xff] }
   0x2   :  { %v68_v2 = vld [vmem:[%s134_s1] ss:$0 sm:$0xff]  ;;  %v17_v7 = vld [vmem:[%s133_s0 + $0x18] sm:$0xff] }
   0x3   :  { %v25_v3 = vmul.f32 %v68_v2, %v14_v0  ;;  %v26_v4 = vmul.f32 %v68_v2, %v15_v1  ;;  %v69_v5 = vld [vmem:[%s135_s2] ss:$0 sm:$0xff]  ;;  %v27_v8 = vmul.f32 %v68_v2, %v16_v6  ;;  %v28_v9 = vmul.f32 %v68_v2, %v17_v7 }
   0x5   :  { %v36_v10 = vadd.f32 %v69_v5, %v25_v3  ;;  %v37_v11 = vadd.f32 %v69_v5, %v26_v4  ;;  %v38_v12 = vadd.f32 %v69_v5, %v27_v8  ;;  %v39_v13 = vadd.f32 %v69_v5, %v28_v9 }
   0x7   :  { %v40_v14 = vmax.f32 %v36_v10, 0.0  ;;  %v41_v15 = vmax.f32 %v37_v11, 0.0  ;;  %v42_v16 = vmax.f32 %v38_v12, 0.0  ;;  %v43_v17 = vmax.f32 %v39_v13, 0.0 }
   0x9   :  { %v81_v18 = vpack.c.bf16 %v41_v15, %v40_v14  ;;  %v86_v19 = vpack.c.bf16 %v43_v17, %v42_v16 }
   0xb   :  { %82 = vst [vmem:[%s136_s3] sm:$0xff] %v81_v18   ;;  %88 = vst [vmem:[%s136_s3 + $0x8] sm:$0xff] %v86_v19  }

// kernel: _lambda_.51
= control target key start
LH: loop header
LB: loop body
LE: loop exit
PB: predicated region body
PF: predicated region fallthrough
CT: control target
= control target key end

     0   :  { %s1185_s15 = smov 0   ;;  %s1187_s16 = smov 0   ;;  %s1360_s0 = inlined_call_operand.vmem [shape: bf16[32,640], index: 0, kind: input, shape index: {}]   ;;  %s1361_s1 = inlined_call_operand.vmem [shape: bf16[640,128], index: 1, kind: input, shape index: {}]   ;;  %s1362_s2 = inlined_call_operand.vmem [shape: f32[32,128], index: 2, kind: output, shape index: {0}]   ;;  %s1363_s3 = inlined_call_operand.vmem [shape: f32[2,1,128], index: 3, kind: output, shape index: {1}]   ;;  %s1364_s4 = inlined_call_operand.vmem [shape: f32[2,1,128], index: 4, kind: output, shape index: {2}]  }
   0x1   :  { %s1189_s17 = smov 0  }
   0x2 LB: > { %s27_s18 = sadd.s32 1, %s1152_s16  ;;  %p935_p0 = scmp.ge.s32.totalorder %s1156_s17, 1  ;;  %s1156_s17 = sphi %s1189_s17, %s15_s17   ;;  %s1152_s16 = sphi %s1187_s16, %s1366_s16   ;;  %s1148_s15 = sphi %s1185_s15, %s1365_s15  }
   0x3   : > { %p29_p1 = scmp.ge.s32.totalorder %s27_s18, 2  ;;  %p196_p2 = scmp.lt.s32.totalorder %s1156_s17, 3 }
   0x5   : > { %s1368_s18 = smov (%p29_p1, %s27_s18), 0  ;;  %p197_p3 = pnand %p935_p0, %p196_p2 }
   0x6   : > { %v1087_v0 = vld [vmem:[%s1361_s1 + $0x40] sm:$0xff] (!%p197_p3)   ;;  %v1091_v4 = vld [vmem:[%s1361_s1 + $0x48] sm:$0xff] (!%p197_p3)   ;;  %v1095_v8 = vld [vmem:[%s1361_s1 + $0x50] sm:$0xff] (!%p197_p3)   ;;  %s936_s27 = sshll.u32 (!%p197_p3), %s1148_s15, 1  ;;  %v1158_v34 = vmov (!%p197_p3), 0.0   ;;  %vm1159_vm0 = vmmov (!%p197_p3), 0  }
   0x7   : > { %200 = sbr.rel (%p197_p3) target bundleno = 305 (0x131), region = 28  ;;  %v1088_v1 = vld [vmem:[%s1361_s1 + $0xc0] sm:$0xff] (!%p197_p3)   ;;  %987 = vmatprep.subr.bf16.mxu0 (!%p197_p3), %v1087_v0  ;;  %v1092_v5 = vld [vmem:[%s1361_s1 + $0xc8] sm:$0xff] (!%p197_p3)   ;;  %v1096_v9 = vld [vmem:[%s1361_s1 + $0xd0] sm:$0xff] (!%p197_p3)   ;;  %p243_p4 = scmp.lt.s32.totalorder (!%p197_p3), %s936_s27, 3 }
   0x8   : > { %v1089_v2 = vld [vmem:[%s1361_s1] sm:$0xff] (!%p197_p3)   ;;  %1009 = vmatprep.subr.bf16.mxu1 (!%p197_p3), %v1088_v1  ;;  %v1093_v6 = vld [vmem:[%s1361_s1 + $0x8] sm:$0xff] (!%p197_p3)   ;;  %v1097_v10 = vld [vmem:[%s1361_s1 + $0x10] sm:$0xff] (!%p197_p3)   ;;  %p262_p5 = scmp.lt.s32.totalorder (!%p197_p3), %s1148_s15, 1 }
   0x9   : > { %v1090_v3 = vld [vmem:[%s1361_s1 + $0x80] sm:$0xff] (!%p197_p3)   ;;  %988 = vmatpush3.bf16.msra.mxu0 (!%p197_p3), %v1089_v2  ;;  %v1094_v7 = vld [vmem:[%s1361_s1 + $0x88] sm:$0xff] (!%p197_p3)   ;;  %v1098_v11 = vld [vmem:[%s1361_s1 + $0x90] sm:$0xff] (!%p197_p3)  }
   0xa   : > { %1010 = vmatpush3.bf16.msra.mxu1 (!%p197_p3), %v1090_v3  ;;  %989 = vmatprep.subr.bf16.mxu0 (!%p197_p3), %v1091_v4  ;;  %v1099_v12 = vld [vmem:[%s1361_s1 + $0x58] sm:$0xff] (!%p197_p3)   ;;  %v1103_v16 = vld [vmem:[%s1361_s1 + $0x60] sm:$0xff] (!%p197_p3)   ;;  %v1107_v20 = vld [vmem:[%s1361_s1 + $0x68] sm:$0xff] (!%p197_p3)  }
   0xb   : > { %1011 = vmatprep.subr.bf16.mxu1 (!%p197_p3), %v1092_v5  ;;  %v1100_v13 = vld [vmem:[%s1361_s1 + $0xd8] sm:$0xff] (!%p197_p3)   ;;  %v1104_v17 = vld [vmem:[%s1361_s1 + $0xe0] sm:$0xff] (!%p197_p3)   ;;  %v1108_v21 = vld [vmem:[%s1361_s1 + $0xe8] sm:$0xff] (!%p197_p3)  }
   0xc   : > { %v1101_v14 = vld [vmem:[%s1361_s1 + $0x18] sm:$0xff] (!%p197_p3)   ;;  %v1105_v18 = vld [vmem:[%s1361_s1 + $0x20] sm:$0xff] (!%p197_p3)   ;;  %v1109_v22 = vld [vmem:[%s1361_s1 + $0x28] sm:$0xff] (!%p197_p3)  }
   0xd   : > { %990 = vmatpush3.bf16.msra.mxu0 (!%p197_p3), %v1093_v6  ;;  %v1102_v15 = vld [vmem:[%s1361_s1 + $0x98] sm:$0xff] (!%p197_p3)   ;;  %v1106_v19 = vld [vmem:[%s1361_s1 + $0xa0] sm:$0xff] (!%p197_p3)   ;;  %v1110_v23 = vld [vmem:[%s1361_s1 + $0xa8] sm:$0xff] (!%p197_p3)  }
   0xe   : > { %1012 = vmatpush3.bf16.msra.mxu1 %v1094_v7  ;;  %991 = vmatprep.subr.bf16.mxu0 %v1095_v8  ;;  %s1370_s27 = smov (!%p243_p4, %s936_s27), 3  ;;  %v1111_v24 = vld [vmem:[%s1361_s1 + $0x70] sm:$0xff]   ;;  %v1115_v28 = vld [vmem:[%s1361_s1 + $0x78] sm:$0xff]   ;;  %v1125_v37 = vld [vmem:[%s1361_s1 + $0x100] sm:$0xff]   ;;  %s1372_s15 = smov (!%p262_p5, %s1148_s15), 1 }
   0xf   : > { %1013 = vmatprep.subr.bf16.mxu1 %v1096_v9  ;;  %v1112_v25 = vld [vmem:[%s1361_s1 + $0xf0] sm:$0xff]   ;;  %s1060_s29 = smul.u32 20, %s1370_s27  ;;  %v1116_v29 = vld [vmem:[%s1361_s1 + $0xf8] sm:$0xff]   ;;  %v1126_v38 = vld [vmem:[%s1361_s1 + $0x108] sm:$0xff]   ;;  %s939_s19 = sshll.u32 %s1370_s27, 3 }
  0x10   : > { %v1113_v26 = vld [vmem:[%s1361_s1 + $0x30] sm:$0xff]   ;;  %v1117_v30 = vld [vmem:[%s1361_s1 + $0x38] sm:$0xff]   ;;  %v1129_v41 = vld [vmem:[%s1361_s1 + $0x120] sm:$0xff]   ;;  %s260_s21 = scalar_lea.vmem %s1362_s2, %s939_s19  ;;  %s267_s23 = scalar_lea.vmem %s1363_s3, %s1372_s15 }
  0x11   : > { %992 = vmatpush3.bf16.msra.mxu0 %v1097_v10  ;;  %v1114_v27 = vld [vmem:[%s1361_s1 + $0xb0] sm:$0xff]   ;;  %s1302_s14 = scalar_lea.vmem %s1360_s0, %s1060_s29  ;;  %v1118_v31 = vld [vmem:[%s1361_s1 + $0xb8] sm:$0xff]   ;;  %v1130_v42 = vld [vmem:[%s1361_s1 + $0x128] sm:$0xff]   ;;  %s273_s26 = scalar_lea.vmem %s1364_s4, %s1372_s15 }
  0x12   : > { %1014 = vmatpush3.bf16.msra.mxu1 %v1098_v11  ;;  %993 = vmatprep.subr.bf16.mxu0 %v1099_v12  ;;  %v1119_v32 = vld [vmem:[%s1302_s14] ss:$20 sps:$4 sm:$0xff]   ;;  %v1121_v33 = vld [vmem:[%s1302_s14 + $0x4] ss:$20 sps:$4 sm:$0xff]   ;;  %v1122_v35 = vld [vmem:[%s1302_s14 + $0x8] ss:$20 sps:$4 sm:$0xff]  }
  0x13   : > { %1015 = vmatprep.subr.bf16.mxu1 %v1100_v13  ;;  %v1124_v36 = vld [vmem:[%s1302_s14 + $0xc] ss:$20 sps:$4 sm:$0xff]   ;;  %659 = vmatprep.mubr.bf16.mxu0 %v1121_v33  ;;  %v1127_v39 = vld [vmem:[%s1361_s1 + $0x110] sm:$0xff]   ;;  %v1128_v40 = vld [vmem:[%s1361_s1 + $0x118] sm:$0xff]  }
  0x14   : > { %700 = vmatprep.mubr.bf16.mxu1 %v1124_v36  ;;  %v1131_v43 = vld [vmem:[%s1361_s1 + $0x130] sm:$0xff]   ;;  %v1132_v44 = vld [vmem:[%s1361_s1 + $0x138] sm:$0xff]  }
  0x15   : > { %994 = vmatpush3.bf16.msra.mxu0 %v1101_v14  ;;  %v1133_v45 = vld [vmem:[%s1302_s14 + $0x10] ss:$20 sps:$4 sm:$0xff]  }
  0x16   : > { %1016 = vmatpush3.bf16.msra.mxu1 %v1102_v15  ;;  %995 = vmatprep.subr.bf16.mxu0 %v1103_v16 }
  0x17   : > { %1017 = vmatprep.subr.bf16.mxu1 %v1104_v17 }
  0x19   : > { %996 = vmatpush3.bf16.msra.mxu0 %v1105_v18 }
  0x1a   : > { %1018 = vmatpush3.bf16.msra.mxu1 %v1106_v19  ;;  %997 = vmatprep.subr.bf16.mxu0 %v1107_v20 }
  0x1b   : > { %1019 = vmatprep.subr.bf16.mxu1 %v1108_v21 }
  0x1d   : > { %998 = vmatpush3.bf16.msra.mxu0 %v1109_v22 }
  0x1e   : > { %1020 = vmatpush3.bf16.msra.mxu1 %v1110_v23  ;;  %999 = vmatprep.subr.bf16.mxu0 %v1111_v24 }
  0x1f   : > { %1021 = vmatprep.subr.bf16.mxu1 %v1112_v25 }
  0x21   : > { %1000 = vmatpush3.bf16.msra.mxu0 %v1113_v26 }
  0x22   : > { %1022 = vmatpush3.bf16.msra.mxu1 %v1114_v27  ;;  %1001 = vmatprep.subr.bf16.mxu0 %v1115_v28 }
  0x23   : > { %1023 = vmatprep.subr.bf16.mxu1 %v1116_v29 }
  0x25   : > { %1002 = vmatpush3.bf16.msra.mxu0 %v1117_v30 }
  0x26   : > { %1024 = vmatpush3.bf16.msra.mxu1 %v1118_v31  ;;  %1040 = vmatprep.subr.bf16.mxu0 %v1158_v34 }
  0x28   : > { %660 = vmatmul.mubr.bf16.vlgmr.msra.gmra.mrb[0].mxu0 %v1119_v32 }
  0x29   : > { %701 = vmatmul.mubr.bf16.vlgmr.msra.gmra.mrb[0].mxu1 %v1122_v35  ;;  %1041 = vmatpush3.bf16.msra.mxu0 %v1125_v37 }
  0x2a   : > { %1042 = vmatprep.subr.bf16.mxu0 %v1158_v34  ;;  %1056 = vmatprep.mubr.msk.bf16.mxu0 %vm1159_vm0, %v1158_v34 }
  0x2d   : > { %1043 = vmatpush3.bf16.msra.mxu0 %v1126_v38 }
  0x2e   : > { %1044 = vmatprep.subr.bf16.mxu0 %v1158_v34 }
  0x31   : > { %1045 = vmatpush3.bf16.msra.mxu0 %v1127_v39 }
  0x32   : > { %1046 = vmatprep.subr.bf16.mxu0 %v1158_v34 }
  0x35   : > { %1047 = vmatpush3.bf16.msra.mxu0 %v1128_v40 }
  0x36   : > { %1048 = vmatprep.subr.bf16.mxu0 %v1158_v34 }
  0x39   : > { %1049 = vmatpush3.bf16.msra.mxu0 %v1129_v41 }
  0x3a   : > { %1050 = vmatprep.subr.bf16.mxu0 %v1158_v34 }
  0x3d   : > { %1051 = vmatpush3.bf16.msra.mxu0 %v1130_v42 }
  0x3e   : > { %1052 = vmatprep.subr.bf16.mxu0 %v1158_v34 }
  0x41   : > { %1053 = vmatpush3.bf16.msra.mxu0 %v1131_v43 }
  0x42   : > { %1054 = vmatprep.subr.bf16.mxu0 %v1158_v34 }
  0x45   : > { %1055 = vmatpush3.bf16.msra.mxu0 %v1132_v44 }
  0x48   : > { %1057 = vmatmul.mubr.bf16.vlgmr.msra.gmra.mrb[4].mxu0 %v1133_v45 }
  0xfb   : > { %v1003_v46 = vpop.f32.mrb[0].mxu0 }
  0xfc   : > { %v1025_v47 = vpop.f32.mrb[0].mxu1  ;;  %v1004_v48 = vpop.f32.mrb[1].mxu0 }
  0xfd   : > { %v1005_v49 = vadd.f32 %v1004_v48, %v1003_v46  ;;  %v1026_v50 = vpop.f32.mrb[1].mxu1  ;;  %v1006_v51 = vpop.f32.mrb[2].mxu0 }
  0xfe   : > { %v1027_v52 = vadd.f32 %v1026_v50, %v1025_v47  ;;  %v1028_v53 = vpop.f32.mrb[2].mxu1  ;;  %v1007_v54 = vpop.f32.mrb[3].mxu0 }
  0xff   : > { %v1008_v55 = vadd.f32 %v1007_v54, %v1006_v51  ;;  %v1029_v56 = vpop.f32.mrb[3].mxu1 }
 0x100   : > { %v1030_v57 = vadd.f32 %v1029_v56, %v1028_v53  ;;  %v703_v58 = vadd.f32 %v1027_v52, %v1005_v49 }
 0x102   : > { %v706_v59 = vadd.f32 %v1030_v57, %v1008_v55 }
 0x11b   : > { %v743_v60 = vpop.f32.mrb[4].mxu0 }
 0x11c   : > { %v744_v61 = vadd.f32 %v743_v60, %v703_v58  ;;  %v1058_v62 = vpop.f32.mrb[5].mxu0 }
 0x11d   : > { %v746_v63 = vpop.f32.mrb[6].mxu0 }
 0x11e   : > { %750 = vst [vmem:[%s260_s21] sm:$0xff] %v744_v61  ;;  %v747_v0 = vadd.f32 %v746_v63, %v706_v59  ;;  %v1059_v1 = vpop.f32.mrb[7].mxu0  ;;  %v760_v2 = vmul.f32 %v744_v61, %v744_v61 }
 0x120   : > { %751 = vst [vmem:[%s260_s21 + $0x8] sm:$0xff] %v747_v0  ;;  %v752_v3 = vadd.f32 %v747_v0, %v744_v61  ;;  %v761_v4 = vmul.f32 %v747_v0, %v747_v0 }
 0x122   : > { %v753_v5 = vrot.slane %v752_v3, 4  ;;  %v762_v6 = vadd.f32 %v761_v4, %v760_v2 }
 0x124   : > { %v754_v7 = vadd.f32 %v753_v5, %v752_v3  ;;  %v763_v8 = vrot.slane %v762_v6, 4 }
 0x126   : > { %v755_v9 = vrot.slane %v754_v7, 2  ;;  %v764_v10 = vadd.f32 %v763_v8, %v762_v6 }
 0x128   : > { %v756_v11 = vadd.f32 %v755_v9, %v754_v7  ;;  %v765_v12 = vrot.slane %v764_v10, 2 }
 0x12a   : > { %v757_v13 = vrot.slane %v756_v11, 1  ;;  %v766_v14 = vadd.f32 %v765_v12, %v764_v10 }
 0x12c   : > { %v758_v15 = vadd.f32 %v757_v13, %v756_v11  ;;  %v767_v16 = vrot.slane %v766_v14, 1 }
 0x12e   : > { %759 = vst [vmem:[%s267_s23] sm:$0x1] %v758_v15  ;;  %v768_v17 = vadd.f32 %v767_v16, %v766_v14 }
 0x130   : > { %769 = vst [vmem:[%s273_s26] sm:$0x1] %v768_v17 }
 0x131 PF: > { %s15_s17 = sadd.s32 1, %s1156_s17   ;;  %s1365_s15 = smov %s1152_s16 }
 0x132   : > { %p12_p6 = scmp.ge.s32.totalorder %s15_s17, 4   ;;  %s1366_s16 = smov %s1368_s18 }
 0x134   :  { %14 = sbr.rel (!%p12_p6) target bundleno = 2 (0x2), region = 85 }

// kernel: _lambda_.53
= control target key start
LH: loop header
LB: loop body
LE: loop exit
PB: predicated region body
PF: predicated region fallthrough
CT: control target
= control target key end

     0   :  { %s1117_s15 = smov 0   ;;  %s1119_s16 = smov 0   ;;  %s1268_s0 = inlined_call_operand.vmem [shape: bf16[32,1152], index: 0, kind: input, shape index: {}]   ;;  %s1269_s1 = inlined_call_operand.vmem [shape: bf16[1152,128], index: 1, kind: input, shape index: {}]   ;;  %s1270_s2 = inlined_call_operand.vmem [shape: f32[32,128], index: 2, kind: output, shape index: {0}]   ;;  %s1271_s3 = inlined_call_operand.vmem [shape: f32[2,1,128], index: 3, kind: output, shape index: {1}]   ;;  %s1272_s4 = inlined_call_operand.vmem [shape: f32[2,1,128], index: 4, kind: output, shape index: {2}]  }
   0x1   :  { %s1121_s17 = smov 0   ;;  %s1123_s18 = smov 0  }
   0x2   :  { %s1125_s19 = smov 0   ;;  %s1127_s20 = smov 0  }
   0x3   :  { %s1129_s21 = smov 0  }
   0x4 LB: > { %s27_s22 = sadd.s32 1, %s1079_s19  ;;  %s34_s23 = sadd.s32 1, %s1083_s20  ;;  %s1087_s21 = sphi %s1129_s21, %s15_s21   ;;  %s1083_s20 = sphi %s1127_s20, %s1278_s20   ;;  %s1079_s19 = sphi %s1125_s19, %s1277_s19   ;;  %s1075_s18 = sphi %s1123_s18, %s1276_s18   ;;  %s1071_s17 = sphi %s1121_s17, %s1275_s17   ;;  %s1067_s16 = sphi %s1119_s16, %s1274_s16   ;;  %s1063_s15 = sphi %s1117_s15, %s1273_s15  }
   0x5   : > { %p28_p0 = scmp.ge.s32.totalorder %s27_s22, 3  ;;  %p50_p1 = scmp.ne.s32.totalorder %s1067_s16, %s1063_s15 }
   0x6   : > { %p51_p2 = scmp.eq.s32.totalorder %s1087_s21, 0  ;;  %s43_s27 = sadd.s32 1, %s1067_s16 }
   0x7   : > { %s1280_s22 = smov (%p28_p0, %s27_s22), 0  ;;  %s1282_s23 = smov (!%p28_p0, %s34_s23), %s1083_s20 }
   0x8   : > { %p52_p3 = por %p51_p2, %p50_p1  ;;  %p36_p4 = scmp.ge.s32.totalorder %s1282_s23, 2 }
   0x9   : > { %s39_s24 = ssub.s32 %s1079_s19, %s1280_s22  ;;  %p849_p6 = scmp.ge.s32.totalorder %s1087_s21, 6 }
   0xa   : > { %s1284_s23 = smov (%p36_p4, %s1282_s23), 0 }
   0xb   : > { %s38_s25 = ssub.s32 %s1083_s20, %s1284_s23  ;;  %188 = sbr.rel (%p849_p6) target bundleno = 29 (0x1d), region = 16 }
   0xc   : > { %s40_s26 = sor.u32 %s39_s24, %s38_s25 }
   0xd   : > { %p41_p5 = scmp.eq.s32.totalorder %s40_s26, 0 }
   0xf   : > { %s1168_s28 = scalar_select %p41_p5, %s1067_s16, %s43_s27  }
  0x12   : > { %191 = sbr.rel (!%p52_p3) target bundleno = 29 (0x1d), region = 20  ;;  %s193_s29 = sand.u32 (%p52_p3), 1, %s1067_s16  }
  0x13   : > { %s197_s30 = smul.u32 (%p52_p3), 3, %s1079_s19 }
  0x14   : > { %s943_s5 = smul.u32 (%p52_p3), 24, %s193_s29 }
  0x15   : > { %s944_s6 = smul.u32 (%p52_p3), 18, %s1083_s20 }
  0x16   : > { %s195_s12 = scalar_lea.vmem (%p52_p3), [#allocation3], %s943_s5 }
  0x17   : > { %s199_s7 = sadd.s32 (%p52_p3), %s944_s6, %s197_s30 }
  0x18   : > { %s852_s8 = sshll.u32 (%p52_p3), %s199_s7, 2 }
  0x19   : > { %s201_s11 = scalar_lea.vmem %s1268_s0, %s852_s8 }
  0x1a   : > { %v216_v0 = vld [vmem:[%s201_s11] sm:$0xff]  ;;  %v853_v2 = vld [vmem:[%s201_s11 + $0x8] sm:$0xf]  ;;  %v855_v3 = vld [vmem:[%s201_s11 + $0x2c] sm:$0xf] }
  0x1b   : > { %v218_v1 = vld [vmem:[%s201_s11 + $0x24] sm:$0xff]  ;;  %217 = vst [vmem:[%s195_s12] sm:$0xff] %v216_v0  ;;  %854 = vst [vmem:[%s195_s12 + $0x8] sm:$0xf] %v853_v2 }
  0x1c   : > { %219 = vst [vmem:[%s195_s12 + $0xc] sm:$0xff] %v218_v1  ;;  %856 = vst [vmem:[%s195_s12 + $0x14] sm:$0xf] %v855_v3 }
  0x1d PF: > { %p857_p7 = scmp.ge.s32.totalorder %s1087_s21, 1  ;;  %p247_p8 = scmp.lt.s32.totalorder %s1087_s21, 7 }
  0x1f   : > { %p248_p9 = pnand %p857_p7, %p247_p8 }
  0x20   : > { %s254_s13 = sand.u32 (!%p248_p9), 1, %s1063_s15   ;;  %s304_s14 = smul.u32 (!%p248_p9), 48, %s1071_s17 }
  0x21   : > { %251 = sbr.rel (%p248_p9) target bundleno = 331 (0x14b), region = 50  ;;  %s859_s25 = sshll.u32 (!%p248_p9), %s1075_s18, 1 }
  0x22   : > { %s945_s24 = smul.u32 (!%p248_p9), 24, %s254_s13  ;;  %p305_p10 = scmp.lt.s32.totalorder (!%p248_p9), %s304_s14, 143 }
  0x23   : > { %p314_p11 = scmp.lt.s32.totalorder (!%p248_p9), %s859_s25, 3  ;;  %p322_p12 = scmp.lt.s32.totalorder (!%p248_p9), %s1075_s18, 1 }
  0x24   : > { %p861_p13 = scmp.ne.s32.totalorder (!%p248_p9), %s1071_s17, 0 }
  0x28   : > { %s1286_s14 = smov (!%p305_p10, %s304_s14), 143  ;;  %s1288_s25 = smov (!%p314_p11, %s859_s25), 3 }
  0x29   : > { %s858_s26 = sshll.u32 %s1286_s14, 2  ;;  %s860_s5 = sshll.u32 %s1288_s25, 3  ;;  %v1089_v4 = vmov (!%p861_p13), 0.0  }
  0x2a   : > { %s1186_s30 = scalar_lea.vmem %s1269_s1, %s858_s26  ;;  %s1191_s8 = scalar_lea.vmem %s1270_s2, %s860_s5  ;;  %339 = vst [vmem:[#allocation2] sm:$0xff] (!%p861_p13), %v1089_v4  ;;  %340 = vst [vmem:[#allocation2 + $0x8] sm:$0xff] (!%p861_p13), %v1089_v4 }
  0x2b   : > { %s1290_s18 = smov (!%p322_p12, %s1075_s18), 1  ;;  %s1204_s14 = scalar_lea.vmem [#allocation3], %s945_s24 }
  0x2c   : > { %s327_s10 = scalar_lea.vmem %s1271_s3, %s1290_s18  ;;  %s333_s13 = scalar_lea.vmem %s1272_s4, %s1290_s18 }
  0x2d   : > { %338 = sbr.rel (%p861_p13) target bundleno = 52 (0x34), region = 58 }
  0x34 PF: > { %v1005_v5 = vld [vmem:[%s1186_s30 + $0x40] sm:$0xff]   ;;  %v1090_v6 = vmov 0.0   ;;  %vm1091_vm0 = vmmov 0   ;;  %v1008_v9 = vld [vmem:[%s1186_s30 + $0x48] sm:$0xff]   ;;  %v1011_v12 = vld [vmem:[%s1186_s30 + $0x50] sm:$0xff]   ;;  %p889_p0 = scmp.ne.s32.totalorder %s1071_s17, 2 }
  0x35   : > { %923 = vmatprep.subr.bf16.mxu1 %v1090_v6  ;;  %v1006_v7 = vld [vmem:[%s1186_s30] sm:$0xff]   ;;  %892 = vmatprep.subr.bf16.mxu0 %v1005_v5  ;;  %v1009_v10 = vld [vmem:[%s1186_s30 + $0x8] sm:$0xff]   ;;  %v1012_v13 = vld [vmem:[%s1186_s30 + $0x10] sm:$0xff]  }
  0x36   : > { %v1007_v8 = vld [vmem:[%s1186_s30 + $0x80] sm:$0xff]   ;;  %939 = vmatprep.mubr.msk.bf16.mxu1 %vm1091_vm0, %v1090_v6  ;;  %893 = vmatpush3.bf16.msra.mxu0 %v1006_v7  ;;  %v1010_v11 = vld [vmem:[%s1186_s30 + $0x88] sm:$0xff]   ;;  %v1013_v14 = vld [vmem:[%s1186_s30 + $0x90] sm:$0xff]  }
  0x37   : > { %924 = vmatpush3.bf16.msra.mxu1 %v1007_v8  ;;  %894 = vmatprep.subr.bf16.mxu0 %v1008_v9  ;;  %v1014_v15 = vld [vmem:[%s1186_s30 + $0x58] sm:$0xff]   ;;  %v1017_v18 = vld [vmem:[%s1186_s30 + $0x60] sm:$0xff]   ;;  %v1020_v21 = vld [vmem:[%s1186_s30 + $0x68] sm:$0xff]  }
  0x38   : > { %925 = vmatprep.subr.bf16.mxu1 %v1090_v6  ;;  %v1015_v16 = vld [vmem:[%s1186_s30 + $0x18] sm:$0xff]   ;;  %v1018_v19 = vld [vmem:[%s1186_s30 + $0x20] sm:$0xff]   ;;  %v1021_v22 = vld [vmem:[%s1186_s30 + $0x28] sm:$0xff]  }
  0x39   : > { %v1016_v17 = vld [vmem:[%s1186_s30 + $0x98] sm:$0xff]   ;;  %v1019_v20 = vld [vmem:[%s1186_s30 + $0xa0] sm:$0xff]   ;;  %v1022_v23 = vld [vmem:[%s1186_s30 + $0xa8] sm:$0xff]  }
  0x3a   : > { %895 = vmatpush3.bf16.msra.mxu0 %v1009_v10  ;;  %v1023_v24 = vld [vmem:[%s1186_s30 + $0x70] sm:$0xff]   ;;  %v1026_v27 = vld [vmem:[%s1186_s30 + $0x78] sm:$0xff]   ;;  %v341_v39 = vld [vmem:[#allocation2] sm:$0xff] }
  0x3b   : > { %926 = vmatpush3.bf16.msra.mxu1 %v1010_v11  ;;  %896 = vmatprep.subr.bf16.mxu0 %v1011_v12  ;;  %v1024_v25 = vld [vmem:[%s1186_s30 + $0x30] sm:$0xff]   ;;  %v1027_v29 = vld [vmem:[%s1186_s30 + $0x38] sm:$0xff]   ;;  %v342_v45 = vld [vmem:[#allocation2 + $0x8] sm:$0xff] }
  0x3c   : > { %927 = vmatprep.subr.bf16.mxu1 %v1090_v6  ;;  %v1025_v26 = vld [vmem:[%s1186_s30 + $0xb0] sm:$0xff]   ;;  %v1028_v30 = vld [vmem:[%s1186_s30 + $0xb8] sm:$0xff]  }
  0x3d   : > { %v1031_v28 = vld [vmem:[%s1204_s14 + $0x4] ss:$12 sps:$4 sm:$0xff]   ;;  %v1029_v31 = vld [vmem:[%s1204_s14] ss:$12 sps:$4 sm:$0xff]   ;;  %v1032_v32 = vld [vmem:[%s1204_s14 + $0x8] ss:$12 sps:$4 sm:$0xff]  }
  0x3e   : > { %897 = vmatpush3.bf16.msra.mxu0 %v1012_v13  ;;  %587 = vmatprep.mubr.bf16.mxu0 %v1031_v28 }
  0x3f   : > { %928 = vmatpush3.bf16.msra.mxu1 %v1013_v14  ;;  %898 = vmatprep.subr.bf16.mxu0 %v1014_v15 }
  0x40   : > { %929 = vmatprep.subr.bf16.mxu1 %v1090_v6 }
  0x42   : > { %899 = vmatpush3.bf16.msra.mxu0 %v1015_v16 }
  0x43   : > { %930 = vmatpush3.bf16.msra.mxu1 %v1016_v17  ;;  %900 = vmatprep.subr.bf16.mxu0 %v1017_v18 }
  0x44   : > { %931 = vmatprep.subr.bf16.mxu1 %v1090_v6 }
  0x46   : > { %901 = vmatpush3.bf16.msra.mxu0 %v1018_v19 }
  0x47   : > { %932 = vmatpush3.bf16.msra.mxu1 %v1019_v20  ;;  %902 = vmatprep.subr.bf16.mxu0 %v1020_v21 }
  0x48   : > { %933 = vmatprep.subr.bf16.mxu1 %v1090_v6 }
  0x4a   : > { %903 = vmatpush3.bf16.msra.mxu0 %v1021_v22 }
  0x4b   : > { %934 = vmatpush3.bf16.msra.mxu1 %v1022_v23  ;;  %904 = vmatprep.subr.bf16.mxu0 %v1023_v24 }
  0x4c   : > { %935 = vmatprep.subr.bf16.mxu1 %v1090_v6 }
  0x4e   : > { %905 = vmatpush3.bf16.msra.mxu0 %v1024_v25 }
  0x4f   : > { %936 = vmatpush3.bf16.msra.mxu1 %v1025_v26  ;;  %906 = vmatprep.subr.bf16.mxu0 %v1026_v27 }
  0x50   : > { %937 = vmatprep.subr.bf16.mxu1 %v1090_v6 }
  0x52   : > { %907 = vmatpush3.bf16.msra.mxu0 %v1027_v29 }
  0x53   : > { %938 = vmatpush3.bf16.msra.mxu1 %v1028_v30 }
  0x55   : > { %588 = vmatmul.mubr.bf16.vlgmr.msra.gmra.mrb[0].mxu0 %v1029_v31 }
  0x56   : > { %940 = vmatmul.mubr.bf16.vlgmr.msra.gmra.mrb[0].mxu1 %v1032_v32 }
 0x128   : > { %v908_v33 = vpop.f32.mrb[0].mxu0 }
 0x129   : > { %v630_v34 = vpop.f32.mrb[0].mxu1  ;;  %v909_v35 = vpop.f32.mrb[1].mxu0 }
 0x12a   : > { %v910_v36 = vadd.f32 %v909_v35, %v908_v33  ;;  %v941_v37 = vpop.f32.mrb[1].mxu1  ;;  %v911_v38 = vpop.f32.mrb[2].mxu0 }
 0x12b   : > { %v633_v40 = vpop.f32.mrb[2].mxu1  ;;  %v912_v41 = vpop.f32.mrb[3].mxu0 }
 0x12c   : > { %v631_v42 = vadd.f32 %v910_v36, %v630_v34  ;;  %v913_v43 = vadd.f32 %v912_v41, %v911_v38  ;;  %v942_v44 = vpop.f32.mrb[3].mxu1  ;;  %644 = sbr.rel (%p889_p0) target bundleno = 331 (0x14b), region = 62 }
 0x12e   : > { %v637_v46 = vadd.f32 %v631_v42, %v341_v39  ;;  %v634_v47 = vadd.f32 %v913_v43, %v633_v40 }
 0x130   : > { %639 = vst [vmem:[#allocation2] sm:$0xff] %v637_v46  ;;  %v638_v48 = vadd.f32 %v634_v47, %v342_v45 }
 0x132   : > { %640 = vst [vmem:[#allocation2 + $0x8] sm:$0xff] %v638_v48 }
 0x137   : > { %v645_v49 = vld [vmem:[#allocation2] sm:$0xff] }
 0x138   : > { %647 = vst [vmem:[%s1191_s8] sm:$0xff] %v645_v49  ;;  %v657_v51 = vmul.f32 %v645_v49, %v645_v49 }
 0x139   : > { %v646_v50 = vld [vmem:[#allocation2 + $0x8] sm:$0xff] }
 0x13a   : > { %v649_v52 = vadd.f32 %v646_v50, %v645_v49  ;;  %v658_v53 = vmul.f32 %v646_v50, %v646_v50  ;;  %648 = vst [vmem:[%s1191_s8 + $0x8] sm:$0xff] %v646_v50 }
 0x13c   : > { %v650_v54 = vrot.slane %v649_v52, 4  ;;  %v659_v55 = vadd.f32 %v658_v53, %v657_v51 }
 0x13e   : > { %v651_v56 = vadd.f32 %v650_v54, %v649_v52  ;;  %v660_v57 = vrot.slane %v659_v55, 4 }
 0x140   : > { %v652_v58 = vrot.slane %v651_v56, 2  ;;  %v661_v59 = vadd.f32 %v660_v57, %v659_v55 }
 0x142   : > { %v653_v60 = vadd.f32 %v652_v58, %v651_v56  ;;  %v662_v61 = vrot.slane %v661_v59, 2 }
 0x144   : > { %v654_v62 = vrot.slane %v653_v60, 1  ;;  %v663_v63 = vadd.f32 %v662_v61, %v661_v59 }
 0x146   : > { %v655_v0 = vadd.f32 %v654_v62, %v653_v60  ;;  %v664_v1 = vrot.slane %v663_v63, 1 }
 0x148   : > { %656 = vst [vmem:[%s327_s10] sm:$0x1] %v655_v0  ;;  %v665_v2 = vadd.f32 %v664_v1, %v663_v63 }
 0x14a   : > { %666 = vst [vmem:[%s333_s13] sm:$0x1] %v665_v2 }
 0x14b PF: > { %s15_s21 = sadd.s32 1, %s1087_s21   ;;  %s1273_s15 = smov %s1067_s16 }
 0x14c   : > { %p12_p1 = scmp.ge.s32.totalorder %s15_s21, 8   ;;  %s1274_s16 = smov %s1168_s28 }
 0x14d   : > { %s1275_s17 = smov %s1079_s19  ;;  %s1276_s18 = smov %s1083_s20 }
 0x14e   : > { %s1277_s19 = smov %s1280_s22  ;;  %s1278_s20 = smov %s1284_s23 }
 0x14f   :  { %14 = sbr.rel (!%p12_p1) target bundleno = 4 (0x4), region = 130 }

// kernel: _lambda_.54
= control target key start
LH: loop header
LB: loop body
LE: loop exit
PB: predicated region body
PF: predicated region fallthrough
CT: control target
= control target key end

     0   :  { %s701_s15 = smov 0   ;;  %s703_s16 = smov 0   ;;  %s769_s0 = inlined_call_operand.vmem [shape: bf16[32,128], index: 0, kind: input, shape index: {}]   ;;  %s770_s1 = inlined_call_operand.vmem [shape: bf16[128,128], index: 1, kind: input, shape index: {}]   ;;  %s771_s2 = inlined_call_operand.vmem [shape: f32[32,128], index: 2, kind: output, shape index: {0}]   ;;  %s772_s3 = inlined_call_operand.vmem [shape: f32[2,1,128], index: 3, kind: output, shape index: {1}]   ;;  %s773_s4 = inlined_call_operand.vmem [shape: f32[2,1,128], index: 4, kind: output, shape index: {2}]  }
   0x1   :  { %s705_s17 = smov 0  }
   0x2 LB: > { %s27_s18 = sadd.s32 1, %s668_s16  ;;  %p570_p0 = scmp.ge.s32.totalorder %s672_s17, 1  ;;  %s672_s17 = sphi %s705_s17, %s15_s17   ;;  %s668_s16 = sphi %s703_s16, %s775_s16   ;;  %s664_s15 = sphi %s701_s15, %s774_s15  }
   0x3   : > { %p29_p1 = scmp.ge.s32.totalorder %s27_s18, 2  ;;  %p195_p2 = scmp.lt.s32.totalorder %s672_s17, 3 }
   0x5   : > { %s777_s18 = smov (%p29_p1, %s27_s18), 0  ;;  %p196_p3 = pnand %p570_p0, %p195_p2 }
   0x6   : > { %v641_v0 = vld [vmem:[%s770_s1] sm:$0xff] (!%p196_p3)   ;;  %v674_v1 = vmov (!%p196_p3), 0.0   ;;  %v642_v2 = vld [vmem:[%s770_s1 + $0x8] sm:$0xff] (!%p196_p3)   ;;  %vm675_vm0 = vmmov (!%p196_p3), 0   ;;  %s571_s23 = sshll.u32 (!%p196_p3), %s664_s15, 1  ;;  %v643_v3 = vld [vmem:[%s770_s1 + $0x10] sm:$0xff] (!%p196_p3)  }
   0x7   : > { %199 = sbr.rel (%p196_p3) target bundleno = 270 (0x10e), region = 28  ;;  %595 = vmatprep.subr.bf16.mxu0 (!%p196_p3), %v674_v1  ;;  %611 = vmatprep.mubr.msk.bf16.mxu0 (!%p196_p3), %vm675_vm0, %v674_v1  ;;  %p241_p4 = scmp.lt.s32.totalorder (!%p196_p3), %s571_s23, 3  ;;  %v644_v4 = vld [vmem:[%s770_s1 + $0x18] sm:$0xff] (!%p196_p3)   ;;  %v645_v5 = vld [vmem:[%s770_s1 + $0x20] sm:$0xff] (!%p196_p3)   ;;  %v646_v6 = vld [vmem:[%s770_s1 + $0x28] sm:$0xff] (!%p196_p3)  }
   0x8   : > { %596 = vmatpush3.bf16.msra.mxu0 (!%p196_p3), %v641_v0  ;;  %v647_v7 = vld [vmem:[%s770_s1 + $0x30] sm:$0xff] (!%p196_p3)   ;;  %v648_v8 = vld [vmem:[%s770_s1 + $0x38] sm:$0xff] (!%p196_p3)   ;;  %p259_p5 = scmp.lt.s32.totalorder (!%p196_p3), %s664_s15, 1 }
   0x9   : > { %597 = vmatprep.subr.bf16.mxu0 (!%p196_p3), %v674_v1 }
   0xc   : > { %598 = vmatpush3.bf16.msra.mxu0 (!%p196_p3), %v642_v2 }
   0xd   : > { %599 = vmatprep.subr.bf16.mxu0 (!%p196_p3), %v674_v1 }
   0xe   : > { %s779_s23 = smov (!%p241_p4, %s571_s23), 3  ;;  %s781_s15 = smov (!%p259_p5, %s664_s15), 1 }
   0xf   : > { %s572_s26 = sshll.u32 %s779_s23, 2  ;;  %s574_s14 = sshll.u32 %s779_s23, 3 }
  0x10   : > { %s244_s29 = scalar_lea.vmem %s769_s0, %s572_s26  ;;  %600 = vmatpush3.bf16.msra.mxu0 %v643_v3  ;;  %s257_s21 = scalar_lea.vmem %s771_s2, %s574_s14 }
  0x11   : > { %601 = vmatprep.subr.bf16.mxu0 %v674_v1  ;;  %v649_v9 = vld [vmem:[%s244_s29] sm:$0xff]   ;;  %s264_s24 = scalar_lea.vmem %s772_s3, %s781_s15  ;;  %s270_s27 = scalar_lea.vmem %s773_s4, %s781_s15 }
  0x14   : > { %602 = vmatpush3.bf16.msra.mxu0 %v644_v4 }
  0x15   : > { %603 = vmatprep.subr.bf16.mxu0 %v674_v1 }
  0x18   : > { %604 = vmatpush3.bf16.msra.mxu0 %v645_v5 }
  0x19   : > { %605 = vmatprep.subr.bf16.mxu0 %v674_v1 }
  0x1c   : > { %606 = vmatpush3.bf16.msra.mxu0 %v646_v6 }
  0x1d   : > { %607 = vmatprep.subr.bf16.mxu0 %v674_v1 }
  0x20   : > { %608 = vmatpush3.bf16.msra.mxu0 %v647_v7 }
  0x21   : > { %609 = vmatprep.subr.bf16.mxu0 %v674_v1 }
  0x24   : > { %610 = vmatpush3.bf16.msra.mxu0 %v648_v8 }
  0x27   : > { %612 = vmatmul.mubr.bf16.vlgmr.msra.gmra.mrb[0].mxu0 %v649_v9 }
  0xfa   : > { %v378_v10 = vpop.f32.mrb[0].mxu0 }
  0xfb   : > { %385 = vst [vmem:[%s257_s21] sm:$0xff] %v378_v10  ;;  %v613_v11 = vpop.f32.mrb[1].mxu0  ;;  %v395_v13 = vmul.f32 %v378_v10, %v378_v10 }
  0xfc   : > { %v381_v12 = vpop.f32.mrb[2].mxu0 }
  0xfd   : > { %386 = vst [vmem:[%s257_s21 + $0x8] sm:$0xff] %v381_v12  ;;  %v387_v14 = vadd.f32 %v381_v12, %v378_v10  ;;  %v396_v15 = vmul.f32 %v381_v12, %v381_v12  ;;  %v614_v16 = vpop.f32.mrb[3].mxu0 }
  0xff   : > { %v388_v17 = vrot.slane %v387_v14, 4  ;;  %v397_v18 = vadd.f32 %v396_v15, %v395_v13 }
 0x101   : > { %v389_v19 = vadd.f32 %v388_v17, %v387_v14  ;;  %v398_v20 = vrot.slane %v397_v18, 4 }
 0x103   : > { %v390_v21 = vrot.slane %v389_v19, 2  ;;  %v399_v22 = vadd.f32 %v398_v20, %v397_v18 }
 0x105   : > { %v391_v23 = vadd.f32 %v390_v21, %v389_v19  ;;  %v400_v24 = vrot.slane %v399_v22, 2 }
 0x107   : > { %v392_v25 = vrot.slane %v391_v23, 1  ;;  %v401_v26 = vadd.f32 %v400_v24, %v399_v22 }
 0x109   : > { %v393_v27 = vadd.f32 %v392_v25, %v391_v23  ;;  %v402_v28 = vrot.slane %v401_v26, 1 }
 0x10b   : > { %394 = vst [vmem:[%s264_s24] sm:$0x1] %v393_v27  ;;  %v403_v29 = vadd.f32 %v402_v28, %v401_v26 }
 0x10d   : > { %404 = vst [vmem:[%s270_s27] sm:$0x1] %v403_v29 }
 0x10e PF: > { %s15_s17 = sadd.s32 1, %s672_s17   ;;  %s774_s15 = smov %s668_s16 }
 0x10f   : > { %p12_p6 = scmp.ge.s32.totalorder %s15_s17, 4   ;;  %s775_s16 = smov %s777_s18 }
 0x111   :  { %14 = sbr.rel (!%p12_p6) target bundleno = 2 (0x2), region = 85 }

// kernel: _lambda_.55
= control target key start
LH: loop header
LB: loop body
LE: loop exit
PB: predicated region body
PF: predicated region fallthrough
CT: control target
= control target key end

     0   :  { %s207_s0 = inlined_call_operand.vmem [shape: f32[32,128], index: 0, kind: input, shape index: {}]   ;;  %s208_s1 = inlined_call_operand.vmem [shape: f32[1,128], index: 1, kind: input, shape index: {}]   ;;  %s209_s2 = inlined_call_operand.vmem [shape: f32[1,128], index: 2, kind: input, shape index: {}]   ;;  %s210_s3 = inlined_call_operand.vmem [shape: f32[32,128], index: 3, kind: input, shape index: {}]   ;;  %s211_s4 = inlined_call_operand.vmem [shape: f32[1,128], index: 4, kind: input, shape index: {}]   ;;  %s212_s5 = inlined_call_operand.vmem [shape: f32[1,128], index: 5, kind: input, shape index: {}]   ;;  %s213_s6 = inlined_call_operand.vmem [shape: bf16[32,128], index: 6, kind: output, shape index: {}]  }
   0x1   :  { %v23_v0 = vld [vmem:[%s207_s0] sm:$0xff]  ;;  %v24_v1 = vld [vmem:[%s207_s0 + $0x8] sm:$0xff]  ;;  %v25_v9 = vld [vmem:[%s207_s0 + $0x10] sm:$0xff] }
   0x2   :  { %v107_v2 = vld [vmem:[%s208_s1] ss:$0 sm:$0xff]  ;;  %v50_v7 = vld [vmem:[%s210_s3 + $0x8] sm:$0xff]  ;;  %v26_v14 = vld [vmem:[%s207_s0 + $0x18] sm:$0xff] }
   0x3   :  { %v34_v3 = vmul.f32 %v107_v2, %v23_v0  ;;  %v35_v4 = vmul.f32 %v107_v2, %v24_v1  ;;  %v108_v5 = vld [vmem:[%s209_s2] ss:$0 sm:$0xff]  ;;  %v51_v15 = vld [vmem:[%s210_s3 + $0x10] sm:$0xff]  ;;  %v52_v16 = vld [vmem:[%s210_s3 + $0x18] sm:$0xff]  ;;  %v36_v18 = vmul.f32 %v107_v2, %v25_v9  ;;  %v37_v19 = vmul.f32 %v107_v2, %v26_v14 }
   0x4   :  { %v49_v6 = vld [vmem:[%s210_s3] sm:$0xff] }
   0x5   :  { %v109_v8 = vld [vmem:[%s211_s4] ss:$0 sm:$0xff]  ;;  %v45_v10 = vadd.f32 %v108_v5, %v34_v3  ;;  %v46_v11 = vadd.f32 %v108_v5, %v35_v4  ;;  %v47_v24 = vadd.f32 %v108_v5, %v36_v18  ;;  %v48_v25 = vadd.f32 %v108_v5, %v37_v19 }
   0x6   :  { %v60_v12 = vmul.f32 %v109_v8, %v49_v6  ;;  %v61_v13 = vmul.f32 %v109_v8, %v50_v7  ;;  %v110_v17 = vld [vmem:[%s212_s5] ss:$0 sm:$0xff]  ;;  %v62_v20 = vmul.f32 %v109_v8, %v51_v15  ;;  %v63_v21 = vmul.f32 %v109_v8, %v52_v16 }
   0x8   :  { %v64_v22 = vadd.f32 %v60_v12, %v45_v10  ;;  %v65_v23 = vadd.f32 %v61_v13, %v46_v11  ;;  %v66_v28 = vadd.f32 %v62_v20, %v47_v24  ;;  %v67_v29 = vadd.f32 %v63_v21, %v48_v25 }
   0xa   :  { %v75_v26 = vadd.f32 %v110_v17, %v64_v22  ;;  %v76_v27 = vadd.f32 %v110_v17, %v65_v23  ;;  %v77_v32 = vadd.f32 %v110_v17, %v66_v28  ;;  %v78_v33 = vadd.f32 %v110_v17, %v67_v29 }
   0xc   :  { %v79_v30 = vmax.f32 %v75_v26, 0.0  ;;  %v80_v31 = vmax.f32 %v76_v27, 0.0  ;;  %v81_v35 = vmax.f32 %v77_v32, 0.0  ;;  %v82_v36 = vmax.f32 %v78_v33, 0.0 }
   0xe   :  { %v122_v34 = vpack.c.bf16 %v80_v31, %v79_v30  ;;  %v127_v37 = vpack.c.bf16 %v82_v36, %v81_v35 }
  0x10   :  { %123 = vst [vmem:[%s213_s6] sm:$0xff] %v122_v34   ;;  %129 = vst [vmem:[%s213_s6 + $0x8] sm:$0xff] %v127_v37  }

// kernel: _lambda_.64
= control target key start
LH: loop header
LB: loop body
LE: loop exit
PB: predicated region body
PF: predicated region fallthrough
CT: control target
= control target key end

     0   :  { %s883_s15 = smov 0   ;;  %s885_s16 = smov 0   ;;  %s994_s0 = inlined_call_operand.vmem [shape: bf16[16,128], index: 0, kind: input, shape index: {}]   ;;  %s995_s1 = inlined_call_operand.vmem [shape: bf16[128,256], index: 1, kind: input, shape index: {}]   ;;  %s996_s2 = inlined_call_operand.vmem [shape: f32[16,256], index: 2, kind: output, shape index: {0}]   ;;  %s997_s3 = inlined_call_operand.vmem [shape: f32[1,1,256], index: 3, kind: output, shape index: {1}]   ;;  %s998_s4 = inlined_call_operand.vmem [shape: f32[1,1,256], index: 4, kind: output, shape index: {2}]  }
   0x1   :  { %s887_s17 = smov 0   ;;  %s889_s18 = smov 0  }
   0x2   :  { %s891_s19 = smov 0  }
   0x3 LB: > { %s24_s20 = sadd.s32 1, %s850_s18  ;;  %s713_s21 = sadd.s32 4294967295, %s854_s19   ;;  %s854_s19 = sphi %s891_s19, %s15_s19   ;;  %s850_s18 = sphi %s889_s18, %s1003_s18   ;;  %s846_s17 = sphi %s887_s17, %s1002_s17   ;;  %s842_s16 = sphi %s885_s16, %s1001_s16   ;;  %s838_s15 = sphi %s883_s15, %s1000_s15  }
   0x4   : > { %p25_p0 = scmp.ge.s32.totalorder %s24_s20, 2  ;;  %p67_p1 = scmp.ne.s32.totalorder %s842_s16, %s838_s15 }
   0x5   : > { %p68_p2 = scmp.eq.s32.totalorder %s854_s19, 0  ;;  %p99_p4 = scmp.eq.s32.totalorder %s713_s21, 1 }
   0x6   : > { %s1005_s20 = smov (%p25_p0, %s24_s20), 0  ;;  %s60_s23 = sadd.s32 1, %s842_s16 }
   0x7   : > { %p69_p3 = por %p68_p2, %p67_p1  ;;  %s57_s22 = ssub.s32 %s850_s18, %s1005_s20 }
   0x8   : > { %p58_p5 = scmp.eq.s32.totalorder %s57_s22, 0  ;;  %p918_p6 = por %p99_p4, %p67_p1 }
   0x9   : > { %p717_p7 = scmp.ge.s32.totalorder %s854_s19, 2 }
   0xa   : > { %s923_s25 = scalar_select %p58_p5, %s842_s16, %s60_s23  }
   0xb   : > { %186 = sbr.rel (%p717_p7) target bundleno = 32 (0x20), region = 20 }
  0x12   : > { %189 = sbr.rel (!%p69_p3) target bundleno = 32 (0x20), region = 24  ;;  %s191_s26 = sand.u32 (%p69_p3), 1, %s842_s16  }
  0x13   : > { %s719_s27 = sshll.u32 (%p69_p3), %s850_s18, 2  ;;  %s718_s28 = sshll.u32 (%p69_p3), %s191_s26, 6 }
  0x14   : > { %s931_s5 = scalar_lea.vmem (%p69_p3), %s995_s1, %s719_s27  ;;  %s193_s6 = scalar_lea.vmem (%p69_p3), [#allocation2], %s718_s28 }
  0x15   : > { %v211_v0 = vld [vmem:[%s931_s5] sm:$0xf] (%p69_p3)  ;;  %v213_v1 = vld [vmem:[%s931_s5 + $0x8] sm:$0xf] (%p69_p3)  ;;  %v215_v2 = vld [vmem:[%s931_s5 + $0x10] sm:$0xf] (%p69_p3) }
  0x16   : > { %212 = vst [vmem:[%s193_s6] sm:$0xf] (%p69_p3), %v211_v0  ;;  %214 = vst [vmem:[%s193_s6 + $0x4] sm:$0xf] (%p69_p3), %v213_v1  ;;  %v217_v3 = vld [vmem:[%s931_s5 + $0x18] sm:$0xf] (%p69_p3) }
  0x17   : > { %v219_v4 = vld [vmem:[%s931_s5 + $0x20] sm:$0xf] (%p69_p3)  ;;  %216 = vst [vmem:[%s193_s6 + $0x8] sm:$0xf] (%p69_p3), %v215_v2  ;;  %218 = vst [vmem:[%s193_s6 + $0xc] sm:$0xf] (%p69_p3), %v217_v3 }
  0x18   : > { %220 = vst [vmem:[%s193_s6 + $0x10] sm:$0xf] (%p69_p3), %v219_v4  ;;  %v221_v5 = vld [vmem:[%s931_s5 + $0x28] sm:$0xf] (%p69_p3)  ;;  %v223_v6 = vld [vmem:[%s931_s5 + $0x30] sm:$0xf] (%p69_p3) }
  0x19   : > { %v225_v7 = vld [vmem:[%s931_s5 + $0x38] sm:$0xf]  ;;  %222 = vst [vmem:[%s193_s6 + $0x14] sm:$0xf] %v221_v5  ;;  %224 = vst [vmem:[%s193_s6 + $0x18] sm:$0xf] %v223_v6 }
  0x1a   : > { %226 = vst [vmem:[%s193_s6 + $0x1c] sm:$0xf] %v225_v7  ;;  %v227_v8 = vld [vmem:[%s931_s5 + $0x40] sm:$0xf]  ;;  %v229_v9 = vld [vmem:[%s931_s5 + $0x48] sm:$0xf] }
  0x1b   : > { %v231_v10 = vld [vmem:[%s931_s5 + $0x50] sm:$0xf]  ;;  %228 = vst [vmem:[%s193_s6 + $0x20] sm:$0xf] %v227_v8  ;;  %230 = vst [vmem:[%s193_s6 + $0x24] sm:$0xf] %v229_v9 }
  0x1c   : > { %232 = vst [vmem:[%s193_s6 + $0x28] sm:$0xf] %v231_v10  ;;  %v233_v11 = vld [vmem:[%s931_s5 + $0x58] sm:$0xf]  ;;  %v235_v12 = vld [vmem:[%s931_s5 + $0x60] sm:$0xf] }
  0x1d   : > { %v237_v13 = vld [vmem:[%s931_s5 + $0x68] sm:$0xf]  ;;  %234 = vst [vmem:[%s193_s6 + $0x2c] sm:$0xf] %v233_v11  ;;  %236 = vst [vmem:[%s193_s6 + $0x30] sm:$0xf] %v235_v12 }
  0x1e   : > { %238 = vst [vmem:[%s193_s6 + $0x34] sm:$0xf] %v237_v13  ;;  %v239_v14 = vld [vmem:[%s931_s5 + $0x70] sm:$0xf]  ;;  %v241_v15 = vld [vmem:[%s931_s5 + $0x78] sm:$0xf] }
  0x1f   : > { %240 = vst [vmem:[%s193_s6 + $0x38] sm:$0xf] %v239_v14  ;;  %242 = vst [vmem:[%s193_s6 + $0x3c] sm:$0xf] %v241_v15 }
  0x20 PF: > { %p720_p8 = scmp.ge.s32.totalorder %s854_s19, 1  ;;  %p296_p9 = scmp.lt.s32.totalorder %s854_s19, 3 }
  0x22   : > { %p297_p10 = pnand %p720_p8, %p296_p9 }
  0x23   : > { %s303_s7 = sand.u32 (!%p297_p10), 1, %s838_s15   ;;  %v856_v16 = vmov (!%p297_p10), 0.0   ;;  %vm857_vm0 = vmmov (!%p297_p10), 0   ;;  %v815_v25 = vld [vmem:[%s994_s0] sm:$0xff] (!%p297_p10)   ;;  %p355_p11 = scmp.lt.s32.totalorder (!%p297_p10), %s846_s17, 1 }
  0x24   : > { %300 = sbr.rel (%p297_p10) target bundleno = 301 (0x12d), region = 65  ;;  %745 = vmatprep.subr.bf16.mxu0 (!%p297_p10), %v856_v16  ;;  %s721_s8 = sshll.u32 (!%p297_p10), %s303_s7, 6  ;;  %761 = vmatprep.mubr.msk.bf16.mxu0 (!%p297_p10), %vm857_vm0, %v856_v16 }
  0x25   : > { %s305_s9 = scalar_lea.vmem (!%p297_p10), [#allocation2], %s721_s8  ;;  %s722_s12 = sshll.u32 (!%p297_p10), %s303_s7, 4 }
  0x26   : > { %v807_v17 = vld [vmem:[%s305_s9] sm:$0xff] (!%p297_p10)   ;;  %v808_v18 = vld [vmem:[%s305_s9 + $0x8] sm:$0xff] (!%p297_p10)   ;;  %v809_v19 = vld [vmem:[%s305_s9 + $0x10] sm:$0xff] (!%p297_p10)   ;;  %s959_s13 = scalar_lea.vmem (!%p297_p10), [#allocation3], %s722_s12 }
  0x27   : > { %746 = vmatpush3.bf16.msra.mxu0 (!%p297_p10), %v807_v17  ;;  %v810_v20 = vld [vmem:[%s305_s9 + $0x18] sm:$0xff] (!%p297_p10)   ;;  %v811_v21 = vld [vmem:[%s305_s9 + $0x20] sm:$0xff] (!%p297_p10)   ;;  %v812_v22 = vld [vmem:[%s305_s9 + $0x28] sm:$0xff] (!%p297_p10)  }
  0x28   : > { %747 = vmatprep.subr.bf16.mxu0 (!%p297_p10), %v856_v16  ;;  %v813_v23 = vld [vmem:[%s305_s9 + $0x30] sm:$0xff] (!%p297_p10)   ;;  %v814_v24 = vld [vmem:[%s305_s9 + $0x38] sm:$0xff] (!%p297_p10)  }
  0x2b   : > { %748 = vmatpush3.bf16.msra.mxu0 %v808_v18  ;;  %s356_s14 = scalar_select %p355_p11, %s846_s17, 1 }
  0x2c   : > { %749 = vmatprep.subr.bf16.mxu0 %v856_v16  ;;  %s733_s28 = sshll.u32 (%p918_p6), %s846_s17, 3 }
  0x2d   : > { %s359_s22 = scalar_lea.vmem %s997_s3, %s356_s14  ;;  %s366_s27 = scalar_lea.vmem %s998_s4, %s356_s14 }
  0x2e   : > { %s526_s5 = scalar_lea.vmem (%p918_p6), %s996_s2, %s733_s28 }
  0x2f   : > { %750 = vmatpush3.bf16.msra.mxu0 %v809_v19 }
  0x30   : > { %751 = vmatprep.subr.bf16.mxu0 %v856_v16 }
  0x33   : > { %752 = vmatpush3.bf16.msra.mxu0 %v810_v20 }
  0x34   : > { %753 = vmatprep.subr.bf16.mxu0 %v856_v16 }
  0x37   : > { %754 = vmatpush3.bf16.msra.mxu0 %v811_v21 }
  0x38   : > { %755 = vmatprep.subr.bf16.mxu0 %v856_v16 }
  0x3b   : > { %756 = vmatpush3.bf16.msra.mxu0 %v812_v22 }
  0x3c   : > { %757 = vmatprep.subr.bf16.mxu0 %v856_v16 }
  0x3f   : > { %758 = vmatpush3.bf16.msra.mxu0 %v813_v23 }
  0x40   : > { %759 = vmatprep.subr.bf16.mxu0 %v856_v16 }
  0x43   : > { %760 = vmatpush3.bf16.msra.mxu0 %v814_v24 }
  0x46   : > { %762 = vmatmul.mubr.bf16.vlgmr.msra.gmra.mrb[0].mxu0 %v815_v25 }
 0x119   : > { %v474_v26 = vpop.f32.mrb[0].mxu0 }
 0x11a   : > { %481 = vst [vmem:[%s959_s13] sm:$0xff] %v474_v26  ;;  %v763_v27 = vpop.f32.mrb[1].mxu0  ;;  %v491_v29 = vmul.f32 %v474_v26, %v474_v26 }
 0x11b   : > { %v477_v28 = vpop.f32.mrb[2].mxu0 }
 0x11c   : > { %482 = vst [vmem:[%s959_s13 + $0x8] sm:$0xff] %v477_v28  ;;  %v483_v30 = vadd.f32 %v477_v28, %v474_v26  ;;  %v492_v31 = vmul.f32 %v477_v28, %v477_v28  ;;  %v764_v32 = vpop.f32.mrb[3].mxu0 }
 0x11e   : > { %v484_v33 = vrot.slane %v483_v30, 4  ;;  %v493_v34 = vadd.f32 %v492_v31, %v491_v29 }
 0x120   : > { %v485_v35 = vadd.f32 %v484_v33, %v483_v30  ;;  %v494_v36 = vrot.slane %v493_v34, 4 }
 0x121   : > { %v556_v46 = vld [vmem:[%s959_s13] sm:$0xff] (%p918_p6) }
 0x122   : > { %v486_v37 = vrot.slane %v485_v35, 2  ;;  %v495_v38 = vadd.f32 %v494_v36, %v493_v34  ;;  %557 = vst [vmem:[%s526_s5] sm:$0xff] (%p918_p6), %v556_v46 }
 0x123   : > { %v558_v47 = vld [vmem:[%s959_s13 + $0x8] sm:$0xff] (%p918_p6) }
 0x124   : > { %v487_v39 = vadd.f32 %v486_v37, %v485_v35  ;;  %v496_v40 = vrot.slane %v495_v38, 2  ;;  %559 = vst [vmem:[%s526_s5 + $0x10] sm:$0xff] (%p918_p6), %v558_v47 }
 0x126   : > { %v488_v41 = vrot.slane %v487_v39, 1  ;;  %v497_v42 = vadd.f32 %v496_v40, %v495_v38  ;;  %521 = sbr.rel (!%p918_p6) target bundleno = 301 (0x12d), region = 73 }
 0x128   : > { %v489_v43 = vadd.f32 %v488_v41, %v487_v39  ;;  %v498_v44 = vrot.slane %v497_v42, 1 }
 0x12a   : > { %490 = vst [vmem:[%s359_s22] sm:$0x1] %v489_v43  ;;  %v499_v45 = vadd.f32 %v498_v44, %v497_v42 }
 0x12c   : > { %500 = vst [vmem:[%s366_s27] sm:$0x1] %v499_v45 }
 0x12d PF: > { %s15_s19 = sadd.s32 1, %s854_s19   ;;  %s1000_s15 = smov %s842_s16 }
 0x12e   : > { %p12_p12 = scmp.ge.s32.totalorder %s15_s19, 4   ;;  %s1001_s16 = smov %s923_s25 }
 0x12f   : > { %s1002_s17 = smov %s850_s18  ;;  %s1003_s18 = smov %s1005_s20 }
 0x130   :  { %14 = sbr.rel (!%p12_p12) target bundleno = 3 (0x3), region = 169 }

// kernel: _lambda_.62
= control target key start
LH: loop header
LB: loop body
LE: loop exit
PB: predicated region body
PF: predicated region fallthrough
CT: control target
= control target key end

     0   :  { %v18_v0 = vlaneseq  ;;  %s96_s1 = inlined_call_operand.vmem [shape: f32[1,256], index: 1, kind: input, shape index: {}]   ;;  %s97_s2 = inlined_call_operand.vmem [shape: f32[1,256], index: 2, kind: input, shape index: {}]   ;;  %s98_s0 = inlined_call_operand.vmem [shape: f32[8,256], index: 0, kind: input, shape index: {}]   ;;  %s99_s3 = inlined_call_operand.vmem [shape: bf16[8,256], index: 3, kind: output, shape index: {}]  }
   0x1   :  { %v16_v2 = vld [vmem:[%s96_s1] sm:$0x3]  ;;  %v15_v7 = vld [vmem:[%s98_s0 + $0x8] sm:$0xff] }
   0x2   :  { %v19_v1 = vshrl.u32 %v18_v0, 7  ;;  %v30_v3 = vld [vmem:[%s97_s2] sm:$0x3] }
   0x3   :  { %v14_v6 = vld [vmem:[%s98_s0] sm:$0xff] }
   0x4   :  { %v20_v4 = vsub.s32 0, %v19_v1  ;;  %v24_v5 = vsub.s32 1, %v19_v1 }
   0x6   :  { %v21_v8 = vrot.slane %v16_v2, %v20_v4  ;;  %v25_v9 = vrot.slane %v16_v2, %v24_v5  ;;  %v35_v10 = vrot.slane %v30_v3, %v20_v4  ;;  %v39_v11 = vrot.slane %v30_v3, %v24_v5 }
   0x8   :  { %v28_v12 = vmul.f32 %v21_v8, %v14_v6  ;;  %v29_v13 = vmul.f32 %v25_v9, %v15_v7 }
   0xa   :  { %v42_v14 = vadd.f32 %v35_v10, %v28_v12  ;;  %v43_v15 = vadd.f32 %v39_v11, %v29_v13 }
   0xc   :  { %v44_v16 = vmax.f32 %v42_v14, 0.0  ;;  %v45_v17 = vmax.f32 %v43_v15, 0.0 }
   0xe   :  { %v60_v18 = vpack.c.bf16 %v45_v17, %v44_v16 }
  0x10   :  { %54 = vst [vmem:[%s99_s3] sm:$0xff] %v60_v18 }

// kernel: _lambda_.61
= control target key start
LH: loop header
LB: loop body
LE: loop exit
PB: predicated region body
PF: predicated region fallthrough
CT: control target
= control target key end

     0   :  { %s1768_s0 = inlined_call_operand.vmem [shape: bf16[16,1152], index: 0, kind: input, shape index: {}]   ;;  %s1769_s1 = inlined_call_operand.vmem [shape: bf16[1152,256], index: 1, kind: input, shape index: {}]   ;;  %s1770_s2 = inlined_call_operand.vmem [shape: f32[16,256], index: 2, kind: output, shape index: {0}]   ;;  %s1771_s3 = inlined_call_operand.vmem [shape: f32[1,1,256], index: 3, kind: output, shape index: {1}]   ;;  %s1772_s4 = inlined_call_operand.vmem [shape: f32[1,1,256], index: 4, kind: output, shape index: {2}]  }
   0x1   :  { %1776 = sst [smem:[#allocation9_spill]] %s1768_s0 }
   0x2   :  { %1777 = sst [smem:[#allocation10_spill]] %s1769_s1 }
   0x3   :  { %s1449_s15 = smov 0   ;;  %s1451_s16 = smov 0  }
   0x4   :  { %s1453_s17 = smov 0   ;;  %s1455_s18 = smov 0  }
   0x5   :  { %s1457_s19 = smov 0   ;;  %s1459_s20 = smov 0  }
   0x6   :  { %s1461_s21 = smov 0   ;;  %s1463_s22 = smov 0  }
   0x7   :  { %s1465_s23 = smov 0   ;;  %s1467_s24 = smov 0  }
   0x8   :  { %s1469_s25 = smov 0  }
   0x9 LB: > { %1778 = sst [smem:[#allocation6_spill]] %s1415_s24  ;;  %s1111_s26 = sadd.s32 4294967295, %s1419_s25   ;;  %s1419_s25 = sphi %s1469_s25, %s15_s25   ;;  %s1415_s24 = sphi %s1467_s24, %s1788_s24   ;;  %s1411_s23 = sphi %s1465_s23, %s1796_s23   ;;  %s1407_s22 = sphi %s1463_s22, %s1786_s22   ;;  %s1403_s21 = sphi %s1461_s21, %s1795_s21   ;;  %s1399_s20 = sphi %s1459_s20, %s1794_s20   ;;  %s1395_s19 = sphi %s1457_s19, %s1793_s19   ;;  %s1391_s18 = sphi %s1455_s18, %s1792_s18   ;;  %s1387_s17 = sphi %s1453_s17, %s1791_s17   ;;  %s1383_s16 = sphi %s1451_s16, %s1790_s16   ;;  %s1379_s15 = sphi %s1449_s15, %s1789_s15  }
   0xa   : > { %s27_s27 = sadd.s32 1, %s1411_s23  ;;  %s30_s28 = sadd.s32 1, %s1415_s24 }
   0xb   : > { %p28_p0 = scmp.ge.s32.totalorder %s27_s27, 3  ;;  %s43_s29 = sadd.s32 1, %s1399_s20 }
   0xc   : > { %p50_p1 = scmp.ne.s32.totalorder %s1399_s20, %s1395_s19  ;;  %p51_p2 = scmp.eq.s32.totalorder %s1419_s25, 0 }
   0xd   : > { %s1798_s27 = smov (%p28_p0, %s27_s27), 0  ;;  %s1800_s28 = smov (!%p28_p0, %s30_s28), %s1415_s24 }
   0xe   : > { %1779 = sst [smem:[#allocation7_spill]] %s1798_s27  ;;  %s39_s30 = ssub.s32 %s1411_s23, %s1798_s27 }
   0xf   : > { %p32_p3 = scmp.ge.s32.totalorder %s1800_s28, 2  ;;  %p41_p4 = scmp.eq.s32.totalorder %s39_s30, 0 }
  0x10   : > { %p1516_p5 = por %p51_p2, %p50_p1  ;;  %s71_s6 = sadd.s32 1, %s1391_s18 }
  0x11   : > { %s1802_s28 = smov (%p32_p3, %s1800_s28), 0  ;;  %p78_p6 = scmp.ne.s32.totalorder %s1391_s18, %s1387_s17 }
  0x12   : > { %1781 = sst [smem:[#allocation8_spill]] %s1802_s28  ;;  %s67_s8 = ssub.s32 %s1415_s24, %s1802_s28 }
  0x13   : > { %s1524_s7 = scalar_select %p41_p4, %s1399_s20, %s43_s29  }
  0x14   : > { %s68_s9 = sor.u32 %s67_s8, %s39_s30  ;;  %p97_p7 = scmp.eq.s32.totalorder %s67_s8, 0 }
  0x15   : > { %p69_p8 = scmp.eq.s32.totalorder %s68_s9, 0  ;;  %p1530_p9 = por %p78_p6, %p51_p2 }
  0x16   : > { %s99_s11 = sadd.s32 1, %s1383_s16  ;;  %p109_p10 = scmp.ne.s32.totalorder %s1383_s16, %s1379_s15 }
  0x17   : > { %s1538_s12 = scalar_select %p69_p8, %s1391_s18, %s71_s6  }
  0x18   : > { %s1541_s13 = scalar_select %p97_p7, %s1383_s16, %s99_s11  }
  0x19   : > { %p110_p11 = scmp.eq.s32.totalorder %s1111_s26, 5  ;;  %p1114_p13 = scmp.ge.s32.totalorder %s1419_s25, 6 }
  0x1b   : > { %p1543_p12 = por %p110_p11, %p109_p10  ;;  %188 = sbr.rel (%p1114_p13) target bundleno = 86 (0x56), region = 16 }
  0x22   : > { %191 = sbr.rel (!%p1516_p5) target bundleno = 45 (0x2d), region = 20  ;;  %s193_s29 = sand.u32 (%p1516_p5), 1, %s1399_s20  }
  0x23   : > { %s1157_s30 = smul.u32 (%p1516_p5), 12, %s1411_s23  ;;  %s1784_s0 = sld [smem:[#allocation9_spill]] (%p1516_p5) }
  0x24   : > { %s1210_s8 = smul.u32 (%p1516_p5), 24, %s193_s29 }
  0x26   : > { %s195_s26 = scalar_lea.vmem (%p1516_p5), [#allocation3], %s1210_s8 }
  0x29   : > { %s201_s11 = scalar_lea.vmem %s1784_s0, %s1157_s30 }
  0x2a   : > { %v216_v0 = vld [vmem:[%s201_s11] sm:$0xff]  ;;  %v1116_v2 = vld [vmem:[%s201_s11 + $0x8] sm:$0xf]  ;;  %v1118_v3 = vld [vmem:[%s201_s11 + $0x2c] sm:$0xf] }
  0x2b   : > { %v218_v1 = vld [vmem:[%s201_s11 + $0x24] sm:$0xff]  ;;  %217 = vst [vmem:[%s195_s26] sm:$0xff] %v216_v0  ;;  %1117 = vst [vmem:[%s195_s26 + $0x8] sm:$0xf] %v1116_v2 }
  0x2c   : > { %219 = vst [vmem:[%s195_s26 + $0xc] sm:$0xff] %v218_v1  ;;  %1119 = vst [vmem:[%s195_s26 + $0x14] sm:$0xf] %v1118_v3 }
  0x2d PF: > { %236 = sbr.rel (!%p1530_p9) target bundleno = 86 (0x56), region = 46  ;;  %s238_s5 = sand.u32 (%p1530_p9), 1, %s1391_s18  }
  0x2e   : > { %s1158_s29 = smul.u32 (%p1530_p9), 96, %s1411_s23  ;;  %s1785_s1 = sld [smem:[#allocation10_spill]] (%p1530_p9) }
  0x2f   : > { %s1211_s6 = smul.u32 (%p1530_p9), 192, %s238_s5 }
  0x30   : > { %s243_s30 = sadd.s32 (%p1530_p9), %s1415_s24, %s1158_s29 }
  0x31   : > { %s1121_s9 = sshll.u32 (%p1530_p9), %s243_s30, 2  ;;  %s1568_s10 = scalar_lea.vmem (%p1530_p9), [#allocation4], %s1211_s6 }
  0x34   : > { %s1563_s8 = scalar_lea.vmem %s1785_s1, %s1121_s9 }
  0x35   : > { %v261_v4 = vld [vmem:[%s1563_s8] sm:$0xf]  ;;  %v263_v5 = vld [vmem:[%s1563_s8 + $0x8] sm:$0xf]  ;;  %v265_v6 = vld [vmem:[%s1563_s8 + $0x10] sm:$0xf] }
  0x36   : > { %262 = vst [vmem:[%s1568_s10] sm:$0xf] %v261_v4  ;;  %264 = vst [vmem:[%s1568_s10 + $0x4] sm:$0xf] %v263_v5  ;;  %v267_v7 = vld [vmem:[%s1563_s8 + $0x18] sm:$0xf] }
  0x37   : > { %266 = vst [vmem:[%s1568_s10 + $0x8] sm:$0xf] %v265_v6  ;;  %v269_v8 = vld [vmem:[%s1563_s8 + $0x20] sm:$0xf]  ;;  %v271_v9 = vld [vmem:[%s1563_s8 + $0x28] sm:$0xf] }
  0x38   : > { %268 = vst [vmem:[%s1568_s10 + $0xc] sm:$0xf] %v267_v7  ;;  %270 = vst [vmem:[%s1568_s10 + $0x10] sm:$0xf] %v269_v8  ;;  %v273_v10 = vld [vmem:[%s1563_s8 + $0x30] sm:$0xf] }
  0x39   : > { %272 = vst [vmem:[%s1568_s10 + $0x14] sm:$0xf] %v271_v9  ;;  %v275_v11 = vld [vmem:[%s1563_s8 + $0x38] sm:$0xf]  ;;  %v277_v12 = vld [vmem:[%s1563_s8 + $0x40] sm:$0xf] }
  0x3a   : > { %274 = vst [vmem:[%s1568_s10 + $0x18] sm:$0xf] %v273_v10  ;;  %276 = vst [vmem:[%s1568_s10 + $0x1c] sm:$0xf] %v275_v11  ;;  %v279_v13 = vld [vmem:[%s1563_s8 + $0x48] sm:$0xf] }
  0x3b   : > { %278 = vst [vmem:[%s1568_s10 + $0x20] sm:$0xf] %v277_v12  ;;  %v281_v14 = vld [vmem:[%s1563_s8 + $0x50] sm:$0xf]  ;;  %v283_v15 = vld [vmem:[%s1563_s8 + $0x58] sm:$0xf] }
  0x3c   : > { %280 = vst [vmem:[%s1568_s10 + $0x24] sm:$0xf] %v279_v13  ;;  %282 = vst [vmem:[%s1568_s10 + $0x28] sm:$0xf] %v281_v14  ;;  %v285_v16 = vld [vmem:[%s1563_s8 + $0x60] sm:$0xf] }
  0x3d   : > { %284 = vst [vmem:[%s1568_s10 + $0x2c] sm:$0xf] %v283_v15  ;;  %v287_v17 = vld [vmem:[%s1563_s8 + $0x68] sm:$0xf]  ;;  %v289_v18 = vld [vmem:[%s1563_s8 + $0x70] sm:$0xf] }
  0x3e   : > { %286 = vst [vmem:[%s1568_s10 + $0x30] sm:$0xf] %v285_v16  ;;  %288 = vst [vmem:[%s1568_s10 + $0x34] sm:$0xf] %v287_v17  ;;  %v291_v19 = vld [vmem:[%s1563_s8 + $0x78] sm:$0xf] }
  0x3f   : > { %290 = vst [vmem:[%s1568_s10 + $0x38] sm:$0xf] %v289_v18  ;;  %v293_v20 = vld [vmem:[%s1563_s8 + $0x80] sm:$0xf]  ;;  %v295_v21 = vld [vmem:[%s1563_s8 + $0x88] sm:$0xf] }
  0x40   : > { %292 = vst [vmem:[%s1568_s10 + $0x3c] sm:$0xf] %v291_v19  ;;  %294 = vst [vmem:[%s1568_s10 + $0x40] sm:$0xf] %v293_v20  ;;  %v297_v22 = vld [vmem:[%s1563_s8 + $0x90] sm:$0xf] }
  0x41   : > { %296 = vst [vmem:[%s1568_s10 + $0x44] sm:$0xf] %v295_v21  ;;  %v299_v23 = vld [vmem:[%s1563_s8 + $0x98] sm:$0xf]  ;;  %v301_v24 = vld [vmem:[%s1563_s8 + $0xa0] sm:$0xf] }
  0x42   : > { %298 = vst [vmem:[%s1568_s10 + $0x48] sm:$0xf] %v297_v22  ;;  %300 = vst [vmem:[%s1568_s10 + $0x4c] sm:$0xf] %v299_v23  ;;  %v303_v25 = vld [vmem:[%s1563_s8 + $0xa8] sm:$0xf] }
  0x43   : > { %302 = vst [vmem:[%s1568_s10 + $0x50] sm:$0xf] %v301_v24  ;;  %v305_v26 = vld [vmem:[%s1563_s8 + $0xb0] sm:$0xf]  ;;  %v307_v27 = vld [vmem:[%s1563_s8 + $0xb8] sm:$0xf] }
  0x44   : > { %304 = vst [vmem:[%s1568_s10 + $0x54] sm:$0xf] %v303_v25  ;;  %306 = vst [vmem:[%s1568_s10 + $0x58] sm:$0xf] %v305_v26  ;;  %v309_v28 = vld [vmem:[%s1563_s8 + $0xc0] sm:$0xf] }
  0x45   : > { %308 = vst [vmem:[%s1568_s10 + $0x5c] sm:$0xf] %v307_v27  ;;  %v311_v29 = vld [vmem:[%s1563_s8 + $0xc8] sm:$0xf]  ;;  %v313_v30 = vld [vmem:[%s1563_s8 + $0xd0] sm:$0xf] }
  0x46   : > { %310 = vst [vmem:[%s1568_s10 + $0x60] sm:$0xf] %v309_v28  ;;  %312 = vst [vmem:[%s1568_s10 + $0x64] sm:$0xf] %v311_v29  ;;  %v315_v31 = vld [vmem:[%s1563_s8 + $0xd8] sm:$0xf] }
  0x47   : > { %314 = vst [vmem:[%s1568_s10 + $0x68] sm:$0xf] %v313_v30  ;;  %v317_v32 = vld [vmem:[%s1563_s8 + $0xe0] sm:$0xf]  ;;  %v319_v33 = vld [vmem:[%s1563_s8 + $0xe8] sm:$0xf] }
  0x48   : > { %316 = vst [vmem:[%s1568_s10 + $0x6c] sm:$0xf] %v315_v31  ;;  %318 = vst [vmem:[%s1568_s10 + $0x70] sm:$0xf] %v317_v32  ;;  %v321_v34 = vld [vmem:[%s1563_s8 + $0xf0] sm:$0xf] }
  0x49   : > { %320 = vst [vmem:[%s1568_s10 + $0x74] sm:$0xf] %v319_v33  ;;  %v323_v35 = vld [vmem:[%s1563_s8 + $0xf8] sm:$0xf]  ;;  %v325_v36 = vld [vmem:[%s1563_s8 + $0x100] sm:$0xf] }
  0x4a   : > { %322 = vst [vmem:[%s1568_s10 + $0x78] sm:$0xf] %v321_v34  ;;  %324 = vst [vmem:[%s1568_s10 + $0x7c] sm:$0xf] %v323_v35  ;;  %v327_v37 = vld [vmem:[%s1563_s8 + $0x108] sm:$0xf] }
  0x4b   : > { %326 = vst [vmem:[%s1568_s10 + $0x80] sm:$0xf] %v325_v36  ;;  %v329_v38 = vld [vmem:[%s1563_s8 + $0x110] sm:$0xf]  ;;  %v331_v39 = vld [vmem:[%s1563_s8 + $0x118] sm:$0xf] }
  0x4c   : > { %328 = vst [vmem:[%s1568_s10 + $0x84] sm:$0xf] %v327_v37  ;;  %330 = vst [vmem:[%s1568_s10 + $0x88] sm:$0xf] %v329_v38  ;;  %v333_v40 = vld [vmem:[%s1563_s8 + $0x120] sm:$0xf] }
  0x4d   : > { %332 = vst [vmem:[%s1568_s10 + $0x8c] sm:$0xf] %v331_v39  ;;  %v335_v41 = vld [vmem:[%s1563_s8 + $0x128] sm:$0xf]  ;;  %v337_v42 = vld [vmem:[%s1563_s8 + $0x130] sm:$0xf] }
  0x4e   : > { %334 = vst [vmem:[%s1568_s10 + $0x90] sm:$0xf] %v333_v40  ;;  %336 = vst [vmem:[%s1568_s10 + $0x94] sm:$0xf] %v335_v41  ;;  %v339_v43 = vld [vmem:[%s1563_s8 + $0x138] sm:$0xf] }
  0x4f   : > { %338 = vst [vmem:[%s1568_s10 + $0x98] sm:$0xf] %v337_v42  ;;  %v341_v44 = vld [vmem:[%s1563_s8 + $0x140] sm:$0xf]  ;;  %v343_v45 = vld [vmem:[%s1563_s8 + $0x148] sm:$0xf] }
  0x50   : > { %340 = vst [vmem:[%s1568_s10 + $0x9c] sm:$0xf] %v339_v43  ;;  %342 = vst [vmem:[%s1568_s10 + $0xa0] sm:$0xf] %v341_v44  ;;  %v345_v46 = vld [vmem:[%s1563_s8 + $0x150] sm:$0xf] }
  0x51   : > { %344 = vst [vmem:[%s1568_s10 + $0xa4] sm:$0xf] %v343_v45  ;;  %v347_v47 = vld [vmem:[%s1563_s8 + $0x158] sm:$0xf]  ;;  %v349_v48 = vld [vmem:[%s1563_s8 + $0x160] sm:$0xf] }
  0x52   : > { %346 = vst [vmem:[%s1568_s10 + $0xa8] sm:$0xf] %v345_v46  ;;  %348 = vst [vmem:[%s1568_s10 + $0xac] sm:$0xf] %v347_v47  ;;  %v351_v49 = vld [vmem:[%s1563_s8 + $0x168] sm:$0xf] }
  0x53   : > { %350 = vst [vmem:[%s1568_s10 + $0xb0] sm:$0xf] %v349_v48  ;;  %v353_v50 = vld [vmem:[%s1563_s8 + $0x170] sm:$0xf]  ;;  %v355_v51 = vld [vmem:[%s1563_s8 + $0x178] sm:$0xf] }
  0x54   : > { %352 = vst [vmem:[%s1568_s10 + $0xb4] sm:$0xf] %v351_v49  ;;  %354 = vst [vmem:[%s1568_s10 + $0xb8] sm:$0xf] %v353_v50 }
  0x55   : > { %356 = vst [vmem:[%s1568_s10 + $0xbc] sm:$0xf] %v355_v51 }
  0x56 PF: > { %p1122_p0 = scmp.ge.s32.totalorder %s1419_s25, 1  ;;  %p474_p1 = scmp.lt.s32.totalorder %s1419_s25, 7 }
  0x58   : > { %p475_p2 = pnand %p1122_p0, %p474_p1 }
  0x59   : > { %s481_s0 = sand.u32 (!%p475_p2), 1, %s1395_s19   ;;  %s488_s28 = sand.u32 (!%p475_p2), 1, %s1387_s17  }
  0x5a   : > { %478 = sbr.rel (%p475_p2) target bundleno = 391 (0x187), region = 87  ;;  %s509_s26 = sand.u32 (!%p475_p2), 1, %s1379_s15  }
  0x5b   : > { %s1212_s11 = smul.u32 (!%p475_p2), 24, %s481_s0  ;;  %s1123_s29 = sshll.u32 (!%p475_p2), %s509_s26, 4 }
  0x5c   : > { %s1213_s5 = smul.u32 (!%p475_p2), 192, %s488_s28  ;;  %p536_p3 = scmp.lt.s32.totalorder (!%p475_p2), %s1407_s22, 1 }
  0x5d   : > { %s1680_s24 = scalar_lea.vmem (!%p475_p2), [#allocation3], %s1212_s11  ;;  %s1684_s15 = scalar_lea.vmem (!%p475_p2), [#allocation5], %s1123_s29 }
  0x5e   : > { %s1682_s17 = scalar_lea.vmem (!%p475_p2), [#allocation4], %s1213_s5  ;;  %p1124_p4 = scmp.ne.s32.totalorder (!%p475_p2), %s1403_s21, 0 }
  0x61   : > { %s1670_s6 = scalar_select %p536_p3, %s1407_s22, 1 }
  0x62   : > { %552 = sbr.rel (%p1124_p4) target bundleno = 105 (0x69), region = 99  ;;  %v1421_v52 = vmov (!%p1124_p4), 0.0  }
  0x63   : > { %s540_s8 = scalar_lea.vmem %s1771_s3, %s1670_s6  ;;  %s547_s27 = scalar_lea.vmem %s1772_s4, %s1670_s6  ;;  %553 = vst [vmem:[#allocation2] sm:$0xff] (!%p1124_p4), %v1421_v52  ;;  %554 = vst [vmem:[#allocation2 + $0x8] sm:$0xff] (!%p1124_p4), %v1421_v52 }
  0x69 PF: > { %v1305_v53 = vld [vmem:[%s1682_s17 + $0x40] sm:$0xff]   ;;  %v1422_v54 = vmov 0.0   ;;  %vm1423_vm0 = vmmov 0   ;;  %v1308_v57 = vld [vmem:[%s1682_s17 + $0x48] sm:$0xff]   ;;  %v1311_v60 = vld [vmem:[%s1682_s17 + $0x50] sm:$0xff]   ;;  %p1152_p5 = scmp.ne.s32.totalorder %s1403_s21, 2 }
  0x6a   : > { %1190 = vmatprep.subr.bf16.mxu1 %v1422_v54  ;;  %v1306_v55 = vld [vmem:[%s1682_s17] sm:$0xff]   ;;  %1159 = vmatprep.subr.bf16.mxu0 %v1305_v53  ;;  %v1309_v58 = vld [vmem:[%s1682_s17 + $0x8] sm:$0xff]   ;;  %v1312_v61 = vld [vmem:[%s1682_s17 + $0x10] sm:$0xff]  }
  0x6b   : > { %v1307_v56 = vld [vmem:[%s1682_s17 + $0x80] sm:$0xff]   ;;  %1206 = vmatprep.mubr.msk.bf16.mxu1 %vm1423_vm0, %v1422_v54  ;;  %1160 = vmatpush3.bf16.msra.mxu0 %v1306_v55  ;;  %v1310_v59 = vld [vmem:[%s1682_s17 + $0x88] sm:$0xff]   ;;  %v1313_v62 = vld [vmem:[%s1682_s17 + $0x90] sm:$0xff]  }
  0x6c   : > { %1191 = vmatpush3.bf16.msra.mxu1 %v1307_v56  ;;  %1161 = vmatprep.subr.bf16.mxu0 %v1308_v57  ;;  %v1314_v63 = vld [vmem:[%s1682_s17 + $0x58] sm:$0xff]   ;;  %v1317_v2 = vld [vmem:[%s1682_s17 + $0x60] sm:$0xff]   ;;  %v1320_v5 = vld [vmem:[%s1682_s17 + $0x68] sm:$0xff]  }
  0x6d   : > { %1192 = vmatprep.subr.bf16.mxu1 %v1422_v54  ;;  %v1315_v0 = vld [vmem:[%s1682_s17 + $0x18] sm:$0xff]   ;;  %v1318_v3 = vld [vmem:[%s1682_s17 + $0x20] sm:$0xff]   ;;  %v1321_v6 = vld [vmem:[%s1682_s17 + $0x28] sm:$0xff]  }
  0x6e   : > { %v1316_v1 = vld [vmem:[%s1682_s17 + $0x98] sm:$0xff]   ;;  %v1319_v4 = vld [vmem:[%s1682_s17 + $0xa0] sm:$0xff]   ;;  %v1322_v7 = vld [vmem:[%s1682_s17 + $0xa8] sm:$0xff]  }
  0x6f   : > { %1162 = vmatpush3.bf16.msra.mxu0 %v1309_v58  ;;  %v1323_v8 = vld [vmem:[%s1682_s17 + $0x70] sm:$0xff]   ;;  %v1326_v11 = vld [vmem:[%s1682_s17 + $0x78] sm:$0xff]   ;;  %v555_v23 = vld [vmem:[#allocation2] sm:$0xff] }
  0x70   : > { %1193 = vmatpush3.bf16.msra.mxu1 %v1310_v59  ;;  %1163 = vmatprep.subr.bf16.mxu0 %v1311_v60  ;;  %v1324_v9 = vld [vmem:[%s1682_s17 + $0x30] sm:$0xff]   ;;  %v1327_v13 = vld [vmem:[%s1682_s17 + $0x38] sm:$0xff]   ;;  %v556_v29 = vld [vmem:[#allocation2 + $0x8] sm:$0xff] }
  0x71   : > { %1194 = vmatprep.subr.bf16.mxu1 %v1422_v54  ;;  %v1325_v10 = vld [vmem:[%s1682_s17 + $0xb0] sm:$0xff]   ;;  %v1328_v14 = vld [vmem:[%s1682_s17 + $0xb8] sm:$0xff]  }
  0x72   : > { %v1331_v12 = vld [vmem:[%s1680_s24 + $0x4] ss:$12 sps:$4 sm:$0xff]   ;;  %v1329_v15 = vld [vmem:[%s1680_s24] ss:$12 sps:$4 sm:$0xff]   ;;  %v1332_v16 = vld [vmem:[%s1680_s24 + $0x8] ss:$12 sps:$4 sm:$0xff]  }
  0x73   : > { %1164 = vmatpush3.bf16.msra.mxu0 %v1312_v61  ;;  %801 = vmatprep.mubr.bf16.mxu0 %v1331_v12 }
  0x74   : > { %1195 = vmatpush3.bf16.msra.mxu1 %v1313_v62  ;;  %1165 = vmatprep.subr.bf16.mxu0 %v1314_v63 }
  0x75   : > { %1196 = vmatprep.subr.bf16.mxu1 %v1422_v54 }
  0x77   : > { %1166 = vmatpush3.bf16.msra.mxu0 %v1315_v0 }
  0x78   : > { %1197 = vmatpush3.bf16.msra.mxu1 %v1316_v1  ;;  %1167 = vmatprep.subr.bf16.mxu0 %v1317_v2 }
  0x79   : > { %1198 = vmatprep.subr.bf16.mxu1 %v1422_v54 }
  0x7b   : > { %1168 = vmatpush3.bf16.msra.mxu0 %v1318_v3 }
  0x7c   : > { %1199 = vmatpush3.bf16.msra.mxu1 %v1319_v4  ;;  %1169 = vmatprep.subr.bf16.mxu0 %v1320_v5 }
  0x7d   : > { %1200 = vmatprep.subr.bf16.mxu1 %v1422_v54 }
  0x7f   : > { %1170 = vmatpush3.bf16.msra.mxu0 %v1321_v6 }
  0x80   : > { %1201 = vmatpush3.bf16.msra.mxu1 %v1322_v7  ;;  %1171 = vmatprep.subr.bf16.mxu0 %v1323_v8 }
  0x81   : > { %1202 = vmatprep.subr.bf16.mxu1 %v1422_v54 }
  0x83   : > { %1172 = vmatpush3.bf16.msra.mxu0 %v1324_v9 }
  0x84   : > { %1203 = vmatpush3.bf16.msra.mxu1 %v1325_v10  ;;  %1173 = vmatprep.subr.bf16.mxu0 %v1326_v11 }
  0x85   : > { %1204 = vmatprep.subr.bf16.mxu1 %v1422_v54 }
  0x87   : > { %1174 = vmatpush3.bf16.msra.mxu0 %v1327_v13 }
  0x88   : > { %1205 = vmatpush3.bf16.msra.mxu1 %v1328_v14 }
  0x8a   : > { %802 = vmatmul.mubr.bf16.vlgmr.msra.gmra.mrb[0].mxu0 %v1329_v15 }
  0x8b   : > { %1207 = vmatmul.mubr.bf16.vlgmr.msra.gmra.mrb[0].mxu1 %v1332_v16 }
 0x15d   : > { %v1175_v17 = vpop.f32.mrb[0].mxu0 }
 0x15e   : > { %v844_v18 = vpop.f32.mrb[0].mxu1  ;;  %v1176_v19 = vpop.f32.mrb[1].mxu0 }
 0x15f   : > { %v1177_v20 = vadd.f32 %v1176_v19, %v1175_v17  ;;  %v1208_v21 = vpop.f32.mrb[1].mxu1  ;;  %v1178_v22 = vpop.f32.mrb[2].mxu0 }
 0x160   : > { %v847_v24 = vpop.f32.mrb[2].mxu1  ;;  %v1179_v25 = vpop.f32.mrb[3].mxu0 }
 0x161   : > { %v845_v26 = vadd.f32 %v1177_v20, %v844_v18  ;;  %v1180_v27 = vadd.f32 %v1179_v25, %v1178_v22  ;;  %v1209_v28 = vpop.f32.mrb[3].mxu1  ;;  %858 = sbr.rel (%p1152_p5) target bundleno = 384 (0x180), region = 103 }
 0x163   : > { %v851_v30 = vadd.f32 %v845_v26, %v555_v23  ;;  %v848_v31 = vadd.f32 %v1180_v27, %v847_v24 }
 0x165   : > { %853 = vst [vmem:[#allocation2] sm:$0xff] %v851_v30  ;;  %v852_v32 = vadd.f32 %v848_v31, %v556_v29 }
 0x167   : > { %854 = vst [vmem:[#allocation2 + $0x8] sm:$0xff] %v852_v32 }
 0x16c   : > { %v859_v33 = vld [vmem:[#allocation2] sm:$0xff] }
 0x16d   : > { %861 = vst [vmem:[%s1684_s15] sm:$0xff] %v859_v33  ;;  %v871_v35 = vmul.f32 %v859_v33, %v859_v33 }
 0x16e   : > { %v860_v34 = vld [vmem:[#allocation2 + $0x8] sm:$0xff] }
 0x16f   : > { %862 = vst [vmem:[%s1684_s15 + $0x8] sm:$0xff] %v860_v34  ;;  %v863_v36 = vadd.f32 %v860_v34, %v859_v33  ;;  %v872_v37 = vmul.f32 %v860_v34, %v860_v34 }
 0x171   : > { %v864_v38 = vrot.slane %v863_v36, 4  ;;  %v873_v39 = vadd.f32 %v872_v37, %v871_v35 }
 0x173   : > { %v865_v40 = vadd.f32 %v864_v38, %v863_v36  ;;  %v874_v41 = vrot.slane %v873_v39, 4 }
 0x175   : > { %v866_v42 = vrot.slane %v865_v40, 2  ;;  %v875_v43 = vadd.f32 %v874_v41, %v873_v39 }
 0x177   : > { %v867_v44 = vadd.f32 %v866_v42, %v865_v40  ;;  %v876_v45 = vrot.slane %v875_v43, 2 }
 0x179   : > { %v868_v46 = vrot.slane %v867_v44, 1  ;;  %v877_v47 = vadd.f32 %v876_v45, %v875_v43 }
 0x17b   : > { %v869_v48 = vadd.f32 %v868_v46, %v867_v44  ;;  %v878_v49 = vrot.slane %v877_v47, 1 }
 0x17d   : > { %870 = vst [vmem:[%s540_s8] sm:$0x1] %v869_v48  ;;  %v879_v50 = vadd.f32 %v878_v49, %v877_v47 }
 0x17f   : > { %880 = vst [vmem:[%s547_s27] sm:$0x1] %v879_v50 }
 0x180 PF: > { %901 = sbr.rel (!%p1543_p12) target bundleno = 391 (0x187), region = 107  ;;  %s1154_s0 = sshll.u32 (%p1543_p12), %s1407_s22, 3  ;;  %v936_v51 = vld [vmem:[%s1684_s15] sm:$0xff] (%p1543_p12)  ;;  %v938_v52 = vld [vmem:[%s1684_s15 + $0x8] sm:$0xff] (%p1543_p12) }
 0x181   : > { %s906_s26 = scalar_lea.vmem (%p1543_p12), %s1770_s2, %s1154_s0 }
 0x182   : > { %937 = vst [vmem:[%s906_s26] sm:$0xff] (%p1543_p12), %v936_v51  ;;  %939 = vst [vmem:[%s906_s26 + $0x10] sm:$0xff] (%p1543_p12), %v938_v52 }
 0x187 PF: > { %s15_s25 = sadd.s32 1, %s1419_s25   ;;  %s1786_s22 = sld [smem:[#allocation6_spill]] }
 0x188   : > { %p12_p6 = scmp.ge.s32.totalorder %s15_s25, 8   ;;  %s1787_s27 = sld [smem:[#allocation7_spill]] }
 0x189   : > { %s1788_s24 = sld [smem:[#allocation8_spill]]  ;;  %s1789_s15 = smov %s1383_s16 }
 0x18a   : > { %s1790_s16 = smov %s1541_s13  ;;  %s1791_s17 = smov %s1391_s18 }
 0x18b   : > { %s1792_s18 = smov %s1538_s12  ;;  %s1793_s19 = smov %s1399_s20 }
 0x18c   : > { %s1794_s20 = smov %s1524_s7  ;;  %s1795_s21 = smov %s1411_s23 }
 0x18d   :  { %14 = sbr.rel (!%p12_p6) target bundleno = 9 (0x9), region = 214 }
 0x18e   : > { %s1796_s23 = smov %s1787_s27 }

// kernel: _lambda_.65
= control target key start
LH: loop header
LB: loop body
LE: loop exit
PB: predicated region body
PF: predicated region fallthrough
CT: control target
= control target key end

     0   :  { %v27_v0 = vlaneseq  ;;  %s164_s1 = inlined_call_operand.vmem [shape: f32[1,256], index: 1, kind: input, shape index: {}]   ;;  %s165_s2 = inlined_call_operand.vmem [shape: f32[1,256], index: 2, kind: input, shape index: {}]   ;;  %s166_s4 = inlined_call_operand.vmem [shape: f32[1,256], index: 4, kind: input, shape index: {}]   ;;  %s167_s0 = inlined_call_operand.vmem [shape: f32[8,256], index: 0, kind: input, shape index: {}]   ;;  %s168_s3 = inlined_call_operand.vmem [shape: f32[8,256], index: 3, kind: input, shape index: {}]   ;;  %s169_s5 = inlined_call_operand.vmem [shape: f32[1,256], index: 5, kind: input, shape index: {}]   ;;  %s170_s6 = inlined_call_operand.vmem [shape: bf16[8,256], index: 6, kind: output, shape index: {}]  }
   0x1   :  { %v25_v2 = vld [vmem:[%s164_s1] sm:$0x3]  ;;  %v24_v8 = vld [vmem:[%s167_s0 + $0x8] sm:$0xff] }
   0x2   :  { %v28_v1 = vshrl.u32 %v27_v0, 7  ;;  %v39_v3 = vld [vmem:[%s165_s2] sm:$0x3]  ;;  %v54_v14 = vld [vmem:[%s168_s3 + $0x8] sm:$0xff] }
   0x3   :  { %v55_v6 = vld [vmem:[%s166_s4] sm:$0x3] }
   0x4   :  { %v29_v4 = vsub.s32 0, %v28_v1  ;;  %v33_v5 = vsub.s32 1, %v28_v1  ;;  %v23_v7 = vld [vmem:[%s167_s0] sm:$0xff] }
   0x5   :  { %v53_v13 = vld [vmem:[%s168_s3] sm:$0xff] }
   0x6   :  { %v30_v9 = vrot.slane %v25_v2, %v29_v4  ;;  %v34_v10 = vrot.slane %v25_v2, %v33_v5  ;;  %v44_v11 = vrot.slane %v39_v3, %v29_v4  ;;  %v48_v12 = vrot.slane %v39_v3, %v33_v5  ;;  %v71_v17 = vld [vmem:[%s169_s5] sm:$0x3] }
   0x7   :  { %v60_v15 = vrot.slane %v55_v6, %v29_v4  ;;  %v64_v16 = vrot.slane %v55_v6, %v33_v5  ;;  %v76_v24 = vrot.slane %v71_v17, %v29_v4  ;;  %v80_v25 = vrot.slane %v71_v17, %v33_v5 }
   0x8   :  { %v37_v18 = vmul.f32 %v30_v9, %v23_v7  ;;  %v38_v19 = vmul.f32 %v34_v10, %v24_v8 }
   0x9   :  { %v67_v20 = vmul.f32 %v60_v15, %v53_v13  ;;  %v68_v21 = vmul.f32 %v64_v16, %v54_v14 }
   0xa   :  { %v51_v22 = vadd.f32 %v44_v11, %v37_v18  ;;  %v52_v23 = vadd.f32 %v48_v12, %v38_v19 }
   0xc   :  { %v69_v26 = vadd.f32 %v67_v20, %v51_v22  ;;  %v70_v27 = vadd.f32 %v68_v21, %v52_v23 }
   0xe   :  { %v83_v28 = vadd.f32 %v76_v24, %v69_v26  ;;  %v84_v29 = vadd.f32 %v80_v25, %v70_v27 }
  0x10   :  { %v85_v30 = vmax.f32 %v83_v28, 0.0  ;;  %v86_v31 = vmax.f32 %v84_v29, 0.0 }
  0x12   :  { %v101_v32 = vpack.c.bf16 %v86_v31, %v85_v30 }
  0x14   :  { %95 = vst [vmem:[%s170_s6] sm:$0xff] %v101_v32 }

// kernel: _lambda_.63
= control target key start
LH: loop header
LB: loop body
LE: loop exit
PB: predicated region body
PF: predicated region fallthrough
CT: control target
= control target key end

     0   :  { %s1768_s0 = inlined_call_operand.vmem [shape: bf16[16,2304], index: 0, kind: input, shape index: {}]   ;;  %s1769_s1 = inlined_call_operand.vmem [shape: bf16[2304,256], index: 1, kind: input, shape index: {}]   ;;  %s1770_s2 = inlined_call_operand.vmem [shape: f32[16,256], index: 2, kind: output, shape index: {0}]   ;;  %s1771_s3 = inlined_call_operand.vmem [shape: f32[1,1,256], index: 3, kind: output, shape index: {1}]   ;;  %s1772_s4 = inlined_call_operand.vmem [shape: f32[1,1,256], index: 4, kind: output, shape index: {2}]  }
   0x1   :  { %1776 = sst [smem:[#allocation9_spill]] %s1768_s0 }
   0x2   :  { %1777 = sst [smem:[#allocation10_spill]] %s1769_s1 }
   0x3   :  { %s1449_s15 = smov 0   ;;  %s1451_s16 = smov 0  }
   0x4   :  { %s1453_s17 = smov 0   ;;  %s1455_s18 = smov 0  }
   0x5   :  { %s1457_s19 = smov 0   ;;  %s1459_s20 = smov 0  }
   0x6   :  { %s1461_s21 = smov 0   ;;  %s1463_s22 = smov 0  }
   0x7   :  { %s1465_s23 = smov 0   ;;  %s1467_s24 = smov 0  }
   0x8   :  { %s1469_s25 = smov 0  }
   0x9 LB: > { %1778 = sst [smem:[#allocation6_spill]] %s1415_s24  ;;  %s1111_s26 = sadd.s32 4294967295, %s1419_s25   ;;  %s1419_s25 = sphi %s1469_s25, %s15_s25   ;;  %s1415_s24 = sphi %s1467_s24, %s1788_s24   ;;  %s1411_s23 = sphi %s1465_s23, %s1796_s23   ;;  %s1407_s22 = sphi %s1463_s22, %s1786_s22   ;;  %s1403_s21 = sphi %s1461_s21, %s1795_s21   ;;  %s1399_s20 = sphi %s1459_s20, %s1794_s20   ;;  %s1395_s19 = sphi %s1457_s19, %s1793_s19   ;;  %s1391_s18 = sphi %s1455_s18, %s1792_s18   ;;  %s1387_s17 = sphi %s1453_s17, %s1791_s17   ;;  %s1383_s16 = sphi %s1451_s16, %s1790_s16   ;;  %s1379_s15 = sphi %s1449_s15, %s1789_s15  }
   0xa   : > { %s27_s27 = sadd.s32 1, %s1411_s23  ;;  %s30_s28 = sadd.s32 1, %s1415_s24 }
   0xb   : > { %p28_p0 = scmp.ge.s32.totalorder %s27_s27, 6  ;;  %s43_s29 = sadd.s32 1, %s1399_s20 }
   0xc   : > { %p50_p1 = scmp.ne.s32.totalorder %s1399_s20, %s1395_s19  ;;  %p51_p2 = scmp.eq.s32.totalorder %s1419_s25, 0 }
   0xd   : > { %s1798_s27 = smov (%p28_p0, %s27_s27), 0  ;;  %s1800_s28 = smov (!%p28_p0, %s30_s28), %s1415_s24 }
   0xe   : > { %1779 = sst [smem:[#allocation7_spill]] %s1798_s27  ;;  %s39_s30 = ssub.s32 %s1411_s23, %s1798_s27 }
   0xf   : > { %p32_p3 = scmp.ge.s32.totalorder %s1800_s28, 2  ;;  %p41_p4 = scmp.eq.s32.totalorder %s39_s30, 0 }
  0x10   : > { %p1516_p5 = por %p51_p2, %p50_p1  ;;  %s71_s6 = sadd.s32 1, %s1391_s18 }
  0x11   : > { %s1802_s28 = smov (%p32_p3, %s1800_s28), 0  ;;  %p78_p6 = scmp.ne.s32.totalorder %s1391_s18, %s1387_s17 }
  0x12   : > { %1781 = sst [smem:[#allocation8_spill]] %s1802_s28  ;;  %s67_s8 = ssub.s32 %s1415_s24, %s1802_s28 }
  0x13   : > { %s1524_s7 = scalar_select %p41_p4, %s1399_s20, %s43_s29  }
  0x14   : > { %s68_s9 = sor.u32 %s67_s8, %s39_s30  ;;  %p97_p7 = scmp.eq.s32.totalorder %s67_s8, 0 }
  0x15   : > { %p69_p8 = scmp.eq.s32.totalorder %s68_s9, 0  ;;  %p1530_p9 = por %p78_p6, %p51_p2 }
  0x16   : > { %s99_s11 = sadd.s32 1, %s1383_s16  ;;  %p109_p10 = scmp.ne.s32.totalorder %s1383_s16, %s1379_s15 }
  0x17   : > { %s1538_s12 = scalar_select %p69_p8, %s1391_s18, %s71_s6  }
  0x18   : > { %s1541_s13 = scalar_select %p97_p7, %s1383_s16, %s99_s11  }
  0x19   : > { %p110_p11 = scmp.eq.s32.totalorder %s1111_s26, 11  ;;  %p1114_p13 = scmp.ge.s32.totalorder %s1419_s25, 12 }
  0x1b   : > { %p1543_p12 = por %p110_p11, %p109_p10  ;;  %188 = sbr.rel (%p1114_p13) target bundleno = 86 (0x56), region = 16 }
  0x22   : > { %191 = sbr.rel (!%p1516_p5) target bundleno = 45 (0x2d), region = 20  ;;  %s193_s29 = sand.u32 (%p1516_p5), 1, %s1399_s20  }
  0x23   : > { %s1157_s30 = smul.u32 (%p1516_p5), 12, %s1411_s23  ;;  %s1784_s0 = sld [smem:[#allocation9_spill]] (%p1516_p5) }
  0x24   : > { %s1210_s8 = smul.u32 (%p1516_p5), 24, %s193_s29 }
  0x26   : > { %s195_s26 = scalar_lea.vmem (%p1516_p5), [#allocation3], %s1210_s8 }
  0x29   : > { %s201_s11 = scalar_lea.vmem %s1784_s0, %s1157_s30 }
  0x2a   : > { %v216_v0 = vld [vmem:[%s201_s11] sm:$0xff]  ;;  %v218_v1 = vld [vmem:[%s201_s11 + $0x48] sm:$0xff]  ;;  %v1118_v3 = vld [vmem:[%s201_s11 + $0x50] sm:$0xf] }
  0x2b   : > { %v1116_v2 = vld [vmem:[%s201_s11 + $0x8] sm:$0xf]  ;;  %217 = vst [vmem:[%s195_s26] sm:$0xff] %v216_v0  ;;  %219 = vst [vmem:[%s195_s26 + $0xc] sm:$0xff] %v218_v1 }
  0x2c   : > { %1117 = vst [vmem:[%s195_s26 + $0x8] sm:$0xf] %v1116_v2  ;;  %1119 = vst [vmem:[%s195_s26 + $0x14] sm:$0xf] %v1118_v3 }
  0x2d PF: > { %236 = sbr.rel (!%p1530_p9) target bundleno = 86 (0x56), region = 46  ;;  %s238_s5 = sand.u32 (%p1530_p9), 1, %s1391_s18  }
  0x2e   : > { %s1158_s29 = smul.u32 (%p1530_p9), 96, %s1411_s23  ;;  %s1785_s1 = sld [smem:[#allocation10_spill]] (%p1530_p9) }
  0x2f   : > { %s1211_s6 = smul.u32 (%p1530_p9), 192, %s238_s5 }
  0x30   : > { %s243_s30 = sadd.s32 (%p1530_p9), %s1415_s24, %s1158_s29 }
  0x31   : > { %s1121_s9 = sshll.u32 (%p1530_p9), %s243_s30, 2  ;;  %s1568_s10 = scalar_lea.vmem (%p1530_p9), [#allocation4], %s1211_s6 }
  0x34   : > { %s1563_s8 = scalar_lea.vmem %s1785_s1, %s1121_s9 }
  0x35   : > { %v261_v4 = vld [vmem:[%s1563_s8] sm:$0xf]  ;;  %v263_v5 = vld [vmem:[%s1563_s8 + $0x8] sm:$0xf]  ;;  %v265_v6 = vld [vmem:[%s1563_s8 + $0x10] sm:$0xf] }
  0x36   : > { %262 = vst [vmem:[%s1568_s10] sm:$0xf] %v261_v4  ;;  %264 = vst [vmem:[%s1568_s10 + $0x4] sm:$0xf] %v263_v5  ;;  %v267_v7 = vld [vmem:[%s1563_s8 + $0x18] sm:$0xf] }
  0x37   : > { %266 = vst [vmem:[%s1568_s10 + $0x8] sm:$0xf] %v265_v6  ;;  %v269_v8 = vld [vmem:[%s1563_s8 + $0x20] sm:$0xf]  ;;  %v271_v9 = vld [vmem:[%s1563_s8 + $0x28] sm:$0xf] }
  0x38   : > { %268 = vst [vmem:[%s1568_s10 + $0xc] sm:$0xf] %v267_v7  ;;  %270 = vst [vmem:[%s1568_s10 + $0x10] sm:$0xf] %v269_v8  ;;  %v273_v10 = vld [vmem:[%s1563_s8 + $0x30] sm:$0xf] }
  0x39   : > { %272 = vst [vmem:[%s1568_s10 + $0x14] sm:$0xf] %v271_v9  ;;  %v275_v11 = vld [vmem:[%s1563_s8 + $0x38] sm:$0xf]  ;;  %v277_v12 = vld [vmem:[%s1563_s8 + $0x40] sm:$0xf] }
  0x3a   : > { %274 = vst [vmem:[%s1568_s10 + $0x18] sm:$0xf] %v273_v10  ;;  %276 = vst [vmem:[%s1568_s10 + $0x1c] sm:$0xf] %v275_v11  ;;  %v279_v13 = vld [vmem:[%s1563_s8 + $0x48] sm:$0xf] }
  0x3b   : > { %278 = vst [vmem:[%s1568_s10 + $0x20] sm:$0xf] %v277_v12  ;;  %v281_v14 = vld [vmem:[%s1563_s8 + $0x50] sm:$0xf]  ;;  %v283_v15 = vld [vmem:[%s1563_s8 + $0x58] sm:$0xf] }
  0x3c   : > { %280 = vst [vmem:[%s1568_s10 + $0x24] sm:$0xf] %v279_v13  ;;  %282 = vst [vmem:[%s1568_s10 + $0x28] sm:$0xf] %v281_v14  ;;  %v285_v16 = vld [vmem:[%s1563_s8 + $0x60] sm:$0xf] }
  0x3d   : > { %284 = vst [vmem:[%s1568_s10 + $0x2c] sm:$0xf] %v283_v15  ;;  %v287_v17 = vld [vmem:[%s1563_s8 + $0x68] sm:$0xf]  ;;  %v289_v18 = vld [vmem:[%s1563_s8 + $0x70] sm:$0xf] }
  0x3e   : > { %286 = vst [vmem:[%s1568_s10 + $0x30] sm:$0xf] %v285_v16  ;;  %288 = vst [vmem:[%s1568_s10 + $0x34] sm:$0xf] %v287_v17  ;;  %v291_v19 = vld [vmem:[%s1563_s8 + $0x78] sm:$0xf] }
  0x3f   : > { %290 = vst [vmem:[%s1568_s10 + $0x38] sm:$0xf] %v289_v18  ;;  %v293_v20 = vld [vmem:[%s1563_s8 + $0x80] sm:$0xf]  ;;  %v295_v21 = vld [vmem:[%s1563_s8 + $0x88] sm:$0xf] }
  0x40   : > { %292 = vst [vmem:[%s1568_s10 + $0x3c] sm:$0xf] %v291_v19  ;;  %294 = vst [vmem:[%s1568_s10 + $0x40] sm:$0xf] %v293_v20  ;;  %v297_v22 = vld [vmem:[%s1563_s8 + $0x90] sm:$0xf] }
  0x41   : > { %296 = vst [vmem:[%s1568_s10 + $0x44] sm:$0xf] %v295_v21  ;;  %v299_v23 = vld [vmem:[%s1563_s8 + $0x98] sm:$0xf]  ;;  %v301_v24 = vld [vmem:[%s1563_s8 + $0xa0] sm:$0xf] }
  0x42   : > { %298 = vst [vmem:[%s1568_s10 + $0x48] sm:$0xf] %v297_v22  ;;  %300 = vst [vmem:[%s1568_s10 + $0x4c] sm:$0xf] %v299_v23  ;;  %v303_v25 = vld [vmem:[%s1563_s8 + $0xa8] sm:$0xf] }
  0x43   : > { %302 = vst [vmem:[%s1568_s10 + $0x50] sm:$0xf] %v301_v24  ;;  %v305_v26 = vld [vmem:[%s1563_s8 + $0xb0] sm:$0xf]  ;;  %v307_v27 = vld [vmem:[%s1563_s8 + $0xb8] sm:$0xf] }
  0x44   : > { %304 = vst [vmem:[%s1568_s10 + $0x54] sm:$0xf] %v303_v25  ;;  %306 = vst [vmem:[%s1568_s10 + $0x58] sm:$0xf] %v305_v26  ;;  %v309_v28 = vld [vmem:[%s1563_s8 + $0xc0] sm:$0xf] }
  0x45   : > { %308 = vst [vmem:[%s1568_s10 + $0x5c] sm:$0xf] %v307_v27  ;;  %v311_v29 = vld [vmem:[%s1563_s8 + $0xc8] sm:$0xf]  ;;  %v313_v30 = vld [vmem:[%s1563_s8 + $0xd0] sm:$0xf] }
  0x46   : > { %310 = vst [vmem:[%s1568_s10 + $0x60] sm:$0xf] %v309_v28  ;;  %312 = vst [vmem:[%s1568_s10 + $0x64] sm:$0xf] %v311_v29  ;;  %v315_v31 = vld [vmem:[%s1563_s8 + $0xd8] sm:$0xf] }
  0x47   : > { %314 = vst [vmem:[%s1568_s10 + $0x68] sm:$0xf] %v313_v30  ;;  %v317_v32 = vld [vmem:[%s1563_s8 + $0xe0] sm:$0xf]  ;;  %v319_v33 = vld [vmem:[%s1563_s8 + $0xe8] sm:$0xf] }
  0x48   : > { %316 = vst [vmem:[%s1568_s10 + $0x6c] sm:$0xf] %v315_v31  ;;  %318 = vst [vmem:[%s1568_s10 + $0x70] sm:$0xf] %v317_v32  ;;  %v321_v34 = vld [vmem:[%s1563_s8 + $0xf0] sm:$0xf] }
  0x49   : > { %320 = vst [vmem:[%s1568_s10 + $0x74] sm:$0xf] %v319_v33  ;;  %v323_v35 = vld [vmem:[%s1563_s8 + $0xf8] sm:$0xf]  ;;  %v325_v36 = vld [vmem:[%s1563_s8 + $0x100] sm:$0xf] }
  0x4a   : > { %322 = vst [vmem:[%s1568_s10 + $0x78] sm:$0xf] %v321_v34  ;;  %324 = vst [vmem:[%s1568_s10 + $0x7c] sm:$0xf] %v323_v35  ;;  %v327_v37 = vld [vmem:[%s1563_s8 + $0x108] sm:$0xf] }
  0x4b   : > { %326 = vst [vmem:[%s1568_s10 + $0x80] sm:$0xf] %v325_v36  ;;  %v329_v38 = vld [vmem:[%s1563_s8 + $0x110] sm:$0xf]  ;;  %v331_v39 = vld [vmem:[%s1563_s8 + $0x118] sm:$0xf] }
  0x4c   : > { %328 = vst [vmem:[%s1568_s10 + $0x84] sm:$0xf] %v327_v37  ;;  %330 = vst [vmem:[%s1568_s10 + $0x88] sm:$0xf] %v329_v38  ;;  %v333_v40 = vld [vmem:[%s1563_s8 + $0x120] sm:$0xf] }
  0x4d   : > { %332 = vst [vmem:[%s1568_s10 + $0x8c] sm:$0xf] %v331_v39  ;;  %v335_v41 = vld [vmem:[%s1563_s8 + $0x128] sm:$0xf]  ;;  %v337_v42 = vld [vmem:[%s1563_s8 + $0x130] sm:$0xf] }
  0x4e   : > { %334 = vst [vmem:[%s1568_s10 + $0x90] sm:$0xf] %v333_v40  ;;  %336 = vst [vmem:[%s1568_s10 + $0x94] sm:$0xf] %v335_v41  ;;  %v339_v43 = vld [vmem:[%s1563_s8 + $0x138] sm:$0xf] }
  0x4f   : > { %338 = vst [vmem:[%s1568_s10 + $0x98] sm:$0xf] %v337_v42  ;;  %v341_v44 = vld [vmem:[%s1563_s8 + $0x140] sm:$0xf]  ;;  %v343_v45 = vld [vmem:[%s1563_s8 + $0x148] sm:$0xf] }
  0x50   : > { %340 = vst [vmem:[%s1568_s10 + $0x9c] sm:$0xf] %v339_v43  ;;  %342 = vst [vmem:[%s1568_s10 + $0xa0] sm:$0xf] %v341_v44  ;;  %v345_v46 = vld [vmem:[%s1563_s8 + $0x150] sm:$0xf] }
  0x51   : > { %344 = vst [vmem:[%s1568_s10 + $0xa4] sm:$0xf] %v343_v45  ;;  %v347_v47 = vld [vmem:[%s1563_s8 + $0x158] sm:$0xf]  ;;  %v349_v48 = vld [vmem:[%s1563_s8 + $0x160] sm:$0xf] }
  0x52   : > { %346 = vst [vmem:[%s1568_s10 + $0xa8] sm:$0xf] %v345_v46  ;;  %348 = vst [vmem:[%s1568_s10 + $0xac] sm:$0xf] %v347_v47  ;;  %v351_v49 = vld [vmem:[%s1563_s8 + $0x168] sm:$0xf] }
  0x53   : > { %350 = vst [vmem:[%s1568_s10 + $0xb0] sm:$0xf] %v349_v48  ;;  %v353_v50 = vld [vmem:[%s1563_s8 + $0x170] sm:$0xf]  ;;  %v355_v51 = vld [vmem:[%s1563_s8 + $0x178] sm:$0xf] }
  0x54   : > { %352 = vst [vmem:[%s1568_s10 + $0xb4] sm:$0xf] %v351_v49  ;;  %354 = vst [vmem:[%s1568_s10 + $0xb8] sm:$0xf] %v353_v50 }
  0x55   : > { %356 = vst [vmem:[%s1568_s10 + $0xbc] sm:$0xf] %v355_v51 }
  0x56 PF: > { %p1122_p0 = scmp.ge.s32.totalorder %s1419_s25, 1  ;;  %p474_p1 = scmp.lt.s32.totalorder %s1419_s25, 13 }
  0x58   : > { %p475_p2 = pnand %p1122_p0, %p474_p1 }
  0x59   : > { %s481_s0 = sand.u32 (!%p475_p2), 1, %s1395_s19   ;;  %s488_s28 = sand.u32 (!%p475_p2), 1, %s1387_s17  }
  0x5a   : > { %478 = sbr.rel (%p475_p2) target bundleno = 391 (0x187), region = 87  ;;  %s509_s26 = sand.u32 (!%p475_p2), 1, %s1379_s15  }
  0x5b   : > { %s1212_s11 = smul.u32 (!%p475_p2), 24, %s481_s0  ;;  %s1123_s29 = sshll.u32 (!%p475_p2), %s509_s26, 4 }
  0x5c   : > { %s1213_s5 = smul.u32 (!%p475_p2), 192, %s488_s28  ;;  %p536_p3 = scmp.lt.s32.totalorder (!%p475_p2), %s1407_s22, 1 }
  0x5d   : > { %s1680_s24 = scalar_lea.vmem (!%p475_p2), [#allocation3], %s1212_s11  ;;  %s1684_s15 = scalar_lea.vmem (!%p475_p2), [#allocation5], %s1123_s29 }
  0x5e   : > { %s1682_s17 = scalar_lea.vmem (!%p475_p2), [#allocation4], %s1213_s5  ;;  %p1124_p4 = scmp.ne.s32.totalorder (!%p475_p2), %s1403_s21, 0 }
  0x61   : > { %s1670_s6 = scalar_select %p536_p3, %s1407_s22, 1 }
  0x62   : > { %552 = sbr.rel (%p1124_p4) target bundleno = 105 (0x69), region = 99  ;;  %v1421_v52 = vmov (!%p1124_p4), 0.0  }
  0x63   : > { %s540_s8 = scalar_lea.vmem %s1771_s3, %s1670_s6  ;;  %s547_s27 = scalar_lea.vmem %s1772_s4, %s1670_s6  ;;  %553 = vst [vmem:[#allocation2] sm:$0xff] (!%p1124_p4), %v1421_v52  ;;  %554 = vst [vmem:[#allocation2 + $0x8] sm:$0xff] (!%p1124_p4), %v1421_v52 }
  0x69 PF: > { %v1305_v53 = vld [vmem:[%s1682_s17 + $0x40] sm:$0xff]   ;;  %v1422_v54 = vmov 0.0   ;;  %vm1423_vm0 = vmmov 0   ;;  %v1308_v57 = vld [vmem:[%s1682_s17 + $0x48] sm:$0xff]   ;;  %v1311_v60 = vld [vmem:[%s1682_s17 + $0x50] sm:$0xff]   ;;  %p1152_p5 = scmp.ne.s32.totalorder %s1403_s21, 5 }
  0x6a   : > { %1190 = vmatprep.subr.bf16.mxu1 %v1422_v54  ;;  %v1306_v55 = vld [vmem:[%s1682_s17] sm:$0xff]   ;;  %1159 = vmatprep.subr.bf16.mxu0 %v1305_v53  ;;  %v1309_v58 = vld [vmem:[%s1682_s17 + $0x8] sm:$0xff]   ;;  %v1312_v61 = vld [vmem:[%s1682_s17 + $0x10] sm:$0xff]  }
  0x6b   : > { %v1307_v56 = vld [vmem:[%s1682_s17 + $0x80] sm:$0xff]   ;;  %1206 = vmatprep.mubr.msk.bf16.mxu1 %vm1423_vm0, %v1422_v54  ;;  %1160 = vmatpush3.bf16.msra.mxu0 %v1306_v55  ;;  %v1310_v59 = vld [vmem:[%s1682_s17 + $0x88] sm:$0xff]   ;;  %v1313_v62 = vld [vmem:[%s1682_s17 + $0x90] sm:$0xff]  }
  0x6c   : > { %1191 = vmatpush3.bf16.msra.mxu1 %v1307_v56  ;;  %1161 = vmatprep.subr.bf16.mxu0 %v1308_v57  ;;  %v1314_v63 = vld [vmem:[%s1682_s17 + $0x58] sm:$0xff]   ;;  %v1317_v2 = vld [vmem:[%s1682_s17 + $0x60] sm:$0xff]   ;;  %v1320_v5 = vld [vmem:[%s1682_s17 + $0x68] sm:$0xff]  }
  0x6d   : > { %1192 = vmatprep.subr.bf16.mxu1 %v1422_v54  ;;  %v1315_v0 = vld [vmem:[%s1682_s17 + $0x18] sm:$0xff]   ;;  %v1318_v3 = vld [vmem:[%s1682_s17 + $0x20] sm:$0xff]   ;;  %v1321_v6 = vld [vmem:[%s1682_s17 + $0x28] sm:$0xff]  }
  0x6e   : > { %v1316_v1 = vld [vmem:[%s1682_s17 + $0x98] sm:$0xff]   ;;  %v1319_v4 = vld [vmem:[%s1682_s17 + $0xa0] sm:$0xff]   ;;  %v1322_v7 = vld [vmem:[%s1682_s17 + $0xa8] sm:$0xff]  }
  0x6f   : > { %1162 = vmatpush3.bf16.msra.mxu0 %v1309_v58  ;;  %v1323_v8 = vld [vmem:[%s1682_s17 + $0x70] sm:$0xff]   ;;  %v1326_v11 = vld [vmem:[%s1682_s17 + $0x78] sm:$0xff]   ;;  %v555_v23 = vld [vmem:[#allocation2] sm:$0xff] }
  0x70   : > { %1193 = vmatpush3.bf16.msra.mxu1 %v1310_v59  ;;  %1163 = vmatprep.subr.bf16.mxu0 %v1311_v60  ;;  %v1324_v9 = vld [vmem:[%s1682_s17 + $0x30] sm:$0xff]   ;;  %v1327_v13 = vld [vmem:[%s1682_s17 + $0x38] sm:$0xff]   ;;  %v556_v29 = vld [vmem:[#allocation2 + $0x8] sm:$0xff] }
  0x71   : > { %1194 = vmatprep.subr.bf16.mxu1 %v1422_v54  ;;  %v1325_v10 = vld [vmem:[%s1682_s17 + $0xb0] sm:$0xff]   ;;  %v1328_v14 = vld [vmem:[%s1682_s17 + $0xb8] sm:$0xff]  }
  0x72   : > { %v1331_v12 = vld [vmem:[%s1680_s24 + $0x4] ss:$12 sps:$4 sm:$0xff]   ;;  %v1329_v15 = vld [vmem:[%s1680_s24] ss:$12 sps:$4 sm:$0xff]   ;;  %v1332_v16 = vld [vmem:[%s1680_s24 + $0x8] ss:$12 sps:$4 sm:$0xff]  }
  0x73   : > { %1164 = vmatpush3.bf16.msra.mxu0 %v1312_v61  ;;  %801 = vmatprep.mubr.bf16.mxu0 %v1331_v12 }
  0x74   : > { %1195 = vmatpush3.bf16.msra.mxu1 %v1313_v62  ;;  %1165 = vmatprep.subr.bf16.mxu0 %v1314_v63 }
  0x75   : > { %1196 = vmatprep.subr.bf16.mxu1 %v1422_v54 }
  0x77   : > { %1166 = vmatpush3.bf16.msra.mxu0 %v1315_v0 }
  0x78   : > { %1197 = vmatpush3.bf16.msra.mxu1 %v1316_v1  ;;  %1167 = vmatprep.subr.bf16.mxu0 %v1317_v2 }
  0x79   : > { %1198 = vmatprep.subr.bf16.mxu1 %v1422_v54 }
  0x7b   : > { %1168 = vmatpush3.bf16.msra.mxu0 %v1318_v3 }
  0x7c   : > { %1199 = vmatpush3.bf16.msra.mxu1 %v1319_v4  ;;  %1169 = vmatprep.subr.bf16.mxu0 %v1320_v5 }
  0x7d   : > { %1200 = vmatprep.subr.bf16.mxu1 %v1422_v54 }
  0x7f   : > { %1170 = vmatpush3.bf16.msra.mxu0 %v1321_v6 }
  0x80   : > { %1201 = vmatpush3.bf16.msra.mxu1 %v1322_v7  ;;  %1171 = vmatprep.subr.bf16.mxu0 %v1323_v8 }
  0x81   : > { %1202 = vmatprep.subr.bf16.mxu1 %v1422_v54 }
  0x83   : > { %1172 = vmatpush3.bf16.msra.mxu0 %v1324_v9 }
  0x84   : > { %1203 = vmatpush3.bf16.msra.mxu1 %v1325_v10  ;;  %1173 = vmatprep.subr.bf16.mxu0 %v1326_v11 }
  0x85   : > { %1204 = vmatprep.subr.bf16.mxu1 %v1422_v54 }
  0x87   : > { %1174 = vmatpush3.bf16.msra.mxu0 %v1327_v13 }
  0x88   : > { %1205 = vmatpush3.bf16.msra.mxu1 %v1328_v14 }
  0x8a   : > { %802 = vmatmul.mubr.bf16.vlgmr.msra.gmra.mrb[0].mxu0 %v1329_v15 }
  0x8b   : > { %1207 = vmatmul.mubr.bf16.vlgmr.msra.gmra.mrb[0].mxu1 %v1332_v16 }
 0x15d   : > { %v1175_v17 = vpop.f32.mrb[0].mxu0 }
 0x15e   : > { %v844_v18 = vpop.f32.mrb[0].mxu1  ;;  %v1176_v19 = vpop.f32.mrb[1].mxu0 }
 0x15f   : > { %v1177_v20 = vadd.f32 %v1176_v19, %v1175_v17  ;;  %v1208_v21 = vpop.f32.mrb[1].mxu1  ;;  %v1178_v22 = vpop.f32.mrb[2].mxu0 }
 0x160   : > { %v847_v24 = vpop.f32.mrb[2].mxu1  ;;  %v1179_v25 = vpop.f32.mrb[3].mxu0 }
 0x161   : > { %v845_v26 = vadd.f32 %v1177_v20, %v844_v18  ;;  %v1180_v27 = vadd.f32 %v1179_v25, %v1178_v22  ;;  %v1209_v28 = vpop.f32.mrb[3].mxu1  ;;  %858 = sbr.rel (%p1152_p5) target bundleno = 384 (0x180), region = 103 }
 0x163   : > { %v851_v30 = vadd.f32 %v845_v26, %v555_v23  ;;  %v848_v31 = vadd.f32 %v1180_v27, %v847_v24 }
 0x165   : > { %853 = vst [vmem:[#allocation2] sm:$0xff] %v851_v30  ;;  %v852_v32 = vadd.f32 %v848_v31, %v556_v29 }
 0x167   : > { %854 = vst [vmem:[#allocation2 + $0x8] sm:$0xff] %v852_v32 }
 0x16c   : > { %v859_v33 = vld [vmem:[#allocation2] sm:$0xff] }
 0x16d   : > { %861 = vst [vmem:[%s1684_s15] sm:$0xff] %v859_v33  ;;  %v871_v35 = vmul.f32 %v859_v33, %v859_v33 }
 0x16e   : > { %v860_v34 = vld [vmem:[#allocation2 + $0x8] sm:$0xff] }
 0x16f   : > { %862 = vst [vmem:[%s1684_s15 + $0x8] sm:$0xff] %v860_v34  ;;  %v863_v36 = vadd.f32 %v860_v34, %v859_v33  ;;  %v872_v37 = vmul.f32 %v860_v34, %v860_v34 }
 0x171   : > { %v864_v38 = vrot.slane %v863_v36, 4  ;;  %v873_v39 = vadd.f32 %v872_v37, %v871_v35 }
 0x173   : > { %v865_v40 = vadd.f32 %v864_v38, %v863_v36  ;;  %v874_v41 = vrot.slane %v873_v39, 4 }
 0x175   : > { %v866_v42 = vrot.slane %v865_v40, 2  ;;  %v875_v43 = vadd.f32 %v874_v41, %v873_v39 }
 0x177   : > { %v867_v44 = vadd.f32 %v866_v42, %v865_v40  ;;  %v876_v45 = vrot.slane %v875_v43, 2 }
 0x179   : > { %v868_v46 = vrot.slane %v867_v44, 1  ;;  %v877_v47 = vadd.f32 %v876_v45, %v875_v43 }
 0x17b   : > { %v869_v48 = vadd.f32 %v868_v46, %v867_v44  ;;  %v878_v49 = vrot.slane %v877_v47, 1 }
 0x17d   : > { %870 = vst [vmem:[%s540_s8] sm:$0x1] %v869_v48  ;;  %v879_v50 = vadd.f32 %v878_v49, %v877_v47 }
 0x17f   : > { %880 = vst [vmem:[%s547_s27] sm:$0x1] %v879_v50 }
 0x180 PF: > { %901 = sbr.rel (!%p1543_p12) target bundleno = 391 (0x187), region = 107  ;;  %s1154_s0 = sshll.u32 (%p1543_p12), %s1407_s22, 3  ;;  %v936_v51 = vld [vmem:[%s1684_s15] sm:$0xff] (%p1543_p12)  ;;  %v938_v52 = vld [vmem:[%s1684_s15 + $0x8] sm:$0xff] (%p1543_p12) }
 0x181   : > { %s906_s26 = scalar_lea.vmem (%p1543_p12), %s1770_s2, %s1154_s0 }
 0x182   : > { %937 = vst [vmem:[%s906_s26] sm:$0xff] (%p1543_p12), %v936_v51  ;;  %939 = vst [vmem:[%s906_s26 + $0x10] sm:$0xff] (%p1543_p12), %v938_v52 }
 0x187 PF: > { %s15_s25 = sadd.s32 1, %s1419_s25   ;;  %s1786_s22 = sld [smem:[#allocation6_spill]] }
 0x188   : > { %p12_p6 = scmp.ge.s32.totalorder %s15_s25, 14   ;;  %s1787_s27 = sld [smem:[#allocation7_spill]] }
 0x189   : > { %s1788_s24 = sld [smem:[#allocation8_spill]]  ;;  %s1789_s15 = smov %s1383_s16 }
 0x18a   : > { %s1790_s16 = smov %s1541_s13  ;;  %s1791_s17 = smov %s1391_s18 }
 0x18b   : > { %s1792_s18 = smov %s1538_s12  ;;  %s1793_s19 = smov %s1399_s20 }
 0x18c   : > { %s1794_s20 = smov %s1524_s7  ;;  %s1795_s21 = smov %s1411_s23 }
 0x18d   :  { %14 = sbr.rel (!%p12_p6) target bundleno = 9 (0x9), region = 214 }
 0x18e   : > { %s1796_s23 = smov %s1787_s27 }

// kernel: _lambda_.69
= control target key start
LH: loop header
LB: loop body
LE: loop exit
PB: predicated region body
PF: predicated region fallthrough
CT: control target
= control target key end

     0   :  { %s1026_s15 = smov 0   ;;  %s1028_s16 = smov 0   ;;  %s1202_s0 = inlined_call_operand.vmem [shape: bf16[16,256], index: 0, kind: input, shape index: {}]   ;;  %s1203_s1 = inlined_call_operand.vmem [shape: bf16[256,256], index: 1, kind: input, shape index: {}]   ;;  %s1204_s2 = inlined_call_operand.vmem [shape: f32[16,256], index: 2, kind: output, shape index: {0}]   ;;  %s1205_s3 = inlined_call_operand.vmem [shape: f32[1,1,256], index: 3, kind: output, shape index: {1}]   ;;  %s1206_s4 = inlined_call_operand.vmem [shape: f32[1,1,256], index: 4, kind: output, shape index: {2}]  }
   0x1   :  { %s1030_s17 = smov 0   ;;  %s1032_s18 = smov 0  }
   0x2   :  { %s1034_s19 = smov 0  }
   0x3 LB: > { %s24_s20 = sadd.s32 1, %s995_s18  ;;  %s848_s21 = sadd.s32 4294967295, %s999_s19   ;;  %s999_s19 = sphi %s1034_s19, %s15_s19   ;;  %s995_s18 = sphi %s1032_s18, %s1211_s18   ;;  %s991_s17 = sphi %s1030_s17, %s1210_s17   ;;  %s987_s16 = sphi %s1028_s16, %s1209_s16   ;;  %s983_s15 = sphi %s1026_s15, %s1208_s15  }
   0x4   : > { %p25_p0 = scmp.ge.s32.totalorder %s24_s20, 2  ;;  %p67_p1 = scmp.ne.s32.totalorder %s987_s16, %s983_s15 }
   0x5   : > { %p68_p2 = scmp.eq.s32.totalorder %s999_s19, 0  ;;  %p99_p4 = scmp.eq.s32.totalorder %s848_s21, 1 }
   0x6   : > { %s1213_s20 = smov (%p25_p0, %s24_s20), 0  ;;  %s60_s23 = sadd.s32 1, %s987_s16 }
   0x7   : > { %p69_p3 = por %p68_p2, %p67_p1  ;;  %s57_s22 = ssub.s32 %s995_s18, %s1213_s20 }
   0x8   : > { %p58_p5 = scmp.eq.s32.totalorder %s57_s22, 0  ;;  %p1061_p6 = por %p99_p4, %p67_p1 }
   0x9   : > { %p852_p7 = scmp.ge.s32.totalorder %s999_s19, 2 }
   0xa   : > { %s1066_s25 = scalar_select %p58_p5, %s987_s16, %s60_s23  }
   0xb   : > { %187 = sbr.rel (%p852_p7) target bundleno = 43 (0x2b), region = 20 }
  0x12   : > { %190 = sbr.rel (!%p69_p3) target bundleno = 43 (0x2b), region = 24  ;;  %s192_s26 = sand.u32 (%p69_p3), 1, %s987_s16  }
  0x13   : > { %s854_s27 = sshll.u32 (%p69_p3), %s995_s18, 2  ;;  %s853_s28 = sshll.u32 (%p69_p3), %s192_s26, 7 }
  0x14   : > { %s1074_s5 = scalar_lea.vmem (%p69_p3), %s1203_s1, %s854_s27  ;;  %s1078_s6 = scalar_lea.vmem (%p69_p3), [#allocation2], %s853_s28 }
  0x15   : > { %v212_v0 = vld [vmem:[%s1074_s5] sm:$0xf] (%p69_p3)  ;;  %v214_v1 = vld [vmem:[%s1074_s5 + $0x8] sm:$0xf] (%p69_p3)  ;;  %v216_v2 = vld [vmem:[%s1074_s5 + $0x10] sm:$0xf] (%p69_p3) }
  0x16   : > { %213 = vst [vmem:[%s1078_s6] sm:$0xf] (%p69_p3), %v212_v0  ;;  %215 = vst [vmem:[%s1078_s6 + $0x4] sm:$0xf] (%p69_p3), %v214_v1  ;;  %v218_v3 = vld [vmem:[%s1074_s5 + $0x18] sm:$0xf] (%p69_p3) }
  0x17   : > { %v220_v4 = vld [vmem:[%s1074_s5 + $0x20] sm:$0xf] (%p69_p3)  ;;  %217 = vst [vmem:[%s1078_s6 + $0x8] sm:$0xf] (%p69_p3), %v216_v2  ;;  %219 = vst [vmem:[%s1078_s6 + $0xc] sm:$0xf] (%p69_p3), %v218_v3 }
  0x18   : > { %221 = vst [vmem:[%s1078_s6 + $0x10] sm:$0xf] (%p69_p3), %v220_v4  ;;  %v222_v5 = vld [vmem:[%s1074_s5 + $0x28] sm:$0xf] (%p69_p3)  ;;  %v224_v6 = vld [vmem:[%s1074_s5 + $0x30] sm:$0xf] (%p69_p3) }
  0x19   : > { %v226_v7 = vld [vmem:[%s1074_s5 + $0x38] sm:$0xf]  ;;  %223 = vst [vmem:[%s1078_s6 + $0x14] sm:$0xf] %v222_v5  ;;  %225 = vst [vmem:[%s1078_s6 + $0x18] sm:$0xf] %v224_v6 }
  0x1a   : > { %227 = vst [vmem:[%s1078_s6 + $0x1c] sm:$0xf] %v226_v7  ;;  %v228_v8 = vld [vmem:[%s1074_s5 + $0x40] sm:$0xf]  ;;  %v230_v9 = vld [vmem:[%s1074_s5 + $0x48] sm:$0xf] }
  0x1b   : > { %v232_v10 = vld [vmem:[%s1074_s5 + $0x50] sm:$0xf]  ;;  %229 = vst [vmem:[%s1078_s6 + $0x20] sm:$0xf] %v228_v8  ;;  %231 = vst [vmem:[%s1078_s6 + $0x24] sm:$0xf] %v230_v9 }
  0x1c   : > { %233 = vst [vmem:[%s1078_s6 + $0x28] sm:$0xf] %v232_v10  ;;  %v234_v11 = vld [vmem:[%s1074_s5 + $0x58] sm:$0xf]  ;;  %v236_v12 = vld [vmem:[%s1074_s5 + $0x60] sm:$0xf] }
  0x1d   : > { %v238_v13 = vld [vmem:[%s1074_s5 + $0x68] sm:$0xf]  ;;  %235 = vst [vmem:[%s1078_s6 + $0x2c] sm:$0xf] %v234_v11  ;;  %237 = vst [vmem:[%s1078_s6 + $0x30] sm:$0xf] %v236_v12 }
  0x1e   : > { %239 = vst [vmem:[%s1078_s6 + $0x34] sm:$0xf] %v238_v13  ;;  %v240_v14 = vld [vmem:[%s1074_s5 + $0x70] sm:$0xf]  ;;  %v242_v15 = vld [vmem:[%s1074_s5 + $0x78] sm:$0xf] }
  0x1f   : > { %v244_v16 = vld [vmem:[%s1074_s5 + $0x80] sm:$0xf]  ;;  %241 = vst [vmem:[%s1078_s6 + $0x38] sm:$0xf] %v240_v14  ;;  %243 = vst [vmem:[%s1078_s6 + $0x3c] sm:$0xf] %v242_v15 }
  0x20   : > { %245 = vst [vmem:[%s1078_s6 + $0x40] sm:$0xf] %v244_v16  ;;  %v246_v17 = vld [vmem:[%s1074_s5 + $0x88] sm:$0xf]  ;;  %v248_v18 = vld [vmem:[%s1074_s5 + $0x90] sm:$0xf] }
  0x21   : > { %v250_v19 = vld [vmem:[%s1074_s5 + $0x98] sm:$0xf]  ;;  %247 = vst [vmem:[%s1078_s6 + $0x44] sm:$0xf] %v246_v17  ;;  %249 = vst [vmem:[%s1078_s6 + $0x48] sm:$0xf] %v248_v18 }
  0x22   : > { %251 = vst [vmem:[%s1078_s6 + $0x4c] sm:$0xf] %v250_v19  ;;  %v252_v20 = vld [vmem:[%s1074_s5 + $0xa0] sm:$0xf]  ;;  %v254_v21 = vld [vmem:[%s1074_s5 + $0xa8] sm:$0xf] }
  0x23   : > { %v256_v22 = vld [vmem:[%s1074_s5 + $0xb0] sm:$0xf]  ;;  %253 = vst [vmem:[%s1078_s6 + $0x50] sm:$0xf] %v252_v20  ;;  %255 = vst [vmem:[%s1078_s6 + $0x54] sm:$0xf] %v254_v21 }
  0x24   : > { %257 = vst [vmem:[%s1078_s6 + $0x58] sm:$0xf] %v256_v22  ;;  %v258_v23 = vld [vmem:[%s1074_s5 + $0xb8] sm:$0xf]  ;;  %v260_v24 = vld [vmem:[%s1074_s5 + $0xc0] sm:$0xf] }
  0x25   : > { %v262_v25 = vld [vmem:[%s1074_s5 + $0xc8] sm:$0xf]  ;;  %259 = vst [vmem:[%s1078_s6 + $0x5c] sm:$0xf] %v258_v23  ;;  %261 = vst [vmem:[%s1078_s6 + $0x60] sm:$0xf] %v260_v24 }
  0x26   : > { %263 = vst [vmem:[%s1078_s6 + $0x64] sm:$0xf] %v262_v25  ;;  %v264_v26 = vld [vmem:[%s1074_s5 + $0xd0] sm:$0xf]  ;;  %v266_v27 = vld [vmem:[%s1074_s5 + $0xd8] sm:$0xf] }
  0x27   : > { %v268_v28 = vld [vmem:[%s1074_s5 + $0xe0] sm:$0xf]  ;;  %265 = vst [vmem:[%s1078_s6 + $0x68] sm:$0xf] %v264_v26  ;;  %267 = vst [vmem:[%s1078_s6 + $0x6c] sm:$0xf] %v266_v27 }
  0x28   : > { %269 = vst [vmem:[%s1078_s6 + $0x70] sm:$0xf] %v268_v28  ;;  %v270_v29 = vld [vmem:[%s1074_s5 + $0xe8] sm:$0xf]  ;;  %v272_v30 = vld [vmem:[%s1074_s5 + $0xf0] sm:$0xf] }
  0x29   : > { %v274_v31 = vld [vmem:[%s1074_s5 + $0xf8] sm:$0xf]  ;;  %271 = vst [vmem:[%s1078_s6 + $0x74] sm:$0xf] %v270_v29  ;;  %273 = vst [vmem:[%s1078_s6 + $0x78] sm:$0xf] %v272_v30 }
  0x2a   : > { %275 = vst [vmem:[%s1078_s6 + $0x7c] sm:$0xf] %v274_v31 }
  0x2b PF: > { %p855_p8 = scmp.ge.s32.totalorder %s999_s19, 1  ;;  %p361_p9 = scmp.lt.s32.totalorder %s999_s19, 3 }
  0x2d   : > { %p362_p10 = pnand %p855_p8, %p361_p9 }
  0x2e   : > { %s368_s7 = sand.u32 (!%p362_p10), 1, %s983_s15   ;;  %v960_v32 = vld [vmem:[%s1202_s0 + $0x4] ss:$8 sps:$4 sm:$0xff] (!%p362_p10)   ;;  %v958_v49 = vld [vmem:[%s1202_s0] ss:$8 sps:$4 sm:$0xff] (!%p362_p10)   ;;  %p422_p11 = scmp.lt.s32.totalorder (!%p362_p10), %s991_s17, 1 }
  0x2f   : > { %365 = sbr.rel (%p362_p10) target bundleno = 316 (0x13c), region = 65  ;;  %s856_s8 = sshll.u32 (!%p362_p10), %s368_s7, 7  ;;  %607 = vmatprep.mubr.bf16.mxu0 (!%p362_p10), %v960_v32 }
  0x30   : > { %s1150_s11 = scalar_lea.vmem (!%p362_p10), [#allocation2], %s856_s8  ;;  %s857_s14 = sshll.u32 (!%p362_p10), %s368_s7, 4 }
  0x31   : > { %v942_v33 = vld [vmem:[%s1150_s11 + $0x40] sm:$0xff] (!%p362_p10)   ;;  %v944_v35 = vld [vmem:[%s1150_s11 + $0x48] sm:$0xff] (!%p362_p10)   ;;  %v946_v37 = vld [vmem:[%s1150_s11 + $0x50] sm:$0xff] (!%p362_p10)   ;;  %s393_s21 = scalar_lea.vmem (!%p362_p10), [#allocation3], %s857_s14 }
  0x32   : > { %v943_v34 = vld [vmem:[%s1150_s11] sm:$0xff] (!%p362_p10)   ;;  %880 = vmatprep.subr.bf16.mxu0 (!%p362_p10), %v942_v33  ;;  %v945_v36 = vld [vmem:[%s1150_s11 + $0x8] sm:$0xff] (!%p362_p10)   ;;  %v947_v38 = vld [vmem:[%s1150_s11 + $0x10] sm:$0xff] (!%p362_p10)  }
  0x33   : > { %881 = vmatpush3.bf16.msra.mxu0 (!%p362_p10), %v943_v34  ;;  %v948_v39 = vld [vmem:[%s1150_s11 + $0x58] sm:$0xff] (!%p362_p10)   ;;  %v950_v41 = vld [vmem:[%s1150_s11 + $0x60] sm:$0xff] (!%p362_p10)   ;;  %v952_v43 = vld [vmem:[%s1150_s11 + $0x68] sm:$0xff] (!%p362_p10)  }
  0x34   : > { %882 = vmatprep.subr.bf16.mxu0 (!%p362_p10), %v944_v35  ;;  %v949_v40 = vld [vmem:[%s1150_s11 + $0x18] sm:$0xff] (!%p362_p10)   ;;  %v951_v42 = vld [vmem:[%s1150_s11 + $0x20] sm:$0xff] (!%p362_p10)   ;;  %v953_v44 = vld [vmem:[%s1150_s11 + $0x28] sm:$0xff] (!%p362_p10)  }
  0x35   : > { %v954_v45 = vld [vmem:[%s1150_s11 + $0x70] sm:$0xff] (!%p362_p10)   ;;  %v956_v47 = vld [vmem:[%s1150_s11 + $0x78] sm:$0xff] (!%p362_p10)  }
  0x36   : > { %v955_v46 = vld [vmem:[%s1150_s11 + $0x30] sm:$0xff]   ;;  %v957_v48 = vld [vmem:[%s1150_s11 + $0x38] sm:$0xff]   ;;  %s423_s15 = scalar_select %p422_p11, %s991_s17, 1 }
  0x37   : > { %883 = vmatpush3.bf16.msra.mxu0 %v945_v36  ;;  %s877_s30 = sshll.u32 (%p1061_p6), %s991_s17, 3 }
  0x38   : > { %884 = vmatprep.subr.bf16.mxu0 %v946_v37  ;;  %s426_s26 = scalar_lea.vmem %s1205_s3, %s423_s15  ;;  %s433_s29 = scalar_lea.vmem %s1206_s4, %s423_s15 }
  0x39   : > { %s661_s7 = scalar_lea.vmem (%p1061_p6), %s1204_s2, %s877_s30 }
  0x3b   : > { %885 = vmatpush3.bf16.msra.mxu0 %v947_v38 }
  0x3c   : > { %886 = vmatprep.subr.bf16.mxu0 %v948_v39 }
  0x3f   : > { %887 = vmatpush3.bf16.msra.mxu0 %v949_v40 }
  0x40   : > { %888 = vmatprep.subr.bf16.mxu0 %v950_v41 }
  0x43   : > { %889 = vmatpush3.bf16.msra.mxu0 %v951_v42 }
  0x44   : > { %890 = vmatprep.subr.bf16.mxu0 %v952_v43 }
  0x47   : > { %891 = vmatpush3.bf16.msra.mxu0 %v953_v44 }
  0x48   : > { %892 = vmatprep.subr.bf16.mxu0 %v954_v45 }
  0x4b   : > { %893 = vmatpush3.bf16.msra.mxu0 %v955_v46 }
  0x4c   : > { %894 = vmatprep.subr.bf16.mxu0 %v956_v47 }
  0x4f   : > { %895 = vmatpush3.bf16.msra.mxu0 %v957_v48 }
  0x52   : > { %608 = vmatmul.mubr.bf16.vlgmr.msra.gmra.mrb[0].mxu0 %v958_v49 }
 0x125   : > { %v896_v50 = vpop.f32.mrb[0].mxu0 }
 0x126   : > { %v897_v51 = vpop.f32.mrb[1].mxu0 }
 0x127   : > { %v898_v52 = vadd.f32 %v897_v51, %v896_v50  ;;  %v899_v53 = vpop.f32.mrb[2].mxu0 }
 0x128   : > { %v900_v54 = vpop.f32.mrb[3].mxu0 }
 0x129   : > { %616 = vst [vmem:[%s393_s21] sm:$0xff] %v898_v52  ;;  %v901_v55 = vadd.f32 %v900_v54, %v899_v53  ;;  %v626_v56 = vmul.f32 %v898_v52, %v898_v52 }
 0x12b   : > { %617 = vst [vmem:[%s393_s21 + $0x8] sm:$0xff] %v901_v55  ;;  %v618_v57 = vadd.f32 %v901_v55, %v898_v52  ;;  %v627_v58 = vmul.f32 %v901_v55, %v901_v55 }
 0x12d   : > { %v619_v59 = vrot.slane %v618_v57, 4  ;;  %v628_v60 = vadd.f32 %v627_v58, %v626_v56 }
 0x12f   : > { %v620_v61 = vadd.f32 %v619_v59, %v618_v57  ;;  %v629_v62 = vrot.slane %v628_v60, 4 }
 0x130   : > { %v691_v8 = vld [vmem:[%s393_s21] sm:$0xff] (%p1061_p6) }
 0x131   : > { %v621_v63 = vrot.slane %v620_v61, 2  ;;  %v630_v0 = vadd.f32 %v629_v62, %v628_v60  ;;  %692 = vst [vmem:[%s661_s7] sm:$0xff] (%p1061_p6), %v691_v8 }
 0x132   : > { %v693_v9 = vld [vmem:[%s393_s21 + $0x8] sm:$0xff] (%p1061_p6) }
 0x133   : > { %v622_v1 = vadd.f32 %v621_v63, %v620_v61  ;;  %v631_v2 = vrot.slane %v630_v0, 2  ;;  %694 = vst [vmem:[%s661_s7 + $0x10] sm:$0xff] (%p1061_p6), %v693_v9 }
 0x135   : > { %v623_v3 = vrot.slane %v622_v1, 1  ;;  %v632_v4 = vadd.f32 %v631_v2, %v630_v0  ;;  %656 = sbr.rel (!%p1061_p6) target bundleno = 316 (0x13c), region = 73 }
 0x137   : > { %v624_v5 = vadd.f32 %v623_v3, %v622_v1  ;;  %v633_v6 = vrot.slane %v632_v4, 1 }
 0x139   : > { %625 = vst [vmem:[%s426_s26] sm:$0x1] %v624_v5  ;;  %v634_v7 = vadd.f32 %v633_v6, %v632_v4 }
 0x13b   : > { %635 = vst [vmem:[%s433_s29] sm:$0x1] %v634_v7 }
 0x13c PF: > { %s15_s19 = sadd.s32 1, %s999_s19   ;;  %s1208_s15 = smov %s987_s16 }
 0x13d   : > { %p12_p12 = scmp.ge.s32.totalorder %s15_s19, 4   ;;  %s1209_s16 = smov %s1066_s25 }
 0x13e   : > { %s1210_s17 = smov %s995_s18  ;;  %s1211_s18 = smov %s1213_s20 }
 0x13f   :  { %14 = sbr.rel (!%p12_p12) target bundleno = 3 (0x3), region = 169 }

// kernel: _lambda_.74
= control target key start
LH: loop header
LB: loop body
LE: loop exit
PB: predicated region body
PF: predicated region fallthrough
CT: control target
= control target key end

     0   :  { %s1180_s15 = smov 0   ;;  %s1182_s16 = smov 0   ;;  %s1381_s0 = inlined_call_operand.vmem [shape: bf16[16,256], index: 0, kind: input, shape index: {}]   ;;  %s1382_s1 = inlined_call_operand.vmem [shape: bf16[256,512], index: 1, kind: input, shape index: {}]   ;;  %s1383_s2 = inlined_call_operand.vmem [shape: f32[16,512], index: 2, kind: output, shape index: {0}]   ;;  %s1384_s3 = inlined_call_operand.vmem [shape: f32[1,1,512], index: 3, kind: output, shape index: {1}]   ;;  %s1385_s4 = inlined_call_operand.vmem [shape: f32[1,1,512], index: 4, kind: output, shape index: {2}]  }
   0x1   :  { %s1184_s17 = smov 0   ;;  %s1186_s18 = smov 0  }
   0x2   :  { %s1188_s19 = smov 0  }
   0x3 LB: > { %s24_s20 = sadd.s32 1, %s1148_s18  ;;  %s968_s21 = sadd.s32 4294967295, %s1152_s19   ;;  %s1152_s19 = sphi %s1188_s19, %s15_s19   ;;  %s1148_s18 = sphi %s1186_s18, %s1390_s18   ;;  %s1144_s17 = sphi %s1184_s17, %s1389_s17   ;;  %s1140_s16 = sphi %s1182_s16, %s1388_s16   ;;  %s1136_s15 = sphi %s1180_s15, %s1387_s15  }
   0x4   : > { %p25_p0 = scmp.ge.s32.totalorder %s24_s20, 2  ;;  %p67_p1 = scmp.ne.s32.totalorder %s1140_s16, %s1136_s15 }
   0x5   : > { %p68_p2 = scmp.eq.s32.totalorder %s1152_s19, 0  ;;  %p99_p4 = scmp.eq.s32.totalorder %s968_s21, 1 }
   0x6   : > { %s1392_s20 = smov (%p25_p0, %s24_s20), 0  ;;  %s60_s23 = sadd.s32 1, %s1140_s16 }
   0x7   : > { %p69_p3 = por %p68_p2, %p67_p1  ;;  %s57_s22 = ssub.s32 %s1148_s18, %s1392_s20 }
   0x8   : > { %p58_p5 = scmp.eq.s32.totalorder %s57_s22, 0  ;;  %p1215_p6 = por %p99_p4, %p67_p1 }
   0x9   : > { %p972_p7 = scmp.ge.s32.totalorder %s1152_s19, 2 }
   0xa   : > { %s1220_s25 = scalar_select %p58_p5, %s1140_s16, %s60_s23  }
   0xb   : > { %187 = sbr.rel (%p972_p7) target bundleno = 38 (0x26), region = 20 }
  0x12   : > { %190 = sbr.rel (!%p69_p3) target bundleno = 38 (0x26), region = 24  ;;  %s192_s26 = sand.u32 (%p69_p3), 1, %s1140_s16  }
  0x13   : > { %s1020_s27 = sshll.u32 (%p69_p3), %s1148_s18, 3  ;;  %s973_s28 = sshll.u32 (%p69_p3), %s192_s26, 8 }
  0x14   : > { %s1228_s5 = scalar_lea.vmem (%p69_p3), %s1382_s1, %s1020_s27  ;;  %s1233_s6 = scalar_lea.vmem (%p69_p3), [#allocation2], %s973_s28 }
  0x15   : > { %v287_v0 = vld [vmem:[%s1228_s5] sm:$0xff] (%p69_p3)  ;;  %v289_v1 = vld [vmem:[%s1228_s5 + $0x10] sm:$0xff] (%p69_p3) }
  0x16   : > { %v291_v2 = vld [vmem:[%s1228_s5 + $0x20] sm:$0xff] (%p69_p3)  ;;  %288 = vst [vmem:[%s1233_s6] sm:$0xff] (%p69_p3), %v287_v0  ;;  %290 = vst [vmem:[%s1233_s6 + $0x8] sm:$0xff] (%p69_p3), %v289_v1  ;;  %v293_v3 = vld [vmem:[%s1228_s5 + $0x30] sm:$0xff] (%p69_p3) }
  0x17   : > { %292 = vst [vmem:[%s1233_s6 + $0x10] sm:$0xff] (%p69_p3), %v291_v2  ;;  %v295_v4 = vld [vmem:[%s1228_s5 + $0x40] sm:$0xff] (%p69_p3)  ;;  %v297_v5 = vld [vmem:[%s1228_s5 + $0x50] sm:$0xff] (%p69_p3)  ;;  %294 = vst [vmem:[%s1233_s6 + $0x18] sm:$0xff] (%p69_p3), %v293_v3 }
  0x18   : > { %296 = vst [vmem:[%s1233_s6 + $0x20] sm:$0xff] (%p69_p3), %v295_v4  ;;  %298 = vst [vmem:[%s1233_s6 + $0x28] sm:$0xff] (%p69_p3), %v297_v5  ;;  %v299_v6 = vld [vmem:[%s1228_s5 + $0x60] sm:$0xff] (%p69_p3)  ;;  %v301_v7 = vld [vmem:[%s1228_s5 + $0x70] sm:$0xff] (%p69_p3) }
  0x19   : > { %v303_v8 = vld [vmem:[%s1228_s5 + $0x80] sm:$0xff]  ;;  %300 = vst [vmem:[%s1233_s6 + $0x30] sm:$0xff] %v299_v6  ;;  %302 = vst [vmem:[%s1233_s6 + $0x38] sm:$0xff] %v301_v7  ;;  %v305_v9 = vld [vmem:[%s1228_s5 + $0x90] sm:$0xff] }
  0x1a   : > { %304 = vst [vmem:[%s1233_s6 + $0x40] sm:$0xff] %v303_v8  ;;  %v307_v10 = vld [vmem:[%s1228_s5 + $0xa0] sm:$0xff]  ;;  %v309_v11 = vld [vmem:[%s1228_s5 + $0xb0] sm:$0xff]  ;;  %306 = vst [vmem:[%s1233_s6 + $0x48] sm:$0xff] %v305_v9 }
  0x1b   : > { %308 = vst [vmem:[%s1233_s6 + $0x50] sm:$0xff] %v307_v10  ;;  %310 = vst [vmem:[%s1233_s6 + $0x58] sm:$0xff] %v309_v11  ;;  %v311_v12 = vld [vmem:[%s1228_s5 + $0xc0] sm:$0xff]  ;;  %v313_v13 = vld [vmem:[%s1228_s5 + $0xd0] sm:$0xff] }
  0x1c   : > { %v315_v14 = vld [vmem:[%s1228_s5 + $0xe0] sm:$0xff]  ;;  %312 = vst [vmem:[%s1233_s6 + $0x60] sm:$0xff] %v311_v12  ;;  %314 = vst [vmem:[%s1233_s6 + $0x68] sm:$0xff] %v313_v13  ;;  %v317_v15 = vld [vmem:[%s1228_s5 + $0xf0] sm:$0xff] }
  0x1d   : > { %316 = vst [vmem:[%s1233_s6 + $0x70] sm:$0xff] %v315_v14  ;;  %v319_v16 = vld [vmem:[%s1228_s5 + $0x100] sm:$0xff]  ;;  %v321_v17 = vld [vmem:[%s1228_s5 + $0x110] sm:$0xff]  ;;  %318 = vst [vmem:[%s1233_s6 + $0x78] sm:$0xff] %v317_v15 }
  0x1e   : > { %320 = vst [vmem:[%s1233_s6 + $0x80] sm:$0xff] %v319_v16  ;;  %322 = vst [vmem:[%s1233_s6 + $0x88] sm:$0xff] %v321_v17  ;;  %v323_v18 = vld [vmem:[%s1228_s5 + $0x120] sm:$0xff]  ;;  %v325_v19 = vld [vmem:[%s1228_s5 + $0x130] sm:$0xff] }
  0x1f   : > { %v327_v20 = vld [vmem:[%s1228_s5 + $0x140] sm:$0xff]  ;;  %324 = vst [vmem:[%s1233_s6 + $0x90] sm:$0xff] %v323_v18  ;;  %326 = vst [vmem:[%s1233_s6 + $0x98] sm:$0xff] %v325_v19  ;;  %v329_v21 = vld [vmem:[%s1228_s5 + $0x150] sm:$0xff] }
  0x20   : > { %328 = vst [vmem:[%s1233_s6 + $0xa0] sm:$0xff] %v327_v20  ;;  %v331_v22 = vld [vmem:[%s1228_s5 + $0x160] sm:$0xff]  ;;  %v333_v23 = vld [vmem:[%s1228_s5 + $0x170] sm:$0xff]  ;;  %330 = vst [vmem:[%s1233_s6 + $0xa8] sm:$0xff] %v329_v21 }
  0x21   : > { %332 = vst [vmem:[%s1233_s6 + $0xb0] sm:$0xff] %v331_v22  ;;  %334 = vst [vmem:[%s1233_s6 + $0xb8] sm:$0xff] %v333_v23  ;;  %v335_v24 = vld [vmem:[%s1228_s5 + $0x180] sm:$0xff]  ;;  %v337_v25 = vld [vmem:[%s1228_s5 + $0x190] sm:$0xff] }
  0x22   : > { %v339_v26 = vld [vmem:[%s1228_s5 + $0x1a0] sm:$0xff]  ;;  %336 = vst [vmem:[%s1233_s6 + $0xc0] sm:$0xff] %v335_v24  ;;  %338 = vst [vmem:[%s1233_s6 + $0xc8] sm:$0xff] %v337_v25  ;;  %v341_v27 = vld [vmem:[%s1228_s5 + $0x1b0] sm:$0xff] }
  0x23   : > { %340 = vst [vmem:[%s1233_s6 + $0xd0] sm:$0xff] %v339_v26  ;;  %v343_v28 = vld [vmem:[%s1228_s5 + $0x1c0] sm:$0xff]  ;;  %v345_v29 = vld [vmem:[%s1228_s5 + $0x1d0] sm:$0xff]  ;;  %342 = vst [vmem:[%s1233_s6 + $0xd8] sm:$0xff] %v341_v27 }
  0x24   : > { %344 = vst [vmem:[%s1233_s6 + $0xe0] sm:$0xff] %v343_v28  ;;  %346 = vst [vmem:[%s1233_s6 + $0xe8] sm:$0xff] %v345_v29  ;;  %v347_v30 = vld [vmem:[%s1228_s5 + $0x1e0] sm:$0xff]  ;;  %v349_v31 = vld [vmem:[%s1228_s5 + $0x1f0] sm:$0xff] }
  0x25   : > { %348 = vst [vmem:[%s1233_s6 + $0xf0] sm:$0xff] %v347_v30  ;;  %350 = vst [vmem:[%s1233_s6 + $0xf8] sm:$0xff] %v349_v31 }
  0x26 PF: > { %p976_p8 = scmp.ge.s32.totalorder %s1152_s19, 1  ;;  %p355_p9 = scmp.lt.s32.totalorder %s1152_s19, 3 }
  0x28   : > { %p356_p10 = pnand %p976_p8, %p355_p9 }
  0x29   : > { %s362_s7 = sand.u32 (!%p356_p10), 1, %s1136_s15   ;;  %v1113_v32 = vld [vmem:[%s1381_s0 + $0x4] ss:$8 sps:$4 sm:$0xff] (!%p356_p10)   ;;  %v1111_v1 = vld [vmem:[%s1381_s0] ss:$8 sps:$4 sm:$0xff] (!%p356_p10)   ;;  %v707_v21 = vlaneseq (!%p356_p10)  ;;  %s979_s15 = sshll.u32 (!%p356_p10), %s1144_s17, 1 }
  0x2a   : > { %359 = sbr.rel (%p356_p10) target bundleno = 347 (0x15b), region = 62  ;;  %s977_s8 = sshll.u32 (!%p356_p10), %s362_s7, 8  ;;  %672 = vmatprep.mubr.bf16.mxu0 (!%p356_p10), %v1113_v32  ;;  %v1154_v19 = vmov (!%p356_p10), 1966171168  }
  0x2b   : > { %s1304_s11 = scalar_lea.vmem (!%p356_p10), [#allocation2], %s977_s8  ;;  %s978_s14 = sshll.u32 (!%p356_p10), %s362_s7, 5  ;;  %v705_v20 = vunpack.c.l.s4 (!%p356_p10), %v1154_v19  ;;  %v708_v31 = vshrl.u32 (!%p356_p10), %v707_v21, 7  ;;  %vm721_vm0 = vcmp.lt.s32.totalorder (!%p356_p10), %v707_v21, 256 }
  0x2c   : > { %v1063_v33 = vld [vmem:[%s1304_s11 + $0x4] ss:$8 sps:$4 sm:$0xff] (!%p356_p10)   ;;  %v1065_v34 = vld [vmem:[%s1304_s11] ss:$8 sps:$4 sm:$0xff] (!%p356_p10)   ;;  %v1066_v35 = vld [vmem:[%s1304_s11 + $0x14] ss:$8 sps:$4 sm:$0xff] (!%p356_p10)  }
  0x2d   : > { %640 = vmatprep.subr.bf16.mxu0 (!%p356_p10), %v1063_v33  ;;  %v1068_v36 = vld [vmem:[%s1304_s11 + $0x10] ss:$8 sps:$4 sm:$0xff] (!%p356_p10)   ;;  %v1069_v37 = vld [vmem:[%s1304_s11 + $0x24] ss:$8 sps:$4 sm:$0xff] (!%p356_p10)   ;;  %v1071_v38 = vld [vmem:[%s1304_s11 + $0x20] ss:$8 sps:$4 sm:$0xff] (!%p356_p10)   ;;  %v706_v30 = vunpack.c.0.s8 (!%p356_p10), %v705_v20 }
  0x2e   : > { %641 = vmatpush1.bf16.msra.mxu0 (!%p356_p10), %v1065_v34  ;;  %v1072_v39 = vld [vmem:[%s1304_s11 + $0x34] ss:$8 sps:$4 sm:$0xff] (!%p356_p10)   ;;  %v1074_v40 = vld [vmem:[%s1304_s11 + $0x30] ss:$8 sps:$4 sm:$0xff] (!%p356_p10)   ;;  %v1075_v41 = vld [vmem:[%s1304_s11 + $0x44] ss:$8 sps:$4 sm:$0xff] (!%p356_p10)  }
  0x2f   : > { %642 = vmatprep.subr.bf16.mxu0 (!%p356_p10), %v1066_v35  ;;  %v1077_v42 = vld [vmem:[%s1304_s11 + $0x40] ss:$8 sps:$4 sm:$0xff] (!%p356_p10)   ;;  %v1078_v43 = vld [vmem:[%s1304_s11 + $0x54] ss:$8 sps:$4 sm:$0xff] (!%p356_p10)   ;;  %v1080_v44 = vld [vmem:[%s1304_s11 + $0x50] ss:$8 sps:$4 sm:$0xff] (!%p356_p10)  }
  0x30   : > { %v1081_v45 = vld [vmem:[%s1304_s11 + $0x64] ss:$8 sps:$4 sm:$0xff] (!%p356_p10)   ;;  %v1083_v46 = vld [vmem:[%s1304_s11 + $0x60] ss:$8 sps:$4 sm:$0xff] (!%p356_p10)   ;;  %v1084_v47 = vld [vmem:[%s1304_s11 + $0x74] ss:$8 sps:$4 sm:$0xff] (!%p356_p10)  }
  0x31   : > { %v1086_v48 = vld [vmem:[%s1304_s11 + $0x70] ss:$8 sps:$4 sm:$0xff]   ;;  %v1087_v49 = vld [vmem:[%s1304_s11 + $0x84] ss:$8 sps:$4 sm:$0xff]   ;;  %v1089_v50 = vld [vmem:[%s1304_s11 + $0x80] ss:$8 sps:$4 sm:$0xff]  }
  0x32   : > { %643 = vmatpush1.bf16.msra.mxu0 %v1068_v36  ;;  %v1090_v51 = vld [vmem:[%s1304_s11 + $0x94] ss:$8 sps:$4 sm:$0xff]   ;;  %v1092_v52 = vld [vmem:[%s1304_s11 + $0x90] ss:$8 sps:$4 sm:$0xff]   ;;  %v1093_v53 = vld [vmem:[%s1304_s11 + $0xa4] ss:$8 sps:$4 sm:$0xff]  }
  0x33   : > { %644 = vmatprep.subr.bf16.mxu0 %v1069_v37  ;;  %v1095_v54 = vld [vmem:[%s1304_s11 + $0xa0] ss:$8 sps:$4 sm:$0xff]   ;;  %v1096_v55 = vld [vmem:[%s1304_s11 + $0xb4] ss:$8 sps:$4 sm:$0xff]   ;;  %v1098_v56 = vld [vmem:[%s1304_s11 + $0xb0] ss:$8 sps:$4 sm:$0xff]  }
  0x34   : > { %v1099_v57 = vld [vmem:[%s1304_s11 + $0xc4] ss:$8 sps:$4 sm:$0xff]   ;;  %v1101_v58 = vld [vmem:[%s1304_s11 + $0xc0] ss:$8 sps:$4 sm:$0xff]   ;;  %v1102_v59 = vld [vmem:[%s1304_s11 + $0xd4] ss:$8 sps:$4 sm:$0xff]  }
  0x35   : > { %v1104_v60 = vld [vmem:[%s1304_s11 + $0xd0] ss:$8 sps:$4 sm:$0xff]   ;;  %v1105_v61 = vld [vmem:[%s1304_s11 + $0xe4] ss:$8 sps:$4 sm:$0xff]   ;;  %v1107_v62 = vld [vmem:[%s1304_s11 + $0xe0] ss:$8 sps:$4 sm:$0xff]  }
  0x36   : > { %645 = vmatpush1.bf16.msra.mxu0 %v1071_v38  ;;  %v1108_v63 = vld [vmem:[%s1304_s11 + $0xf4] ss:$8 sps:$4 sm:$0xff]   ;;  %v1110_v0 = vld [vmem:[%s1304_s11 + $0xf0] ss:$8 sps:$4 sm:$0xff]   ;;  %s1343_s21 = scalar_lea.vmem [#allocation3], %s978_s14  ;;  %p421_p11 = scmp.lt.s32.totalorder %s979_s15, 3 }
  0x37   : > { %646 = vmatprep.subr.bf16.mxu0 %v1072_v39  ;;  %s1021_s30 = sshll.u32 (%p1215_p6), %s1144_s17, 4 }
  0x38   : > { %s1394_s15 = smov (!%p421_p11, %s979_s15), 3  ;;  %s789_s7 = scalar_lea.vmem (%p1215_p6), %s1383_s2, %s1021_s30 }
  0x39   : > { %s425_s26 = scalar_lea.vmem %s1384_s3, %s1394_s15  ;;  %s434_s29 = scalar_lea.vmem %s1385_s4, %s1394_s15 }
  0x3a   : > { %647 = vmatpush1.bf16.msra.mxu0 %v1074_v40  ;;  %v709_v40 = vsub.s32 %v706_v30, %v708_v31 }
  0x3b   : > { %648 = vmatprep.subr.bf16.mxu0 %v1075_v41 }
  0x3e   : > { %649 = vmatpush1.bf16.msra.mxu0 %v1077_v42 }
  0x3f   : > { %650 = vmatprep.subr.bf16.mxu0 %v1078_v43 }
  0x42   : > { %651 = vmatpush1.bf16.msra.mxu0 %v1080_v44 }
  0x43   : > { %652 = vmatprep.subr.bf16.mxu0 %v1081_v45 }
  0x46   : > { %653 = vmatpush1.bf16.msra.mxu0 %v1083_v46 }
  0x47   : > { %654 = vmatprep.subr.bf16.mxu0 %v1084_v47 }
  0x4a   : > { %655 = vmatpush1.bf16.msra.mxu0 %v1086_v48 }
  0x4b   : > { %656 = vmatprep.subr.bf16.mxu0 %v1087_v49 }
  0x4e   : > { %657 = vmatpush1.bf16.msra.mxu0 %v1089_v50 }
  0x4f   : > { %658 = vmatprep.subr.bf16.mxu0 %v1090_v51 }
  0x52   : > { %659 = vmatpush1.bf16.msra.mxu0 %v1092_v52 }
  0x53   : > { %660 = vmatprep.subr.bf16.mxu0 %v1093_v53 }
  0x56   : > { %661 = vmatpush1.bf16.msra.mxu0 %v1095_v54 }
  0x57   : > { %662 = vmatprep.subr.bf16.mxu0 %v1096_v55 }
  0x5a   : > { %663 = vmatpush1.bf16.msra.mxu0 %v1098_v56 }
  0x5b   : > { %664 = vmatprep.subr.bf16.mxu0 %v1099_v57 }
  0x5e   : > { %665 = vmatpush1.bf16.msra.mxu0 %v1101_v58 }
  0x5f   : > { %666 = vmatprep.subr.bf16.mxu0 %v1102_v59 }
  0x62   : > { %667 = vmatpush1.bf16.msra.mxu0 %v1104_v60 }
  0x63   : > { %668 = vmatprep.subr.bf16.mxu0 %v1105_v61 }
  0x66   : > { %669 = vmatpush1.bf16.msra.mxu0 %v1107_v62 }
  0x67   : > { %670 = vmatprep.subr.bf16.mxu0 %v1108_v63 }
  0x6a   : > { %671 = vmatpush1.bf16.msra.mxu0 %v1110_v0 }
  0x6d   : > { %673 = vmatmul.mubr.bf16.vlgmr.msra.gmra.mrb[0].mxu0 %v1111_v1 }
 0x140   : > { %v674_v2 = vpop.f32.mrb[0].mxu0 }
 0x141   : > { %683 = vst [vmem:[%s1343_s21] sm:$0xff] %v674_v2  ;;  %v676_v3 = vpop.f32.mrb[1].mxu0  ;;  %v724_v5 = vmul.f32 %v674_v2, %v674_v2 }
 0x142   : > { %684 = vst [vmem:[%s1343_s21 + $0x8] sm:$0xff] %v676_v3  ;;  %v678_v4 = vpop.f32.mrb[2].mxu0  ;;  %v725_v9 = vmul.f32 %v676_v3, %v676_v3 }
 0x143   : > { %685 = vst [vmem:[%s1343_s21 + $0x10] sm:$0xff] %v678_v4  ;;  %v687_v6 = vadd.f32 %v678_v4, %v674_v2  ;;  %v726_v7 = vmul.f32 %v678_v4, %v678_v4  ;;  %v680_v8 = vpop.f32.mrb[3].mxu0 }
 0x144   : > { %686 = vst [vmem:[%s1343_s21 + $0x18] sm:$0xff] %v680_v8  ;;  %v694_v10 = vadd.f32 %v680_v8, %v676_v3  ;;  %v727_v11 = vmul.f32 %v680_v8, %v680_v8 }
 0x145   : > { %v688_v12 = vrot.slane %v687_v6, 4  ;;  %v728_v13 = vadd.f32 %v726_v7, %v724_v5 }
 0x146   : > { %v695_v14 = vrot.slane %v694_v10, 4  ;;  %v735_v15 = vadd.f32 %v727_v11, %v725_v9 }
 0x147   : > { %v689_v16 = vadd.f32 %v688_v12, %v687_v6  ;;  %v729_v17 = vrot.slane %v728_v13, 4 }
 0x148   : > { %v696_v18 = vadd.f32 %v695_v14, %v694_v10  ;;  %v736_v22 = vrot.slane %v735_v15, 4  ;;  %v802_v50 = vld [vmem:[%s1343_s21] sm:$0xff] (%p1215_p6) }
 0x149   : > { %v690_v23 = vrot.slane %v689_v16, 2  ;;  %v730_v24 = vadd.f32 %v729_v17, %v728_v13  ;;  %v804_v51 = vld [vmem:[%s1343_s21 + $0x8] sm:$0xff] (%p1215_p6)  ;;  %803 = vst [vmem:[%s789_s7] sm:$0xff] (%p1215_p6), %v802_v50 }
 0x14a   : > { %v697_v25 = vrot.slane %v696_v18, 2  ;;  %v737_v26 = vadd.f32 %v736_v22, %v735_v15  ;;  %v806_v52 = vld [vmem:[%s1343_s21 + $0x10] sm:$0xff] (%p1215_p6)  ;;  %805 = vst [vmem:[%s789_s7 + $0x8] sm:$0xff] (%p1215_p6), %v804_v51 }
 0x14b   : > { %v691_v27 = vadd.f32 %v690_v23, %v689_v16  ;;  %v731_v28 = vrot.slane %v730_v24, 2  ;;  %v808_v53 = vld [vmem:[%s1343_s21 + $0x18] sm:$0xff] (%p1215_p6)  ;;  %807 = vst [vmem:[%s789_s7 + $0x20] sm:$0xff] (%p1215_p6), %v806_v52 }
 0x14c   : > { %v698_v29 = vadd.f32 %v697_v25, %v696_v18  ;;  %v738_v32 = vrot.slane %v737_v26, 2  ;;  %809 = vst [vmem:[%s789_s7 + $0x28] sm:$0xff] (%p1215_p6), %v808_v53 }
 0x14d   : > { %v692_v33 = vrot.slane %v691_v27, 1  ;;  %v732_v34 = vadd.f32 %v731_v28, %v730_v24 }
 0x14e   : > { %v699_v35 = vrot.slane %v698_v29, 1  ;;  %v739_v36 = vadd.f32 %v738_v32, %v737_v26 }
 0x14f   : > { %v693_v37 = vadd.f32 %v692_v33, %v691_v27  ;;  %v733_v38 = vrot.slane %v732_v34, 1 }
 0x150   : > { %v700_v39 = vadd.f32 %v699_v35, %v698_v29  ;;  %v740_v41 = vrot.slane %v739_v36, 1 }
 0x151   : > { %v734_v42 = vadd.f32 %v733_v38, %v732_v34 }
 0x152   : > { %v703_v43 = vcombine.low %v693_v37, %v700_v39  ;;  %v741_v44 = vadd.f32 %v740_v41, %v739_v36 }
 0x154   : > { %v710_v45 = vrot.slane %v703_v43, %v709_v40  ;;  %v744_v46 = vcombine.low %v734_v42, %v741_v44  ;;  %783 = sbr.rel (!%p1215_p6) target bundleno = 347 (0x15b), region = 70 }
 0x156   : > { %v717_v47 = vrot.slane %v710_v45, %v709_v40  ;;  %v751_v48 = vrot.slane %v744_v46, %v709_v40 }
 0x158   : > { %723 = vst.msk [vmem:[%s425_s26] sm:$0x3] %vm721_vm0, %v717_v47  ;;  %v758_v49 = vrot.slane %v751_v48, %v709_v40 }
 0x15a   : > { %760 = vst.msk [vmem:[%s434_s29] sm:$0x3] %vm721_vm0, %v758_v49 }
 0x15b PF: > { %s15_s19 = sadd.s32 1, %s1152_s19   ;;  %s1387_s15 = smov %s1140_s16 }
 0x15c   : > { %p12_p12 = scmp.ge.s32.totalorder %s15_s19, 4   ;;  %s1388_s16 = smov %s1220_s25 }
 0x15d   : > { %s1389_s17 = smov %s1148_s18  ;;  %s1390_s18 = smov %s1392_s20 }
 0x15e   :  { %14 = sbr.rel (!%p12_p12) target bundleno = 3 (0x3), region = 151 }

// kernel: _lambda_.71
= control target key start
LH: loop header
LB: loop body
LE: loop exit
PB: predicated region body
PF: predicated region fallthrough
CT: control target
= control target key end

     0   :  { %s1991_s0 = inlined_call_operand.vmem [shape: bf16[16,2304], index: 0, kind: input, shape index: {}]   ;;  %s1992_s1 = inlined_call_operand.vmem [shape: bf16[2304,512], index: 1, kind: input, shape index: {}]   ;;  %s1993_s2 = inlined_call_operand.vmem [shape: f32[16,512], index: 2, kind: output, shape index: {0}]   ;;  %s1994_s3 = inlined_call_operand.vmem [shape: f32[1,1,512], index: 3, kind: output, shape index: {1}]   ;;  %s1995_s4 = inlined_call_operand.vmem [shape: f32[1,1,512], index: 4, kind: output, shape index: {2}]  }
   0x1   :  { %1998 = sst [smem:[#allocation8_spill]] %s1991_s0 }
   0x2   :  { %1999 = sst [smem:[#allocation9_spill]] %s1992_s1 }
   0x3   :  { %s1645_s15 = smov 0   ;;  %s1647_s16 = smov 0  }
   0x4   :  { %s1649_s17 = smov 0   ;;  %s1651_s18 = smov 0  }
   0x5   :  { %s1653_s19 = smov 0   ;;  %s1655_s20 = smov 0  }
   0x6   :  { %s1657_s21 = smov 0   ;;  %s1659_s22 = smov 0  }
   0x7   :  { %s1661_s23 = smov 0   ;;  %s1663_s24 = smov 0  }
   0x8   :  { %s1665_s25 = smov 0  }
   0x9 LB: > { %s1277_s26 = sadd.s32 4294967295, %s1615_s25   ;;  %s27_s27 = sadd.s32 1, %s1607_s23  ;;  %s1615_s25 = sphi %s1665_s25, %s15_s25   ;;  %s1611_s24 = sphi %s1663_s24, %s2018_s24   ;;  %s1607_s23 = sphi %s1661_s23, %s2017_s23   ;;  %s1603_s22 = sphi %s1659_s22, %s2016_s22   ;;  %s1599_s21 = sphi %s1657_s21, %s2015_s21   ;;  %s1595_s20 = sphi %s1655_s20, %s2014_s20   ;;  %s1591_s19 = sphi %s1653_s19, %s2013_s19   ;;  %s1587_s18 = sphi %s1651_s18, %s2012_s18   ;;  %s1583_s17 = sphi %s1649_s17, %s2011_s17   ;;  %s1579_s16 = sphi %s1647_s16, %s2010_s16   ;;  %s1575_s15 = sphi %s1645_s15, %s2009_s15  }
   0xa   : > { %p28_p0 = scmp.ge.s32.totalorder %s27_s27, 6  ;;  %s30_s28 = sadd.s32 1, %s1611_s24 }
   0xb   : > { %s43_s29 = sadd.s32 1, %s1595_s20  ;;  %p50_p1 = scmp.ne.s32.totalorder %s1595_s20, %s1591_s19 }
   0xc   : > { %s2020_s27 = smov (%p28_p0, %s27_s27), 0  ;;  %s2022_s28 = smov (!%p28_p0, %s30_s28), %s1611_s24 }
   0xd   : > { %2000 = sst [smem:[#allocation6_spill]] %s2020_s27  ;;  %s39_s30 = ssub.s32 %s1607_s23, %s2020_s27 }
   0xe   : > { %p51_p2 = scmp.eq.s32.totalorder %s1615_s25, 0  ;;  %p32_p3 = scmp.ge.s32.totalorder %s2022_s28, 2 }
   0xf   : > { %p41_p4 = scmp.eq.s32.totalorder %s39_s30, 0  ;;  %s71_s6 = sadd.s32 1, %s1587_s18 }
  0x10   : > { %p1712_p5 = por %p51_p2, %p50_p1  ;;  %s2024_s28 = smov (%p32_p3, %s2022_s28), 0 }
  0x11   : > { %2002 = sst [smem:[#allocation7_spill]] %s2024_s28  ;;  %s67_s8 = ssub.s32 %s1611_s24, %s2024_s28 }
  0x12   : > { %s1720_s7 = scalar_select %p41_p4, %s1595_s20, %s43_s29  }
  0x13   : > { %p78_p6 = scmp.ne.s32.totalorder %s1587_s18, %s1583_s17  ;;  %s68_s9 = sor.u32 %s67_s8, %s39_s30 }
  0x14   : > { %p97_p7 = scmp.eq.s32.totalorder %s67_s8, 0  ;;  %p69_p8 = scmp.eq.s32.totalorder %s68_s9, 0 }
  0x15   : > { %p1726_p9 = por %p78_p6, %p51_p2  ;;  %s99_s11 = sadd.s32 1, %s1579_s16 }
  0x16   : > { %p109_p10 = scmp.ne.s32.totalorder %s1579_s16, %s1575_s15  ;;  %p110_p11 = scmp.eq.s32.totalorder %s1277_s26, 11 }
  0x17   : > { %s1734_s12 = scalar_select %p69_p8, %s1587_s18, %s71_s6  }
  0x18   : > { %s1737_s13 = scalar_select %p97_p7, %s1579_s16, %s99_s11  }
  0x19   : > { %p1739_p12 = por %p110_p11, %p109_p10  ;;  %p1280_p13 = scmp.ge.s32.totalorder %s1615_s25, 12 }
  0x1b   : > { %188 = sbr.rel (%p1280_p13) target bundleno = 79 (0x4f), region = 16 }
  0x22   : > { %191 = sbr.rel (!%p1712_p5) target bundleno = 45 (0x2d), region = 20  ;;  %s193_s29 = sand.u32 (%p1712_p5), 1, %s1595_s20  }
  0x23   : > { %s1351_s30 = smul.u32 (%p1712_p5), 12, %s1607_s23  ;;  %s2005_s0 = sld [smem:[#allocation8_spill]] (%p1712_p5) }
  0x24   : > { %s1358_s8 = smul.u32 (%p1712_p5), 24, %s193_s29 }
  0x26   : > { %s195_s26 = scalar_lea.vmem (%p1712_p5), [#allocation3], %s1358_s8 }
  0x29   : > { %s201_s11 = scalar_lea.vmem %s2005_s0, %s1351_s30 }
  0x2a   : > { %v216_v0 = vld [vmem:[%s201_s11] sm:$0xff]  ;;  %v218_v1 = vld [vmem:[%s201_s11 + $0x48] sm:$0xff]  ;;  %v1284_v3 = vld [vmem:[%s201_s11 + $0x50] sm:$0xf] }
  0x2b   : > { %v1282_v2 = vld [vmem:[%s201_s11 + $0x8] sm:$0xf]  ;;  %217 = vst [vmem:[%s195_s26] sm:$0xff] %v216_v0  ;;  %219 = vst [vmem:[%s195_s26 + $0xc] sm:$0xff] %v218_v1 }
  0x2c   : > { %1283 = vst [vmem:[%s195_s26 + $0x8] sm:$0xf] %v1282_v2  ;;  %1285 = vst [vmem:[%s195_s26 + $0x14] sm:$0xf] %v1284_v3 }
  0x2d PF: > { %236 = sbr.rel (!%p1726_p9) target bundleno = 79 (0x4f), region = 46  ;;  %s238_s5 = sand.u32 (%p1726_p9), 1, %s1587_s18  }
  0x2e   : > { %s1359_s29 = smul.u32 (%p1726_p9), 384, %s238_s5  ;;  %s1286_s6 = sshll.u32 (%p1726_p9), %s1611_s24, 1 }
  0x2f   : > { %s1352_s30 = smul.u32 (%p1726_p9), 192, %s1607_s23  ;;  %s2006_s1 = sld [smem:[#allocation9_spill]] (%p1726_p9) }
  0x30   : > { %s1764_s10 = scalar_lea.vmem (%p1726_p9), [#allocation4], %s1359_s29 }
  0x31   : > { %s244_s9 = sadd.s32 (%p1726_p9), %s1352_s30, %s1286_s6 }
  0x32   : > { %s1288_s0 = sshll.u32 (%p1726_p9), %s244_s9, 2 }
  0x35   : > { %s1759_s27 = scalar_lea.vmem %s2006_s1, %s1288_s0 }
  0x36   : > { %v368_v4 = vld [vmem:[%s1759_s27] sm:$0xff]  ;;  %v370_v5 = vld [vmem:[%s1759_s27 + $0x10] sm:$0xff] }
  0x37   : > { %v372_v6 = vld [vmem:[%s1759_s27 + $0x20] sm:$0xff]  ;;  %369 = vst [vmem:[%s1764_s10] sm:$0xff] %v368_v4  ;;  %371 = vst [vmem:[%s1764_s10 + $0x8] sm:$0xff] %v370_v5  ;;  %v374_v7 = vld [vmem:[%s1759_s27 + $0x30] sm:$0xff] }
  0x38   : > { %373 = vst [vmem:[%s1764_s10 + $0x10] sm:$0xff] %v372_v6  ;;  %v376_v8 = vld [vmem:[%s1759_s27 + $0x40] sm:$0xff]  ;;  %v378_v9 = vld [vmem:[%s1759_s27 + $0x50] sm:$0xff]  ;;  %375 = vst [vmem:[%s1764_s10 + $0x18] sm:$0xff] %v374_v7 }
  0x39   : > { %377 = vst [vmem:[%s1764_s10 + $0x20] sm:$0xff] %v376_v8  ;;  %379 = vst [vmem:[%s1764_s10 + $0x28] sm:$0xff] %v378_v9  ;;  %v380_v10 = vld [vmem:[%s1759_s27 + $0x60] sm:$0xff]  ;;  %v382_v11 = vld [vmem:[%s1759_s27 + $0x70] sm:$0xff] }
  0x3a   : > { %v384_v12 = vld [vmem:[%s1759_s27 + $0x80] sm:$0xff]  ;;  %381 = vst [vmem:[%s1764_s10 + $0x30] sm:$0xff] %v380_v10  ;;  %383 = vst [vmem:[%s1764_s10 + $0x38] sm:$0xff] %v382_v11  ;;  %v386_v13 = vld [vmem:[%s1759_s27 + $0x90] sm:$0xff] }
  0x3b   : > { %385 = vst [vmem:[%s1764_s10 + $0x40] sm:$0xff] %v384_v12  ;;  %v388_v14 = vld [vmem:[%s1759_s27 + $0xa0] sm:$0xff]  ;;  %v390_v15 = vld [vmem:[%s1759_s27 + $0xb0] sm:$0xff]  ;;  %387 = vst [vmem:[%s1764_s10 + $0x48] sm:$0xff] %v386_v13 }
  0x3c   : > { %389 = vst [vmem:[%s1764_s10 + $0x50] sm:$0xff] %v388_v14  ;;  %391 = vst [vmem:[%s1764_s10 + $0x58] sm:$0xff] %v390_v15  ;;  %v392_v16 = vld [vmem:[%s1759_s27 + $0xc0] sm:$0xff]  ;;  %v394_v17 = vld [vmem:[%s1759_s27 + $0xd0] sm:$0xff] }
  0x3d   : > { %v396_v18 = vld [vmem:[%s1759_s27 + $0xe0] sm:$0xff]  ;;  %393 = vst [vmem:[%s1764_s10 + $0x60] sm:$0xff] %v392_v16  ;;  %395 = vst [vmem:[%s1764_s10 + $0x68] sm:$0xff] %v394_v17  ;;  %v398_v19 = vld [vmem:[%s1759_s27 + $0xf0] sm:$0xff] }
  0x3e   : > { %397 = vst [vmem:[%s1764_s10 + $0x70] sm:$0xff] %v396_v18  ;;  %v400_v20 = vld [vmem:[%s1759_s27 + $0x100] sm:$0xff]  ;;  %v402_v21 = vld [vmem:[%s1759_s27 + $0x110] sm:$0xff]  ;;  %399 = vst [vmem:[%s1764_s10 + $0x78] sm:$0xff] %v398_v19 }
  0x3f   : > { %401 = vst [vmem:[%s1764_s10 + $0x80] sm:$0xff] %v400_v20  ;;  %403 = vst [vmem:[%s1764_s10 + $0x88] sm:$0xff] %v402_v21  ;;  %v404_v22 = vld [vmem:[%s1759_s27 + $0x120] sm:$0xff]  ;;  %v406_v23 = vld [vmem:[%s1759_s27 + $0x130] sm:$0xff] }
  0x40   : > { %v408_v24 = vld [vmem:[%s1759_s27 + $0x140] sm:$0xff]  ;;  %405 = vst [vmem:[%s1764_s10 + $0x90] sm:$0xff] %v404_v22  ;;  %407 = vst [vmem:[%s1764_s10 + $0x98] sm:$0xff] %v406_v23  ;;  %v410_v25 = vld [vmem:[%s1759_s27 + $0x150] sm:$0xff] }
  0x41   : > { %409 = vst [vmem:[%s1764_s10 + $0xa0] sm:$0xff] %v408_v24  ;;  %v412_v26 = vld [vmem:[%s1759_s27 + $0x160] sm:$0xff]  ;;  %v414_v27 = vld [vmem:[%s1759_s27 + $0x170] sm:$0xff]  ;;  %411 = vst [vmem:[%s1764_s10 + $0xa8] sm:$0xff] %v410_v25 }
  0x42   : > { %413 = vst [vmem:[%s1764_s10 + $0xb0] sm:$0xff] %v412_v26  ;;  %415 = vst [vmem:[%s1764_s10 + $0xb8] sm:$0xff] %v414_v27  ;;  %v416_v28 = vld [vmem:[%s1759_s27 + $0x180] sm:$0xff]  ;;  %v418_v29 = vld [vmem:[%s1759_s27 + $0x190] sm:$0xff] }
  0x43   : > { %v420_v30 = vld [vmem:[%s1759_s27 + $0x1a0] sm:$0xff]  ;;  %417 = vst [vmem:[%s1764_s10 + $0xc0] sm:$0xff] %v416_v28  ;;  %419 = vst [vmem:[%s1764_s10 + $0xc8] sm:$0xff] %v418_v29  ;;  %v422_v31 = vld [vmem:[%s1759_s27 + $0x1b0] sm:$0xff] }
  0x44   : > { %421 = vst [vmem:[%s1764_s10 + $0xd0] sm:$0xff] %v420_v30  ;;  %v424_v32 = vld [vmem:[%s1759_s27 + $0x1c0] sm:$0xff]  ;;  %v426_v33 = vld [vmem:[%s1759_s27 + $0x1d0] sm:$0xff]  ;;  %423 = vst [vmem:[%s1764_s10 + $0xd8] sm:$0xff] %v422_v31 }
  0x45   : > { %425 = vst [vmem:[%s1764_s10 + $0xe0] sm:$0xff] %v424_v32  ;;  %427 = vst [vmem:[%s1764_s10 + $0xe8] sm:$0xff] %v426_v33  ;;  %v428_v34 = vld [vmem:[%s1759_s27 + $0x1e0] sm:$0xff]  ;;  %v430_v35 = vld [vmem:[%s1759_s27 + $0x1f0] sm:$0xff] }
  0x46   : > { %v432_v36 = vld [vmem:[%s1759_s27 + $0x200] sm:$0xff]  ;;  %429 = vst [vmem:[%s1764_s10 + $0xf0] sm:$0xff] %v428_v34  ;;  %431 = vst [vmem:[%s1764_s10 + $0xf8] sm:$0xff] %v430_v35  ;;  %v434_v37 = vld [vmem:[%s1759_s27 + $0x210] sm:$0xff] }
  0x47   : > { %433 = vst [vmem:[%s1764_s10 + $0x100] sm:$0xff] %v432_v36  ;;  %v436_v38 = vld [vmem:[%s1759_s27 + $0x220] sm:$0xff]  ;;  %v438_v39 = vld [vmem:[%s1759_s27 + $0x230] sm:$0xff]  ;;  %435 = vst [vmem:[%s1764_s10 + $0x108] sm:$0xff] %v434_v37 }
  0x48   : > { %437 = vst [vmem:[%s1764_s10 + $0x110] sm:$0xff] %v436_v38  ;;  %439 = vst [vmem:[%s1764_s10 + $0x118] sm:$0xff] %v438_v39  ;;  %v440_v40 = vld [vmem:[%s1759_s27 + $0x240] sm:$0xff]  ;;  %v442_v41 = vld [vmem:[%s1759_s27 + $0x250] sm:$0xff] }
  0x49   : > { %v444_v42 = vld [vmem:[%s1759_s27 + $0x260] sm:$0xff]  ;;  %441 = vst [vmem:[%s1764_s10 + $0x120] sm:$0xff] %v440_v40  ;;  %443 = vst [vmem:[%s1764_s10 + $0x128] sm:$0xff] %v442_v41  ;;  %v446_v43 = vld [vmem:[%s1759_s27 + $0x270] sm:$0xff] }
  0x4a   : > { %445 = vst [vmem:[%s1764_s10 + $0x130] sm:$0xff] %v444_v42  ;;  %v448_v44 = vld [vmem:[%s1759_s27 + $0x280] sm:$0xff]  ;;  %v450_v45 = vld [vmem:[%s1759_s27 + $0x290] sm:$0xff]  ;;  %447 = vst [vmem:[%s1764_s10 + $0x138] sm:$0xff] %v446_v43 }
  0x4b   : > { %449 = vst [vmem:[%s1764_s10 + $0x140] sm:$0xff] %v448_v44  ;;  %451 = vst [vmem:[%s1764_s10 + $0x148] sm:$0xff] %v450_v45  ;;  %v452_v46 = vld [vmem:[%s1759_s27 + $0x2a0] sm:$0xff]  ;;  %v454_v47 = vld [vmem:[%s1759_s27 + $0x2b0] sm:$0xff] }
  0x4c   : > { %v456_v48 = vld [vmem:[%s1759_s27 + $0x2c0] sm:$0xff]  ;;  %453 = vst [vmem:[%s1764_s10 + $0x150] sm:$0xff] %v452_v46  ;;  %455 = vst [vmem:[%s1764_s10 + $0x158] sm:$0xff] %v454_v47  ;;  %v458_v49 = vld [vmem:[%s1759_s27 + $0x2d0] sm:$0xff] }
  0x4d   : > { %457 = vst [vmem:[%s1764_s10 + $0x160] sm:$0xff] %v456_v48  ;;  %v460_v50 = vld [vmem:[%s1759_s27 + $0x2e0] sm:$0xff]  ;;  %v462_v51 = vld [vmem:[%s1759_s27 + $0x2f0] sm:$0xff]  ;;  %459 = vst [vmem:[%s1764_s10 + $0x168] sm:$0xff] %v458_v49 }
  0x4e   : > { %461 = vst [vmem:[%s1764_s10 + $0x170] sm:$0xff] %v460_v50  ;;  %463 = vst [vmem:[%s1764_s10 + $0x178] sm:$0xff] %v462_v51 }
  0x4f PF: > { %p1289_p0 = scmp.ge.s32.totalorder %s1615_s25, 1  ;;  %p468_p1 = scmp.lt.s32.totalorder %s1615_s25, 13 }
  0x51   : > { %p469_p2 = pnand %p1289_p0, %p468_p1 }
  0x52   : > { %s475_s0 = sand.u32 (!%p469_p2), 1, %s1591_s19   ;;  %s482_s28 = sand.u32 (!%p469_p2), 1, %s1583_s17  }
  0x53   : > { %472 = sbr.rel (%p469_p2) target bundleno = 419 (0x1a3), region = 84  ;;  %s503_s26 = sand.u32 (!%p469_p2), 1, %s1575_s15  }
  0x54   : > { %s1360_s11 = smul.u32 (!%p469_p2), 24, %s475_s0  ;;  %s1290_s5 = sshll.u32 (!%p469_p2), %s503_s26, 5 }
  0x55   : > { %s1361_s27 = smul.u32 (!%p469_p2), 384, %s482_s28  ;;  %s1291_s29 = sshll.u32 (!%p469_p2), %s1603_s22, 1 }
  0x56   : > { %p535_p3 = scmp.lt.s32.totalorder (!%p469_p2), %s1291_s29, 3  ;;  %s1875_s19 = scalar_lea.vmem (!%p469_p2), [#allocation3], %s1360_s11 }
  0x57   : > { %s1877_s17 = scalar_lea.vmem (!%p469_p2), [#allocation4], %s1361_s27  ;;  %s1879_s15 = scalar_lea.vmem (!%p469_p2), [#allocation5], %s1290_s5 }
  0x58   : > { %p1293_p4 = scmp.ne.s32.totalorder (!%p469_p2), %s1599_s21, 0 }
  0x5a   : > { %s2026_s29 = smov (!%p535_p3, %s1291_s29), 3  ;;  %554 = sbr.rel (%p1293_p4) target bundleno = 97 (0x61), region = 96 }
  0x5b   : > { %s539_s9 = scalar_lea.vmem %s1994_s3, %s2026_s29  ;;  %s548_s1 = scalar_lea.vmem %s1995_s4, %s2026_s29  ;;  %v1617_v52 = vmov (!%p1293_p4), 0.0  }
  0x5c   : > { %555 = vst [vmem:[#allocation2] sm:$0xff] (!%p1293_p4), %v1617_v52  ;;  %556 = vst [vmem:[#allocation2 + $0x8] sm:$0xff] (!%p1293_p4), %v1617_v52 }
  0x5d   : > { %557 = vst [vmem:[#allocation2 + $0x10] sm:$0xff] (!%p1293_p4), %v1617_v52  ;;  %558 = vst [vmem:[#allocation2 + $0x18] sm:$0xff] (!%p1293_p4), %v1617_v52 }
  0x61 PF: > { %v1453_v53 = vld [vmem:[%s1877_s17 + $0x4] ss:$8 sps:$4 sm:$0xff]   ;;  %v1455_v54 = vld [vmem:[%s1877_s17] ss:$8 sps:$4 sm:$0xff]   ;;  %v1618_v55 = vmov 0   ;;  %p1345_p5 = scmp.ne.s32.totalorder %s1599_s21, 5 }
  0x62   : > { %946 = vmatprep.mubr.bf16.mxu0 %v1618_v55  ;;  %871 = vmatprep.subr.bf16.mxu1 %v1453_v53  ;;  %v1456_v56 = vld [vmem:[%s1877_s17 + $0x14] ss:$8 sps:$4 sm:$0xff]   ;;  %v1458_v57 = vld [vmem:[%s1877_s17 + $0x10] ss:$8 sps:$4 sm:$0xff]   ;;  %v1459_v58 = vld [vmem:[%s1877_s17 + $0x24] ss:$8 sps:$4 sm:$0xff]  }
  0x63   : > { %872 = vmatpush1.bf16.msra.mxu1 %v1455_v54  ;;  %v1461_v59 = vld [vmem:[%s1877_s17 + $0x20] ss:$8 sps:$4 sm:$0xff]   ;;  %v1462_v60 = vld [vmem:[%s1877_s17 + $0x34] ss:$8 sps:$4 sm:$0xff]   ;;  %v1464_v61 = vld [vmem:[%s1877_s17 + $0x30] ss:$8 sps:$4 sm:$0xff]  }
  0x64   : > { %873 = vmatprep.subr.bf16.mxu1 %v1456_v56  ;;  %v1477_v62 = vld [vmem:[%s1877_s17 + $0x104] ss:$8 sps:$4 sm:$0xff]   ;;  %v1479_v63 = vld [vmem:[%s1877_s17 + $0x100] ss:$8 sps:$4 sm:$0xff]   ;;  %v1483_v1 = vld [vmem:[%s1877_s17 + $0x114] ss:$8 sps:$4 sm:$0xff]  }
  0x65   : > { %v1465_v0 = vld [vmem:[%s1877_s17 + $0x44] ss:$8 sps:$4 sm:$0xff]   ;;  %914 = vmatprep.subr.bf16.mxu0 %v1477_v62  ;;  %v1485_v2 = vld [vmem:[%s1877_s17 + $0x110] ss:$8 sps:$4 sm:$0xff]   ;;  %v1467_v3 = vld [vmem:[%s1877_s17 + $0x40] ss:$8 sps:$4 sm:$0xff]  }
  0x66   : > { %915 = vmatpush1.bf16.msra.mxu0 %v1479_v63  ;;  %v1468_v4 = vld [vmem:[%s1877_s17 + $0x54] ss:$8 sps:$4 sm:$0xff]   ;;  %v1489_v5 = vld [vmem:[%s1877_s17 + $0x124] ss:$8 sps:$4 sm:$0xff]   ;;  %v1491_v6 = vld [vmem:[%s1877_s17 + $0x120] ss:$8 sps:$4 sm:$0xff]  }
  0x67   : > { %874 = vmatpush1.bf16.msra.mxu1 %v1458_v57  ;;  %916 = vmatprep.subr.bf16.mxu0 %v1483_v1  ;;  %v1470_v7 = vld [vmem:[%s1877_s17 + $0x50] ss:$8 sps:$4 sm:$0xff]   ;;  %v1495_v8 = vld [vmem:[%s1877_s17 + $0x134] ss:$8 sps:$4 sm:$0xff]   ;;  %v1471_v9 = vld [vmem:[%s1877_s17 + $0x64] ss:$8 sps:$4 sm:$0xff]  }
  0x68   : > { %875 = vmatprep.subr.bf16.mxu1 %v1459_v58  ;;  %v1497_v10 = vld [vmem:[%s1877_s17 + $0x130] ss:$8 sps:$4 sm:$0xff]   ;;  %v1473_v11 = vld [vmem:[%s1877_s17 + $0x60] ss:$8 sps:$4 sm:$0xff]   ;;  %v1501_v12 = vld [vmem:[%s1877_s17 + $0x144] ss:$8 sps:$4 sm:$0xff]  }
  0x69   : > { %v1474_v13 = vld [vmem:[%s1877_s17 + $0x74] ss:$8 sps:$4 sm:$0xff]   ;;  %v1503_v14 = vld [vmem:[%s1877_s17 + $0x140] ss:$8 sps:$4 sm:$0xff]   ;;  %v1476_v15 = vld [vmem:[%s1877_s17 + $0x70] ss:$8 sps:$4 sm:$0xff]  }
  0x6a   : > { %917 = vmatpush1.bf16.msra.mxu0 %v1485_v2  ;;  %v1507_v16 = vld [vmem:[%s1877_s17 + $0x154] ss:$8 sps:$4 sm:$0xff]   ;;  %v1480_v17 = vld [vmem:[%s1877_s17 + $0x84] ss:$8 sps:$4 sm:$0xff]   ;;  %v1509_v18 = vld [vmem:[%s1877_s17 + $0x150] ss:$8 sps:$4 sm:$0xff]  }
  0x6b   : > { %876 = vmatpush1.bf16.msra.mxu1 %v1461_v59  ;;  %918 = vmatprep.subr.bf16.mxu0 %v1489_v5  ;;  %v1482_v19 = vld [vmem:[%s1877_s17 + $0x80] ss:$8 sps:$4 sm:$0xff]   ;;  %v1513_v20 = vld [vmem:[%s1877_s17 + $0x164] ss:$8 sps:$4 sm:$0xff]   ;;  %v1486_v21 = vld [vmem:[%s1877_s17 + $0x94] ss:$8 sps:$4 sm:$0xff]  }
  0x6c   : > { %877 = vmatprep.subr.bf16.mxu1 %v1462_v60  ;;  %v1515_v22 = vld [vmem:[%s1877_s17 + $0x160] ss:$8 sps:$4 sm:$0xff]   ;;  %v1488_v24 = vld [vmem:[%s1877_s17 + $0x90] ss:$8 sps:$4 sm:$0xff]   ;;  %v1519_v25 = vld [vmem:[%s1877_s17 + $0x174] ss:$8 sps:$4 sm:$0xff]  }
  0x6d   : > { %v1528_v23 = vld [vmem:[%s1875_s19 + $0x4] ss:$12 sps:$4 sm:$0xff]   ;;  %v1525_v30 = vld [vmem:[%s1875_s19 + $0x8] ss:$12 sps:$4 sm:$0xff]   ;;  %v1526_v40 = vld [vmem:[%s1875_s19] ss:$12 sps:$4 sm:$0xff]  }
  0x6e   : > { %919 = vmatpush1.bf16.msra.mxu0 %v1491_v6  ;;  %v1492_v26 = vld [vmem:[%s1877_s17 + $0xa4] ss:$8 sps:$4 sm:$0xff]   ;;  %903 = vmatprep.mubr.bf16.mxu1 %v1528_v23  ;;  %v1521_v27 = vld [vmem:[%s1877_s17 + $0x170] ss:$8 sps:$4 sm:$0xff]   ;;  %v1494_v28 = vld [vmem:[%s1877_s17 + $0xa0] ss:$8 sps:$4 sm:$0xff]  }
  0x6f   : > { %878 = vmatpush1.bf16.msra.mxu1 %v1464_v61  ;;  %920 = vmatprep.subr.bf16.mxu0 %v1495_v8  ;;  %v1498_v29 = vld [vmem:[%s1877_s17 + $0xb4] ss:$8 sps:$4 sm:$0xff]   ;;  %v1500_v31 = vld [vmem:[%s1877_s17 + $0xb0] ss:$8 sps:$4 sm:$0xff]   ;;  %v1504_v32 = vld [vmem:[%s1877_s17 + $0xc4] ss:$8 sps:$4 sm:$0xff]  }
  0x70   : > { %879 = vmatprep.subr.bf16.mxu1 %v1465_v0  ;;  %v1506_v33 = vld [vmem:[%s1877_s17 + $0xc0] ss:$8 sps:$4 sm:$0xff]   ;;  %v1510_v34 = vld [vmem:[%s1877_s17 + $0xd4] ss:$8 sps:$4 sm:$0xff]   ;;  %v1512_v35 = vld [vmem:[%s1877_s17 + $0xd0] ss:$8 sps:$4 sm:$0xff]  }
  0x71   : > { %v1516_v36 = vld [vmem:[%s1877_s17 + $0xe4] ss:$8 sps:$4 sm:$0xff]   ;;  %v1518_v37 = vld [vmem:[%s1877_s17 + $0xe0] ss:$8 sps:$4 sm:$0xff]   ;;  %v1522_v38 = vld [vmem:[%s1877_s17 + $0xf4] ss:$8 sps:$4 sm:$0xff]  }
  0x72   : > { %921 = vmatpush1.bf16.msra.mxu0 %v1497_v10  ;;  %v1524_v39 = vld [vmem:[%s1877_s17 + $0xf0] ss:$8 sps:$4 sm:$0xff]   ;;  %v561_v51 = vld [vmem:[#allocation2 + $0x10] sm:$0xff]  ;;  %v562_v55 = vld [vmem:[#allocation2 + $0x18] sm:$0xff] }
  0x73   : > { %880 = vmatpush1.bf16.msra.mxu1 %v1467_v3  ;;  %922 = vmatprep.subr.bf16.mxu0 %v1501_v12  ;;  %v559_v45 = vld [vmem:[#allocation2] sm:$0xff]  ;;  %v560_v48 = vld [vmem:[#allocation2 + $0x8] sm:$0xff] }
  0x74   : > { %881 = vmatprep.subr.bf16.mxu1 %v1468_v4 }
  0x76   : > { %923 = vmatpush1.bf16.msra.mxu0 %v1503_v14 }
  0x77   : > { %882 = vmatpush1.bf16.msra.mxu1 %v1470_v7  ;;  %924 = vmatprep.subr.bf16.mxu0 %v1507_v16 }
  0x78   : > { %883 = vmatprep.subr.bf16.mxu1 %v1471_v9 }
  0x7a   : > { %925 = vmatpush1.bf16.msra.mxu0 %v1509_v18 }
  0x7b   : > { %884 = vmatpush1.bf16.msra.mxu1 %v1473_v11  ;;  %926 = vmatprep.subr.bf16.mxu0 %v1513_v20 }
  0x7c   : > { %885 = vmatprep.subr.bf16.mxu1 %v1474_v13 }
  0x7e   : > { %927 = vmatpush1.bf16.msra.mxu0 %v1515_v22 }
  0x7f   : > { %886 = vmatpush1.bf16.msra.mxu1 %v1476_v15  ;;  %928 = vmatprep.subr.bf16.mxu0 %v1519_v25  ;;  %v1619_v15 = vmov (!%p1345_p5), 1966171168  }
  0x80   : > { %887 = vmatprep.subr.bf16.mxu1 %v1480_v17  ;;  %v995_v16 = vunpack.c.l.s4 (!%p1345_p5), %v1619_v15  ;;  %v997_v17 = vlaneseq (!%p1345_p5) }
  0x82   : > { %929 = vmatpush1.bf16.msra.mxu0 %v1521_v27  ;;  %v998_v27 = vshrl.u32 (!%p1345_p5), %v997_v17, 7  ;;  %vm1011_vm0 = vcmp.lt.s32.totalorder (!%p1345_p5), %v997_v17, 256 }
  0x83   : > { %888 = vmatpush1.bf16.msra.mxu1 %v1482_v19 }
  0x84   : > { %889 = vmatprep.subr.bf16.mxu1 %v1486_v21 }
  0x85   : > { %947 = vmatmul.mubr.bf16.vlgmr.msra.gmra.mrb[0].mxu0 %v1525_v30 }
  0x87   : > { %890 = vmatpush1.bf16.msra.mxu1 %v1488_v24 }
  0x88   : > { %891 = vmatprep.subr.bf16.mxu1 %v1492_v26  ;;  %v996_v26 = vunpack.c.0.s8 (!%p1345_p5), %v995_v16 }
  0x8b   : > { %892 = vmatpush1.bf16.msra.mxu1 %v1494_v28 }
  0x8c   : > { %893 = vmatprep.subr.bf16.mxu1 %v1498_v29 }
  0x8f   : > { %894 = vmatpush1.bf16.msra.mxu1 %v1500_v31 }
  0x90   : > { %895 = vmatprep.subr.bf16.mxu1 %v1504_v32 }
  0x93   : > { %896 = vmatpush1.bf16.msra.mxu1 %v1506_v33 }
  0x94   : > { %897 = vmatprep.subr.bf16.mxu1 %v1510_v34 }
  0x97   : > { %898 = vmatpush1.bf16.msra.mxu1 %v1512_v35  ;;  %v999_v35 = vsub.s32 (!%p1345_p5), %v996_v26, %v998_v27 }
  0x98   : > { %899 = vmatprep.subr.bf16.mxu1 %v1516_v36 }
  0x9b   : > { %900 = vmatpush1.bf16.msra.mxu1 %v1518_v37 }
  0x9c   : > { %901 = vmatprep.subr.bf16.mxu1 %v1522_v38 }
  0x9f   : > { %902 = vmatpush1.bf16.msra.mxu1 %v1524_v39 }
  0xa2   : > { %904 = vmatmul.mubr.bf16.vlgmr.msra.gmra.mrb[0].mxu1 %v1526_v40 }
 0x158   : > { %v948_v41 = vpop.f32.mrb[0].mxu0 }
 0x159   : > { %v950_v42 = vpop.f32.mrb[1].mxu0 }
 0x15a   : > { %v952_v43 = vpop.f32.mrb[2].mxu0 }
 0x15b   : > { %v954_v44 = vpop.f32.mrb[3].mxu0 }
 0x175   : > { %v905_v46 = vpop.f32.mrb[0].mxu1 }
 0x176   : > { %v949_v47 = vadd.f32 %v948_v41, %v905_v46  ;;  %v907_v49 = vpop.f32.mrb[1].mxu1 }
 0x177   : > { %v951_v50 = vadd.f32 %v950_v42, %v907_v49  ;;  %v909_v52 = vpop.f32.mrb[2].mxu1  ;;  %968 = sbr.rel (%p1345_p5) target bundleno = 412 (0x19c), region = 100 }
 0x178   : > { %v957_v53 = vadd.f32 %v949_v47, %v559_v45  ;;  %v953_v54 = vadd.f32 %v952_v43, %v909_v52  ;;  %v911_v56 = vpop.f32.mrb[3].mxu1 }
 0x179   : > { %v958_v57 = vadd.f32 %v951_v50, %v560_v48  ;;  %v955_v58 = vadd.f32 %v954_v44, %v911_v56 }
 0x17a   : > { %961 = vst [vmem:[#allocation2] sm:$0xff] %v957_v53  ;;  %v959_v59 = vadd.f32 %v953_v54, %v561_v51 }
 0x17b   : > { %962 = vst [vmem:[#allocation2 + $0x8] sm:$0xff] %v958_v57  ;;  %v960_v60 = vadd.f32 %v955_v58, %v562_v55 }
 0x17c   : > { %963 = vst [vmem:[#allocation2 + $0x10] sm:$0xff] %v959_v59 }
 0x17d   : > { %964 = vst [vmem:[#allocation2 + $0x18] sm:$0xff] %v960_v60 }
 0x181   : > { %v969_v61 = vld [vmem:[#allocation2] sm:$0xff] }
 0x182   : > { %v970_v62 = vld [vmem:[#allocation2 + $0x8] sm:$0xff]  ;;  %973 = vst [vmem:[%s1879_s15] sm:$0xff] %v969_v61  ;;  %v1014_v0 = vmul.f32 %v969_v61, %v969_v61 }
 0x183   : > { %v971_v63 = vld [vmem:[#allocation2 + $0x10] sm:$0xff]  ;;  %974 = vst [vmem:[%s1879_s15 + $0x8] sm:$0xff] %v970_v62  ;;  %v1015_v1 = vmul.f32 %v970_v62, %v970_v62 }
 0x184   : > { %975 = vst [vmem:[%s1879_s15 + $0x10] sm:$0xff] %v971_v63  ;;  %v977_v2 = vadd.f32 %v971_v63, %v969_v61  ;;  %v1016_v3 = vmul.f32 %v971_v63, %v971_v63  ;;  %v972_v4 = vld [vmem:[#allocation2 + $0x18] sm:$0xff] }
 0x185   : > { %976 = vst [vmem:[%s1879_s15 + $0x18] sm:$0xff] %v972_v4  ;;  %v984_v5 = vadd.f32 %v972_v4, %v970_v62  ;;  %v1017_v6 = vmul.f32 %v972_v4, %v972_v4 }
 0x186   : > { %v978_v7 = vrot.slane %v977_v2, 4  ;;  %v1018_v8 = vadd.f32 %v1016_v3, %v1014_v0 }
 0x187   : > { %v985_v9 = vrot.slane %v984_v5, 4  ;;  %v1025_v10 = vadd.f32 %v1017_v6, %v1015_v1 }
 0x188   : > { %v979_v11 = vadd.f32 %v978_v7, %v977_v2  ;;  %v1019_v12 = vrot.slane %v1018_v8, 4 }
 0x189   : > { %v986_v13 = vadd.f32 %v985_v9, %v984_v5  ;;  %v1026_v14 = vrot.slane %v1025_v10, 4 }
 0x18a   : > { %v980_v18 = vrot.slane %v979_v11, 2  ;;  %v1020_v19 = vadd.f32 %v1019_v12, %v1018_v8 }
 0x18b   : > { %v987_v20 = vrot.slane %v986_v13, 2  ;;  %v1027_v21 = vadd.f32 %v1026_v14, %v1025_v10 }
 0x18c   : > { %v981_v22 = vadd.f32 %v980_v18, %v979_v11  ;;  %v1021_v23 = vrot.slane %v1020_v19, 2 }
 0x18d   : > { %v988_v24 = vadd.f32 %v987_v20, %v986_v13  ;;  %v1028_v25 = vrot.slane %v1027_v21, 2 }
 0x18e   : > { %v982_v28 = vrot.slane %v981_v22, 1  ;;  %v1022_v29 = vadd.f32 %v1021_v23, %v1020_v19 }
 0x18f   : > { %v989_v30 = vrot.slane %v988_v24, 1  ;;  %v1029_v31 = vadd.f32 %v1028_v25, %v1027_v21 }
 0x190   : > { %v983_v32 = vadd.f32 %v982_v28, %v981_v22  ;;  %v1023_v33 = vrot.slane %v1022_v29, 1 }
 0x191   : > { %v990_v34 = vadd.f32 %v989_v30, %v988_v24  ;;  %v1030_v36 = vrot.slane %v1029_v31, 1 }
 0x192   : > { %v1024_v37 = vadd.f32 %v1023_v33, %v1022_v29 }
 0x193   : > { %v993_v38 = vcombine.low %v983_v32, %v990_v34  ;;  %v1031_v39 = vadd.f32 %v1030_v36, %v1029_v31 }
 0x195   : > { %v1000_v40 = vrot.slane %v993_v38, %v999_v35  ;;  %v1034_v41 = vcombine.low %v1024_v37, %v1031_v39 }
 0x197   : > { %v1007_v42 = vrot.slane %v1000_v40, %v999_v35  ;;  %v1041_v43 = vrot.slane %v1034_v41, %v999_v35 }
 0x199   : > { %1013 = vst.msk [vmem:[%s539_s9] sm:$0x3] %vm1011_vm0, %v1007_v42  ;;  %v1048_v44 = vrot.slane %v1041_v43, %v999_v35 }
 0x19b   : > { %1050 = vst.msk [vmem:[%s548_s1] sm:$0x3] %vm1011_vm0, %v1048_v44 }
 0x19c PF: > { %1073 = sbr.rel (!%p1739_p12) target bundleno = 419 (0x1a3), region = 104  ;;  %s1353_s26 = sshll.u32 (%p1739_p12), %s1603_s22, 4  ;;  %v1092_v45 = vld [vmem:[%s1879_s15] sm:$0xff] (%p1739_p12)  ;;  %v1094_v46 = vld [vmem:[%s1879_s15 + $0x8] sm:$0xff] (%p1739_p12)  ;;  %v1096_v47 = vld [vmem:[%s1879_s15 + $0x10] sm:$0xff] (%p1739_p12) }
 0x19d   : > { %s1079_s6 = scalar_lea.vmem (%p1739_p12), %s1993_s2, %s1353_s26  ;;  %v1098_v48 = vld [vmem:[%s1879_s15 + $0x18] sm:$0xff] (%p1739_p12) }
 0x19e   : > { %1093 = vst [vmem:[%s1079_s6] sm:$0xff] (%p1739_p12), %v1092_v45  ;;  %1095 = vst [vmem:[%s1079_s6 + $0x8] sm:$0xff] (%p1739_p12), %v1094_v46 }
 0x19f   : > { %1097 = vst [vmem:[%s1079_s6 + $0x20] sm:$0xff] (%p1739_p12), %v1096_v47  ;;  %1099 = vst [vmem:[%s1079_s6 + $0x28] sm:$0xff] (%p1739_p12), %v1098_v48 }
 0x1a3 PF: > { %s15_s25 = sadd.s32 1, %s1615_s25   ;;  %s2007_s1 = sld [smem:[#allocation6_spill]] }
 0x1a4   : > { %p12_p6 = scmp.ge.s32.totalorder %s15_s25, 14   ;;  %s2008_s14 = sld [smem:[#allocation7_spill]] }
 0x1a5   : > { %s2009_s15 = smov %s1579_s16  ;;  %s2010_s16 = smov %s1737_s13 }
 0x1a6   : > { %s2011_s17 = smov %s1587_s18  ;;  %s2012_s18 = smov %s1734_s12 }
 0x1a7   : > { %s2013_s19 = smov %s1595_s20  ;;  %s2014_s20 = smov %s1720_s7 }
 0x1a8   : > { %s2015_s21 = smov %s1607_s23  ;;  %s2016_s22 = smov %s1611_s24 }
 0x1a9   : > { %s2017_s23 = smov %s2007_s1  ;;  %14 = sbr.rel (!%p12_p6) target bundleno = 9 (0x9), region = 196 }
 0x1aa   : > { %s2018_s24 = smov %s2008_s14 }

// kernel: _lambda_.72
= control target key start
LH: loop header
LB: loop body
LE: loop exit
PB: predicated region body
PF: predicated region fallthrough
CT: control target
= control target key end

     0   :  { %v20_v0 = vlaneseq  ;;  %s144_s1 = inlined_call_operand.vmem [shape: f32[1,512], index: 1, kind: input, shape index: {}]   ;;  %s145_s2 = inlined_call_operand.vmem [shape: f32[1,512], index: 2, kind: input, shape index: {}]   ;;  %s146_s0 = inlined_call_operand.vmem [shape: f32[8,512], index: 0, kind: input, shape index: {}]   ;;  %s147_s3 = inlined_call_operand.vmem [shape: bf16[8,512], index: 3, kind: output, shape index: {}]  }
   0x1   :  { %v18_v2 = vld [vmem:[%s144_s1] sm:$0xf]  ;;  %v15_v9 = vld [vmem:[%s146_s0 + $0x8] sm:$0xff]  ;;  %v16_v14 = vld [vmem:[%s146_s0 + $0x10] sm:$0xff] }
   0x2   :  { %v21_v1 = vshrl.u32 %v20_v0, 7  ;;  %v44_v3 = vld [vmem:[%s145_s2] sm:$0xf]  ;;  %v17_v15 = vld [vmem:[%s146_s0 + $0x18] sm:$0xff] }
   0x3   :  { %v14_v8 = vld [vmem:[%s146_s0] sm:$0xff] }
   0x4   :  { %v22_v4 = vsub.s32 0, %v21_v1  ;;  %v26_v5 = vsub.s32 1, %v21_v1  ;;  %v30_v6 = vsub.s32 2, %v21_v1  ;;  %v34_v7 = vsub.s32 3, %v21_v1 }
   0x6   :  { %v23_v10 = vrot.slane %v18_v2, %v22_v4  ;;  %v27_v11 = vrot.slane %v18_v2, %v26_v5  ;;  %v49_v12 = vrot.slane %v44_v3, %v22_v4  ;;  %v53_v13 = vrot.slane %v44_v3, %v26_v5 }
   0x7   :  { %v31_v16 = vrot.slane %v18_v2, %v30_v6  ;;  %v35_v17 = vrot.slane %v18_v2, %v34_v7  ;;  %v57_v18 = vrot.slane %v44_v3, %v30_v6  ;;  %v61_v19 = vrot.slane %v44_v3, %v34_v7 }
   0x8   :  { %v40_v20 = vmul.f32 %v23_v10, %v14_v8  ;;  %v41_v21 = vmul.f32 %v27_v11, %v15_v9 }
   0x9   :  { %v42_v22 = vmul.f32 %v31_v16, %v16_v14  ;;  %v43_v23 = vmul.f32 %v35_v17, %v17_v15 }
   0xa   :  { %v66_v24 = vadd.f32 %v49_v12, %v40_v20  ;;  %v67_v25 = vadd.f32 %v53_v13, %v41_v21 }
   0xb   :  { %v68_v26 = vadd.f32 %v57_v18, %v42_v22  ;;  %v69_v27 = vadd.f32 %v61_v19, %v43_v23 }
   0xc   :  { %v70_v28 = vmax.f32 %v66_v24, 0.0  ;;  %v71_v29 = vmax.f32 %v67_v25, 0.0 }
   0xd   :  { %v72_v30 = vmax.f32 %v68_v26, 0.0  ;;  %v73_v31 = vmax.f32 %v69_v27, 0.0 }
   0xe   :  { %v98_v32 = vpack.c.bf16 %v71_v29, %v70_v28 }
   0xf   :  { %v99_v33 = vpack.c.bf16 %v73_v31, %v72_v30 }
  0x10   :  { %90 = vst [vmem:[%s147_s3] sm:$0xff] %v98_v32 }
  0x11   :  { %91 = vst [vmem:[%s147_s3 + $0x8] sm:$0xff] %v99_v33 }

// kernel: _lambda_.75
= control target key start
LH: loop header
LB: loop body
LE: loop exit
PB: predicated region body
PF: predicated region fallthrough
CT: control target
= control target key end

     0   :  { %v29_v0 = vlaneseq  ;;  %s246_s1 = inlined_call_operand.vmem [shape: f32[1,512], index: 1, kind: input, shape index: {}]   ;;  %s247_s2 = inlined_call_operand.vmem [shape: f32[1,512], index: 2, kind: input, shape index: {}]   ;;  %s248_s4 = inlined_call_operand.vmem [shape: f32[1,512], index: 4, kind: input, shape index: {}]   ;;  %s249_s5 = inlined_call_operand.vmem [shape: f32[1,512], index: 5, kind: input, shape index: {}]   ;;  %s250_s0 = inlined_call_operand.vmem [shape: f32[8,512], index: 0, kind: input, shape index: {}]   ;;  %s251_s3 = inlined_call_operand.vmem [shape: f32[8,512], index: 3, kind: input, shape index: {}]   ;;  %s252_s6 = inlined_call_operand.vmem [shape: bf16[8,512], index: 6, kind: output, shape index: {}]  }
   0x1   :  { %v27_v2 = vld [vmem:[%s246_s1] sm:$0xf]  ;;  %v24_v11 = vld [vmem:[%s250_s0 + $0x8] sm:$0xff]  ;;  %v25_v22 = vld [vmem:[%s250_s0 + $0x10] sm:$0xff] }
   0x2   :  { %v30_v1 = vshrl.u32 %v29_v0, 7  ;;  %v53_v3 = vld [vmem:[%s247_s2] sm:$0xf]  ;;  %v80_v17 = vld [vmem:[%s251_s3 + $0x8] sm:$0xff]  ;;  %v26_v23 = vld [vmem:[%s250_s0 + $0x18] sm:$0xff] }
   0x3   :  { %v83_v4 = vld [vmem:[%s248_s4] sm:$0xf]  ;;  %v81_v36 = vld [vmem:[%s251_s3 + $0x10] sm:$0xff]  ;;  %v82_v37 = vld [vmem:[%s251_s3 + $0x18] sm:$0xff] }
   0x4   :  { %v31_v5 = vsub.s32 0, %v30_v1  ;;  %v35_v6 = vsub.s32 1, %v30_v1  ;;  %v113_v7 = vld [vmem:[%s249_s5] sm:$0xf]  ;;  %v39_v8 = vsub.s32 2, %v30_v1  ;;  %v43_v9 = vsub.s32 3, %v30_v1 }
   0x5   :  { %v23_v10 = vld [vmem:[%s250_s0] sm:$0xff] }
   0x6   :  { %v32_v12 = vrot.slane %v27_v2, %v31_v5  ;;  %v36_v13 = vrot.slane %v27_v2, %v35_v6  ;;  %v58_v14 = vrot.slane %v53_v3, %v31_v5  ;;  %v62_v15 = vrot.slane %v53_v3, %v35_v6  ;;  %v79_v16 = vld [vmem:[%s251_s3] sm:$0xff] }
   0x7   :  { %v88_v18 = vrot.slane %v83_v4, %v31_v5  ;;  %v92_v19 = vrot.slane %v83_v4, %v35_v6  ;;  %v118_v20 = vrot.slane %v113_v7, %v31_v5  ;;  %v122_v21 = vrot.slane %v113_v7, %v35_v6 }
   0x8   :  { %v49_v24 = vmul.f32 %v32_v12, %v23_v10  ;;  %v50_v25 = vmul.f32 %v36_v13, %v24_v11  ;;  %v40_v26 = vrot.slane %v27_v2, %v39_v8  ;;  %v44_v27 = vrot.slane %v27_v2, %v43_v9 }
   0x9   :  { %v105_v28 = vmul.f32 %v88_v18, %v79_v16  ;;  %v106_v29 = vmul.f32 %v92_v19, %v80_v17  ;;  %v66_v30 = vrot.slane %v53_v3, %v39_v8  ;;  %v70_v31 = vrot.slane %v53_v3, %v43_v9 }
   0xa   :  { %v75_v32 = vadd.f32 %v58_v14, %v49_v24  ;;  %v76_v33 = vadd.f32 %v62_v15, %v50_v25  ;;  %v51_v34 = vmul.f32 %v40_v26, %v25_v22  ;;  %v52_v35 = vmul.f32 %v44_v27, %v26_v23 }
   0xb   :  { %v96_v38 = vrot.slane %v83_v4, %v39_v8  ;;  %v100_v39 = vrot.slane %v83_v4, %v43_v9  ;;  %v126_v46 = vrot.slane %v113_v7, %v39_v8  ;;  %v130_v47 = vrot.slane %v113_v7, %v43_v9 }
   0xc   :  { %v109_v40 = vadd.f32 %v105_v28, %v75_v32  ;;  %v110_v41 = vadd.f32 %v106_v29, %v76_v33  ;;  %v77_v42 = vadd.f32 %v66_v30, %v51_v34  ;;  %v78_v43 = vadd.f32 %v70_v31, %v52_v35 }
   0xd   :  { %v107_v44 = vmul.f32 %v96_v38, %v81_v36  ;;  %v108_v45 = vmul.f32 %v100_v39, %v82_v37 }
   0xe   :  { %v135_v48 = vadd.f32 %v118_v20, %v109_v40  ;;  %v136_v49 = vadd.f32 %v122_v21, %v110_v41 }
   0xf   :  { %v111_v50 = vadd.f32 %v107_v44, %v77_v42  ;;  %v112_v51 = vadd.f32 %v108_v45, %v78_v43 }
  0x10   :  { %v139_v52 = vmax.f32 %v135_v48, 0.0  ;;  %v140_v53 = vmax.f32 %v136_v49, 0.0 }
  0x11   :  { %v137_v54 = vadd.f32 %v126_v46, %v111_v50  ;;  %v138_v55 = vadd.f32 %v130_v47, %v112_v51 }
  0x12   :  { %v167_v56 = vpack.c.bf16 %v140_v53, %v139_v52 }
  0x13   :  { %v141_v57 = vmax.f32 %v137_v54, 0.0  ;;  %v142_v58 = vmax.f32 %v138_v55, 0.0 }
  0x14   :  { %159 = vst [vmem:[%s252_s6] sm:$0xff] %v167_v56 }
  0x15   :  { %v168_v59 = vpack.c.bf16 %v142_v58, %v141_v57 }
  0x17   :  { %160 = vst [vmem:[%s252_s6 + $0x8] sm:$0xff] %v168_v59 }

// kernel: _lambda_.73
= control target key start
LH: loop header
LB: loop body
LE: loop exit
PB: predicated region body
PF: predicated region fallthrough
CT: control target
= control target key end

     0   :  { %s2229_s0 = inlined_call_operand.vmem [shape: bf16[16,4608], index: 0, kind: input, shape index: {}]   ;;  %s2230_s1 = inlined_call_operand.vmem [shape: bf16[4608,512], index: 1, kind: input, shape index: {}]   ;;  %s2231_s2 = inlined_call_operand.vmem [shape: f32[16,512], index: 2, kind: output, shape index: {0}]   ;;  %s2232_s3 = inlined_call_operand.vmem [shape: f32[1,1,512], index: 3, kind: output, shape index: {1}]   ;;  %s2233_s4 = inlined_call_operand.vmem [shape: f32[1,1,512], index: 4, kind: output, shape index: {2}]  }
   0x1   :  { %2236 = sst [smem:[#allocation8_spill]] %s2229_s0 }
   0x2   :  { %2237 = sst [smem:[#allocation9_spill]] %s2230_s1 }
   0x3   :  { %s1834_s15 = smov 0   ;;  %s1836_s16 = smov 0  }
   0x4   :  { %s1838_s17 = smov 0   ;;  %s1840_s18 = smov 0  }
   0x5   :  { %s1842_s19 = smov 0   ;;  %s1844_s20 = smov 0  }
   0x6   :  { %s1846_s21 = smov 0   ;;  %s1848_s22 = smov 0  }
   0x7   :  { %s1850_s23 = smov 0   ;;  %s1852_s24 = smov 0  }
   0x8   :  { %s1854_s25 = smov 0  }
   0x9 LB: > { %s1427_s26 = sadd.s32 4294967295, %s1805_s25   ;;  %s27_s27 = sadd.s32 1, %s1797_s23  ;;  %s1805_s25 = sphi %s1854_s25, %s15_s25   ;;  %s1801_s24 = sphi %s1852_s24, %s2256_s24   ;;  %s1797_s23 = sphi %s1850_s23, %s2255_s23   ;;  %s1793_s22 = sphi %s1848_s22, %s2254_s22   ;;  %s1789_s21 = sphi %s1846_s21, %s2253_s21   ;;  %s1785_s20 = sphi %s1844_s20, %s2252_s20   ;;  %s1781_s19 = sphi %s1842_s19, %s2251_s19   ;;  %s1777_s18 = sphi %s1840_s18, %s2250_s18   ;;  %s1773_s17 = sphi %s1838_s17, %s2249_s17   ;;  %s1769_s16 = sphi %s1836_s16, %s2248_s16   ;;  %s1765_s15 = sphi %s1834_s15, %s2247_s15  }
   0xa   : > { %p28_p0 = scmp.ge.s32.totalorder %s27_s27, 9  ;;  %s30_s28 = sadd.s32 1, %s1801_s24 }
   0xb   : > { %s43_s29 = sadd.s32 1, %s1785_s20  ;;  %p50_p1 = scmp.ne.s32.totalorder %s1785_s20, %s1781_s19 }
   0xc   : > { %s2258_s27 = smov (%p28_p0, %s27_s27), 0  ;;  %s2260_s28 = smov (!%p28_p0, %s30_s28), %s1801_s24 }
   0xd   : > { %2238 = sst [smem:[#allocation6_spill]] %s2258_s27  ;;  %s39_s30 = ssub.s32 %s1797_s23, %s2258_s27 }
   0xe   : > { %p51_p2 = scmp.eq.s32.totalorder %s1805_s25, 0  ;;  %p32_p3 = scmp.ge.s32.totalorder %s2260_s28, 2 }
   0xf   : > { %p41_p4 = scmp.eq.s32.totalorder %s39_s30, 0  ;;  %s71_s6 = sadd.s32 1, %s1777_s18 }
  0x10   : > { %p1901_p5 = por %p51_p2, %p50_p1  ;;  %s2262_s28 = smov (%p32_p3, %s2260_s28), 0 }
  0x11   : > { %2240 = sst [smem:[#allocation7_spill]] %s2262_s28  ;;  %s67_s8 = ssub.s32 %s1801_s24, %s2262_s28 }
  0x12   : > { %s1909_s7 = scalar_select %p41_p4, %s1785_s20, %s43_s29  }
  0x13   : > { %p78_p6 = scmp.ne.s32.totalorder %s1777_s18, %s1773_s17  ;;  %s68_s9 = sor.u32 %s67_s8, %s39_s30 }
  0x14   : > { %p97_p7 = scmp.eq.s32.totalorder %s67_s8, 0  ;;  %p69_p8 = scmp.eq.s32.totalorder %s68_s9, 0 }
  0x15   : > { %p1915_p9 = por %p78_p6, %p51_p2  ;;  %s99_s11 = sadd.s32 1, %s1769_s16 }
  0x16   : > { %p109_p10 = scmp.ne.s32.totalorder %s1769_s16, %s1765_s15  ;;  %p110_p11 = scmp.eq.s32.totalorder %s1427_s26, 17 }
  0x17   : > { %s1923_s12 = scalar_select %p69_p8, %s1777_s18, %s71_s6  }
  0x18   : > { %s1926_s13 = scalar_select %p97_p7, %s1769_s16, %s99_s11  }
  0x19   : > { %p1928_p12 = por %p110_p11, %p109_p10  ;;  %p1430_p13 = scmp.ge.s32.totalorder %s1805_s25, 18 }
  0x1b   : > { %188 = sbr.rel (%p1430_p13) target bundleno = 88 (0x58), region = 16 }
  0x22   : > { %191 = sbr.rel (!%p1901_p5) target bundleno = 46 (0x2e), region = 20  ;;  %s193_s29 = sand.u32 (%p1901_p5), 1, %s1785_s20  }
  0x23   : > { %s1520_s30 = sshll.u32 (%p1901_p5), %s1797_s23, 4  ;;  %s1431_s8 = sshll.u32 (%p1901_p5), %s193_s29, 5 }
  0x24   : > { %s2243_s0 = sld [smem:[#allocation8_spill]] (%p1901_p5)  ;;  %s195_s26 = scalar_lea.vmem (%p1901_p5), [#allocation3], %s1431_s8 }
  0x2a   : > { %s201_s11 = scalar_lea.vmem %s2243_s0, %s1520_s30 }
  0x2b   : > { %v214_v0 = vld [vmem:[%s201_s11] sm:$0xff]  ;;  %v216_v1 = vld [vmem:[%s201_s11 + $0x8] sm:$0xff]  ;;  %v218_v2 = vld [vmem:[%s201_s11 + $0x90] sm:$0xff] }
  0x2c   : > { %215 = vst [vmem:[%s195_s26] sm:$0xff] %v214_v0  ;;  %217 = vst [vmem:[%s195_s26 + $0x8] sm:$0xff] %v216_v1  ;;  %v220_v3 = vld [vmem:[%s201_s11 + $0x98] sm:$0xff] }
  0x2d   : > { %219 = vst [vmem:[%s195_s26 + $0x10] sm:$0xff] %v218_v2  ;;  %221 = vst [vmem:[%s195_s26 + $0x18] sm:$0xff] %v220_v3 }
  0x2e PF: > { %227 = sbr.rel (!%p1915_p9) target bundleno = 88 (0x58), region = 43  ;;  %s229_s5 = sand.u32 (%p1915_p9), 1, %s1777_s18  }
  0x2f   : > { %s1436_s29 = sshll.u32 (%p1915_p9), %s1801_s24, 1  ;;  %s1434_s6 = sshll.u32 (%p1915_p9), %s229_s5, 9 }
  0x30   : > { %s1521_s30 = sshll.u32 (%p1915_p9), %s1797_s23, 8  ;;  %s2244_s1 = sld [smem:[#allocation9_spill]] (%p1915_p9) }
  0x31   : > { %s235_s9 = sadd.s32 (%p1915_p9), %s1521_s30, %s1436_s29  ;;  %s1953_s10 = scalar_lea.vmem (%p1915_p9), [#allocation4], %s1434_s6 }
  0x32   : > { %s1438_s0 = sshll.u32 (%p1915_p9), %s235_s9, 2 }
  0x36   : > { %s1948_s27 = scalar_lea.vmem %s2244_s1, %s1438_s0 }
  0x37   : > { %v391_v4 = vld [vmem:[%s1948_s27] sm:$0xff]  ;;  %v393_v5 = vld [vmem:[%s1948_s27 + $0x10] sm:$0xff] }
  0x38   : > { %v395_v6 = vld [vmem:[%s1948_s27 + $0x20] sm:$0xff]  ;;  %392 = vst [vmem:[%s1953_s10] sm:$0xff] %v391_v4  ;;  %394 = vst [vmem:[%s1953_s10 + $0x8] sm:$0xff] %v393_v5  ;;  %v397_v7 = vld [vmem:[%s1948_s27 + $0x30] sm:$0xff] }
  0x39   : > { %396 = vst [vmem:[%s1953_s10 + $0x10] sm:$0xff] %v395_v6  ;;  %v399_v8 = vld [vmem:[%s1948_s27 + $0x40] sm:$0xff]  ;;  %v401_v9 = vld [vmem:[%s1948_s27 + $0x50] sm:$0xff]  ;;  %398 = vst [vmem:[%s1953_s10 + $0x18] sm:$0xff] %v397_v7 }
  0x3a   : > { %400 = vst [vmem:[%s1953_s10 + $0x20] sm:$0xff] %v399_v8  ;;  %402 = vst [vmem:[%s1953_s10 + $0x28] sm:$0xff] %v401_v9  ;;  %v403_v10 = vld [vmem:[%s1948_s27 + $0x60] sm:$0xff]  ;;  %v405_v11 = vld [vmem:[%s1948_s27 + $0x70] sm:$0xff] }
  0x3b   : > { %v407_v12 = vld [vmem:[%s1948_s27 + $0x80] sm:$0xff]  ;;  %404 = vst [vmem:[%s1953_s10 + $0x30] sm:$0xff] %v403_v10  ;;  %406 = vst [vmem:[%s1953_s10 + $0x38] sm:$0xff] %v405_v11  ;;  %v409_v13 = vld [vmem:[%s1948_s27 + $0x90] sm:$0xff] }
  0x3c   : > { %408 = vst [vmem:[%s1953_s10 + $0x40] sm:$0xff] %v407_v12  ;;  %v411_v14 = vld [vmem:[%s1948_s27 + $0xa0] sm:$0xff]  ;;  %v413_v15 = vld [vmem:[%s1948_s27 + $0xb0] sm:$0xff]  ;;  %410 = vst [vmem:[%s1953_s10 + $0x48] sm:$0xff] %v409_v13 }
  0x3d   : > { %412 = vst [vmem:[%s1953_s10 + $0x50] sm:$0xff] %v411_v14  ;;  %414 = vst [vmem:[%s1953_s10 + $0x58] sm:$0xff] %v413_v15  ;;  %v415_v16 = vld [vmem:[%s1948_s27 + $0xc0] sm:$0xff]  ;;  %v417_v17 = vld [vmem:[%s1948_s27 + $0xd0] sm:$0xff] }
  0x3e   : > { %v419_v18 = vld [vmem:[%s1948_s27 + $0xe0] sm:$0xff]  ;;  %416 = vst [vmem:[%s1953_s10 + $0x60] sm:$0xff] %v415_v16  ;;  %418 = vst [vmem:[%s1953_s10 + $0x68] sm:$0xff] %v417_v17  ;;  %v421_v19 = vld [vmem:[%s1948_s27 + $0xf0] sm:$0xff] }
  0x3f   : > { %420 = vst [vmem:[%s1953_s10 + $0x70] sm:$0xff] %v419_v18  ;;  %v423_v20 = vld [vmem:[%s1948_s27 + $0x100] sm:$0xff]  ;;  %v425_v21 = vld [vmem:[%s1948_s27 + $0x110] sm:$0xff]  ;;  %422 = vst [vmem:[%s1953_s10 + $0x78] sm:$0xff] %v421_v19 }
  0x40   : > { %424 = vst [vmem:[%s1953_s10 + $0x80] sm:$0xff] %v423_v20  ;;  %426 = vst [vmem:[%s1953_s10 + $0x88] sm:$0xff] %v425_v21  ;;  %v427_v22 = vld [vmem:[%s1948_s27 + $0x120] sm:$0xff]  ;;  %v429_v23 = vld [vmem:[%s1948_s27 + $0x130] sm:$0xff] }
  0x41   : > { %v431_v24 = vld [vmem:[%s1948_s27 + $0x140] sm:$0xff]  ;;  %428 = vst [vmem:[%s1953_s10 + $0x90] sm:$0xff] %v427_v22  ;;  %430 = vst [vmem:[%s1953_s10 + $0x98] sm:$0xff] %v429_v23  ;;  %v433_v25 = vld [vmem:[%s1948_s27 + $0x150] sm:$0xff] }
  0x42   : > { %432 = vst [vmem:[%s1953_s10 + $0xa0] sm:$0xff] %v431_v24  ;;  %v435_v26 = vld [vmem:[%s1948_s27 + $0x160] sm:$0xff]  ;;  %v437_v27 = vld [vmem:[%s1948_s27 + $0x170] sm:$0xff]  ;;  %434 = vst [vmem:[%s1953_s10 + $0xa8] sm:$0xff] %v433_v25 }
  0x43   : > { %436 = vst [vmem:[%s1953_s10 + $0xb0] sm:$0xff] %v435_v26  ;;  %438 = vst [vmem:[%s1953_s10 + $0xb8] sm:$0xff] %v437_v27  ;;  %v439_v28 = vld [vmem:[%s1948_s27 + $0x180] sm:$0xff]  ;;  %v441_v29 = vld [vmem:[%s1948_s27 + $0x190] sm:$0xff] }
  0x44   : > { %v443_v30 = vld [vmem:[%s1948_s27 + $0x1a0] sm:$0xff]  ;;  %440 = vst [vmem:[%s1953_s10 + $0xc0] sm:$0xff] %v439_v28  ;;  %442 = vst [vmem:[%s1953_s10 + $0xc8] sm:$0xff] %v441_v29  ;;  %v445_v31 = vld [vmem:[%s1948_s27 + $0x1b0] sm:$0xff] }
  0x45   : > { %444 = vst [vmem:[%s1953_s10 + $0xd0] sm:$0xff] %v443_v30  ;;  %v447_v32 = vld [vmem:[%s1948_s27 + $0x1c0] sm:$0xff]  ;;  %v449_v33 = vld [vmem:[%s1948_s27 + $0x1d0] sm:$0xff]  ;;  %446 = vst [vmem:[%s1953_s10 + $0xd8] sm:$0xff] %v445_v31 }
  0x46   : > { %448 = vst [vmem:[%s1953_s10 + $0xe0] sm:$0xff] %v447_v32  ;;  %450 = vst [vmem:[%s1953_s10 + $0xe8] sm:$0xff] %v449_v33  ;;  %v451_v34 = vld [vmem:[%s1948_s27 + $0x1e0] sm:$0xff]  ;;  %v453_v35 = vld [vmem:[%s1948_s27 + $0x1f0] sm:$0xff] }
  0x47   : > { %v455_v36 = vld [vmem:[%s1948_s27 + $0x200] sm:$0xff]  ;;  %452 = vst [vmem:[%s1953_s10 + $0xf0] sm:$0xff] %v451_v34  ;;  %454 = vst [vmem:[%s1953_s10 + $0xf8] sm:$0xff] %v453_v35  ;;  %v457_v37 = vld [vmem:[%s1948_s27 + $0x210] sm:$0xff] }
  0x48   : > { %456 = vst [vmem:[%s1953_s10 + $0x100] sm:$0xff] %v455_v36  ;;  %v459_v38 = vld [vmem:[%s1948_s27 + $0x220] sm:$0xff]  ;;  %v461_v39 = vld [vmem:[%s1948_s27 + $0x230] sm:$0xff]  ;;  %458 = vst [vmem:[%s1953_s10 + $0x108] sm:$0xff] %v457_v37 }
  0x49   : > { %460 = vst [vmem:[%s1953_s10 + $0x110] sm:$0xff] %v459_v38  ;;  %462 = vst [vmem:[%s1953_s10 + $0x118] sm:$0xff] %v461_v39  ;;  %v463_v40 = vld [vmem:[%s1948_s27 + $0x240] sm:$0xff]  ;;  %v465_v41 = vld [vmem:[%s1948_s27 + $0x250] sm:$0xff] }
  0x4a   : > { %v467_v42 = vld [vmem:[%s1948_s27 + $0x260] sm:$0xff]  ;;  %464 = vst [vmem:[%s1953_s10 + $0x120] sm:$0xff] %v463_v40  ;;  %466 = vst [vmem:[%s1953_s10 + $0x128] sm:$0xff] %v465_v41  ;;  %v469_v43 = vld [vmem:[%s1948_s27 + $0x270] sm:$0xff] }
  0x4b   : > { %468 = vst [vmem:[%s1953_s10 + $0x130] sm:$0xff] %v467_v42  ;;  %v471_v44 = vld [vmem:[%s1948_s27 + $0x280] sm:$0xff]  ;;  %v473_v45 = vld [vmem:[%s1948_s27 + $0x290] sm:$0xff]  ;;  %470 = vst [vmem:[%s1953_s10 + $0x138] sm:$0xff] %v469_v43 }
  0x4c   : > { %472 = vst [vmem:[%s1953_s10 + $0x140] sm:$0xff] %v471_v44  ;;  %474 = vst [vmem:[%s1953_s10 + $0x148] sm:$0xff] %v473_v45  ;;  %v475_v46 = vld [vmem:[%s1948_s27 + $0x2a0] sm:$0xff]  ;;  %v477_v47 = vld [vmem:[%s1948_s27 + $0x2b0] sm:$0xff] }
  0x4d   : > { %v479_v48 = vld [vmem:[%s1948_s27 + $0x2c0] sm:$0xff]  ;;  %476 = vst [vmem:[%s1953_s10 + $0x150] sm:$0xff] %v475_v46  ;;  %478 = vst [vmem:[%s1953_s10 + $0x158] sm:$0xff] %v477_v47  ;;  %v481_v49 = vld [vmem:[%s1948_s27 + $0x2d0] sm:$0xff] }
  0x4e   : > { %480 = vst [vmem:[%s1953_s10 + $0x160] sm:$0xff] %v479_v48  ;;  %v483_v50 = vld [vmem:[%s1948_s27 + $0x2e0] sm:$0xff]  ;;  %v485_v51 = vld [vmem:[%s1948_s27 + $0x2f0] sm:$0xff]  ;;  %482 = vst [vmem:[%s1953_s10 + $0x168] sm:$0xff] %v481_v49 }
  0x4f   : > { %484 = vst [vmem:[%s1953_s10 + $0x170] sm:$0xff] %v483_v50  ;;  %486 = vst [vmem:[%s1953_s10 + $0x178] sm:$0xff] %v485_v51  ;;  %v487_v52 = vld [vmem:[%s1948_s27 + $0x300] sm:$0xff]  ;;  %v489_v53 = vld [vmem:[%s1948_s27 + $0x310] sm:$0xff] }
  0x50   : > { %v491_v54 = vld [vmem:[%s1948_s27 + $0x320] sm:$0xff]  ;;  %488 = vst [vmem:[%s1953_s10 + $0x180] sm:$0xff] %v487_v52  ;;  %490 = vst [vmem:[%s1953_s10 + $0x188] sm:$0xff] %v489_v53  ;;  %v493_v55 = vld [vmem:[%s1948_s27 + $0x330] sm:$0xff] }
  0x51   : > { %492 = vst [vmem:[%s1953_s10 + $0x190] sm:$0xff] %v491_v54  ;;  %v495_v56 = vld [vmem:[%s1948_s27 + $0x340] sm:$0xff]  ;;  %v497_v57 = vld [vmem:[%s1948_s27 + $0x350] sm:$0xff]  ;;  %494 = vst [vmem:[%s1953_s10 + $0x198] sm:$0xff] %v493_v55 }
  0x52   : > { %496 = vst [vmem:[%s1953_s10 + $0x1a0] sm:$0xff] %v495_v56  ;;  %498 = vst [vmem:[%s1953_s10 + $0x1a8] sm:$0xff] %v497_v57  ;;  %v499_v58 = vld [vmem:[%s1948_s27 + $0x360] sm:$0xff]  ;;  %v501_v59 = vld [vmem:[%s1948_s27 + $0x370] sm:$0xff] }
  0x53   : > { %v503_v60 = vld [vmem:[%s1948_s27 + $0x380] sm:$0xff]  ;;  %500 = vst [vmem:[%s1953_s10 + $0x1b0] sm:$0xff] %v499_v58  ;;  %502 = vst [vmem:[%s1953_s10 + $0x1b8] sm:$0xff] %v501_v59  ;;  %v505_v61 = vld [vmem:[%s1948_s27 + $0x390] sm:$0xff] }
  0x54   : > { %504 = vst [vmem:[%s1953_s10 + $0x1c0] sm:$0xff] %v503_v60  ;;  %v507_v62 = vld [vmem:[%s1948_s27 + $0x3a0] sm:$0xff]  ;;  %v509_v63 = vld [vmem:[%s1948_s27 + $0x3b0] sm:$0xff]  ;;  %506 = vst [vmem:[%s1953_s10 + $0x1c8] sm:$0xff] %v505_v61 }
  0x55   : > { %508 = vst [vmem:[%s1953_s10 + $0x1d0] sm:$0xff] %v507_v62  ;;  %510 = vst [vmem:[%s1953_s10 + $0x1d8] sm:$0xff] %v509_v63  ;;  %v511_v0 = vld [vmem:[%s1948_s27 + $0x3c0] sm:$0xff]  ;;  %v513_v1 = vld [vmem:[%s1948_s27 + $0x3d0] sm:$0xff] }
  0x56   : > { %v515_v2 = vld [vmem:[%s1948_s27 + $0x3e0] sm:$0xff]  ;;  %512 = vst [vmem:[%s1953_s10 + $0x1e0] sm:$0xff] %v511_v0  ;;  %514 = vst [vmem:[%s1953_s10 + $0x1e8] sm:$0xff] %v513_v1  ;;  %v517_v3 = vld [vmem:[%s1948_s27 + $0x3f0] sm:$0xff] }
  0x57   : > { %516 = vst [vmem:[%s1953_s10 + $0x1f0] sm:$0xff] %v515_v2  ;;  %518 = vst [vmem:[%s1953_s10 + $0x1f8] sm:$0xff] %v517_v3 }
  0x58 PF: > { %p1439_p0 = scmp.ge.s32.totalorder %s1805_s25, 1  ;;  %p523_p1 = scmp.lt.s32.totalorder %s1805_s25, 19 }
  0x5a   : > { %p524_p2 = pnand %p1439_p0, %p523_p1 }
  0x5b   : > { %s530_s0 = sand.u32 (!%p524_p2), 1, %s1781_s19   ;;  %s537_s28 = sand.u32 (!%p524_p2), 1, %s1773_s17  }
  0x5c   : > { %527 = sbr.rel (%p524_p2) target bundleno = 429 (0x1ad), region = 81  ;;  %s1440_s11 = sshll.u32 (!%p524_p2), %s530_s0, 5 }
  0x5d   : > { %s1441_s26 = sshll.u32 (!%p524_p2), %s537_s28, 9  ;;  %s558_s5 = sand.u32 (!%p524_p2), 1, %s1765_s15  }
  0x5e   : > { %s1443_s29 = sshll.u32 (!%p524_p2), %s1793_s22, 1  ;;  %s1442_s27 = sshll.u32 (!%p524_p2), %s558_s5, 5 }
  0x5f   : > { %p590_p3 = scmp.lt.s32.totalorder (!%p524_p2), %s1443_s29, 3  ;;  %s2096_s19 = scalar_lea.vmem (!%p524_p2), [#allocation3], %s1440_s11 }
  0x60   : > { %s2098_s17 = scalar_lea.vmem (!%p524_p2), [#allocation4], %s1441_s26  ;;  %s2100_s15 = scalar_lea.vmem (!%p524_p2), [#allocation5], %s1442_s27 }
  0x61   : > { %p1445_p4 = scmp.ne.s32.totalorder (!%p524_p2), %s1789_s21, 0 }
  0x63   : > { %s2264_s29 = smov (!%p590_p3, %s1443_s29), 3  ;;  %608 = sbr.rel (%p1445_p4) target bundleno = 106 (0x6a), region = 93 }
  0x64   : > { %s594_s9 = scalar_lea.vmem %s2232_s3, %s2264_s29  ;;  %s603_s1 = scalar_lea.vmem %s2233_s4, %s2264_s29  ;;  %v1807_v4 = vmov (!%p1445_p4), 0.0  }
  0x65   : > { %609 = vst [vmem:[#allocation2] sm:$0xff] (!%p1445_p4), %v1807_v4  ;;  %610 = vst [vmem:[#allocation2 + $0x8] sm:$0xff] (!%p1445_p4), %v1807_v4 }
  0x66   : > { %611 = vst [vmem:[#allocation2 + $0x10] sm:$0xff] (!%p1445_p4), %v1807_v4  ;;  %612 = vst [vmem:[#allocation2 + $0x18] sm:$0xff] (!%p1445_p4), %v1807_v4 }
  0x6a PF: > { %v1617_v5 = vld [vmem:[%s2098_s17 + $0x4] ss:$8 sps:$4 sm:$0xff]   ;;  %v1621_v7 = vld [vmem:[%s2098_s17] ss:$8 sps:$4 sm:$0xff]   ;;  %v1623_v9 = vld [vmem:[%s2098_s17 + $0x14] ss:$8 sps:$4 sm:$0xff]  }
  0x6b   : > { %v1619_v6 = vld [vmem:[%s2098_s17 + $0x104] ss:$8 sps:$4 sm:$0xff]   ;;  %1025 = vmatprep.subr.bf16.mxu1 %v1617_v5  ;;  %v1622_v8 = vld [vmem:[%s2098_s17 + $0x100] ss:$8 sps:$4 sm:$0xff]   ;;  %v1625_v10 = vld [vmem:[%s2098_s17 + $0x114] ss:$8 sps:$4 sm:$0xff]  }
  0x6c   : > { %1068 = vmatprep.subr.bf16.mxu0 %v1619_v6  ;;  %1026 = vmatpush1.bf16.msra.mxu1 %v1621_v7  ;;  %v1627_v11 = vld [vmem:[%s2098_s17 + $0x10] ss:$8 sps:$4 sm:$0xff]   ;;  %v1629_v13 = vld [vmem:[%s2098_s17 + $0x24] ss:$8 sps:$4 sm:$0xff]   ;;  %v1633_v15 = vld [vmem:[%s2098_s17 + $0x20] ss:$8 sps:$4 sm:$0xff]  }
  0x6d   : > { %1069 = vmatpush1.bf16.msra.mxu0 %v1622_v8  ;;  %1027 = vmatprep.subr.bf16.mxu1 %v1623_v9  ;;  %v1628_v12 = vld [vmem:[%s2098_s17 + $0x110] ss:$8 sps:$4 sm:$0xff]   ;;  %v1631_v14 = vld [vmem:[%s2098_s17 + $0x124] ss:$8 sps:$4 sm:$0xff]   ;;  %v1634_v16 = vld [vmem:[%s2098_s17 + $0x120] ss:$8 sps:$4 sm:$0xff]  }
  0x6e   : > { %1070 = vmatprep.subr.bf16.mxu0 %v1625_v10  ;;  %v1635_v17 = vld [vmem:[%s2098_s17 + $0x34] ss:$8 sps:$4 sm:$0xff]   ;;  %v1639_v19 = vld [vmem:[%s2098_s17 + $0x30] ss:$8 sps:$4 sm:$0xff]   ;;  %v1641_v21 = vld [vmem:[%s2098_s17 + $0x44] ss:$8 sps:$4 sm:$0xff]  }
  0x6f   : > { %v1637_v18 = vld [vmem:[%s2098_s17 + $0x134] ss:$8 sps:$4 sm:$0xff]   ;;  %v1640_v20 = vld [vmem:[%s2098_s17 + $0x130] ss:$8 sps:$4 sm:$0xff]   ;;  %v1643_v22 = vld [vmem:[%s2098_s17 + $0x144] ss:$8 sps:$4 sm:$0xff]  }
  0x70   : > { %1028 = vmatpush1.bf16.msra.mxu1 %v1627_v11  ;;  %v1645_v23 = vld [vmem:[%s2098_s17 + $0x40] ss:$8 sps:$4 sm:$0xff]   ;;  %v1647_v25 = vld [vmem:[%s2098_s17 + $0x54] ss:$8 sps:$4 sm:$0xff]   ;;  %v1651_v27 = vld [vmem:[%s2098_s17 + $0x50] ss:$8 sps:$4 sm:$0xff]  }
  0x71   : > { %1071 = vmatpush1.bf16.msra.mxu0 %v1628_v12  ;;  %1029 = vmatprep.subr.bf16.mxu1 %v1629_v13  ;;  %v1646_v24 = vld [vmem:[%s2098_s17 + $0x140] ss:$8 sps:$4 sm:$0xff]   ;;  %v1649_v26 = vld [vmem:[%s2098_s17 + $0x154] ss:$8 sps:$4 sm:$0xff]   ;;  %v1652_v28 = vld [vmem:[%s2098_s17 + $0x150] ss:$8 sps:$4 sm:$0xff]  }
  0x72   : > { %1072 = vmatprep.subr.bf16.mxu0 %v1631_v14  ;;  %v1653_v29 = vld [vmem:[%s2098_s17 + $0x64] ss:$8 sps:$4 sm:$0xff]   ;;  %v1657_v31 = vld [vmem:[%s2098_s17 + $0x60] ss:$8 sps:$4 sm:$0xff]   ;;  %v1659_v33 = vld [vmem:[%s2098_s17 + $0x74] ss:$8 sps:$4 sm:$0xff]  }
  0x73   : > { %v1655_v30 = vld [vmem:[%s2098_s17 + $0x164] ss:$8 sps:$4 sm:$0xff]   ;;  %v1658_v32 = vld [vmem:[%s2098_s17 + $0x160] ss:$8 sps:$4 sm:$0xff]   ;;  %v1661_v34 = vld [vmem:[%s2098_s17 + $0x174] ss:$8 sps:$4 sm:$0xff]  }
  0x74   : > { %1030 = vmatpush1.bf16.msra.mxu1 %v1633_v15  ;;  %v1663_v35 = vld [vmem:[%s2098_s17 + $0x70] ss:$8 sps:$4 sm:$0xff]   ;;  %v1665_v37 = vld [vmem:[%s2098_s17 + $0x84] ss:$8 sps:$4 sm:$0xff]   ;;  %v1669_v39 = vld [vmem:[%s2098_s17 + $0x80] ss:$8 sps:$4 sm:$0xff]  }
  0x75   : > { %1073 = vmatpush1.bf16.msra.mxu0 %v1634_v16  ;;  %1031 = vmatprep.subr.bf16.mxu1 %v1635_v17  ;;  %v1664_v36 = vld [vmem:[%s2098_s17 + $0x170] ss:$8 sps:$4 sm:$0xff]   ;;  %v1667_v38 = vld [vmem:[%s2098_s17 + $0x184] ss:$8 sps:$4 sm:$0xff]   ;;  %v1670_v40 = vld [vmem:[%s2098_s17 + $0x180] ss:$8 sps:$4 sm:$0xff]  }
  0x76   : > { %1074 = vmatprep.subr.bf16.mxu0 %v1637_v18  ;;  %v1671_v41 = vld [vmem:[%s2098_s17 + $0x94] ss:$8 sps:$4 sm:$0xff]   ;;  %v1675_v43 = vld [vmem:[%s2098_s17 + $0x90] ss:$8 sps:$4 sm:$0xff]   ;;  %v1677_v45 = vld [vmem:[%s2098_s17 + $0xa4] ss:$8 sps:$4 sm:$0xff]  }
  0x77   : > { %v1673_v42 = vld [vmem:[%s2098_s17 + $0x194] ss:$8 sps:$4 sm:$0xff]   ;;  %v1676_v44 = vld [vmem:[%s2098_s17 + $0x190] ss:$8 sps:$4 sm:$0xff]   ;;  %v1679_v46 = vld [vmem:[%s2098_s17 + $0x1a4] ss:$8 sps:$4 sm:$0xff]  }
  0x78   : > { %1032 = vmatpush1.bf16.msra.mxu1 %v1639_v19  ;;  %v1681_v47 = vld [vmem:[%s2098_s17 + $0xa0] ss:$8 sps:$4 sm:$0xff]   ;;  %v1683_v49 = vld [vmem:[%s2098_s17 + $0xb4] ss:$8 sps:$4 sm:$0xff]   ;;  %v1687_v51 = vld [vmem:[%s2098_s17 + $0xb0] ss:$8 sps:$4 sm:$0xff]  }
  0x79   : > { %1075 = vmatpush1.bf16.msra.mxu0 %v1640_v20  ;;  %1033 = vmatprep.subr.bf16.mxu1 %v1641_v21  ;;  %v1682_v48 = vld [vmem:[%s2098_s17 + $0x1a0] ss:$8 sps:$4 sm:$0xff]   ;;  %v1685_v50 = vld [vmem:[%s2098_s17 + $0x1b4] ss:$8 sps:$4 sm:$0xff]   ;;  %v1688_v53 = vld [vmem:[%s2098_s17 + $0x1b0] ss:$8 sps:$4 sm:$0xff]  }
  0x7a   : > { %1076 = vmatprep.subr.bf16.mxu0 %v1643_v22  ;;  %v1715_v52 = vld [vmem:[%s2096_s19 + $0x4] ss:$16 sps:$4 sm:$0xff]   ;;  %v1718_v56 = vld [vmem:[%s2096_s19 + $0xc] ss:$16 sps:$4 sm:$0xff]   ;;  %v1693_v57 = vld [vmem:[%s2098_s17 + $0xc0] ss:$8 sps:$4 sm:$0xff]  }
  0x7b   : > { %v1689_v54 = vld [vmem:[%s2098_s17 + $0xc4] ss:$8 sps:$4 sm:$0xff]   ;;  %1057 = vmatprep.mubr.bf16.mxu1 %v1715_v52  ;;  %1100 = vmatprep.mubr.bf16.mxu0 %v1718_v56  ;;  %v1694_v58 = vld [vmem:[%s2098_s17 + $0x1c0] ss:$8 sps:$4 sm:$0xff]   ;;  %v1695_v59 = vld [vmem:[%s2098_s17 + $0xd4] ss:$8 sps:$4 sm:$0xff]  }
  0x7c   : > { %1034 = vmatpush1.bf16.msra.mxu1 %v1645_v23  ;;  %v1691_v55 = vld [vmem:[%s2098_s17 + $0x1c4] ss:$8 sps:$4 sm:$0xff]   ;;  %v1697_v60 = vld [vmem:[%s2098_s17 + $0x1d4] ss:$8 sps:$4 sm:$0xff]   ;;  %v1699_v61 = vld [vmem:[%s2098_s17 + $0xd0] ss:$8 sps:$4 sm:$0xff]  }
  0x7d   : > { %1077 = vmatpush1.bf16.msra.mxu0 %v1646_v24  ;;  %1035 = vmatprep.subr.bf16.mxu1 %v1647_v25  ;;  %v1700_v62 = vld [vmem:[%s2098_s17 + $0x1d0] ss:$8 sps:$4 sm:$0xff]   ;;  %v1701_v63 = vld [vmem:[%s2098_s17 + $0xe4] ss:$8 sps:$4 sm:$0xff]   ;;  %v1705_v1 = vld [vmem:[%s2098_s17 + $0xe0] ss:$8 sps:$4 sm:$0xff]  }
  0x7e   : > { %1078 = vmatprep.subr.bf16.mxu0 %v1649_v26  ;;  %v1703_v0 = vld [vmem:[%s2098_s17 + $0x1e4] ss:$8 sps:$4 sm:$0xff]   ;;  %v1706_v2 = vld [vmem:[%s2098_s17 + $0x1e0] ss:$8 sps:$4 sm:$0xff]   ;;  %v1707_v3 = vld [vmem:[%s2098_s17 + $0xf4] ss:$8 sps:$4 sm:$0xff]  }
  0x7f   : > { %v1709_v4 = vld [vmem:[%s2098_s17 + $0x1f4] ss:$8 sps:$4 sm:$0xff]   ;;  %v1711_v5 = vld [vmem:[%s2098_s17 + $0xf0] ss:$8 sps:$4 sm:$0xff]   ;;  %v613_v10 = vld [vmem:[#allocation2] sm:$0xff]  ;;  %p1514_p5 = scmp.ne.s32.totalorder %s1789_s21, 8 }
  0x80   : > { %1036 = vmatpush1.bf16.msra.mxu1 %v1651_v27  ;;  %v1712_v6 = vld [vmem:[%s2098_s17 + $0x1f0] ss:$8 sps:$4 sm:$0xff]   ;;  %v614_v14 = vld [vmem:[#allocation2 + $0x8] sm:$0xff] }
  0x81   : > { %1079 = vmatpush1.bf16.msra.mxu0 %v1652_v28  ;;  %1037 = vmatprep.subr.bf16.mxu1 %v1653_v29  ;;  %v1713_v7 = vld [vmem:[%s2096_s19] ss:$16 sps:$4 sm:$0xff]   ;;  %v1716_v8 = vld [vmem:[%s2096_s19 + $0x8] ss:$16 sps:$4 sm:$0xff]  }
  0x82   : > { %1080 = vmatprep.subr.bf16.mxu0 %v1655_v30  ;;  %v615_v18 = vld [vmem:[#allocation2 + $0x10] sm:$0xff]  ;;  %v616_v23 = vld [vmem:[#allocation2 + $0x18] sm:$0xff] }
  0x84   : > { %1038 = vmatpush1.bf16.msra.mxu1 %v1657_v31 }
  0x85   : > { %1081 = vmatpush1.bf16.msra.mxu0 %v1658_v32  ;;  %1039 = vmatprep.subr.bf16.mxu1 %v1659_v33 }
  0x86   : > { %1082 = vmatprep.subr.bf16.mxu0 %v1661_v34 }
  0x88   : > { %1040 = vmatpush1.bf16.msra.mxu1 %v1663_v35 }
  0x89   : > { %1083 = vmatpush1.bf16.msra.mxu0 %v1664_v36  ;;  %1041 = vmatprep.subr.bf16.mxu1 %v1665_v37 }
  0x8a   : > { %1084 = vmatprep.subr.bf16.mxu0 %v1667_v38 }
  0x8c   : > { %1042 = vmatpush1.bf16.msra.mxu1 %v1669_v39 }
  0x8d   : > { %1085 = vmatpush1.bf16.msra.mxu0 %v1670_v40  ;;  %1043 = vmatprep.subr.bf16.mxu1 %v1671_v41 }
  0x8e   : > { %1086 = vmatprep.subr.bf16.mxu0 %v1673_v42 }
  0x90   : > { %1044 = vmatpush1.bf16.msra.mxu1 %v1675_v43 }
  0x91   : > { %1087 = vmatpush1.bf16.msra.mxu0 %v1676_v44  ;;  %1045 = vmatprep.subr.bf16.mxu1 %v1677_v45 }
  0x92   : > { %1088 = vmatprep.subr.bf16.mxu0 %v1679_v46 }
  0x94   : > { %1046 = vmatpush1.bf16.msra.mxu1 %v1681_v47  ;;  %v1808_v47 = vmov (!%p1514_p5), 1966171168  }
  0x95   : > { %1089 = vmatpush1.bf16.msra.mxu0 %v1682_v48  ;;  %1047 = vmatprep.subr.bf16.mxu1 %v1683_v49  ;;  %v1149_v48 = vunpack.c.l.s4 (!%p1514_p5), %v1808_v47  ;;  %v1151_v49 = vlaneseq (!%p1514_p5) }
  0x96   : > { %1090 = vmatprep.subr.bf16.mxu0 %v1685_v50 }
  0x97   : > { %vm1165_vm0 = vcmp.lt.s32.totalorder (!%p1514_p5), %v1151_v49, 256 }
  0x98   : > { %1048 = vmatpush1.bf16.msra.mxu1 %v1687_v51 }
  0x99   : > { %1091 = vmatpush1.bf16.msra.mxu0 %v1688_v53  ;;  %1049 = vmatprep.subr.bf16.mxu1 %v1689_v54 }
  0x9a   : > { %1092 = vmatprep.subr.bf16.mxu0 %v1691_v55 }
  0x9c   : > { %1050 = vmatpush1.bf16.msra.mxu1 %v1693_v57 }
  0x9d   : > { %1093 = vmatpush1.bf16.msra.mxu0 %v1694_v58  ;;  %1051 = vmatprep.subr.bf16.mxu1 %v1695_v59  ;;  %v1150_v58 = vunpack.c.0.s8 (!%p1514_p5), %v1149_v48  ;;  %v1152_v59 = vshrl.u32 (!%p1514_p5), %v1151_v49, 7 }
  0x9e   : > { %1094 = vmatprep.subr.bf16.mxu0 %v1697_v60 }
  0xa0   : > { %1052 = vmatpush1.bf16.msra.mxu1 %v1699_v61 }
  0xa1   : > { %1095 = vmatpush1.bf16.msra.mxu0 %v1700_v62  ;;  %1053 = vmatprep.subr.bf16.mxu1 %v1701_v63 }
  0xa2   : > { %1096 = vmatprep.subr.bf16.mxu0 %v1703_v0 }
  0xa4   : > { %1054 = vmatpush1.bf16.msra.mxu1 %v1705_v1 }
  0xa5   : > { %1097 = vmatpush1.bf16.msra.mxu0 %v1706_v2  ;;  %1055 = vmatprep.subr.bf16.mxu1 %v1707_v3  ;;  %v1153_v3 = vsub.s32 (!%p1514_p5), %v1150_v58, %v1152_v59 }
  0xa6   : > { %1098 = vmatprep.subr.bf16.mxu0 %v1709_v4 }
  0xa8   : > { %1056 = vmatpush1.bf16.msra.mxu1 %v1711_v5 }
  0xa9   : > { %1099 = vmatpush1.bf16.msra.mxu0 %v1712_v6 }
  0xab   : > { %1058 = vmatmul.mubr.bf16.vlgmr.msra.gmra.mrb[0].mxu1 %v1713_v7 }
  0xac   : > { %1101 = vmatmul.mubr.bf16.vlgmr.msra.gmra.mrb[0].mxu0 %v1716_v8 }
 0x17e   : > { %v1059_v9 = vpop.f32.mrb[0].mxu1 }
 0x17f   : > { %v1102_v11 = vpop.f32.mrb[0].mxu0  ;;  %v1061_v13 = vpop.f32.mrb[1].mxu1 }
 0x180   : > { %v1103_v12 = vadd.f32 %v1102_v11, %v1059_v9  ;;  %v1104_v15 = vpop.f32.mrb[1].mxu0  ;;  %v1063_v17 = vpop.f32.mrb[2].mxu1 }
 0x181   : > { %v1105_v16 = vadd.f32 %v1104_v15, %v1061_v13  ;;  %v1106_v19 = vpop.f32.mrb[2].mxu0  ;;  %v1065_v22 = vpop.f32.mrb[3].mxu1  ;;  %1122 = sbr.rel (%p1514_p5) target bundleno = 422 (0x1a6), region = 97 }
 0x182   : > { %v1111_v20 = vadd.f32 %v1103_v12, %v613_v10  ;;  %v1107_v21 = vadd.f32 %v1106_v19, %v1063_v17  ;;  %v1108_v24 = vpop.f32.mrb[3].mxu0 }
 0x183   : > { %v1112_v25 = vadd.f32 %v1105_v16, %v614_v14  ;;  %v1109_v26 = vadd.f32 %v1108_v24, %v1065_v22 }
 0x184   : > { %1115 = vst [vmem:[#allocation2] sm:$0xff] %v1111_v20  ;;  %v1113_v27 = vadd.f32 %v1107_v21, %v615_v18 }
 0x185   : > { %1116 = vst [vmem:[#allocation2 + $0x8] sm:$0xff] %v1112_v25  ;;  %v1114_v28 = vadd.f32 %v1109_v26, %v616_v23 }
 0x186   : > { %1117 = vst [vmem:[#allocation2 + $0x10] sm:$0xff] %v1113_v27 }
 0x187   : > { %1118 = vst [vmem:[#allocation2 + $0x18] sm:$0xff] %v1114_v28 }
 0x18b   : > { %v1123_v29 = vld [vmem:[#allocation2] sm:$0xff] }
 0x18c   : > { %v1124_v30 = vld [vmem:[#allocation2 + $0x8] sm:$0xff]  ;;  %1127 = vst [vmem:[%s2100_s15] sm:$0xff] %v1123_v29  ;;  %v1168_v32 = vmul.f32 %v1123_v29, %v1123_v29 }
 0x18d   : > { %v1125_v31 = vld [vmem:[#allocation2 + $0x10] sm:$0xff]  ;;  %1128 = vst [vmem:[%s2100_s15 + $0x8] sm:$0xff] %v1124_v30  ;;  %v1169_v33 = vmul.f32 %v1124_v30, %v1124_v30 }
 0x18e   : > { %1129 = vst [vmem:[%s2100_s15 + $0x10] sm:$0xff] %v1125_v31  ;;  %v1131_v34 = vadd.f32 %v1125_v31, %v1123_v29  ;;  %v1170_v35 = vmul.f32 %v1125_v31, %v1125_v31  ;;  %v1126_v36 = vld [vmem:[#allocation2 + $0x18] sm:$0xff] }
 0x18f   : > { %1130 = vst [vmem:[%s2100_s15 + $0x18] sm:$0xff] %v1126_v36  ;;  %v1138_v37 = vadd.f32 %v1126_v36, %v1124_v30  ;;  %v1171_v38 = vmul.f32 %v1126_v36, %v1126_v36 }
 0x190   : > { %v1132_v39 = vrot.slane %v1131_v34, 4  ;;  %v1172_v40 = vadd.f32 %v1170_v35, %v1168_v32 }
 0x191   : > { %v1139_v41 = vrot.slane %v1138_v37, 4  ;;  %v1179_v42 = vadd.f32 %v1171_v38, %v1169_v33 }
 0x192   : > { %v1133_v43 = vadd.f32 %v1132_v39, %v1131_v34  ;;  %v1173_v44 = vrot.slane %v1172_v40, 4 }
 0x193   : > { %v1140_v45 = vadd.f32 %v1139_v41, %v1138_v37  ;;  %v1180_v46 = vrot.slane %v1179_v42, 4 }
 0x194   : > { %v1134_v50 = vrot.slane %v1133_v43, 2  ;;  %v1174_v51 = vadd.f32 %v1173_v44, %v1172_v40 }
 0x195   : > { %v1141_v52 = vrot.slane %v1140_v45, 2  ;;  %v1181_v53 = vadd.f32 %v1180_v46, %v1179_v42 }
 0x196   : > { %v1135_v54 = vadd.f32 %v1134_v50, %v1133_v43  ;;  %v1175_v55 = vrot.slane %v1174_v51, 2 }
 0x197   : > { %v1142_v56 = vadd.f32 %v1141_v52, %v1140_v45  ;;  %v1182_v57 = vrot.slane %v1181_v53, 2 }
 0x198   : > { %v1136_v60 = vrot.slane %v1135_v54, 1  ;;  %v1176_v61 = vadd.f32 %v1175_v55, %v1174_v51 }
 0x199   : > { %v1143_v62 = vrot.slane %v1142_v56, 1  ;;  %v1183_v63 = vadd.f32 %v1182_v57, %v1181_v53 }
 0x19a   : > { %v1137_v0 = vadd.f32 %v1136_v60, %v1135_v54  ;;  %v1177_v1 = vrot.slane %v1176_v61, 1 }
 0x19b   : > { %v1144_v2 = vadd.f32 %v1143_v62, %v1142_v56  ;;  %v1184_v4 = vrot.slane %v1183_v63, 1 }
 0x19c   : > { %v1178_v5 = vadd.f32 %v1177_v1, %v1176_v61 }
 0x19d   : > { %v1147_v6 = vcombine.low %v1137_v0, %v1144_v2  ;;  %v1185_v7 = vadd.f32 %v1184_v4, %v1183_v63 }
 0x19f   : > { %v1154_v8 = vrot.slane %v1147_v6, %v1153_v3  ;;  %v1188_v9 = vcombine.low %v1178_v5, %v1185_v7 }
 0x1a1   : > { %v1161_v10 = vrot.slane %v1154_v8, %v1153_v3  ;;  %v1195_v11 = vrot.slane %v1188_v9, %v1153_v3 }
 0x1a3   : > { %1167 = vst.msk [vmem:[%s594_s9] sm:$0x3] %vm1165_vm0, %v1161_v10  ;;  %v1202_v12 = vrot.slane %v1195_v11, %v1153_v3 }
 0x1a5   : > { %1204 = vst.msk [vmem:[%s603_s1] sm:$0x3] %vm1165_vm0, %v1202_v12 }
 0x1a6 PF: > { %1227 = sbr.rel (!%p1928_p12) target bundleno = 429 (0x1ad), region = 101  ;;  %s1522_s26 = sshll.u32 (%p1928_p12), %s1793_s22, 4  ;;  %v1246_v13 = vld [vmem:[%s2100_s15] sm:$0xff] (%p1928_p12)  ;;  %v1248_v14 = vld [vmem:[%s2100_s15 + $0x8] sm:$0xff] (%p1928_p12)  ;;  %v1250_v15 = vld [vmem:[%s2100_s15 + $0x10] sm:$0xff] (%p1928_p12) }
 0x1a7   : > { %s1233_s6 = scalar_lea.vmem (%p1928_p12), %s2231_s2, %s1522_s26  ;;  %v1252_v16 = vld [vmem:[%s2100_s15 + $0x18] sm:$0xff] (%p1928_p12) }
 0x1a8   : > { %1247 = vst [vmem:[%s1233_s6] sm:$0xff] (%p1928_p12), %v1246_v13  ;;  %1249 = vst [vmem:[%s1233_s6 + $0x8] sm:$0xff] (%p1928_p12), %v1248_v14 }
 0x1a9   : > { %1251 = vst [vmem:[%s1233_s6 + $0x20] sm:$0xff] (%p1928_p12), %v1250_v15  ;;  %1253 = vst [vmem:[%s1233_s6 + $0x28] sm:$0xff] (%p1928_p12), %v1252_v16 }
 0x1ad PF: > { %s15_s25 = sadd.s32 1, %s1805_s25   ;;  %s2245_s1 = sld [smem:[#allocation6_spill]] }
 0x1ae   : > { %p12_p6 = scmp.ge.s32.totalorder %s15_s25, 20   ;;  %s2246_s14 = sld [smem:[#allocation7_spill]] }
 0x1af   : > { %s2247_s15 = smov %s1769_s16  ;;  %s2248_s16 = smov %s1926_s13 }
 0x1b0   : > { %s2249_s17 = smov %s1777_s18  ;;  %s2250_s18 = smov %s1923_s12 }
 0x1b1   : > { %s2251_s19 = smov %s1785_s20  ;;  %s2252_s20 = smov %s1909_s7 }
 0x1b2   : > { %s2253_s21 = smov %s1797_s23  ;;  %s2254_s22 = smov %s1801_s24 }
 0x1b3   : > { %s2255_s23 = smov %s2245_s1  ;;  %14 = sbr.rel (!%p12_p6) target bundleno = 9 (0x9), region = 187 }
 0x1b4   : > { %s2256_s24 = smov %s2246_s14 }

// kernel: _lambda_.79
= control target key start
LH: loop header
LB: loop body
LE: loop exit
PB: predicated region body
PF: predicated region fallthrough
CT: control target
= control target key end

     0   :  { %s1644_s15 = smov 0   ;;  %s1646_s16 = smov 0   ;;  %s1947_s0 = inlined_call_operand.vmem [shape: bf16[16,512], index: 0, kind: input, shape index: {}]   ;;  %s1948_s1 = inlined_call_operand.vmem [shape: bf16[512,512], index: 1, kind: input, shape index: {}]   ;;  %s1949_s2 = inlined_call_operand.vmem [shape: f32[16,512], index: 2, kind: output, shape index: {0}]   ;;  %s1950_s3 = inlined_call_operand.vmem [shape: f32[1,1,512], index: 3, kind: output, shape index: {1}]   ;;  %s1951_s4 = inlined_call_operand.vmem [shape: f32[1,1,512], index: 4, kind: output, shape index: {2}]  }
   0x1   :  { %s1648_s17 = smov 0   ;;  %s1650_s18 = smov 0  }
   0x2   :  { %s1652_s19 = smov 0  }
   0x3 LB: > { %s24_s20 = sadd.s32 1, %s1612_s18  ;;  %s1343_s21 = sadd.s32 4294967295, %s1616_s19   ;;  %s1616_s19 = sphi %s1652_s19, %s15_s19   ;;  %s1612_s18 = sphi %s1650_s18, %s1956_s18   ;;  %s1608_s17 = sphi %s1648_s17, %s1955_s17   ;;  %s1604_s16 = sphi %s1646_s16, %s1954_s16   ;;  %s1600_s15 = sphi %s1644_s15, %s1953_s15  }
   0x4   : > { %p25_p0 = scmp.ge.s32.totalorder %s24_s20, 2  ;;  %p67_p1 = scmp.ne.s32.totalorder %s1604_s16, %s1600_s15 }
   0x5   : > { %p68_p2 = scmp.eq.s32.totalorder %s1616_s19, 0  ;;  %p99_p4 = scmp.eq.s32.totalorder %s1343_s21, 1 }
   0x6   : > { %s1958_s20 = smov (%p25_p0, %s24_s20), 0  ;;  %s60_s23 = sadd.s32 1, %s1604_s16 }
   0x7   : > { %p69_p3 = por %p68_p2, %p67_p1  ;;  %s57_s22 = ssub.s32 %s1612_s18, %s1958_s20 }
   0x8   : > { %p58_p5 = scmp.eq.s32.totalorder %s57_s22, 0  ;;  %p1679_p6 = por %p99_p4, %p67_p1 }
   0x9   : > { %p1347_p7 = scmp.ge.s32.totalorder %s1616_s19, 2 }
   0xa   : > { %s1684_s25 = scalar_select %p58_p5, %s1604_s16, %s60_s23  }
   0xb   : > { %187 = sbr.rel (%p1347_p7) target bundleno = 54 (0x36), region = 20 }
  0x12   : > { %190 = sbr.rel (!%p69_p3) target bundleno = 54 (0x36), region = 24  ;;  %s192_s26 = sand.u32 (%p69_p3), 1, %s1604_s16  }
  0x13   : > { %s1429_s27 = sshll.u32 (%p69_p3), %s1612_s18, 3  ;;  %s1348_s28 = sshll.u32 (%p69_p3), %s192_s26, 9 }
  0x14   : > { %s1692_s5 = scalar_lea.vmem (%p69_p3), %s1948_s1, %s1429_s27  ;;  %s1697_s6 = scalar_lea.vmem (%p69_p3), [#allocation2], %s1348_s28 }
  0x15   : > { %v351_v0 = vld [vmem:[%s1692_s5] sm:$0xff] (%p69_p3)  ;;  %v353_v1 = vld [vmem:[%s1692_s5 + $0x10] sm:$0xff] (%p69_p3) }
  0x16   : > { %v355_v2 = vld [vmem:[%s1692_s5 + $0x20] sm:$0xff] (%p69_p3)  ;;  %352 = vst [vmem:[%s1697_s6] sm:$0xff] (%p69_p3), %v351_v0  ;;  %354 = vst [vmem:[%s1697_s6 + $0x8] sm:$0xff] (%p69_p3), %v353_v1  ;;  %v357_v3 = vld [vmem:[%s1692_s5 + $0x30] sm:$0xff] (%p69_p3) }
  0x17   : > { %356 = vst [vmem:[%s1697_s6 + $0x10] sm:$0xff] (%p69_p3), %v355_v2  ;;  %v359_v4 = vld [vmem:[%s1692_s5 + $0x40] sm:$0xff] (%p69_p3)  ;;  %v361_v5 = vld [vmem:[%s1692_s5 + $0x50] sm:$0xff] (%p69_p3)  ;;  %358 = vst [vmem:[%s1697_s6 + $0x18] sm:$0xff] (%p69_p3), %v357_v3 }
  0x18   : > { %360 = vst [vmem:[%s1697_s6 + $0x20] sm:$0xff] (%p69_p3), %v359_v4  ;;  %362 = vst [vmem:[%s1697_s6 + $0x28] sm:$0xff] (%p69_p3), %v361_v5  ;;  %v363_v6 = vld [vmem:[%s1692_s5 + $0x60] sm:$0xff] (%p69_p3)  ;;  %v365_v7 = vld [vmem:[%s1692_s5 + $0x70] sm:$0xff] (%p69_p3) }
  0x19   : > { %v367_v8 = vld [vmem:[%s1692_s5 + $0x80] sm:$0xff]  ;;  %364 = vst [vmem:[%s1697_s6 + $0x30] sm:$0xff] %v363_v6  ;;  %366 = vst [vmem:[%s1697_s6 + $0x38] sm:$0xff] %v365_v7  ;;  %v369_v9 = vld [vmem:[%s1692_s5 + $0x90] sm:$0xff] }
  0x1a   : > { %368 = vst [vmem:[%s1697_s6 + $0x40] sm:$0xff] %v367_v8  ;;  %v371_v10 = vld [vmem:[%s1692_s5 + $0xa0] sm:$0xff]  ;;  %v373_v11 = vld [vmem:[%s1692_s5 + $0xb0] sm:$0xff]  ;;  %370 = vst [vmem:[%s1697_s6 + $0x48] sm:$0xff] %v369_v9 }
  0x1b   : > { %372 = vst [vmem:[%s1697_s6 + $0x50] sm:$0xff] %v371_v10  ;;  %374 = vst [vmem:[%s1697_s6 + $0x58] sm:$0xff] %v373_v11  ;;  %v375_v12 = vld [vmem:[%s1692_s5 + $0xc0] sm:$0xff]  ;;  %v377_v13 = vld [vmem:[%s1692_s5 + $0xd0] sm:$0xff] }
  0x1c   : > { %v379_v14 = vld [vmem:[%s1692_s5 + $0xe0] sm:$0xff]  ;;  %376 = vst [vmem:[%s1697_s6 + $0x60] sm:$0xff] %v375_v12  ;;  %378 = vst [vmem:[%s1697_s6 + $0x68] sm:$0xff] %v377_v13  ;;  %v381_v15 = vld [vmem:[%s1692_s5 + $0xf0] sm:$0xff] }
  0x1d   : > { %380 = vst [vmem:[%s1697_s6 + $0x70] sm:$0xff] %v379_v14  ;;  %v383_v16 = vld [vmem:[%s1692_s5 + $0x100] sm:$0xff]  ;;  %v385_v17 = vld [vmem:[%s1692_s5 + $0x110] sm:$0xff]  ;;  %382 = vst [vmem:[%s1697_s6 + $0x78] sm:$0xff] %v381_v15 }
  0x1e   : > { %384 = vst [vmem:[%s1697_s6 + $0x80] sm:$0xff] %v383_v16  ;;  %386 = vst [vmem:[%s1697_s6 + $0x88] sm:$0xff] %v385_v17  ;;  %v387_v18 = vld [vmem:[%s1692_s5 + $0x120] sm:$0xff]  ;;  %v389_v19 = vld [vmem:[%s1692_s5 + $0x130] sm:$0xff] }
  0x1f   : > { %v391_v20 = vld [vmem:[%s1692_s5 + $0x140] sm:$0xff]  ;;  %388 = vst [vmem:[%s1697_s6 + $0x90] sm:$0xff] %v387_v18  ;;  %390 = vst [vmem:[%s1697_s6 + $0x98] sm:$0xff] %v389_v19  ;;  %v393_v21 = vld [vmem:[%s1692_s5 + $0x150] sm:$0xff] }
  0x20   : > { %392 = vst [vmem:[%s1697_s6 + $0xa0] sm:$0xff] %v391_v20  ;;  %v395_v22 = vld [vmem:[%s1692_s5 + $0x160] sm:$0xff]  ;;  %v397_v23 = vld [vmem:[%s1692_s5 + $0x170] sm:$0xff]  ;;  %394 = vst [vmem:[%s1697_s6 + $0xa8] sm:$0xff] %v393_v21 }
  0x21   : > { %396 = vst [vmem:[%s1697_s6 + $0xb0] sm:$0xff] %v395_v22  ;;  %398 = vst [vmem:[%s1697_s6 + $0xb8] sm:$0xff] %v397_v23  ;;  %v399_v24 = vld [vmem:[%s1692_s5 + $0x180] sm:$0xff]  ;;  %v401_v25 = vld [vmem:[%s1692_s5 + $0x190] sm:$0xff] }
  0x22   : > { %v403_v26 = vld [vmem:[%s1692_s5 + $0x1a0] sm:$0xff]  ;;  %400 = vst [vmem:[%s1697_s6 + $0xc0] sm:$0xff] %v399_v24  ;;  %402 = vst [vmem:[%s1697_s6 + $0xc8] sm:$0xff] %v401_v25  ;;  %v405_v27 = vld [vmem:[%s1692_s5 + $0x1b0] sm:$0xff] }
  0x23   : > { %404 = vst [vmem:[%s1697_s6 + $0xd0] sm:$0xff] %v403_v26  ;;  %v407_v28 = vld [vmem:[%s1692_s5 + $0x1c0] sm:$0xff]  ;;  %v409_v29 = vld [vmem:[%s1692_s5 + $0x1d0] sm:$0xff]  ;;  %406 = vst [vmem:[%s1697_s6 + $0xd8] sm:$0xff] %v405_v27 }
  0x24   : > { %408 = vst [vmem:[%s1697_s6 + $0xe0] sm:$0xff] %v407_v28  ;;  %410 = vst [vmem:[%s1697_s6 + $0xe8] sm:$0xff] %v409_v29  ;;  %v411_v30 = vld [vmem:[%s1692_s5 + $0x1e0] sm:$0xff]  ;;  %v413_v31 = vld [vmem:[%s1692_s5 + $0x1f0] sm:$0xff] }
  0x25   : > { %v415_v32 = vld [vmem:[%s1692_s5 + $0x200] sm:$0xff]  ;;  %412 = vst [vmem:[%s1697_s6 + $0xf0] sm:$0xff] %v411_v30  ;;  %414 = vst [vmem:[%s1697_s6 + $0xf8] sm:$0xff] %v413_v31  ;;  %v417_v33 = vld [vmem:[%s1692_s5 + $0x210] sm:$0xff] }
  0x26   : > { %416 = vst [vmem:[%s1697_s6 + $0x100] sm:$0xff] %v415_v32  ;;  %v419_v34 = vld [vmem:[%s1692_s5 + $0x220] sm:$0xff]  ;;  %v421_v35 = vld [vmem:[%s1692_s5 + $0x230] sm:$0xff]  ;;  %418 = vst [vmem:[%s1697_s6 + $0x108] sm:$0xff] %v417_v33 }
  0x27   : > { %420 = vst [vmem:[%s1697_s6 + $0x110] sm:$0xff] %v419_v34  ;;  %422 = vst [vmem:[%s1697_s6 + $0x118] sm:$0xff] %v421_v35  ;;  %v423_v36 = vld [vmem:[%s1692_s5 + $0x240] sm:$0xff]  ;;  %v425_v37 = vld [vmem:[%s1692_s5 + $0x250] sm:$0xff] }
  0x28   : > { %v427_v38 = vld [vmem:[%s1692_s5 + $0x260] sm:$0xff]  ;;  %424 = vst [vmem:[%s1697_s6 + $0x120] sm:$0xff] %v423_v36  ;;  %426 = vst [vmem:[%s1697_s6 + $0x128] sm:$0xff] %v425_v37  ;;  %v429_v39 = vld [vmem:[%s1692_s5 + $0x270] sm:$0xff] }
  0x29   : > { %428 = vst [vmem:[%s1697_s6 + $0x130] sm:$0xff] %v427_v38  ;;  %v431_v40 = vld [vmem:[%s1692_s5 + $0x280] sm:$0xff]  ;;  %v433_v41 = vld [vmem:[%s1692_s5 + $0x290] sm:$0xff]  ;;  %430 = vst [vmem:[%s1697_s6 + $0x138] sm:$0xff] %v429_v39 }
  0x2a   : > { %432 = vst [vmem:[%s1697_s6 + $0x140] sm:$0xff] %v431_v40  ;;  %434 = vst [vmem:[%s1697_s6 + $0x148] sm:$0xff] %v433_v41  ;;  %v435_v42 = vld [vmem:[%s1692_s5 + $0x2a0] sm:$0xff]  ;;  %v437_v43 = vld [vmem:[%s1692_s5 + $0x2b0] sm:$0xff] }
  0x2b   : > { %v439_v44 = vld [vmem:[%s1692_s5 + $0x2c0] sm:$0xff]  ;;  %436 = vst [vmem:[%s1697_s6 + $0x150] sm:$0xff] %v435_v42  ;;  %438 = vst [vmem:[%s1697_s6 + $0x158] sm:$0xff] %v437_v43  ;;  %v441_v45 = vld [vmem:[%s1692_s5 + $0x2d0] sm:$0xff] }
  0x2c   : > { %440 = vst [vmem:[%s1697_s6 + $0x160] sm:$0xff] %v439_v44  ;;  %v443_v46 = vld [vmem:[%s1692_s5 + $0x2e0] sm:$0xff]  ;;  %v445_v47 = vld [vmem:[%s1692_s5 + $0x2f0] sm:$0xff]  ;;  %442 = vst [vmem:[%s1697_s6 + $0x168] sm:$0xff] %v441_v45 }
  0x2d   : > { %444 = vst [vmem:[%s1697_s6 + $0x170] sm:$0xff] %v443_v46  ;;  %446 = vst [vmem:[%s1697_s6 + $0x178] sm:$0xff] %v445_v47  ;;  %v447_v48 = vld [vmem:[%s1692_s5 + $0x300] sm:$0xff]  ;;  %v449_v49 = vld [vmem:[%s1692_s5 + $0x310] sm:$0xff] }
  0x2e   : > { %v451_v50 = vld [vmem:[%s1692_s5 + $0x320] sm:$0xff]  ;;  %448 = vst [vmem:[%s1697_s6 + $0x180] sm:$0xff] %v447_v48  ;;  %450 = vst [vmem:[%s1697_s6 + $0x188] sm:$0xff] %v449_v49  ;;  %v453_v51 = vld [vmem:[%s1692_s5 + $0x330] sm:$0xff] }
  0x2f   : > { %452 = vst [vmem:[%s1697_s6 + $0x190] sm:$0xff] %v451_v50  ;;  %v455_v52 = vld [vmem:[%s1692_s5 + $0x340] sm:$0xff]  ;;  %v457_v53 = vld [vmem:[%s1692_s5 + $0x350] sm:$0xff]  ;;  %454 = vst [vmem:[%s1697_s6 + $0x198] sm:$0xff] %v453_v51 }
  0x30   : > { %456 = vst [vmem:[%s1697_s6 + $0x1a0] sm:$0xff] %v455_v52  ;;  %458 = vst [vmem:[%s1697_s6 + $0x1a8] sm:$0xff] %v457_v53  ;;  %v459_v54 = vld [vmem:[%s1692_s5 + $0x360] sm:$0xff]  ;;  %v461_v55 = vld [vmem:[%s1692_s5 + $0x370] sm:$0xff] }
  0x31   : > { %v463_v56 = vld [vmem:[%s1692_s5 + $0x380] sm:$0xff]  ;;  %460 = vst [vmem:[%s1697_s6 + $0x1b0] sm:$0xff] %v459_v54  ;;  %462 = vst [vmem:[%s1697_s6 + $0x1b8] sm:$0xff] %v461_v55  ;;  %v465_v57 = vld [vmem:[%s1692_s5 + $0x390] sm:$0xff] }
  0x32   : > { %464 = vst [vmem:[%s1697_s6 + $0x1c0] sm:$0xff] %v463_v56  ;;  %v467_v58 = vld [vmem:[%s1692_s5 + $0x3a0] sm:$0xff]  ;;  %v469_v59 = vld [vmem:[%s1692_s5 + $0x3b0] sm:$0xff]  ;;  %466 = vst [vmem:[%s1697_s6 + $0x1c8] sm:$0xff] %v465_v57 }
  0x33   : > { %468 = vst [vmem:[%s1697_s6 + $0x1d0] sm:$0xff] %v467_v58  ;;  %470 = vst [vmem:[%s1697_s6 + $0x1d8] sm:$0xff] %v469_v59  ;;  %v471_v60 = vld [vmem:[%s1692_s5 + $0x3c0] sm:$0xff]  ;;  %v473_v61 = vld [vmem:[%s1692_s5 + $0x3d0] sm:$0xff] }
  0x34   : > { %v475_v62 = vld [vmem:[%s1692_s5 + $0x3e0] sm:$0xff]  ;;  %472 = vst [vmem:[%s1697_s6 + $0x1e0] sm:$0xff] %v471_v60  ;;  %474 = vst [vmem:[%s1697_s6 + $0x1e8] sm:$0xff] %v473_v61  ;;  %v477_v63 = vld [vmem:[%s1692_s5 + $0x3f0] sm:$0xff] }
  0x35   : > { %476 = vst [vmem:[%s1697_s6 + $0x1f0] sm:$0xff] %v475_v62  ;;  %478 = vst [vmem:[%s1697_s6 + $0x1f8] sm:$0xff] %v477_v63 }
  0x36 PF: > { %p1351_p8 = scmp.ge.s32.totalorder %s1616_s19, 1  ;;  %p483_p9 = scmp.lt.s32.totalorder %s1616_s19, 3 }
  0x38   : > { %p484_p10 = pnand %p1351_p8, %p483_p9 }
  0x39   : > { %s490_s7 = sand.u32 (!%p484_p10), 1, %s1600_s15   ;;  %v1574_v0 = vld [vmem:[%s1947_s0 + $0x4] ss:$16 sps:$4 sm:$0xff] (!%p484_p10)   ;;  %v1577_v1 = vld [vmem:[%s1947_s0 + $0xc] ss:$16 sps:$4 sm:$0xff] (!%p484_p10)   ;;  %s1354_s15 = sshll.u32 (!%p484_p10), %s1608_s17, 1 }
  0x3a   : > { %487 = sbr.rel (%p484_p10) target bundleno = 366 (0x16e), region = 62  ;;  %s1352_s8 = sshll.u32 (!%p484_p10), %s490_s7, 9  ;;  %1004 = vmatprep.mubr.bf16.mxu1 (!%p484_p10), %v1574_v0  ;;  %1047 = vmatprep.mubr.bf16.mxu0 (!%p484_p10), %v1577_v1 }
  0x3b   : > { %s1835_s13 = scalar_lea.vmem (!%p484_p10), [#allocation2], %s1352_s8  ;;  %s1353_s26 = sshll.u32 (!%p484_p10), %s490_s7, 5 }
  0x3c   : > { %v1476_v2 = vld [vmem:[%s1835_s13 + $0x4] ss:$8 sps:$4 sm:$0xff] (!%p484_p10)   ;;  %v1480_v4 = vld [vmem:[%s1835_s13] ss:$8 sps:$4 sm:$0xff] (!%p484_p10)   ;;  %v1482_v6 = vld [vmem:[%s1835_s13 + $0x14] ss:$8 sps:$4 sm:$0xff] (!%p484_p10)  }
  0x3d   : > { %v1478_v3 = vld [vmem:[%s1835_s13 + $0x104] ss:$8 sps:$4 sm:$0xff] (!%p484_p10)   ;;  %972 = vmatprep.subr.bf16.mxu1 (!%p484_p10), %v1476_v2  ;;  %v1481_v5 = vld [vmem:[%s1835_s13 + $0x100] ss:$8 sps:$4 sm:$0xff] (!%p484_p10)   ;;  %v1484_v7 = vld [vmem:[%s1835_s13 + $0x114] ss:$8 sps:$4 sm:$0xff] (!%p484_p10)  }
  0x3e   : > { %1015 = vmatprep.subr.bf16.mxu0 (!%p484_p10), %v1478_v3  ;;  %973 = vmatpush1.bf16.msra.mxu1 (!%p484_p10), %v1480_v4  ;;  %v1486_v8 = vld [vmem:[%s1835_s13 + $0x10] ss:$8 sps:$4 sm:$0xff] (!%p484_p10)   ;;  %v1488_v10 = vld [vmem:[%s1835_s13 + $0x24] ss:$8 sps:$4 sm:$0xff] (!%p484_p10)   ;;  %v1492_v12 = vld [vmem:[%s1835_s13 + $0x20] ss:$8 sps:$4 sm:$0xff] (!%p484_p10)  }
  0x3f   : > { %1016 = vmatpush1.bf16.msra.mxu0 (!%p484_p10), %v1481_v5  ;;  %974 = vmatprep.subr.bf16.mxu1 (!%p484_p10), %v1482_v6  ;;  %v1487_v9 = vld [vmem:[%s1835_s13 + $0x110] ss:$8 sps:$4 sm:$0xff] (!%p484_p10)   ;;  %v1490_v11 = vld [vmem:[%s1835_s13 + $0x124] ss:$8 sps:$4 sm:$0xff] (!%p484_p10)   ;;  %v1493_v13 = vld [vmem:[%s1835_s13 + $0x120] ss:$8 sps:$4 sm:$0xff] (!%p484_p10)  }
  0x40   : > { %1017 = vmatprep.subr.bf16.mxu0 (!%p484_p10), %v1484_v7  ;;  %v1494_v14 = vld [vmem:[%s1835_s13 + $0x34] ss:$8 sps:$4 sm:$0xff] (!%p484_p10)   ;;  %v1498_v16 = vld [vmem:[%s1835_s13 + $0x30] ss:$8 sps:$4 sm:$0xff] (!%p484_p10)   ;;  %v1500_v18 = vld [vmem:[%s1835_s13 + $0x44] ss:$8 sps:$4 sm:$0xff] (!%p484_p10)  }
  0x41   : > { %v1496_v15 = vld [vmem:[%s1835_s13 + $0x134] ss:$8 sps:$4 sm:$0xff]   ;;  %v1499_v17 = vld [vmem:[%s1835_s13 + $0x130] ss:$8 sps:$4 sm:$0xff]   ;;  %v1502_v19 = vld [vmem:[%s1835_s13 + $0x144] ss:$8 sps:$4 sm:$0xff]  }
  0x42   : > { %975 = vmatpush1.bf16.msra.mxu1 %v1486_v8  ;;  %v1504_v20 = vld [vmem:[%s1835_s13 + $0x40] ss:$8 sps:$4 sm:$0xff]   ;;  %v1506_v22 = vld [vmem:[%s1835_s13 + $0x54] ss:$8 sps:$4 sm:$0xff]   ;;  %v1510_v24 = vld [vmem:[%s1835_s13 + $0x50] ss:$8 sps:$4 sm:$0xff]  }
  0x43   : > { %1018 = vmatpush1.bf16.msra.mxu0 %v1487_v9  ;;  %976 = vmatprep.subr.bf16.mxu1 %v1488_v10  ;;  %v1505_v21 = vld [vmem:[%s1835_s13 + $0x140] ss:$8 sps:$4 sm:$0xff]   ;;  %v1508_v23 = vld [vmem:[%s1835_s13 + $0x154] ss:$8 sps:$4 sm:$0xff]   ;;  %v1511_v25 = vld [vmem:[%s1835_s13 + $0x150] ss:$8 sps:$4 sm:$0xff]  }
  0x44   : > { %1019 = vmatprep.subr.bf16.mxu0 %v1490_v11  ;;  %v1512_v26 = vld [vmem:[%s1835_s13 + $0x64] ss:$8 sps:$4 sm:$0xff]   ;;  %v1516_v28 = vld [vmem:[%s1835_s13 + $0x60] ss:$8 sps:$4 sm:$0xff]   ;;  %v1518_v30 = vld [vmem:[%s1835_s13 + $0x74] ss:$8 sps:$4 sm:$0xff]  }
  0x45   : > { %v1514_v27 = vld [vmem:[%s1835_s13 + $0x164] ss:$8 sps:$4 sm:$0xff]   ;;  %v1517_v29 = vld [vmem:[%s1835_s13 + $0x160] ss:$8 sps:$4 sm:$0xff]   ;;  %v1520_v31 = vld [vmem:[%s1835_s13 + $0x174] ss:$8 sps:$4 sm:$0xff]  }
  0x46   : > { %977 = vmatpush1.bf16.msra.mxu1 %v1492_v12  ;;  %v1522_v32 = vld [vmem:[%s1835_s13 + $0x70] ss:$8 sps:$4 sm:$0xff]   ;;  %v1524_v34 = vld [vmem:[%s1835_s13 + $0x84] ss:$8 sps:$4 sm:$0xff]   ;;  %v1528_v36 = vld [vmem:[%s1835_s13 + $0x80] ss:$8 sps:$4 sm:$0xff]  }
  0x47   : > { %1020 = vmatpush1.bf16.msra.mxu0 %v1493_v13  ;;  %978 = vmatprep.subr.bf16.mxu1 %v1494_v14  ;;  %v1523_v33 = vld [vmem:[%s1835_s13 + $0x170] ss:$8 sps:$4 sm:$0xff]   ;;  %v1526_v35 = vld [vmem:[%s1835_s13 + $0x184] ss:$8 sps:$4 sm:$0xff]   ;;  %v1529_v37 = vld [vmem:[%s1835_s13 + $0x180] ss:$8 sps:$4 sm:$0xff]  }
  0x48   : > { %1021 = vmatprep.subr.bf16.mxu0 %v1496_v15  ;;  %v1530_v38 = vld [vmem:[%s1835_s13 + $0x94] ss:$8 sps:$4 sm:$0xff]   ;;  %v1534_v40 = vld [vmem:[%s1835_s13 + $0x90] ss:$8 sps:$4 sm:$0xff]   ;;  %v1536_v42 = vld [vmem:[%s1835_s13 + $0xa4] ss:$8 sps:$4 sm:$0xff]  }
  0x49   : > { %v1532_v39 = vld [vmem:[%s1835_s13 + $0x194] ss:$8 sps:$4 sm:$0xff]   ;;  %v1535_v41 = vld [vmem:[%s1835_s13 + $0x190] ss:$8 sps:$4 sm:$0xff]   ;;  %v1538_v43 = vld [vmem:[%s1835_s13 + $0x1a4] ss:$8 sps:$4 sm:$0xff]  }
  0x4a   : > { %979 = vmatpush1.bf16.msra.mxu1 %v1498_v16  ;;  %v1540_v44 = vld [vmem:[%s1835_s13 + $0xa0] ss:$8 sps:$4 sm:$0xff]   ;;  %v1542_v46 = vld [vmem:[%s1835_s13 + $0xb4] ss:$8 sps:$4 sm:$0xff]   ;;  %v1546_v48 = vld [vmem:[%s1835_s13 + $0xb0] ss:$8 sps:$4 sm:$0xff]  }
  0x4b   : > { %1022 = vmatpush1.bf16.msra.mxu0 %v1499_v17  ;;  %980 = vmatprep.subr.bf16.mxu1 %v1500_v18  ;;  %v1541_v45 = vld [vmem:[%s1835_s13 + $0x1a0] ss:$8 sps:$4 sm:$0xff]   ;;  %v1544_v47 = vld [vmem:[%s1835_s13 + $0x1b4] ss:$8 sps:$4 sm:$0xff]   ;;  %v1547_v49 = vld [vmem:[%s1835_s13 + $0x1b0] ss:$8 sps:$4 sm:$0xff]  }
  0x4c   : > { %1023 = vmatprep.subr.bf16.mxu0 %v1502_v19  ;;  %v1548_v50 = vld [vmem:[%s1835_s13 + $0xc4] ss:$8 sps:$4 sm:$0xff]   ;;  %v1552_v52 = vld [vmem:[%s1835_s13 + $0xc0] ss:$8 sps:$4 sm:$0xff]   ;;  %v1554_v54 = vld [vmem:[%s1835_s13 + $0xd4] ss:$8 sps:$4 sm:$0xff]  }
  0x4d   : > { %v1550_v51 = vld [vmem:[%s1835_s13 + $0x1c4] ss:$8 sps:$4 sm:$0xff]   ;;  %v1553_v53 = vld [vmem:[%s1835_s13 + $0x1c0] ss:$8 sps:$4 sm:$0xff]   ;;  %v1556_v55 = vld [vmem:[%s1835_s13 + $0x1d4] ss:$8 sps:$4 sm:$0xff]  }
  0x4e   : > { %981 = vmatpush1.bf16.msra.mxu1 %v1504_v20  ;;  %v1558_v56 = vld [vmem:[%s1835_s13 + $0xd0] ss:$8 sps:$4 sm:$0xff]   ;;  %v1560_v58 = vld [vmem:[%s1835_s13 + $0xe4] ss:$8 sps:$4 sm:$0xff]   ;;  %v1564_v60 = vld [vmem:[%s1835_s13 + $0xe0] ss:$8 sps:$4 sm:$0xff]  }
  0x4f   : > { %1024 = vmatpush1.bf16.msra.mxu0 %v1505_v21  ;;  %982 = vmatprep.subr.bf16.mxu1 %v1506_v22  ;;  %v1559_v57 = vld [vmem:[%s1835_s13 + $0x1d0] ss:$8 sps:$4 sm:$0xff]   ;;  %v1562_v59 = vld [vmem:[%s1835_s13 + $0x1e4] ss:$8 sps:$4 sm:$0xff]   ;;  %v1565_v61 = vld [vmem:[%s1835_s13 + $0x1e0] ss:$8 sps:$4 sm:$0xff]  }
  0x50   : > { %1025 = vmatprep.subr.bf16.mxu0 %v1508_v23  ;;  %v1566_v62 = vld [vmem:[%s1835_s13 + $0xf4] ss:$8 sps:$4 sm:$0xff]   ;;  %v1570_v0 = vld [vmem:[%s1835_s13 + $0xf0] ss:$8 sps:$4 sm:$0xff]   ;;  %s1909_s27 = scalar_lea.vmem [#allocation3], %s1353_s26  ;;  %p549_p11 = scmp.lt.s32.totalorder %s1354_s15, 3 }
  0x51   : > { %v1568_v63 = vld [vmem:[%s1835_s13 + $0x1f4] ss:$8 sps:$4 sm:$0xff]   ;;  %v1571_v1 = vld [vmem:[%s1835_s13 + $0x1f0] ss:$8 sps:$4 sm:$0xff]   ;;  %s1430_s8 = sshll.u32 (%p1679_p6), %s1608_s17, 4 }
  0x52   : > { %983 = vmatpush1.bf16.msra.mxu1 %v1510_v24  ;;  %v1572_v2 = vld [vmem:[%s1947_s0] ss:$16 sps:$4 sm:$0xff]   ;;  %v1575_v3 = vld [vmem:[%s1947_s0 + $0x8] ss:$16 sps:$4 sm:$0xff]   ;;  %s1960_s15 = smov (!%p549_p11, %s1354_s15), 3  ;;  %s1164_s11 = scalar_lea.vmem (%p1679_p6), %s1949_s2, %s1430_s8 }
  0x53   : > { %1026 = vmatpush1.bf16.msra.mxu0 %v1511_v25  ;;  %984 = vmatprep.subr.bf16.mxu1 %v1512_v26  ;;  %s553_s30 = scalar_lea.vmem %s1950_s3, %s1960_s15  ;;  %s562_s7 = scalar_lea.vmem %s1951_s4, %s1960_s15 }
  0x54   : > { %1027 = vmatprep.subr.bf16.mxu0 %v1514_v27 }
  0x56   : > { %985 = vmatpush1.bf16.msra.mxu1 %v1516_v28 }
  0x57   : > { %1028 = vmatpush1.bf16.msra.mxu0 %v1517_v29  ;;  %986 = vmatprep.subr.bf16.mxu1 %v1518_v30  ;;  %v1618_v29 = vmov 1966171168  }
  0x58   : > { %1029 = vmatprep.subr.bf16.mxu0 %v1520_v31  ;;  %v1080_v30 = vunpack.c.l.s4 %v1618_v29  ;;  %v1082_v31 = vlaneseq }
  0x5a   : > { %987 = vmatpush1.bf16.msra.mxu1 %v1522_v32  ;;  %vm1096_vm0 = vcmp.lt.s32.totalorder %v1082_v31, 256 }
  0x5b   : > { %1030 = vmatpush1.bf16.msra.mxu0 %v1523_v33  ;;  %988 = vmatprep.subr.bf16.mxu1 %v1524_v34 }
  0x5c   : > { %1031 = vmatprep.subr.bf16.mxu0 %v1526_v35 }
  0x5e   : > { %989 = vmatpush1.bf16.msra.mxu1 %v1528_v36 }
  0x5f   : > { %1032 = vmatpush1.bf16.msra.mxu0 %v1529_v37  ;;  %990 = vmatprep.subr.bf16.mxu1 %v1530_v38 }
  0x60   : > { %1033 = vmatprep.subr.bf16.mxu0 %v1532_v39 }
  0x62   : > { %991 = vmatpush1.bf16.msra.mxu1 %v1534_v40  ;;  %v1081_v40 = vunpack.c.0.s8 %v1080_v30 }
  0x63   : > { %1034 = vmatpush1.bf16.msra.mxu0 %v1535_v41  ;;  %992 = vmatprep.subr.bf16.mxu1 %v1536_v42  ;;  %v1083_v41 = vshrl.u32 %v1082_v31, 7 }
  0x64   : > { %1035 = vmatprep.subr.bf16.mxu0 %v1538_v43 }
  0x66   : > { %993 = vmatpush1.bf16.msra.mxu1 %v1540_v44 }
  0x67   : > { %1036 = vmatpush1.bf16.msra.mxu0 %v1541_v45  ;;  %994 = vmatprep.subr.bf16.mxu1 %v1542_v46 }
  0x68   : > { %1037 = vmatprep.subr.bf16.mxu0 %v1544_v47 }
  0x6a   : > { %995 = vmatpush1.bf16.msra.mxu1 %v1546_v48 }
  0x6b   : > { %1038 = vmatpush1.bf16.msra.mxu0 %v1547_v49  ;;  %996 = vmatprep.subr.bf16.mxu1 %v1548_v50  ;;  %v1084_v50 = vsub.s32 %v1081_v40, %v1083_v41 }
  0x6c   : > { %1039 = vmatprep.subr.bf16.mxu0 %v1550_v51 }
  0x6e   : > { %997 = vmatpush1.bf16.msra.mxu1 %v1552_v52 }
  0x6f   : > { %1040 = vmatpush1.bf16.msra.mxu0 %v1553_v53  ;;  %998 = vmatprep.subr.bf16.mxu1 %v1554_v54 }
  0x70   : > { %1041 = vmatprep.subr.bf16.mxu0 %v1556_v55 }
  0x72   : > { %999 = vmatpush1.bf16.msra.mxu1 %v1558_v56 }
  0x73   : > { %1042 = vmatpush1.bf16.msra.mxu0 %v1559_v57  ;;  %1000 = vmatprep.subr.bf16.mxu1 %v1560_v58 }
  0x74   : > { %1043 = vmatprep.subr.bf16.mxu0 %v1562_v59 }
  0x76   : > { %1001 = vmatpush1.bf16.msra.mxu1 %v1564_v60 }
  0x77   : > { %1044 = vmatpush1.bf16.msra.mxu0 %v1565_v61  ;;  %1002 = vmatprep.subr.bf16.mxu1 %v1566_v62 }
  0x78   : > { %1045 = vmatprep.subr.bf16.mxu0 %v1568_v63 }
  0x7a   : > { %1003 = vmatpush1.bf16.msra.mxu1 %v1570_v0 }
  0x7b   : > { %1046 = vmatpush1.bf16.msra.mxu0 %v1571_v1 }
  0x7d   : > { %1005 = vmatmul.mubr.bf16.vlgmr.msra.gmra.mrb[0].mxu1 %v1572_v2 }
  0x7e   : > { %1048 = vmatmul.mubr.bf16.vlgmr.msra.gmra.mrb[0].mxu0 %v1575_v3 }
 0x150   : > { %v1006_v4 = vpop.f32.mrb[0].mxu1 }
 0x151   : > { %v1049_v5 = vpop.f32.mrb[0].mxu0  ;;  %v1008_v7 = vpop.f32.mrb[1].mxu1 }
 0x152   : > { %v1050_v6 = vadd.f32 %v1049_v5, %v1006_v4  ;;  %v1051_v8 = vpop.f32.mrb[1].mxu0  ;;  %v1010_v10 = vpop.f32.mrb[2].mxu1 }
 0x153   : > { %v1052_v9 = vadd.f32 %v1051_v8, %v1008_v7  ;;  %v1053_v11 = vpop.f32.mrb[2].mxu0  ;;  %v1012_v13 = vpop.f32.mrb[3].mxu1 }
 0x154   : > { %1058 = vst [vmem:[%s1909_s27] sm:$0xff] %v1050_v6  ;;  %v1054_v12 = vadd.f32 %v1053_v11, %v1010_v10  ;;  %v1055_v14 = vpop.f32.mrb[3].mxu0  ;;  %v1099_v16 = vmul.f32 %v1050_v6, %v1050_v6 }
 0x155   : > { %1059 = vst [vmem:[%s1909_s27 + $0x8] sm:$0xff] %v1052_v9  ;;  %v1056_v15 = vadd.f32 %v1055_v14, %v1012_v13  ;;  %v1100_v19 = vmul.f32 %v1052_v9, %v1052_v9 }
 0x156   : > { %1060 = vst [vmem:[%s1909_s27 + $0x10] sm:$0xff] %v1054_v12  ;;  %v1062_v17 = vadd.f32 %v1054_v12, %v1050_v6  ;;  %v1101_v18 = vmul.f32 %v1054_v12, %v1054_v12 }
 0x157   : > { %1061 = vst [vmem:[%s1909_s27 + $0x18] sm:$0xff] %v1056_v15  ;;  %v1069_v20 = vadd.f32 %v1056_v15, %v1052_v9  ;;  %v1102_v21 = vmul.f32 %v1056_v15, %v1056_v15 }
 0x158   : > { %v1063_v22 = vrot.slane %v1062_v17, 4  ;;  %v1103_v23 = vadd.f32 %v1101_v18, %v1099_v16 }
 0x159   : > { %v1070_v24 = vrot.slane %v1069_v20, 4  ;;  %v1110_v25 = vadd.f32 %v1102_v21, %v1100_v19 }
 0x15a   : > { %v1064_v26 = vadd.f32 %v1063_v22, %v1062_v17  ;;  %v1104_v27 = vrot.slane %v1103_v23, 4 }
 0x15b   : > { %v1071_v28 = vadd.f32 %v1070_v24, %v1069_v20  ;;  %v1111_v32 = vrot.slane %v1110_v25, 4  ;;  %v1177_v60 = vld [vmem:[%s1909_s27] sm:$0xff] (%p1679_p6) }
 0x15c   : > { %v1065_v33 = vrot.slane %v1064_v26, 2  ;;  %v1105_v34 = vadd.f32 %v1104_v27, %v1103_v23  ;;  %v1179_v61 = vld [vmem:[%s1909_s27 + $0x8] sm:$0xff] (%p1679_p6)  ;;  %1178 = vst [vmem:[%s1164_s11] sm:$0xff] (%p1679_p6), %v1177_v60 }
 0x15d   : > { %v1072_v35 = vrot.slane %v1071_v28, 2  ;;  %v1112_v36 = vadd.f32 %v1111_v32, %v1110_v25  ;;  %v1181_v62 = vld [vmem:[%s1909_s27 + $0x10] sm:$0xff] (%p1679_p6)  ;;  %1180 = vst [vmem:[%s1164_s11 + $0x8] sm:$0xff] (%p1679_p6), %v1179_v61 }
 0x15e   : > { %v1066_v37 = vadd.f32 %v1065_v33, %v1064_v26  ;;  %v1106_v38 = vrot.slane %v1105_v34, 2  ;;  %v1183_v63 = vld [vmem:[%s1909_s27 + $0x18] sm:$0xff] (%p1679_p6)  ;;  %1182 = vst [vmem:[%s1164_s11 + $0x20] sm:$0xff] (%p1679_p6), %v1181_v62 }
 0x15f   : > { %v1073_v39 = vadd.f32 %v1072_v35, %v1071_v28  ;;  %v1113_v42 = vrot.slane %v1112_v36, 2  ;;  %1184 = vst [vmem:[%s1164_s11 + $0x28] sm:$0xff] (%p1679_p6), %v1183_v63 }
 0x160   : > { %v1067_v43 = vrot.slane %v1066_v37, 1  ;;  %v1107_v44 = vadd.f32 %v1106_v38, %v1105_v34 }
 0x161   : > { %v1074_v45 = vrot.slane %v1073_v39, 1  ;;  %v1114_v46 = vadd.f32 %v1113_v42, %v1112_v36 }
 0x162   : > { %v1068_v47 = vadd.f32 %v1067_v43, %v1066_v37  ;;  %v1108_v48 = vrot.slane %v1107_v44, 1 }
 0x163   : > { %v1075_v49 = vadd.f32 %v1074_v45, %v1073_v39  ;;  %v1115_v51 = vrot.slane %v1114_v46, 1 }
 0x164   : > { %v1109_v52 = vadd.f32 %v1108_v48, %v1107_v44 }
 0x165   : > { %v1078_v53 = vcombine.low %v1068_v47, %v1075_v49  ;;  %v1116_v54 = vadd.f32 %v1115_v51, %v1114_v46 }
 0x167   : > { %v1085_v55 = vrot.slane %v1078_v53, %v1084_v50  ;;  %v1119_v56 = vcombine.low %v1109_v52, %v1116_v54  ;;  %1158 = sbr.rel (!%p1679_p6) target bundleno = 366 (0x16e), region = 70 }
 0x169   : > { %v1092_v57 = vrot.slane %v1085_v55, %v1084_v50  ;;  %v1126_v58 = vrot.slane %v1119_v56, %v1084_v50 }
 0x16b   : > { %1098 = vst.msk [vmem:[%s553_s30] sm:$0x3] %vm1096_vm0, %v1092_v57  ;;  %v1133_v59 = vrot.slane %v1126_v58, %v1084_v50 }
 0x16d   : > { %1135 = vst.msk [vmem:[%s562_s7] sm:$0x3] %vm1096_vm0, %v1133_v59 }
 0x16e PF: > { %s15_s19 = sadd.s32 1, %s1616_s19   ;;  %s1953_s15 = smov %s1604_s16 }
 0x16f   : > { %p12_p12 = scmp.ge.s32.totalorder %s15_s19, 4   ;;  %s1954_s16 = smov %s1684_s25 }
 0x170   : > { %s1955_s17 = smov %s1612_s18  ;;  %s1956_s18 = smov %s1958_s20 }
 0x171   :  { %14 = sbr.rel (!%p12_p12) target bundleno = 3 (0x3), region = 151 }

// kernel: _lambda_.81
= control target key start
LH: loop header
LB: loop body
LE: loop exit
PB: predicated region body
PF: predicated region fallthrough
CT: control target
= control target key end

     0   :  { %s1371_s9 = smov 0   ;;  %s1373_s10 = smov 0   ;;  %s1657_s0 = inlined_call_operand.vmem [shape: bf16[16,512], index: 0, kind: input, shape index: {}]   ;;  %s1658_s1 = inlined_call_operand.vmem [shape: bf16[512,1024], index: 1, kind: input, shape index: {}]   ;;  %s1659_s2 = inlined_call_operand.vmem [shape: f32[16,1024], index: 2, kind: output, shape index: {}]  }
   0x1   :  { %s1375_s11 = smov 0   ;;  %s1377_s12 = smov 0  }
   0x2   :  { %s1379_s13 = smov 0  }
   0x3 LB: > { %s21_s14 = sadd.s32 1, %s1350_s12  ;;  %s1084_s15 = sadd.s32 4294967295, %s1354_s13   ;;  %s1354_s13 = sphi %s1379_s13, %s12_s13   ;;  %s1350_s12 = sphi %s1377_s12, %s1664_s12   ;;  %s1346_s11 = sphi %s1375_s11, %s1663_s11   ;;  %s1342_s10 = sphi %s1373_s10, %s1662_s10   ;;  %s1338_s9 = sphi %s1371_s9, %s1661_s9  }
   0x4   : > { %p22_p0 = scmp.ge.s32.totalorder %s21_s14, 4  ;;  %p64_p1 = scmp.ne.s32.totalorder %s1342_s10, %s1338_s9 }
   0x5   : > { %p65_p2 = scmp.eq.s32.totalorder %s1354_s13, 0  ;;  %p96_p4 = scmp.eq.s32.totalorder %s1084_s15, 3 }
   0x6   : > { %s1666_s14 = smov (%p22_p0, %s21_s14), 0  ;;  %s57_s17 = sadd.s32 1, %s1342_s10 }
   0x7   : > { %p66_p3 = por %p65_p2, %p64_p1  ;;  %s54_s16 = ssub.s32 %s1350_s12, %s1666_s14 }
   0x8   : > { %p55_p5 = scmp.eq.s32.totalorder %s54_s16, 0  ;;  %p1406_p6 = por %p96_p4, %p64_p1 }
   0x9   : > { %p1088_p7 = scmp.ge.s32.totalorder %s1354_s13, 4 }
   0xa   : > { %s1411_s19 = scalar_select %p55_p5, %s1342_s10, %s57_s17  }
   0xb   : > { %128 = sbr.rel (%p1088_p7) target bundleno = 86 (0x56), region = 20 }
  0x12   : > { %131 = sbr.rel (!%p66_p3) target bundleno = 86 (0x56), region = 24  ;;  %s133_s20 = sand.u32 (%p66_p3), 1, %s1342_s10  }
  0x13   : > { %s1168_s21 = sshll.u32 (%p66_p3), %s1350_s12, 3  ;;  %s1089_s22 = sshll.u32 (%p66_p3), %s133_s20, 9 }
  0x14   : > { %s1419_s25 = scalar_lea.vmem (%p66_p3), %s1658_s1, %s1168_s21  ;;  %s1424_s26 = scalar_lea.vmem (%p66_p3), [#allocation2], %s1089_s22 }
  0x15   : > { %v292_v0 = vld [vmem:[%s1419_s25] sm:$0xff] (%p66_p3) }
  0x16   : > { %v294_v1 = vld [vmem:[%s1419_s25 + $0x20] sm:$0xff] (%p66_p3)  ;;  %293 = vst [vmem:[%s1424_s26] sm:$0xff] (%p66_p3), %v292_v0 }
  0x17   : > { %v296_v2 = vld [vmem:[%s1419_s25 + $0x40] sm:$0xff] (%p66_p3)  ;;  %295 = vst [vmem:[%s1424_s26 + $0x8] sm:$0xff] (%p66_p3), %v294_v1 }
  0x18   : > { %297 = vst [vmem:[%s1424_s26 + $0x10] sm:$0xff] (%p66_p3), %v296_v2  ;;  %v298_v3 = vld [vmem:[%s1419_s25 + $0x60] sm:$0xff] (%p66_p3) }
  0x19   : > { %v300_v4 = vld [vmem:[%s1419_s25 + $0x80] sm:$0xff]  ;;  %299 = vst [vmem:[%s1424_s26 + $0x18] sm:$0xff] %v298_v3 }
  0x1a   : > { %v302_v5 = vld [vmem:[%s1419_s25 + $0xa0] sm:$0xff]  ;;  %301 = vst [vmem:[%s1424_s26 + $0x20] sm:$0xff] %v300_v4 }
  0x1b   : > { %303 = vst [vmem:[%s1424_s26 + $0x28] sm:$0xff] %v302_v5  ;;  %v304_v6 = vld [vmem:[%s1419_s25 + $0xc0] sm:$0xff] }
  0x1c   : > { %v306_v7 = vld [vmem:[%s1419_s25 + $0xe0] sm:$0xff]  ;;  %305 = vst [vmem:[%s1424_s26 + $0x30] sm:$0xff] %v304_v6 }
  0x1d   : > { %v308_v8 = vld [vmem:[%s1419_s25 + $0x100] sm:$0xff]  ;;  %307 = vst [vmem:[%s1424_s26 + $0x38] sm:$0xff] %v306_v7 }
  0x1e   : > { %309 = vst [vmem:[%s1424_s26 + $0x40] sm:$0xff] %v308_v8  ;;  %v310_v9 = vld [vmem:[%s1419_s25 + $0x120] sm:$0xff] }
  0x1f   : > { %v312_v10 = vld [vmem:[%s1419_s25 + $0x140] sm:$0xff]  ;;  %311 = vst [vmem:[%s1424_s26 + $0x48] sm:$0xff] %v310_v9 }
  0x20   : > { %v314_v11 = vld [vmem:[%s1419_s25 + $0x160] sm:$0xff]  ;;  %313 = vst [vmem:[%s1424_s26 + $0x50] sm:$0xff] %v312_v10 }
  0x21   : > { %315 = vst [vmem:[%s1424_s26 + $0x58] sm:$0xff] %v314_v11  ;;  %v316_v12 = vld [vmem:[%s1419_s25 + $0x180] sm:$0xff] }
  0x22   : > { %v318_v13 = vld [vmem:[%s1419_s25 + $0x1a0] sm:$0xff]  ;;  %317 = vst [vmem:[%s1424_s26 + $0x60] sm:$0xff] %v316_v12 }
  0x23   : > { %v320_v14 = vld [vmem:[%s1419_s25 + $0x1c0] sm:$0xff]  ;;  %319 = vst [vmem:[%s1424_s26 + $0x68] sm:$0xff] %v318_v13 }
  0x24   : > { %321 = vst [vmem:[%s1424_s26 + $0x70] sm:$0xff] %v320_v14  ;;  %v322_v15 = vld [vmem:[%s1419_s25 + $0x1e0] sm:$0xff] }
  0x25   : > { %v324_v16 = vld [vmem:[%s1419_s25 + $0x200] sm:$0xff]  ;;  %323 = vst [vmem:[%s1424_s26 + $0x78] sm:$0xff] %v322_v15 }
  0x26   : > { %v326_v17 = vld [vmem:[%s1419_s25 + $0x220] sm:$0xff]  ;;  %325 = vst [vmem:[%s1424_s26 + $0x80] sm:$0xff] %v324_v16 }
  0x27   : > { %327 = vst [vmem:[%s1424_s26 + $0x88] sm:$0xff] %v326_v17  ;;  %v328_v18 = vld [vmem:[%s1419_s25 + $0x240] sm:$0xff] }
  0x28   : > { %v330_v19 = vld [vmem:[%s1419_s25 + $0x260] sm:$0xff]  ;;  %329 = vst [vmem:[%s1424_s26 + $0x90] sm:$0xff] %v328_v18 }
  0x29   : > { %v332_v20 = vld [vmem:[%s1419_s25 + $0x280] sm:$0xff]  ;;  %331 = vst [vmem:[%s1424_s26 + $0x98] sm:$0xff] %v330_v19 }
  0x2a   : > { %333 = vst [vmem:[%s1424_s26 + $0xa0] sm:$0xff] %v332_v20  ;;  %v334_v21 = vld [vmem:[%s1419_s25 + $0x2a0] sm:$0xff] }
  0x2b   : > { %v336_v22 = vld [vmem:[%s1419_s25 + $0x2c0] sm:$0xff]  ;;  %335 = vst [vmem:[%s1424_s26 + $0xa8] sm:$0xff] %v334_v21 }
  0x2c   : > { %v338_v23 = vld [vmem:[%s1419_s25 + $0x2e0] sm:$0xff]  ;;  %337 = vst [vmem:[%s1424_s26 + $0xb0] sm:$0xff] %v336_v22 }
  0x2d   : > { %339 = vst [vmem:[%s1424_s26 + $0xb8] sm:$0xff] %v338_v23  ;;  %v340_v24 = vld [vmem:[%s1419_s25 + $0x300] sm:$0xff] }
  0x2e   : > { %v342_v25 = vld [vmem:[%s1419_s25 + $0x320] sm:$0xff]  ;;  %341 = vst [vmem:[%s1424_s26 + $0xc0] sm:$0xff] %v340_v24 }
  0x2f   : > { %v344_v26 = vld [vmem:[%s1419_s25 + $0x340] sm:$0xff]  ;;  %343 = vst [vmem:[%s1424_s26 + $0xc8] sm:$0xff] %v342_v25 }
  0x30   : > { %345 = vst [vmem:[%s1424_s26 + $0xd0] sm:$0xff] %v344_v26  ;;  %v346_v27 = vld [vmem:[%s1419_s25 + $0x360] sm:$0xff] }
  0x31   : > { %v348_v28 = vld [vmem:[%s1419_s25 + $0x380] sm:$0xff]  ;;  %347 = vst [vmem:[%s1424_s26 + $0xd8] sm:$0xff] %v346_v27 }
  0x32   : > { %v350_v29 = vld [vmem:[%s1419_s25 + $0x3a0] sm:$0xff]  ;;  %349 = vst [vmem:[%s1424_s26 + $0xe0] sm:$0xff] %v348_v28 }
  0x33   : > { %351 = vst [vmem:[%s1424_s26 + $0xe8] sm:$0xff] %v350_v29  ;;  %v352_v30 = vld [vmem:[%s1419_s25 + $0x3c0] sm:$0xff] }
  0x34   : > { %v354_v31 = vld [vmem:[%s1419_s25 + $0x3e0] sm:$0xff]  ;;  %353 = vst [vmem:[%s1424_s26 + $0xf0] sm:$0xff] %v352_v30 }
  0x35   : > { %v356_v32 = vld [vmem:[%s1419_s25 + $0x400] sm:$0xff]  ;;  %355 = vst [vmem:[%s1424_s26 + $0xf8] sm:$0xff] %v354_v31 }
  0x36   : > { %357 = vst [vmem:[%s1424_s26 + $0x100] sm:$0xff] %v356_v32  ;;  %v358_v33 = vld [vmem:[%s1419_s25 + $0x420] sm:$0xff] }
  0x37   : > { %v360_v34 = vld [vmem:[%s1419_s25 + $0x440] sm:$0xff]  ;;  %359 = vst [vmem:[%s1424_s26 + $0x108] sm:$0xff] %v358_v33 }
  0x38   : > { %v362_v35 = vld [vmem:[%s1419_s25 + $0x460] sm:$0xff]  ;;  %361 = vst [vmem:[%s1424_s26 + $0x110] sm:$0xff] %v360_v34 }
  0x39   : > { %363 = vst [vmem:[%s1424_s26 + $0x118] sm:$0xff] %v362_v35  ;;  %v364_v36 = vld [vmem:[%s1419_s25 + $0x480] sm:$0xff] }
  0x3a   : > { %v366_v37 = vld [vmem:[%s1419_s25 + $0x4a0] sm:$0xff]  ;;  %365 = vst [vmem:[%s1424_s26 + $0x120] sm:$0xff] %v364_v36 }
  0x3b   : > { %v368_v38 = vld [vmem:[%s1419_s25 + $0x4c0] sm:$0xff]  ;;  %367 = vst [vmem:[%s1424_s26 + $0x128] sm:$0xff] %v366_v37 }
  0x3c   : > { %369 = vst [vmem:[%s1424_s26 + $0x130] sm:$0xff] %v368_v38  ;;  %v370_v39 = vld [vmem:[%s1419_s25 + $0x4e0] sm:$0xff] }
  0x3d   : > { %v372_v40 = vld [vmem:[%s1419_s25 + $0x500] sm:$0xff]  ;;  %371 = vst [vmem:[%s1424_s26 + $0x138] sm:$0xff] %v370_v39 }
  0x3e   : > { %v374_v41 = vld [vmem:[%s1419_s25 + $0x520] sm:$0xff]  ;;  %373 = vst [vmem:[%s1424_s26 + $0x140] sm:$0xff] %v372_v40 }
  0x3f   : > { %375 = vst [vmem:[%s1424_s26 + $0x148] sm:$0xff] %v374_v41  ;;  %v376_v42 = vld [vmem:[%s1419_s25 + $0x540] sm:$0xff] }
  0x40   : > { %v378_v43 = vld [vmem:[%s1419_s25 + $0x560] sm:$0xff]  ;;  %377 = vst [vmem:[%s1424_s26 + $0x150] sm:$0xff] %v376_v42 }
  0x41   : > { %v380_v44 = vld [vmem:[%s1419_s25 + $0x580] sm:$0xff]  ;;  %379 = vst [vmem:[%s1424_s26 + $0x158] sm:$0xff] %v378_v43 }
  0x42   : > { %381 = vst [vmem:[%s1424_s26 + $0x160] sm:$0xff] %v380_v44  ;;  %v382_v45 = vld [vmem:[%s1419_s25 + $0x5a0] sm:$0xff] }
  0x43   : > { %v384_v46 = vld [vmem:[%s1419_s25 + $0x5c0] sm:$0xff]  ;;  %383 = vst [vmem:[%s1424_s26 + $0x168] sm:$0xff] %v382_v45 }
  0x44   : > { %v386_v47 = vld [vmem:[%s1419_s25 + $0x5e0] sm:$0xff]  ;;  %385 = vst [vmem:[%s1424_s26 + $0x170] sm:$0xff] %v384_v46 }
  0x45   : > { %387 = vst [vmem:[%s1424_s26 + $0x178] sm:$0xff] %v386_v47  ;;  %v388_v48 = vld [vmem:[%s1419_s25 + $0x600] sm:$0xff] }
  0x46   : > { %v390_v49 = vld [vmem:[%s1419_s25 + $0x620] sm:$0xff]  ;;  %389 = vst [vmem:[%s1424_s26 + $0x180] sm:$0xff] %v388_v48 }
  0x47   : > { %v392_v50 = vld [vmem:[%s1419_s25 + $0x640] sm:$0xff]  ;;  %391 = vst [vmem:[%s1424_s26 + $0x188] sm:$0xff] %v390_v49 }
  0x48   : > { %393 = vst [vmem:[%s1424_s26 + $0x190] sm:$0xff] %v392_v50  ;;  %v394_v51 = vld [vmem:[%s1419_s25 + $0x660] sm:$0xff] }
  0x49   : > { %v396_v52 = vld [vmem:[%s1419_s25 + $0x680] sm:$0xff]  ;;  %395 = vst [vmem:[%s1424_s26 + $0x198] sm:$0xff] %v394_v51 }
  0x4a   : > { %v398_v53 = vld [vmem:[%s1419_s25 + $0x6a0] sm:$0xff]  ;;  %397 = vst [vmem:[%s1424_s26 + $0x1a0] sm:$0xff] %v396_v52 }
  0x4b   : > { %399 = vst [vmem:[%s1424_s26 + $0x1a8] sm:$0xff] %v398_v53  ;;  %v400_v54 = vld [vmem:[%s1419_s25 + $0x6c0] sm:$0xff] }
  0x4c   : > { %v402_v55 = vld [vmem:[%s1419_s25 + $0x6e0] sm:$0xff]  ;;  %401 = vst [vmem:[%s1424_s26 + $0x1b0] sm:$0xff] %v400_v54 }
  0x4d   : > { %v404_v56 = vld [vmem:[%s1419_s25 + $0x700] sm:$0xff]  ;;  %403 = vst [vmem:[%s1424_s26 + $0x1b8] sm:$0xff] %v402_v55 }
  0x4e   : > { %405 = vst [vmem:[%s1424_s26 + $0x1c0] sm:$0xff] %v404_v56  ;;  %v406_v57 = vld [vmem:[%s1419_s25 + $0x720] sm:$0xff] }
  0x4f   : > { %v408_v58 = vld [vmem:[%s1419_s25 + $0x740] sm:$0xff]  ;;  %407 = vst [vmem:[%s1424_s26 + $0x1c8] sm:$0xff] %v406_v57 }
  0x50   : > { %v410_v59 = vld [vmem:[%s1419_s25 + $0x760] sm:$0xff]  ;;  %409 = vst [vmem:[%s1424_s26 + $0x1d0] sm:$0xff] %v408_v58 }
  0x51   : > { %411 = vst [vmem:[%s1424_s26 + $0x1d8] sm:$0xff] %v410_v59  ;;  %v412_v60 = vld [vmem:[%s1419_s25 + $0x780] sm:$0xff] }
  0x52   : > { %v414_v61 = vld [vmem:[%s1419_s25 + $0x7a0] sm:$0xff]  ;;  %413 = vst [vmem:[%s1424_s26 + $0x1e0] sm:$0xff] %v412_v60 }
  0x53   : > { %v416_v62 = vld [vmem:[%s1419_s25 + $0x7c0] sm:$0xff]  ;;  %415 = vst [vmem:[%s1424_s26 + $0x1e8] sm:$0xff] %v414_v61 }
  0x54   : > { %417 = vst [vmem:[%s1424_s26 + $0x1f0] sm:$0xff] %v416_v62  ;;  %v418_v63 = vld [vmem:[%s1419_s25 + $0x7e0] sm:$0xff] }
  0x55   : > { %419 = vst [vmem:[%s1424_s26 + $0x1f8] sm:$0xff] %v418_v63 }
  0x56 PF: > { %p1092_p8 = scmp.ge.s32.totalorder %s1354_s13, 1  ;;  %p424_p9 = scmp.lt.s32.totalorder %s1354_s13, 5 }
  0x58   : > { %p425_p10 = pnand %p1092_p8, %p424_p9 }
  0x59   : > { %s431_s27 = sand.u32 (!%p425_p10), 1, %s1338_s9   ;;  %v1312_v0 = vld [vmem:[%s1657_s0 + $0x4] ss:$16 sps:$4 sm:$0xff] (!%p425_p10)   ;;  %v1315_v1 = vld [vmem:[%s1657_s0 + $0xc] ss:$16 sps:$4 sm:$0xff] (!%p425_p10)  }
  0x5a   : > { %428 = sbr.rel (%p425_p10) target bundleno = 384 (0x180), region = 62  ;;  %s1093_s28 = sshll.u32 (!%p425_p10), %s431_s27, 9  ;;  %907 = vmatprep.mubr.bf16.mxu1 (!%p425_p10), %v1312_v0  ;;  %950 = vmatprep.mubr.bf16.mxu0 (!%p425_p10), %v1315_v1 }
  0x5b   : > { %s1562_s5 = scalar_lea.vmem (!%p425_p10), [#allocation2], %s1093_s28  ;;  %s1094_s16 = sshll.u32 (!%p425_p10), %s431_s27, 5 }
  0x5c   : > { %v1214_v2 = vld [vmem:[%s1562_s5 + $0x4] ss:$8 sps:$4 sm:$0xff] (!%p425_p10)   ;;  %v1218_v4 = vld [vmem:[%s1562_s5] ss:$8 sps:$4 sm:$0xff] (!%p425_p10)   ;;  %v1220_v6 = vld [vmem:[%s1562_s5 + $0x14] ss:$8 sps:$4 sm:$0xff] (!%p425_p10)  }
  0x5d   : > { %v1216_v3 = vld [vmem:[%s1562_s5 + $0x104] ss:$8 sps:$4 sm:$0xff] (!%p425_p10)   ;;  %875 = vmatprep.subr.bf16.mxu1 (!%p425_p10), %v1214_v2  ;;  %v1219_v5 = vld [vmem:[%s1562_s5 + $0x100] ss:$8 sps:$4 sm:$0xff] (!%p425_p10)   ;;  %v1222_v7 = vld [vmem:[%s1562_s5 + $0x114] ss:$8 sps:$4 sm:$0xff] (!%p425_p10)  }
  0x5e   : > { %918 = vmatprep.subr.bf16.mxu0 (!%p425_p10), %v1216_v3  ;;  %876 = vmatpush1.bf16.msra.mxu1 (!%p425_p10), %v1218_v4  ;;  %v1224_v8 = vld [vmem:[%s1562_s5 + $0x10] ss:$8 sps:$4 sm:$0xff] (!%p425_p10)   ;;  %v1226_v10 = vld [vmem:[%s1562_s5 + $0x24] ss:$8 sps:$4 sm:$0xff] (!%p425_p10)   ;;  %v1230_v12 = vld [vmem:[%s1562_s5 + $0x20] ss:$8 sps:$4 sm:$0xff] (!%p425_p10)  }
  0x5f   : > { %919 = vmatpush1.bf16.msra.mxu0 (!%p425_p10), %v1219_v5  ;;  %877 = vmatprep.subr.bf16.mxu1 (!%p425_p10), %v1220_v6  ;;  %v1225_v9 = vld [vmem:[%s1562_s5 + $0x110] ss:$8 sps:$4 sm:$0xff] (!%p425_p10)   ;;  %v1228_v11 = vld [vmem:[%s1562_s5 + $0x124] ss:$8 sps:$4 sm:$0xff] (!%p425_p10)   ;;  %v1231_v13 = vld [vmem:[%s1562_s5 + $0x120] ss:$8 sps:$4 sm:$0xff] (!%p425_p10)  }
  0x60   : > { %920 = vmatprep.subr.bf16.mxu0 (!%p425_p10), %v1222_v7  ;;  %v1232_v14 = vld [vmem:[%s1562_s5 + $0x34] ss:$8 sps:$4 sm:$0xff] (!%p425_p10)   ;;  %v1236_v16 = vld [vmem:[%s1562_s5 + $0x30] ss:$8 sps:$4 sm:$0xff] (!%p425_p10)   ;;  %v1238_v18 = vld [vmem:[%s1562_s5 + $0x44] ss:$8 sps:$4 sm:$0xff] (!%p425_p10)  }
  0x61   : > { %v1234_v15 = vld [vmem:[%s1562_s5 + $0x134] ss:$8 sps:$4 sm:$0xff]   ;;  %v1237_v17 = vld [vmem:[%s1562_s5 + $0x130] ss:$8 sps:$4 sm:$0xff]   ;;  %v1240_v19 = vld [vmem:[%s1562_s5 + $0x144] ss:$8 sps:$4 sm:$0xff]  }
  0x62   : > { %878 = vmatpush1.bf16.msra.mxu1 %v1224_v8  ;;  %v1242_v20 = vld [vmem:[%s1562_s5 + $0x40] ss:$8 sps:$4 sm:$0xff]   ;;  %v1244_v22 = vld [vmem:[%s1562_s5 + $0x54] ss:$8 sps:$4 sm:$0xff]   ;;  %v1248_v24 = vld [vmem:[%s1562_s5 + $0x50] ss:$8 sps:$4 sm:$0xff]  }
  0x63   : > { %921 = vmatpush1.bf16.msra.mxu0 %v1225_v9  ;;  %879 = vmatprep.subr.bf16.mxu1 %v1226_v10  ;;  %v1243_v21 = vld [vmem:[%s1562_s5 + $0x140] ss:$8 sps:$4 sm:$0xff]   ;;  %v1246_v23 = vld [vmem:[%s1562_s5 + $0x154] ss:$8 sps:$4 sm:$0xff]   ;;  %v1249_v25 = vld [vmem:[%s1562_s5 + $0x150] ss:$8 sps:$4 sm:$0xff]  }
  0x64   : > { %922 = vmatprep.subr.bf16.mxu0 %v1228_v11  ;;  %v1250_v26 = vld [vmem:[%s1562_s5 + $0x64] ss:$8 sps:$4 sm:$0xff]   ;;  %v1254_v28 = vld [vmem:[%s1562_s5 + $0x60] ss:$8 sps:$4 sm:$0xff]   ;;  %v1256_v30 = vld [vmem:[%s1562_s5 + $0x74] ss:$8 sps:$4 sm:$0xff]  }
  0x65   : > { %v1252_v27 = vld [vmem:[%s1562_s5 + $0x164] ss:$8 sps:$4 sm:$0xff]   ;;  %v1255_v29 = vld [vmem:[%s1562_s5 + $0x160] ss:$8 sps:$4 sm:$0xff]   ;;  %v1258_v31 = vld [vmem:[%s1562_s5 + $0x174] ss:$8 sps:$4 sm:$0xff]  }
  0x66   : > { %880 = vmatpush1.bf16.msra.mxu1 %v1230_v12  ;;  %v1260_v32 = vld [vmem:[%s1562_s5 + $0x70] ss:$8 sps:$4 sm:$0xff]   ;;  %v1262_v34 = vld [vmem:[%s1562_s5 + $0x84] ss:$8 sps:$4 sm:$0xff]   ;;  %v1266_v36 = vld [vmem:[%s1562_s5 + $0x80] ss:$8 sps:$4 sm:$0xff]  }
  0x67   : > { %923 = vmatpush1.bf16.msra.mxu0 %v1231_v13  ;;  %881 = vmatprep.subr.bf16.mxu1 %v1232_v14  ;;  %v1261_v33 = vld [vmem:[%s1562_s5 + $0x170] ss:$8 sps:$4 sm:$0xff]   ;;  %v1264_v35 = vld [vmem:[%s1562_s5 + $0x184] ss:$8 sps:$4 sm:$0xff]   ;;  %v1267_v37 = vld [vmem:[%s1562_s5 + $0x180] ss:$8 sps:$4 sm:$0xff]  }
  0x68   : > { %924 = vmatprep.subr.bf16.mxu0 %v1234_v15  ;;  %v1268_v38 = vld [vmem:[%s1562_s5 + $0x94] ss:$8 sps:$4 sm:$0xff]   ;;  %v1272_v40 = vld [vmem:[%s1562_s5 + $0x90] ss:$8 sps:$4 sm:$0xff]   ;;  %v1274_v42 = vld [vmem:[%s1562_s5 + $0xa4] ss:$8 sps:$4 sm:$0xff]  }
  0x69   : > { %v1270_v39 = vld [vmem:[%s1562_s5 + $0x194] ss:$8 sps:$4 sm:$0xff]   ;;  %v1273_v41 = vld [vmem:[%s1562_s5 + $0x190] ss:$8 sps:$4 sm:$0xff]   ;;  %v1276_v43 = vld [vmem:[%s1562_s5 + $0x1a4] ss:$8 sps:$4 sm:$0xff]  }
  0x6a   : > { %882 = vmatpush1.bf16.msra.mxu1 %v1236_v16  ;;  %v1278_v44 = vld [vmem:[%s1562_s5 + $0xa0] ss:$8 sps:$4 sm:$0xff]   ;;  %v1280_v46 = vld [vmem:[%s1562_s5 + $0xb4] ss:$8 sps:$4 sm:$0xff]   ;;  %v1284_v48 = vld [vmem:[%s1562_s5 + $0xb0] ss:$8 sps:$4 sm:$0xff]  }
  0x6b   : > { %925 = vmatpush1.bf16.msra.mxu0 %v1237_v17  ;;  %883 = vmatprep.subr.bf16.mxu1 %v1238_v18  ;;  %v1279_v45 = vld [vmem:[%s1562_s5 + $0x1a0] ss:$8 sps:$4 sm:$0xff]   ;;  %v1282_v47 = vld [vmem:[%s1562_s5 + $0x1b4] ss:$8 sps:$4 sm:$0xff]   ;;  %v1285_v49 = vld [vmem:[%s1562_s5 + $0x1b0] ss:$8 sps:$4 sm:$0xff]  }
  0x6c   : > { %926 = vmatprep.subr.bf16.mxu0 %v1240_v19  ;;  %v1286_v50 = vld [vmem:[%s1562_s5 + $0xc4] ss:$8 sps:$4 sm:$0xff]   ;;  %v1290_v52 = vld [vmem:[%s1562_s5 + $0xc0] ss:$8 sps:$4 sm:$0xff]   ;;  %v1292_v54 = vld [vmem:[%s1562_s5 + $0xd4] ss:$8 sps:$4 sm:$0xff]  }
  0x6d   : > { %v1288_v51 = vld [vmem:[%s1562_s5 + $0x1c4] ss:$8 sps:$4 sm:$0xff]   ;;  %v1291_v53 = vld [vmem:[%s1562_s5 + $0x1c0] ss:$8 sps:$4 sm:$0xff]   ;;  %v1294_v55 = vld [vmem:[%s1562_s5 + $0x1d4] ss:$8 sps:$4 sm:$0xff]  }
  0x6e   : > { %884 = vmatpush1.bf16.msra.mxu1 %v1242_v20  ;;  %v1296_v56 = vld [vmem:[%s1562_s5 + $0xd0] ss:$8 sps:$4 sm:$0xff]   ;;  %v1298_v58 = vld [vmem:[%s1562_s5 + $0xe4] ss:$8 sps:$4 sm:$0xff]   ;;  %v1302_v60 = vld [vmem:[%s1562_s5 + $0xe0] ss:$8 sps:$4 sm:$0xff]  }
  0x6f   : > { %927 = vmatpush1.bf16.msra.mxu0 %v1243_v21  ;;  %885 = vmatprep.subr.bf16.mxu1 %v1244_v22  ;;  %v1297_v57 = vld [vmem:[%s1562_s5 + $0x1d0] ss:$8 sps:$4 sm:$0xff]   ;;  %v1300_v59 = vld [vmem:[%s1562_s5 + $0x1e4] ss:$8 sps:$4 sm:$0xff]   ;;  %v1303_v61 = vld [vmem:[%s1562_s5 + $0x1e0] ss:$8 sps:$4 sm:$0xff]  }
  0x70   : > { %928 = vmatprep.subr.bf16.mxu0 %v1246_v23  ;;  %v1304_v62 = vld [vmem:[%s1562_s5 + $0xf4] ss:$8 sps:$4 sm:$0xff]   ;;  %v1308_v0 = vld [vmem:[%s1562_s5 + $0xf0] ss:$8 sps:$4 sm:$0xff]   ;;  %s456_s17 = scalar_lea.vmem [#allocation3], %s1094_s16  ;;  %s1169_s9 = sshll.u32 (%p1406_p6), %s1346_s11, 4 }
  0x71   : > { %v1306_v63 = vld [vmem:[%s1562_s5 + $0x1f4] ss:$8 sps:$4 sm:$0xff]   ;;  %v1309_v1 = vld [vmem:[%s1562_s5 + $0x1f0] ss:$8 sps:$4 sm:$0xff]   ;;  %s977_s22 = scalar_lea.vmem (%p1406_p6), %s1659_s2, %s1169_s9 }
  0x72   : > { %886 = vmatpush1.bf16.msra.mxu1 %v1248_v24  ;;  %v1310_v2 = vld [vmem:[%s1657_s0] ss:$16 sps:$4 sm:$0xff]   ;;  %v1313_v3 = vld [vmem:[%s1657_s0 + $0x8] ss:$16 sps:$4 sm:$0xff]  }
  0x73   : > { %929 = vmatpush1.bf16.msra.mxu0 %v1249_v25  ;;  %887 = vmatprep.subr.bf16.mxu1 %v1250_v26 }
  0x74   : > { %930 = vmatprep.subr.bf16.mxu0 %v1252_v27 }
  0x76   : > { %888 = vmatpush1.bf16.msra.mxu1 %v1254_v28 }
  0x77   : > { %931 = vmatpush1.bf16.msra.mxu0 %v1255_v29  ;;  %889 = vmatprep.subr.bf16.mxu1 %v1256_v30 }
  0x78   : > { %932 = vmatprep.subr.bf16.mxu0 %v1258_v31 }
  0x7a   : > { %890 = vmatpush1.bf16.msra.mxu1 %v1260_v32 }
  0x7b   : > { %933 = vmatpush1.bf16.msra.mxu0 %v1261_v33  ;;  %891 = vmatprep.subr.bf16.mxu1 %v1262_v34 }
  0x7c   : > { %934 = vmatprep.subr.bf16.mxu0 %v1264_v35 }
  0x7e   : > { %892 = vmatpush1.bf16.msra.mxu1 %v1266_v36 }
  0x7f   : > { %935 = vmatpush1.bf16.msra.mxu0 %v1267_v37  ;;  %893 = vmatprep.subr.bf16.mxu1 %v1268_v38 }
  0x80   : > { %936 = vmatprep.subr.bf16.mxu0 %v1270_v39 }
  0x82   : > { %894 = vmatpush1.bf16.msra.mxu1 %v1272_v40 }
  0x83   : > { %937 = vmatpush1.bf16.msra.mxu0 %v1273_v41  ;;  %895 = vmatprep.subr.bf16.mxu1 %v1274_v42 }
  0x84   : > { %938 = vmatprep.subr.bf16.mxu0 %v1276_v43 }
  0x86   : > { %896 = vmatpush1.bf16.msra.mxu1 %v1278_v44 }
  0x87   : > { %939 = vmatpush1.bf16.msra.mxu0 %v1279_v45  ;;  %897 = vmatprep.subr.bf16.mxu1 %v1280_v46 }
  0x88   : > { %940 = vmatprep.subr.bf16.mxu0 %v1282_v47 }
  0x8a   : > { %898 = vmatpush1.bf16.msra.mxu1 %v1284_v48 }
  0x8b   : > { %941 = vmatpush1.bf16.msra.mxu0 %v1285_v49  ;;  %899 = vmatprep.subr.bf16.mxu1 %v1286_v50 }
  0x8c   : > { %942 = vmatprep.subr.bf16.mxu0 %v1288_v51 }
  0x8e   : > { %900 = vmatpush1.bf16.msra.mxu1 %v1290_v52 }
  0x8f   : > { %943 = vmatpush1.bf16.msra.mxu0 %v1291_v53  ;;  %901 = vmatprep.subr.bf16.mxu1 %v1292_v54 }
  0x90   : > { %944 = vmatprep.subr.bf16.mxu0 %v1294_v55 }
  0x92   : > { %902 = vmatpush1.bf16.msra.mxu1 %v1296_v56 }
  0x93   : > { %945 = vmatpush1.bf16.msra.mxu0 %v1297_v57  ;;  %903 = vmatprep.subr.bf16.mxu1 %v1298_v58 }
  0x94   : > { %946 = vmatprep.subr.bf16.mxu0 %v1300_v59 }
  0x96   : > { %904 = vmatpush1.bf16.msra.mxu1 %v1302_v60 }
  0x97   : > { %947 = vmatpush1.bf16.msra.mxu0 %v1303_v61  ;;  %905 = vmatprep.subr.bf16.mxu1 %v1304_v62 }
  0x98   : > { %948 = vmatprep.subr.bf16.mxu0 %v1306_v63 }
  0x9a   : > { %906 = vmatpush1.bf16.msra.mxu1 %v1308_v0 }
  0x9b   : > { %949 = vmatpush1.bf16.msra.mxu0 %v1309_v1 }
  0x9d   : > { %908 = vmatmul.mubr.bf16.vlgmr.msra.gmra.mrb[0].mxu1 %v1310_v2 }
  0x9e   : > { %951 = vmatmul.mubr.bf16.vlgmr.msra.gmra.mrb[0].mxu0 %v1313_v3 }
 0x170   : > { %v909_v4 = vpop.f32.mrb[0].mxu1 }
 0x171   : > { %v952_v5 = vpop.f32.mrb[0].mxu0  ;;  %v911_v7 = vpop.f32.mrb[1].mxu1  ;;  %971 = sbr.rel (!%p1406_p6) target bundleno = 384 (0x180), region = 70 }
 0x172   : > { %v953_v6 = vadd.f32 %v952_v5, %v909_v4  ;;  %v954_v8 = vpop.f32.mrb[1].mxu0  ;;  %v913_v10 = vpop.f32.mrb[2].mxu1 }
 0x173   : > { %v955_v9 = vadd.f32 %v954_v8, %v911_v7  ;;  %v956_v11 = vpop.f32.mrb[2].mxu0  ;;  %v915_v13 = vpop.f32.mrb[3].mxu1 }
 0x174   : > { %961 = vst [vmem:[%s456_s17] sm:$0xff] %v953_v6  ;;  %v957_v12 = vadd.f32 %v956_v11, %v913_v10  ;;  %v958_v14 = vpop.f32.mrb[3].mxu0 }
 0x175   : > { %962 = vst [vmem:[%s456_s17 + $0x8] sm:$0xff] %v955_v9  ;;  %v959_v15 = vadd.f32 %v958_v14, %v915_v13 }
 0x176   : > { %963 = vst [vmem:[%s456_s17 + $0x10] sm:$0xff] %v957_v12 }
 0x177   : > { %964 = vst [vmem:[%s456_s17 + $0x18] sm:$0xff] %v959_v15 }
 0x17b   : > { %v990_v16 = vld [vmem:[%s456_s17] sm:$0xff] }
 0x17c   : > { %v992_v17 = vld [vmem:[%s456_s17 + $0x8] sm:$0xff]  ;;  %991 = vst [vmem:[%s977_s22] sm:$0xff] %v990_v16 }
 0x17d   : > { %v994_v18 = vld [vmem:[%s456_s17 + $0x10] sm:$0xff]  ;;  %993 = vst [vmem:[%s977_s22 + $0x8] sm:$0xff] %v992_v17 }
 0x17e   : > { %v996_v19 = vld [vmem:[%s456_s17 + $0x18] sm:$0xff]  ;;  %995 = vst [vmem:[%s977_s22 + $0x40] sm:$0xff] %v994_v18 }
 0x17f   : > { %997 = vst [vmem:[%s977_s22 + $0x48] sm:$0xff] %v996_v19 }
 0x180 PF: > { %s12_s13 = sadd.s32 1, %s1354_s13   ;;  %s1661_s9 = smov %s1342_s10 }
 0x181   : > { %p9_p11 = scmp.ge.s32.totalorder %s12_s13, 6   ;;  %s1662_s10 = smov %s1411_s19 }
 0x182   : > { %s1663_s11 = smov %s1350_s12  ;;  %s1664_s12 = smov %s1666_s14 }
 0x183   :  { %11 = sbr.rel (!%p9_p11) target bundleno = 3 (0x3), region = 127 }

</bundles_post_ra>
